<compile_context>
chip_gen: v7x
topology: tpu7x:2x2x1
jax: 0.10.0
libtpu: 0.0.40
codegen_flags: <defaults>
</compile_context>

<pallas_src>
import functools
import math

import jax
import jax.numpy as jnp
from jax import lax
from jax.experimental import pallas as pl
from jax.experimental.pallas import tpu as pltpu


# ---------------------------------------------------------------------------
# Kernel 1: conv3x3(SAME) + ReLU + masked global-avg-pool + FC, fused.
#   x_ref:    (tf, C, Hp*Wp)  zero-padded NCHW frames, bf16  (lane dim dense)
#   cw_ref:   (9, conv_ch, C) per-tap conv weights, bf16
#   cb_ref:   (conv_ch, 1)    conv bias (column), f32
#   mask_ref: (1, Q)          1/(H*W) on valid pixel columns, 0 elsewhere, f32
#   fw_ref:   (conv_ch, 128)  FC weight, cols zero-padded past cnn_fdim, f32
#   fb_ref:   (1, 128)        FC bias, zero-padded, f32
#   o_ref:    (tf, 128)       per-frame features (lane-dense store), f32
# ---------------------------------------------------------------------------
def _cnn_pool_fc_kernel(x_ref, cw_ref, cb_ref, mask_ref, fw_ref, fb_ref,
                        o_ref, *, wp):
    tf = x_ref.shape[0]
    n_f = cw_ref.shape[1]
    q = mask_ref.shape[-1]

    mask = mask_ref[...]                      # (1, q), pool scale folded in
    cb = cb_ref[...]                          # (n_f, 1)

    pooled_cols = []
    for f in range(tf):                       # tf is small and static
        xf = x_ref[f]                         # (C, Hp*Wp) bf16
        acc = jnp.zeros((n_f, q), jnp.float32)
        # 3x3 window built from 9 static lane-offset slices of the padded
        # plane (no HBM im2col); each tap is a small MXU dot, f32 accumulate.
        for dh in range(3):
            for dw in range(3):
                off = dh * wp + dw
                win = xf[:, off:off + q]                    # (C, q) bf16
                wt = cw_ref[dh * 3 + dw]                    # (n_f, C) bf16
                acc += jnp.dot(wt, win,
                               preferred_element_type=jnp.float32)
        # ReLU + masked average pool (mask removes the 2 pad columns per row
        # and folds the 1/(H*W) scale); all elementwise in f32 (v5e-safe).
        y = jnp.maximum(acc + cb, 0.0) * mask
        pooled_cols.append(jnp.sum(y, axis=1, keepdims=True))  # (n_f, 1)

    pooled = jnp.concatenate(pooled_cols, axis=1)               # (n_f, tf)
    # FC: (tf, n_f) @ (n_f, 128); tiny transpose of an (n_f, tf) block.
    feat = jnp.dot(pooled.T, fw_ref[...],
                   preferred_element_type=jnp.float32)
    o_ref[...] = (feat + fb_ref[...]).astype(o_ref.dtype)


# ---------------------------------------------------------------------------
# Kernel 2: bidirectional LSTM + MLP('leaky') + Linear, fused.
#   seq_ref: (T, ts, 128)   per-frame features (cols >= cnn_fdim are zero)
#   wi_ref:  (128, 8*hp)    input weights, both directions, gate-padded, bf16
#   bi_ref:  (1, 8*hp)      folded biases (b_ih + b_hh), both directions, f32
#   wh_ref:  (2*hp, 8*hp)   block-diagonal recurrent weights [whf 0; 0 whb]
#   w1_ref:  (2*hp, M1)     MLP layer 1, fwd rows [0:hh], bwd rows [hp:hp+hh]
#   w2_ref:  (M1, M2p) / w3_ref: (M2p, 128)   lane-padded, bf16
#   o_ref:   (T, ts, 128)   lane-dense padded logits (real cols [0:out_dim])
# ---------------------------------------------------------------------------
def _bilstm_mlp_kernel(seq_ref, wi_ref, bi_ref, wh_ref,
                       w1_ref, b1_ref, w2_ref, b2_ref, w3_ref, b3_ref,
                       o_ref, xp_ref, of_ref, ob_ref):
    t_len, s_len, i_dim = seq_ref.shape
    hp = wh_ref.shape[0] // 2
    g4 = 4 * hp

    # ---- input projections of both directions, one bf16 matmul, bias folded
    x2d = seq_ref[...].reshape(t_len * s_len, i_dim).astype(jnp.bfloat16)
    proj = (jnp.dot(x2d, wi_ref[...], preferred_element_type=jnp.float32)
            + bi_ref[...])
    xp_ref[...] = proj.reshape(t_len, s_len, 2 * g4)

    wh = wh_ref[...]                           # (2*hp, 8*hp) block-diagonal

    def cell(g, c):
        # PyTorch gate order i, f, g, o; each gate is a whole 128-lane block.
        # Padded lanes of h/c start at 0 and stay 0 (zero-padded weights/bias).
        i_g = jax.nn.sigmoid(g[:, 0 * hp:1 * hp])
        f_g = jax.nn.sigmoid(g[:, 1 * hp:2 * hp])
        g_g = jnp.tanh(g[:, 2 * hp:3 * hp])
        o_g = jax.nn.sigmoid(g[:, 3 * hp:4 * hp])
        c_new = f_g * c + i_g * g_g
        return o_g * jnp.tanh(c_new), c_new

    # ---- interleaved fwd/bwd recurrence; ONE fused recurrent matmul per step
    def body(t, carry):
        h_cat, c_f, c_b = carry
        tb = t_len - 1 - t
        gates = jnp.dot(h_cat.astype(jnp.bfloat16), wh,
                        preferred_element_type=jnp.float32)    # (S, 8*hp)
        gf = gates[:, :g4] + xp_ref[t][:, :g4]
        gb = gates[:, g4:] + xp_ref[tb][:, g4:]
        hf, c_f = cell(gf, c_f)
        hb, c_b = cell(gb, c_b)
        of_ref[pl.ds(t, 1)] = hf.reshape(1, s_len, hp)
        ob_ref[pl.ds(tb, 1)] = hb.reshape(1, s_len, hp)
        return jnp.concatenate([hf, hb], axis=-1), c_f, c_b

    zeros_h = jnp.zeros((s_len, hp), jnp.float32)
    lax.fori_loop(0, t_len, body,
                  (jnp.zeros((s_len, 2 * hp), jnp.float32), zeros_h, zeros_h),
                  unroll=(t_len if t_len <= 8 else 4))   # bounded unroll

    # ---- MLP head (leaky) + final linear, single fused matmul per layer ----
    def leaky(v):
        return jnp.where(v > 0, v, 0.01 * v)

    feat = jnp.concatenate([of_ref[...], ob_ref[...]], axis=-1)
    feat = feat.reshape(t_len * s_len, 2 * hp).astype(jnp.bfloat16)
    h1 = leaky(jnp.dot(feat, w1_ref[...],
                       preferred_element_type=jnp.float32) + b1_ref[...])
    h2 = leaky(jnp.dot(h1.astype(jnp.bfloat16), w2_ref[...],
                       preferred_element_type=jnp.float32) + b2_ref[...])
    out = (jnp.dot(h2.astype(jnp.bfloat16), w3_ref[...],
                   preferred_element_type=jnp.float32) + b3_ref[...])
    o_ref[...] = out.reshape(t_len, s_len, -1).astype(o_ref.dtype)


# ---------------------------------------------------------------------------
# Spec / tiling helpers
# ---------------------------------------------------------------------------
def _full_spec(shape):
    nd = len(shape)
    return pl.BlockSpec(shape, lambda *_a, _nd=nd: (0,) * _nd)


def _choose_tile(total, target, multiple):
    """Largest divisor of `total` that is a multiple of `multiple` and <= target.
    Falls back to `total` (the full dim is always a legal block size)."""
    cands = [d for d in range(multiple, min(total, target) + 1, multiple)
             if total % d == 0]
    return cands[-1] if cands else total


def _round_up(x, m):
    return ((x + m - 1) // m) * m


# ---------------------------------------------------------------------------
# Weight padding (layout plumbing; zero padding, math unchanged)
# ---------------------------------------------------------------------------
def _pad_gate_cols(w, h, hp):
    # (rows, 4h) -> (rows, 4hp): each gate block padded to hp lanes with zeros
    blocks = [jnp.pad(w[:, g * h:(g + 1) * h], ((0, 0), (0, hp - h)))
              for g in range(4)]
    return jnp.concatenate(blocks, axis=1)


def _pad_rows(w, rows_new):
    return jnp.pad(w, ((0, rows_new - w.shape[0]), (0, 0)))


def _pad_cols(w, cols_new):
    return jnp.pad(w, ((0, 0), (0, cols_new - w.shape[1])))


# ---------------------------------------------------------------------------
# Parameters (deterministic, synthetic)
# ---------------------------------------------------------------------------
def init_params(key, *, in_ch, conv_ch, cnn_fdim, v_hdim, mlp_dim, out_dim):
    h = v_hdim // 2
    ks = jax.random.split(key, 20)

    def u(k, shape, fan_in):
        bound = 1.0 / math.sqrt(fan_in)
        return jax.random.uniform(k, shape, jnp.float32, -bound, bound)

    p = {}
    # CNN stand-in
    p["conv_w"] = u(ks[0], (conv_ch, in_ch, 3, 3), in_ch * 9)
    p["conv_b"] = u(ks[1], (conv_ch, 1), in_ch * 9)
    p["fc_w"] = u(ks[2], (conv_ch, cnn_fdim), conv_ch)
    p["fc_b"] = u(ks[3], (1, cnn_fdim), conv_ch)
    # bidirectional LSTM (weights stored transposed for x @ W)
    p["wif"] = u(ks[4], (cnn_fdim, 4 * h), h)
    p["whf"] = u(ks[5], (h, 4 * h), h)
    p["bf"] = u(ks[6], (1, 4 * h), h)
    p["wib"] = u(ks[7], (cnn_fdim, 4 * h), h)
    p["whb"] = u(ks[8], (h, 4 * h), h)
    p["bb"] = u(ks[9], (1, 4 * h), h)
    # MLP + final linear
    p["w1"] = u(ks[10], (v_hdim, mlp_dim[0]), v_hdim)
    p["b1"] = u(ks[11], (1, mlp_dim[0]), v_hdim)
    p["w2"] = u(ks[12], (mlp_dim[0], mlp_dim[1]), mlp_dim[0])
    p["b2"] = u(ks[13], (1, mlp_dim[1]), mlp_dim[0])
    p["w3"] = u(ks[14], (mlp_dim[1], out_dim), mlp_dim[1])
    p["b3"] = u(ks[15], (1, out_dim), mlp_dim[1])
    return p


# ---------------------------------------------------------------------------
# Forward pass (mirrors Baseline_seq.forward)
# ---------------------------------------------------------------------------
def baseline_seq_forward(params, inputs, *, camera_num, cnn_fdim, v_hdim):
    # inputs: (B, camera_num, fr_num, C, H, W)
    b, cam, fr = inputs.shape[0], inputs.shape[1], inputs.shape[2]
    c_in, hgt, wid = inputs.shape[3], inputs.shape[4], inputs.shape[5]
    assert cam == camera_num
    assert v_hdim % 2 == 0

    # ------------------------------------------------------------------ CNN
    x = inputs.reshape(-1, c_in, hgt, wid)            # (N, C, H, W)
    n_frames = x.shape[0]
    hp_sp, wp_sp = hgt + 2, wid + 2                   # padded spatial
    pp = hp_sp * wp_sp
    q = (hgt - 1) * wp_sp + wid                       # conv output columns

    # Only pad + flatten + bf16 cast in HBM (no im2col, no transpose).
    xpad = jnp.pad(x, ((0, 0), (0, 0), (1, 1), (1, 1)))
    xpad = xpad.reshape(n_frames, c_in, pp).astype(jnp.bfloat16)

    conv_ch = params["conv_w"].shape[0]
    cnn_pad = _round_up(cnn_fdim, 128)                # lane-dense features
    cw = jnp.transpose(params["conv_w"], (2, 3, 0, 1))        # (3,3,F,C)
    cw = cw.reshape(9, conv_ch, c_in).astype(jnp.bfloat16)
    cb = params["conv_b"].astype(jnp.float32)                 # (F, 1)
    fw_p = _pad_cols(params["fc_w"], cnn_pad)                 # (F, 128)
    fb_p = _pad_cols(params["fc_b"], cnn_pad)                 # (1, 128)

    # valid-pixel mask with the 1/(H*W) pooling scale folded in
    lane = jnp.arange(q, dtype=jnp.int32)
    mask = ((lane % wp_sp) < wid).astype(jnp.float32) / float(hgt * wid)
    mask = mask.reshape(1, q)

    # whole frames stay resident in VMEM; tile only over frames.
    tf = _choose_tile(n_frames, 8, 8)

    local_feat = pl.pallas_call(
        functools.partial(_cnn_pool_fc_kernel, wp=wp_sp),
        out_shape=jax.ShapeDtypeStruct((n_frames, cnn_pad), jnp.float32),
        grid=(n_frames // tf,),
        in_specs=[
            pl.BlockSpec((tf, c_in, pp), lambda i: (i, 0, 0)),
            _full_spec(cw.shape),
            _full_spec(cb.shape),
            _full_spec(mask.shape),
            _full_spec(fw_p.shape),
            _full_spec(fb_p.shape),
        ],
        out_specs=pl.BlockSpec((tf, cnn_pad), lambda i: (i, 0)),
        compiler_params=pltpu.CompilerParams(
            dimension_semantics=("parallel",),
            vmem_limit_bytes=32 * 1024 * 1024),
    )(xpad, cw, cb, mask, fw_p, fb_p)

    # -------------------------------------------- fused BiLSTM + MLP + Linear
    seq_batch = b * cam
    hh = v_hdim // 2
    hp = max(128, _round_up(hh, 128))                 # padded per-gate width
    mlp0 = params["w1"].shape[1]
    mlp1 = params["w2"].shape[1]
    mlp0_pad = _round_up(mlp0, 128)
    mlp1_pad = _round_up(mlp1, 128)
    out_dim = params["w3"].shape[1]
    out_pad = _round_up(out_dim, 128)

    # (S, T, I) -> (T, S, I): tiny relayout of the feature tensor only.
    seq_in = local_feat.reshape(seq_batch, fr, cnn_pad).transpose(1, 0, 2)

    # pack / pad weights (zeros only; padded h/c lanes stay exactly 0)
    wi_f = _pad_gate_cols(params["wif"], hh, hp)
    wi_b = _pad_gate_cols(params["wib"], hh, hp)
    wi_both = _pad_rows(jnp.concatenate([wi_f, wi_b], axis=1),
                        cnn_pad).astype(jnp.bfloat16)          # (128, 8hp)
    bi_both = jnp.concatenate([_pad_gate_cols(params["bf"], hh, hp),
                               _pad_gate_cols(params["bb"], hh, hp)], axis=1)

    whf_p = _pad_rows(_pad_gate_cols(params["whf"], hh, hp), hp)
    whb_p = _pad_rows(_pad_gate_cols(params["whb"], hh, hp), hp)
    wh_bd = jnp.zeros((2 * hp, 8 * hp), jnp.float32)
    wh_bd = wh_bd.at[:hp, :4 * hp].set(whf_p)
    wh_bd = wh_bd.at[hp:, 4 * hp:].set(whb_p)
    wh_bd = wh_bd.astype(jnp.bfloat16)                          # block-diag

    w1_pk = jnp.zeros((2 * hp, mlp0_pad), jnp.float32)
    w1_pk = w1_pk.at[:hh, :mlp0].set(params["w1"][:hh])
    w1_pk = w1_pk.at[hp:hp + hh, :mlp0].set(params["w1"][hh:])
    w1_pk = w1_pk.astype(jnp.bfloat16)
    b1_p = _pad_cols(params["b1"], mlp0_pad)
    w2_p = _pad_rows(_pad_cols(params["w2"], mlp1_pad), mlp0_pad)
    w2_p = w2_p.astype(jnp.bfloat16)
    b2_p = _pad_cols(params["b2"], mlp1_pad)
    w3_p = _pad_rows(_pad_cols(params["w3"], out_pad), mlp1_pad)
    w3_p = w3_p.astype(jnp.bfloat16)
    b3_p = _pad_cols(params["b3"], out_pad)

    # tile the independent sequences: parallel on v7x megacore and keeps the
    # per-step scratch (xp/of/ob ~ 10*hp*4 B per (t, s)) inside VMEM budgets.
    ts = _choose_tile(seq_batch, 256, 8)

    args = (seq_in, wi_both, bi_both, wh_bd,
            w1_pk, b1_p, w2_p, b2_p, w3_p, b3_p)
    in_specs = ([pl.BlockSpec((fr, ts, cnn_pad), lambda si: (0, si, 0))]
                + [_full_spec(a.shape) for a in args[1:]])

    logits_p = pl.pallas_call(
        _bilstm_mlp_kernel,
        out_shape=jax.ShapeDtypeStruct((fr, seq_batch, out_pad), jnp.float32),
        grid=(seq_batch // ts,),
        in_specs=in_specs,
        out_specs=pl.BlockSpec((fr, ts, out_pad), lambda si: (0, si, 0)),
        scratch_shapes=[
            pltpu.VMEM((fr, ts, 8 * hp), jnp.float32),   # both x-projections
            pltpu.VMEM((fr, ts, hp), jnp.float32),       # forward outputs
            pltpu.VMEM((fr, ts, hp), jnp.float32),       # backward outputs
        ],
        compiler_params=pltpu.CompilerParams(
            dimension_semantics=("parallel",),
            vmem_limit_bytes=48 * 1024 * 1024),
    )(*args)

    # rows are (t, s)-ordered; drop lane padding, reorder to (s, t)
    logits = logits_p[:, :, :out_dim].transpose(1, 0, 2)
    return logits.reshape(-1, camera_num, fr, out_dim)


# ---------------------------------------------------------------------------
if __name__ == "__main__":
    # Small, module-consistent shapes.
    B, CAMERA_NUM, FR_NUM = 2, 3, 4
    FRAME_SHAPE = (3, 16, 16)          # (C, H, W), NCHW frames
    CONV_CH = 8
    CNN_FDIM = 32
    V_HDIM = 32                        # LSTM hidden = 16 per direction
    MLP_DIM = (128, 64)
    OUT_DIM = 2                        # forward reshapes to (..., 2)

    key = jax.random.PRNGKey(0)
    k_in, k_par = jax.random.split(key)

    inputs = jax.random.normal(
        k_in, (B, CAMERA_NUM, FR_NUM) + FRAME_SHAPE, dtype=jnp.float32)

    params = init_params(k_par, in_ch=FRAME_SHAPE[0], conv_ch=CONV_CH,
                         cnn_fdim=CNN_FDIM, v_hdim=V_HDIM, mlp_dim=MLP_DIM,
                         out_dim=OUT_DIM)

    fwd = jax.jit(functools.partial(baseline_seq_forward,
                                    camera_num=CAMERA_NUM,
                                    cnn_fdim=CNN_FDIM, v_hdim=V_HDIM))
    logits = jax.block_until_ready(fwd(params, inputs))

    assert logits.shape == (B, CAMERA_NUM, FR_NUM, 2), logits.shape
    assert bool(jnp.all(jnp.isfinite(logits)))
    print("KERNEL_OK")
</pallas_src>

<mosaic_0001>
module attributes {stable_mosaic.version = 11 : i64} {
  func.func @_cnn_pool_fc_kernel(%arg0: i32, %arg1: memref<8x3x324xbf16, #tpu.memory_space<vmem>>, %arg2: memref<9x8x3xbf16, #tpu.memory_space<vmem>>, %arg3: memref<8x1xf32, #tpu.memory_space<vmem>>, %arg4: memref<1x286xf32, #tpu.memory_space<vmem>>, %arg5: memref<8x128xf32, #tpu.memory_space<vmem>>, %arg6: memref<1x128xf32, #tpu.memory_space<vmem>>, %arg7: memref<8x128xf32, #tpu.memory_space<vmem>>) attributes {dimension_semantics = [#tpu.dimension_semantics<parallel>], iteration_bounds = array<i64: 3>, scalar_prefetch = 0 : i64, scratch_operands = 0 : i64, tpu.core_type = #tpu.core_type<tc>, window_params = [{transform_indices = @transform_0, window_bounds = array<i64: 8, 3, 324>}, {pipeline_mode = #tpu.pipeline_mode<synchronous>, transform_indices = @transform_1, window_bounds = array<i64: 9, 8, 3>}, {pipeline_mode = #tpu.pipeline_mode<synchronous>, transform_indices = @transform_2, window_bounds = array<i64: 8, 1>}, {pipeline_mode = #tpu.pipeline_mode<synchronous>, transform_indices = @transform_3, window_bounds = array<i64: 1, 286>}, {pipeline_mode = #tpu.pipeline_mode<synchronous>, transform_indices = @transform_4, window_bounds = array<i64: 8, 128>}, {pipeline_mode = #tpu.pipeline_mode<synchronous>, transform_indices = @transform_5, window_bounds = array<i64: 1, 128>}, {transform_indices = @transform_6, window_bounds = array<i64: 8, 128>}]} {
    %c0 = arith.constant 0 : index
    %c0_0 = arith.constant 0 : index
    %0 = vector.load %arg4[%c0, %c0_0] : memref<1x286xf32, #tpu.memory_space<vmem>>, vector<1x286xf32>
    %c0_1 = arith.constant 0 : index
    %c0_2 = arith.constant 0 : index
    %1 = vector.load %arg3[%c0_1, %c0_2] : memref<8x1xf32, #tpu.memory_space<vmem>>, vector<8x1xf32>
    %c0_3 = arith.constant 0 : index
    %c0_4 = arith.constant 0 : index
    %c0_5 = arith.constant 0 : index
    %2 = vector.load %arg1[%c0_3, %c0_4, %c0_5] : memref<8x3x324xbf16, #tpu.memory_space<vmem>>, vector<1x3x324xbf16>
    %3 = vector.shape_cast %2 : vector<1x3x324xbf16> to vector<3x324xbf16>
    %cst = arith.constant 0.000000e+00 : f32
    %4 = vector.broadcast %cst : f32 to vector<8x286xf32>
    %5 = vector.extract_strided_slice %3 {offsets = [0, 0], sizes = [3, 286], strides = [1, 1]} : vector<3x324xbf16> to vector<3x286xbf16>
    %c0_6 = arith.constant 0 : index
    %c0_7 = arith.constant 0 : index
    %c0_8 = arith.constant 0 : index
    %6 = vector.load %arg2[%c0_6, %c0_7, %c0_8] : memref<9x8x3xbf16, #tpu.memory_space<vmem>>, vector<1x8x3xbf16>
    %7 = vector.shape_cast %6 : vector<1x8x3xbf16> to vector<8x3xbf16>
    %cst_9 = arith.constant dense<0.000000e+00> : vector<8x286xf32>
    %8 = tpu.matmul %7, %5, %cst_9 {dimension_numbers = #tpu.dot_dimension_numbers<[1], [0], [0], [1], [0, 0, 1, 1], [], []>} : vector<8x3xbf16>, vector<3x286xbf16>, vector<8x286xf32> -> vector<8x286xf32>
    %9 = arith.addf %4, %8 : vector<8x286xf32>
    %10 = vector.extract_strided_slice %3 {offsets = [0, 1], sizes = [3, 286], strides = [1, 1]} : vector<3x324xbf16> to vector<3x286xbf16>
    %c1 = arith.constant 1 : index
    %c0_10 = arith.constant 0 : index
    %c0_11 = arith.constant 0 : index
    %11 = vector.load %arg2[%c1, %c0_10, %c0_11] : memref<9x8x3xbf16, #tpu.memory_space<vmem>>, vector<1x8x3xbf16>
    %12 = vector.shape_cast %11 : vector<1x8x3xbf16> to vector<8x3xbf16>
    %cst_12 = arith.constant dense<0.000000e+00> : vector<8x286xf32>
    %13 = tpu.matmul %12, %10, %cst_12 {dimension_numbers = #tpu.dot_dimension_numbers<[1], [0], [0], [1], [0, 0, 1, 1], [], []>} : vector<8x3xbf16>, vector<3x286xbf16>, vector<8x286xf32> -> vector<8x286xf32>
    %14 = arith.addf %9, %13 : vector<8x286xf32>
    %15 = vector.extract_strided_slice %3 {offsets = [0, 2], sizes = [3, 286], strides = [1, 1]} : vector<3x324xbf16> to vector<3x286xbf16>
    %c2 = arith.constant 2 : index
    %c0_13 = arith.constant 0 : index
    %c0_14 = arith.constant 0 : index
    %16 = vector.load %arg2[%c2, %c0_13, %c0_14] : memref<9x8x3xbf16, #tpu.memory_space<vmem>>, vector<1x8x3xbf16>
    %17 = vector.shape_cast %16 : vector<1x8x3xbf16> to vector<8x3xbf16>
    %cst_15 = arith.constant dense<0.000000e+00> : vector<8x286xf32>
    %18 = tpu.matmul %17, %15, %cst_15 {dimension_numbers = #tpu.dot_dimension_numbers<[1], [0], [0], [1], [0, 0, 1, 1], [], []>} : vector<8x3xbf16>, vector<3x286xbf16>, vector<8x286xf32> -> vector<8x286xf32>
    %19 = arith.addf %14, %18 : vector<8x286xf32>
    %20 = vector.extract_strided_slice %3 {offsets = [0, 18], sizes = [3, 286], strides = [1, 1]} : vector<3x324xbf16> to vector<3x286xbf16>
    %c3 = arith.constant 3 : index
    %c0_16 = arith.constant 0 : index
    %c0_17 = arith.constant 0 : index
    %21 = vector.load %arg2[%c3, %c0_16, %c0_17] : memref<9x8x3xbf16, #tpu.memory_space<vmem>>, vector<1x8x3xbf16>
    %22 = vector.shape_cast %21 : vector<1x8x3xbf16> to vector<8x3xbf16>
    %cst_18 = arith.constant dense<0.000000e+00> : vector<8x286xf32>
    %23 = tpu.matmul %22, %20, %cst_18 {dimension_numbers = #tpu.dot_dimension_numbers<[1], [0], [0], [1], [0, 0, 1, 1], [], []>} : vector<8x3xbf16>, vector<3x286xbf16>, vector<8x286xf32> -> vector<8x286xf32>
    %24 = arith.addf %19, %23 : vector<8x286xf32>
    %25 = vector.extract_strided_slice %3 {offsets = [0, 19], sizes = [3, 286], strides = [1, 1]} : vector<3x324xbf16> to vector<3x286xbf16>
    %c4 = arith.constant 4 : index
    %c0_19 = arith.constant 0 : index
    %c0_20 = arith.constant 0 : index
    %26 = vector.load %arg2[%c4, %c0_19, %c0_20] : memref<9x8x3xbf16, #tpu.memory_space<vmem>>, vector<1x8x3xbf16>
    %27 = vector.shape_cast %26 : vector<1x8x3xbf16> to vector<8x3xbf16>
    %cst_21 = arith.constant dense<0.000000e+00> : vector<8x286xf32>
    %28 = tpu.matmul %27, %25, %cst_21 {dimension_numbers = #tpu.dot_dimension_numbers<[1], [0], [0], [1], [0, 0, 1, 1], [], []>} : vector<8x3xbf16>, vector<3x286xbf16>, vector<8x286xf32> -> vector<8x286xf32>
    %29 = arith.addf %24, %28 : vector<8x286xf32>
    %30 = vector.extract_strided_slice %3 {offsets = [0, 20], sizes = [3, 286], strides = [1, 1]} : vector<3x324xbf16> to vector<3x286xbf16>
    %c5 = arith.constant 5 : index
    %c0_22 = arith.constant 0 : index
    %c0_23 = arith.constant 0 : index
    %31 = vector.load %arg2[%c5, %c0_22, %c0_23] : memref<9x8x3xbf16, #tpu.memory_space<vmem>>, vector<1x8x3xbf16>
    %32 = vector.shape_cast %31 : vector<1x8x3xbf16> to vector<8x3xbf16>
    %cst_24 = arith.constant dense<0.000000e+00> : vector<8x286xf32>
    %33 = tpu.matmul %32, %30, %cst_24 {dimension_numbers = #tpu.dot_dimension_numbers<[1], [0], [0], [1], [0, 0, 1, 1], [], []>} : vector<8x3xbf16>, vector<3x286xbf16>, vector<8x286xf32> -> vector<8x286xf32>
    %34 = arith.addf %29, %33 : vector<8x286xf32>
    %35 = vector.extract_strided_slice %3 {offsets = [0, 36], sizes = [3, 286], strides = [1, 1]} : vector<3x324xbf16> to vector<3x286xbf16>
    %c6 = arith.constant 6 : index
    %c0_25 = arith.constant 0 : index
    %c0_26 = arith.constant 0 : index
    %36 = vector.load %arg2[%c6, %c0_25, %c0_26] : memref<9x8x3xbf16, #tpu.memory_space<vmem>>, vector<1x8x3xbf16>
    %37 = vector.shape_cast %36 : vector<1x8x3xbf16> to vector<8x3xbf16>
    %cst_27 = arith.constant dense<0.000000e+00> : vector<8x286xf32>
    %38 = tpu.matmul %37, %35, %cst_27 {dimension_numbers = #tpu.dot_dimension_numbers<[1], [0], [0], [1], [0, 0, 1, 1], [], []>} : vector<8x3xbf16>, vector<3x286xbf16>, vector<8x286xf32> -> vector<8x286xf32>
    %39 = arith.addf %34, %38 : vector<8x286xf32>
    %40 = vector.extract_strided_slice %3 {offsets = [0, 37], sizes = [3, 286], strides = [1, 1]} : vector<3x324xbf16> to vector<3x286xbf16>
    %c7 = arith.constant 7 : index
    %c0_28 = arith.constant 0 : index
    %c0_29 = arith.constant 0 : index
    %41 = vector.load %arg2[%c7, %c0_28, %c0_29] : memref<9x8x3xbf16, #tpu.memory_space<vmem>>, vector<1x8x3xbf16>
    %42 = vector.shape_cast %41 : vector<1x8x3xbf16> to vector<8x3xbf16>
    %cst_30 = arith.constant dense<0.000000e+00> : vector<8x286xf32>
    %43 = tpu.matmul %42, %40, %cst_30 {dimension_numbers = #tpu.dot_dimension_numbers<[1], [0], [0], [1], [0, 0, 1, 1], [], []>} : vector<8x3xbf16>, vector<3x286xbf16>, vector<8x286xf32> -> vector<8x286xf32>
    %44 = arith.addf %39, %43 : vector<8x286xf32>
    %45 = vector.extract_strided_slice %3 {offsets = [0, 38], sizes = [3, 286], strides = [1, 1]} : vector<3x324xbf16> to vector<3x286xbf16>
    %c8 = arith.constant 8 : index
    %c0_31 = arith.constant 0 : index
    %c0_32 = arith.constant 0 : index
    %46 = vector.load %arg2[%c8, %c0_31, %c0_32] : memref<9x8x3xbf16, #tpu.memory_space<vmem>>, vector<1x8x3xbf16>
    %47 = vector.shape_cast %46 : vector<1x8x3xbf16> to vector<8x3xbf16>
    %cst_33 = arith.constant dense<0.000000e+00> : vector<8x286xf32>
    %48 = tpu.matmul %47, %45, %cst_33 {dimension_numbers = #tpu.dot_dimension_numbers<[1], [0], [0], [1], [0, 0, 1, 1], [], []>} : vector<8x3xbf16>, vector<3x286xbf16>, vector<8x286xf32> -> vector<8x286xf32>
    %49 = arith.addf %44, %48 : vector<8x286xf32>
    %50 = vector.broadcast %1 : vector<8x1xf32> to vector<8x286xf32>
    %51 = arith.addf %49, %50 : vector<8x286xf32>
    %cst_34 = arith.constant 0.000000e+00 : f32
    %52 = vector.broadcast %cst_34 : f32 to vector<8x286xf32>
    %53 = arith.maximumf %51, %52 : vector<8x286xf32>
    %54 = vector.broadcast %0 : vector<1x286xf32> to vector<8x286xf32>
    %55 = arith.mulf %53, %54 : vector<8x286xf32>
    %cst_35 = arith.constant dense<0.000000e+00> : vector<8xf32>
    %56 = vector.multi_reduction <add>, %55, %cst_35 [1] : vector<8x286xf32> to vector<8xf32>
    %57 = vector.shape_cast %56 : vector<8xf32> to vector<8x1xf32>
    %c1_36 = arith.constant 1 : index
    %c0_37 = arith.constant 0 : index
    %c0_38 = arith.constant 0 : index
    %58 = vector.load %arg1[%c1_36, %c0_37, %c0_38] : memref<8x3x324xbf16, #tpu.memory_space<vmem>>, vector<1x3x324xbf16>
    %59 = vector.shape_cast %58 : vector<1x3x324xbf16> to vector<3x324xbf16>
    %cst_39 = arith.constant 0.000000e+00 : f32
    %60 = vector.broadcast %cst_39 : f32 to vector<8x286xf32>
    %61 = vector.extract_strided_slice %59 {offsets = [0, 0], sizes = [3, 286], strides = [1, 1]} : vector<3x324xbf16> to vector<3x286xbf16>
    %c0_40 = arith.constant 0 : index
    %c0_41 = arith.constant 0 : index
    %c0_42 = arith.constant 0 : index
    %62 = vector.load %arg2[%c0_40, %c0_41, %c0_42] : memref<9x8x3xbf16, #tpu.memory_space<vmem>>, vector<1x8x3xbf16>
    %63 = vector.shape_cast %62 : vector<1x8x3xbf16> to vector<8x3xbf16>
    %cst_43 = arith.constant dense<0.000000e+00> : vector<8x286xf32>
    %64 = tpu.matmul %63, %61, %cst_43 {dimension_numbers = #tpu.dot_dimension_numbers<[1], [0], [0], [1], [0, 0, 1, 1], [], []>} : vector<8x3xbf16>, vector<3x286xbf16>, vector<8x286xf32> -> vector<8x286xf32>
    %65 = arith.addf %60, %64 : vector<8x286xf32>
    %66 = vector.extract_strided_slice %59 {offsets = [0, 1], sizes = [3, 286], strides = [1, 1]} : vector<3x324xbf16> to vector<3x286xbf16>
    %c1_44 = arith.constant 1 : index
    %c0_45 = arith.constant 0 : index
    %c0_46 = arith.constant 0 : index
    %67 = vector.load %arg2[%c1_44, %c0_45, %c0_46] : memref<9x8x3xbf16, #tpu.memory_space<vmem>>, vector<1x8x3xbf16>
    %68 = vector.shape_cast %67 : vector<1x8x3xbf16> to vector<8x3xbf16>
    %cst_47 = arith.constant dense<0.000000e+00> : vector<8x286xf32>
    %69 = tpu.matmul %68, %66, %cst_47 {dimension_numbers = #tpu.dot_dimension_numbers<[1], [0], [0], [1], [0, 0, 1, 1], [], []>} : vector<8x3xbf16>, vector<3x286xbf16>, vector<8x286xf32> -> vector<8x286xf32>
    %70 = arith.addf %65, %69 : vector<8x286xf32>
    %71 = vector.extract_strided_slice %59 {offsets = [0, 2], sizes = [3, 286], strides = [1, 1]} : vector<3x324xbf16> to vector<3x286xbf16>
    %c2_48 = arith.constant 2 : index
    %c0_49 = arith.constant 0 : index
    %c0_50 = arith.constant 0 : index
    %72 = vector.load %arg2[%c2_48, %c0_49, %c0_50] : memref<9x8x3xbf16, #tpu.memory_space<vmem>>, vector<1x8x3xbf16>
    %73 = vector.shape_cast %72 : vector<1x8x3xbf16> to vector<8x3xbf16>
    %cst_51 = arith.constant dense<0.000000e+00> : vector<8x286xf32>
    %74 = tpu.matmul %73, %71, %cst_51 {dimension_numbers = #tpu.dot_dimension_numbers<[1], [0], [0], [1], [0, 0, 1, 1], [], []>} : vector<8x3xbf16>, vector<3x286xbf16>, vector<8x286xf32> -> vector<8x286xf32>
    %75 = arith.addf %70, %74 : vector<8x286xf32>
    %76 = vector.extract_strided_slice %59 {offsets = [0, 18], sizes = [3, 286], strides = [1, 1]} : vector<3x324xbf16> to vector<3x286xbf16>
    %c3_52 = arith.constant 3 : index
    %c0_53 = arith.constant 0 : index
    %c0_54 = arith.constant 0 : index
    %77 = vector.load %arg2[%c3_52, %c0_53, %c0_54] : memref<9x8x3xbf16, #tpu.memory_space<vmem>>, vector<1x8x3xbf16>
    %78 = vector.shape_cast %77 : vector<1x8x3xbf16> to vector<8x3xbf16>
    %cst_55 = arith.constant dense<0.000000e+00> : vector<8x286xf32>
    %79 = tpu.matmul %78, %76, %cst_55 {dimension_numbers = #tpu.dot_dimension_numbers<[1], [0], [0], [1], [0, 0, 1, 1], [], []>} : vector<8x3xbf16>, vector<3x286xbf16>, vector<8x286xf32> -> vector<8x286xf32>
    %80 = arith.addf %75, %79 : vector<8x286xf32>
    %81 = vector.extract_strided_slice %59 {offsets = [0, 19], sizes = [3, 286], strides = [1, 1]} : vector<3x324xbf16> to vector<3x286xbf16>
    %c4_56 = arith.constant 4 : index
    %c0_57 = arith.constant 0 : index
    %c0_58 = arith.constant 0 : index
    %82 = vector.load %arg2[%c4_56, %c0_57, %c0_58] : memref<9x8x3xbf16, #tpu.memory_space<vmem>>, vector<1x8x3xbf16>
    %83 = vector.shape_cast %82 : vector<1x8x3xbf16> to vector<8x3xbf16>
    %cst_59 = arith.constant dense<0.000000e+00> : vector<8x286xf32>
    %84 = tpu.matmul %83, %81, %cst_59 {dimension_numbers = #tpu.dot_dimension_numbers<[1], [0], [0], [1], [0, 0, 1, 1], [], []>} : vector<8x3xbf16>, vector<3x286xbf16>, vector<8x286xf32> -> vector<8x286xf32>
    %85 = arith.addf %80, %84 : vector<8x286xf32>
    %86 = vector.extract_strided_slice %59 {offsets = [0, 20], sizes = [3, 286], strides = [1, 1]} : vector<3x324xbf16> to vector<3x286xbf16>
    %c5_60 = arith.constant 5 : index
    %c0_61 = arith.constant 0 : index
    %c0_62 = arith.constant 0 : index
    %87 = vector.load %arg2[%c5_60, %c0_61, %c0_62] : memref<9x8x3xbf16, #tpu.memory_space<vmem>>, vector<1x8x3xbf16>
    %88 = vector.shape_cast %87 : vector<1x8x3xbf16> to vector<8x3xbf16>
    %cst_63 = arith.constant dense<0.000000e+00> : vector<8x286xf32>
    %89 = tpu.matmul %88, %86, %cst_63 {dimension_numbers = #tpu.dot_dimension_numbers<[1], [0], [0], [1], [0, 0, 1, 1], [], []>} : vector<8x3xbf16>, vector<3x286xbf16>, vector<8x286xf32> -> vector<8x286xf32>
    %90 = arith.addf %85, %89 : vector<8x286xf32>
    %91 = vector.extract_strided_slice %59 {offsets = [0, 36], sizes = [3, 286], strides = [1, 1]} : vector<3x324xbf16> to vector<3x286xbf16>
    %c6_64 = arith.constant 6 : index
    %c0_65 = arith.constant 0 : index
    %c0_66 = arith.constant 0 : index
    %92 = vector.load %arg2[%c6_64, %c0_65, %c0_66] : memref<9x8x3xbf16, #tpu.memory_space<vmem>>, vector<1x8x3xbf16>
    %93 = vector.shape_cast %92 : vector<1x8x3xbf16> to vector<8x3xbf16>
    %cst_67 = arith.constant dense<0.000000e+00> : vector<8x286xf32>
    %94 = tpu.matmul %93, %91, %cst_67 {dimension_numbers = #tpu.dot_dimension_numbers<[1], [0], [0], [1], [0, 0, 1, 1], [], []>} : vector<8x3xbf16>, vector<3x286xbf16>, vector<8x286xf32> -> vector<8x286xf32>
    %95 = arith.addf %90, %94 : vector<8x286xf32>
    %96 = vector.extract_strided_slice %59 {offsets = [0, 37], sizes = [3, 286], strides = [1, 1]} : vector<3x324xbf16> to vector<3x286xbf16>
    %c7_68 = arith.constant 7 : index
    %c0_69 = arith.constant 0 : index
    %c0_70 = arith.constant 0 : index
    %97 = vector.load %arg2[%c7_68, %c0_69, %c0_70] : memref<9x8x3xbf16, #tpu.memory_space<vmem>>, vector<1x8x3xbf16>
    %98 = vector.shape_cast %97 : vector<1x8x3xbf16> to vector<8x3xbf16>
    %cst_71 = arith.constant dense<0.000000e+00> : vector<8x286xf32>
    %99 = tpu.matmul %98, %96, %cst_71 {dimension_numbers = #tpu.dot_dimension_numbers<[1], [0], [0], [1], [0, 0, 1, 1], [], []>} : vector<8x3xbf16>, vector<3x286xbf16>, vector<8x286xf32> -> vector<8x286xf32>
    %100 = arith.addf %95, %99 : vector<8x286xf32>
    %101 = vector.extract_strided_slice %59 {offsets = [0, 38], sizes = [3, 286], strides = [1, 1]} : vector<3x324xbf16> to vector<3x286xbf16>
    %c8_72 = arith.constant 8 : index
    %c0_73 = arith.constant 0 : index
    %c0_74 = arith.constant 0 : index
    %102 = vector.load %arg2[%c8_72, %c0_73, %c0_74] : memref<9x8x3xbf16, #tpu.memory_space<vmem>>, vector<1x8x3xbf16>
    %103 = vector.shape_cast %102 : vector<1x8x3xbf16> to vector<8x3xbf16>
    %cst_75 = arith.constant dense<0.000000e+00> : vector<8x286xf32>
    %104 = tpu.matmul %103, %101, %cst_75 {dimension_numbers = #tpu.dot_dimension_numbers<[1], [0], [0], [1], [0, 0, 1, 1], [], []>} : vector<8x3xbf16>, vector<3x286xbf16>, vector<8x286xf32> -> vector<8x286xf32>
    %105 = arith.addf %100, %104 : vector<8x286xf32>
    %106 = vector.broadcast %1 : vector<8x1xf32> to vector<8x286xf32>
    %107 = arith.addf %105, %106 : vector<8x286xf32>
    %cst_76 = arith.constant 0.000000e+00 : f32
    %108 = vector.broadcast %cst_76 : f32 to vector<8x286xf32>
    %109 = arith.maximumf %107, %108 : vector<8x286xf32>
    %110 = vector.broadcast %0 : vector<1x286xf32> to vector<8x286xf32>
    %111 = arith.mulf %109, %110 : vector<8x286xf32>
    %cst_77 = arith.constant dense<0.000000e+00> : vector<8xf32>
    %112 = vector.multi_reduction <add>, %111, %cst_77 [1] : vector<8x286xf32> to vector<8xf32>
    %113 = vector.shape_cast %112 : vector<8xf32> to vector<8x1xf32>
    %c2_78 = arith.constant 2 : index
    %c0_79 = arith.constant 0 : index
    %c0_80 = arith.constant 0 : index
    %114 = vector.load %arg1[%c2_78, %c0_79, %c0_80] : memref<8x3x324xbf16, #tpu.memory_space<vmem>>, vector<1x3x324xbf16>
    %115 = vector.shape_cast %114 : vector<1x3x324xbf16> to vector<3x324xbf16>
    %cst_81 = arith.constant 0.000000e+00 : f32
    %116 = vector.broadcast %cst_81 : f32 to vector<8x286xf32>
    %117 = vector.extract_strided_slice %115 {offsets = [0, 0], sizes = [3, 286], strides = [1, 1]} : vector<3x324xbf16> to vector<3x286xbf16>
    %c0_82 = arith.constant 0 : index
    %c0_83 = arith.constant 0 : index
    %c0_84 = arith.constant 0 : index
    %118 = vector.load %arg2[%c0_82, %c0_83, %c0_84] : memref<9x8x3xbf16, #tpu.memory_space<vmem>>, vector<1x8x3xbf16>
    %119 = vector.shape_cast %118 : vector<1x8x3xbf16> to vector<8x3xbf16>
    %cst_85 = arith.constant dense<0.000000e+00> : vector<8x286xf32>
    %120 = tpu.matmul %119, %117, %cst_85 {dimension_numbers = #tpu.dot_dimension_numbers<[1], [0], [0], [1], [0, 0, 1, 1], [], []>} : vector<8x3xbf16>, vector<3x286xbf16>, vector<8x286xf32> -> vector<8x286xf32>
    %121 = arith.addf %116, %120 : vector<8x286xf32>
    %122 = vector.extract_strided_slice %115 {offsets = [0, 1], sizes = [3, 286], strides = [1, 1]} : vector<3x324xbf16> to vector<3x286xbf16>
    %c1_86 = arith.constant 1 : index
    %c0_87 = arith.constant 0 : index
    %c0_88 = arith.constant 0 : index
    %123 = vector.load %arg2[%c1_86, %c0_87, %c0_88] : memref<9x8x3xbf16, #tpu.memory_space<vmem>>, vector<1x8x3xbf16>
    %124 = vector.shape_cast %123 : vector<1x8x3xbf16> to vector<8x3xbf16>
    %cst_89 = arith.constant dense<0.000000e+00> : vector<8x286xf32>
    %125 = tpu.matmul %124, %122, %cst_89 {dimension_numbers = #tpu.dot_dimension_numbers<[1], [0], [0], [1], [0, 0, 1, 1], [], []>} : vector<8x3xbf16>, vector<3x286xbf16>, vector<8x286xf32> -> vector<8x286xf32>
    %126 = arith.addf %121, %125 : vector<8x286xf32>
    %127 = vector.extract_strided_slice %115 {offsets = [0, 2], sizes = [3, 286], strides = [1, 1]} : vector<3x324xbf16> to vector<3x286xbf16>
    %c2_90 = arith.constant 2 : index
    %c0_91 = arith.constant 0 : index
    %c0_92 = arith.constant 0 : index
    %128 = vector.load %arg2[%c2_90, %c0_91, %c0_92] : memref<9x8x3xbf16, #tpu.memory_space<vmem>>, vector<1x8x3xbf16>
    %129 = vector.shape_cast %128 : vector<1x8x3xbf16> to vector<8x3xbf16>
    %cst_93 = arith.constant dense<0.000000e+00> : vector<8x286xf32>
    %130 = tpu.matmul %129, %127, %cst_93 {dimension_numbers = #tpu.dot_dimension_numbers<[1], [0], [0], [1], [0, 0, 1, 1], [], []>} : vector<8x3xbf16>, vector<3x286xbf16>, vector<8x286xf32> -> vector<8x286xf32>
    %131 = arith.addf %126, %130 : vector<8x286xf32>
    %132 = vector.extract_strided_slice %115 {offsets = [0, 18], sizes = [3, 286], strides = [1, 1]} : vector<3x324xbf16> to vector<3x286xbf16>
    %c3_94 = arith.constant 3 : index
    %c0_95 = arith.constant 0 : index
    %c0_96 = arith.constant 0 : index
    %133 = vector.load %arg2[%c3_94, %c0_95, %c0_96] : memref<9x8x3xbf16, #tpu.memory_space<vmem>>, vector<1x8x3xbf16>
    %134 = vector.shape_cast %133 : vector<1x8x3xbf16> to vector<8x3xbf16>
    %cst_97 = arith.constant dense<0.000000e+00> : vector<8x286xf32>
    %135 = tpu.matmul %134, %132, %cst_97 {dimension_numbers = #tpu.dot_dimension_numbers<[1], [0], [0], [1], [0, 0, 1, 1], [], []>} : vector<8x3xbf16>, vector<3x286xbf16>, vector<8x286xf32> -> vector<8x286xf32>
    %136 = arith.addf %131, %135 : vector<8x286xf32>
    %137 = vector.extract_strided_slice %115 {offsets = [0, 19], sizes = [3, 286], strides = [1, 1]} : vector<3x324xbf16> to vector<3x286xbf16>
    %c4_98 = arith.constant 4 : index
    %c0_99 = arith.constant 0 : index
    %c0_100 = arith.constant 0 : index
    %138 = vector.load %arg2[%c4_98, %c0_99, %c0_100] : memref<9x8x3xbf16, #tpu.memory_space<vmem>>, vector<1x8x3xbf16>
    %139 = vector.shape_cast %138 : vector<1x8x3xbf16> to vector<8x3xbf16>
    %cst_101 = arith.constant dense<0.000000e+00> : vector<8x286xf32>
    %140 = tpu.matmul %139, %137, %cst_101 {dimension_numbers = #tpu.dot_dimension_numbers<[1], [0], [0], [1], [0, 0, 1, 1], [], []>} : vector<8x3xbf16>, vector<3x286xbf16>, vector<8x286xf32> -> vector<8x286xf32>
    %141 = arith.addf %136, %140 : vector<8x286xf32>
    %142 = vector.extract_strided_slice %115 {offsets = [0, 20], sizes = [3, 286], strides = [1, 1]} : vector<3x324xbf16> to vector<3x286xbf16>
    %c5_102 = arith.constant 5 : index
    %c0_103 = arith.constant 0 : index
    %c0_104 = arith.constant 0 : index
    %143 = vector.load %arg2[%c5_102, %c0_103, %c0_104] : memref<9x8x3xbf16, #tpu.memory_space<vmem>>, vector<1x8x3xbf16>
    %144 = vector.shape_cast %143 : vector<1x8x3xbf16> to vector<8x3xbf16>
    %cst_105 = arith.constant dense<0.000000e+00> : vector<8x286xf32>
    %145 = tpu.matmul %144, %142, %cst_105 {dimension_numbers = #tpu.dot_dimension_numbers<[1], [0], [0], [1], [0, 0, 1, 1], [], []>} : vector<8x3xbf16>, vector<3x286xbf16>, vector<8x286xf32> -> vector<8x286xf32>
    %146 = arith.addf %141, %145 : vector<8x286xf32>
    %147 = vector.extract_strided_slice %115 {offsets = [0, 36], sizes = [3, 286], strides = [1, 1]} : vector<3x324xbf16> to vector<3x286xbf16>
    %c6_106 = arith.constant 6 : index
    %c0_107 = arith.constant 0 : index
    %c0_108 = arith.constant 0 : index
    %148 = vector.load %arg2[%c6_106, %c0_107, %c0_108] : memref<9x8x3xbf16, #tpu.memory_space<vmem>>, vector<1x8x3xbf16>
    %149 = vector.shape_cast %148 : vector<1x8x3xbf16> to vector<8x3xbf16>
    %cst_109 = arith.constant dense<0.000000e+00> : vector<8x286xf32>
    %150 = tpu.matmul %149, %147, %cst_109 {dimension_numbers = #tpu.dot_dimension_numbers<[1], [0], [0], [1], [0, 0, 1, 1], [], []>} : vector<8x3xbf16>, vector<3x286xbf16>, vector<8x286xf32> -> vector<8x286xf32>
    %151 = arith.addf %146, %150 : vector<8x286xf32>
    %152 = vector.extract_strided_slice %115 {offsets = [0, 37], sizes = [3, 286], strides = [1, 1]} : vector<3x324xbf16> to vector<3x286xbf16>
    %c7_110 = arith.constant 7 : index
    %c0_111 = arith.constant 0 : index
    %c0_112 = arith.constant 0 : index
    %153 = vector.load %arg2[%c7_110, %c0_111, %c0_112] : memref<9x8x3xbf16, #tpu.memory_space<vmem>>, vector<1x8x3xbf16>
    %154 = vector.shape_cast %153 : vector<1x8x3xbf16> to vector<8x3xbf16>
    %cst_113 = arith.constant dense<0.000000e+00> : vector<8x286xf32>
    %155 = tpu.matmul %154, %152, %cst_113 {dimension_numbers = #tpu.dot_dimension_numbers<[1], [0], [0], [1], [0, 0, 1, 1], [], []>} : vector<8x3xbf16>, vector<3x286xbf16>, vector<8x286xf32> -> vector<8x286xf32>
    %156 = arith.addf %151, %155 : vector<8x286xf32>
    %157 = vector.extract_strided_slice %115 {offsets = [0, 38], sizes = [3, 286], strides = [1, 1]} : vector<3x324xbf16> to vector<3x286xbf16>
    %c8_114 = arith.constant 8 : index
    %c0_115 = arith.constant 0 : index
    %c0_116 = arith.constant 0 : index
    %158 = vector.load %arg2[%c8_114, %c0_115, %c0_116] : memref<9x8x3xbf16, #tpu.memory_space<vmem>>, vector<1x8x3xbf16>
    %159 = vector.shape_cast %158 : vector<1x8x3xbf16> to vector<8x3xbf16>
    %cst_117 = arith.constant dense<0.000000e+00> : vector<8x286xf32>
    %160 = tpu.matmul %159, %157, %cst_117 {dimension_numbers = #tpu.dot_dimension_numbers<[1], [0], [0], [1], [0, 0, 1, 1], [], []>} : vector<8x3xbf16>, vector<3x286xbf16>, vector<8x286xf32> -> vector<8x286xf32>
    %161 = arith.addf %156, %160 : vector<8x286xf32>
    %162 = vector.broadcast %1 : vector<8x1xf32> to vector<8x286xf32>
    %163 = arith.addf %161, %162 : vector<8x286xf32>
    %cst_118 = arith.constant 0.000000e+00 : f32
    %164 = vector.broadcast %cst_118 : f32 to vector<8x286xf32>
    %165 = arith.maximumf %163, %164 : vector<8x286xf32>
    %166 = vector.broadcast %0 : vector<1x286xf32> to vector<8x286xf32>
    %167 = arith.mulf %165, %166 : vector<8x286xf32>
    %cst_119 = arith.constant dense<0.000000e+00> : vector<8xf32>
    %168 = vector.multi_reduction <add>, %167, %cst_119 [1] : vector<8x286xf32> to vector<8xf32>
    %169 = vector.shape_cast %168 : vector<8xf32> to vector<8x1xf32>
    %c3_120 = arith.constant 3 : index
    %c0_121 = arith.constant 0 : index
    %c0_122 = arith.constant 0 : index
    %170 = vector.load %arg1[%c3_120, %c0_121, %c0_122] : memref<8x3x324xbf16, #tpu.memory_space<vmem>>, vector<1x3x324xbf16>
    %171 = vector.shape_cast %170 : vector<1x3x324xbf16> to vector<3x324xbf16>
    %cst_123 = arith.constant 0.000000e+00 : f32
    %172 = vector.broadcast %cst_123 : f32 to vector<8x286xf32>
    %173 = vector.extract_strided_slice %171 {offsets = [0, 0], sizes = [3, 286], strides = [1, 1]} : vector<3x324xbf16> to vector<3x286xbf16>
    %c0_124 = arith.constant 0 : index
    %c0_125 = arith.constant 0 : index
    %c0_126 = arith.constant 0 : index
    %174 = vector.load %arg2[%c0_124, %c0_125, %c0_126] : memref<9x8x3xbf16, #tpu.memory_space<vmem>>, vector<1x8x3xbf16>
    %175 = vector.shape_cast %174 : vector<1x8x3xbf16> to vector<8x3xbf16>
    %cst_127 = arith.constant dense<0.000000e+00> : vector<8x286xf32>
    %176 = tpu.matmul %175, %173, %cst_127 {dimension_numbers = #tpu.dot_dimension_numbers<[1], [0], [0], [1], [0, 0, 1, 1], [], []>} : vector<8x3xbf16>, vector<3x286xbf16>, vector<8x286xf32> -> vector<8x286xf32>
    %177 = arith.addf %172, %176 : vector<8x286xf32>
    %178 = vector.extract_strided_slice %171 {offsets = [0, 1], sizes = [3, 286], strides = [1, 1]} : vector<3x324xbf16> to vector<3x286xbf16>
    %c1_128 = arith.constant 1 : index
    %c0_129 = arith.constant 0 : index
    %c0_130 = arith.constant 0 : index
    %179 = vector.load %arg2[%c1_128, %c0_129, %c0_130] : memref<9x8x3xbf16, #tpu.memory_space<vmem>>, vector<1x8x3xbf16>
    %180 = vector.shape_cast %179 : vector<1x8x3xbf16> to vector<8x3xbf16>
    %cst_131 = arith.constant dense<0.000000e+00> : vector<8x286xf32>
    %181 = tpu.matmul %180, %178, %cst_131 {dimension_numbers = #tpu.dot_dimension_numbers<[1], [0], [0], [1], [0, 0, 1, 1], [], []>} : vector<8x3xbf16>, vector<3x286xbf16>, vector<8x286xf32> -> vector<8x286xf32>
    %182 = arith.addf %177, %181 : vector<8x286xf32>
    %183 = vector.extract_strided_slice %171 {offsets = [0, 2], sizes = [3, 286], strides = [1, 1]} : vector<3x324xbf16> to vector<3x286xbf16>
    %c2_132 = arith.constant 2 : index
    %c0_133 = arith.constant 0 : index
    %c0_134 = arith.constant 0 : index
    %184 = vector.load %arg2[%c2_132, %c0_133, %c0_134] : memref<9x8x3xbf16, #tpu.memory_space<vmem>>, vector<1x8x3xbf16>
    %185 = vector.shape_cast %184 : vector<1x8x3xbf16> to vector<8x3xbf16>
    %cst_135 = arith.constant dense<0.000000e+00> : vector<8x286xf32>
    %186 = tpu.matmul %185, %183, %cst_135 {dimension_numbers = #tpu.dot_dimension_numbers<[1], [0], [0], [1], [0, 0, 1, 1], [], []>} : vector<8x3xbf16>, vector<3x286xbf16>, vector<8x286xf32> -> vector<8x286xf32>
    %187 = arith.addf %182, %186 : vector<8x286xf32>
    %188 = vector.extract_strided_slice %171 {offsets = [0, 18], sizes = [3, 286], strides = [1, 1]} : vector<3x324xbf16> to vector<3x286xbf16>
    %c3_136 = arith.constant 3 : index
    %c0_137 = arith.constant 0 : index
    %c0_138 = arith.constant 0 : index
    %189 = vector.load %arg2[%c3_136, %c0_137, %c0_138] : memref<9x8x3xbf16, #tpu.memory_space<vmem>>, vector<1x8x3xbf16>
    %190 = vector.shape_cast %189 : vector<1x8x3xbf16> to vector<8x3xbf16>
    %cst_139 = arith.constant dense<0.000000e+00> : vector<8x286xf32>
    %191 = tpu.matmul %190, %188, %cst_139 {dimension_numbers = #tpu.dot_dimension_numbers<[1], [0], [0], [1], [0, 0, 1, 1], [], []>} : vector<8x3xbf16>, vector<3x286xbf16>, vector<8x286xf32> -> vector<8x286xf32>
    %192 = arith.addf %187, %191 : vector<8x286xf32>
    %193 = vector.extract_strided_slice %171 {offsets = [0, 19], sizes = [3, 286], strides = [1, 1]} : vector<3x324xbf16> to vector<3x286xbf16>
    %c4_140 = arith.constant 4 : index
    %c0_141 = arith.constant 0 : index
    %c0_142 = arith.constant 0 : index
    %194 = vector.load %arg2[%c4_140, %c0_141, %c0_142] : memref<9x8x3xbf16, #tpu.memory_space<vmem>>, vector<1x8x3xbf16>
    %195 = vector.shape_cast %194 : vector<1x8x3xbf16> to vector<8x3xbf16>
    %cst_143 = arith.constant dense<0.000000e+00> : vector<8x286xf32>
    %196 = tpu.matmul %195, %193, %cst_143 {dimension_numbers = #tpu.dot_dimension_numbers<[1], [0], [0], [1], [0, 0, 1, 1], [], []>} : vector<8x3xbf16>, vector<3x286xbf16>, vector<8x286xf32> -> vector<8x286xf32>
    %197 = arith.addf %192, %196 : vector<8x286xf32>
    %198 = vector.extract_strided_slice %171 {offsets = [0, 20], sizes = [3, 286], strides = [1, 1]} : vector<3x324xbf16> to vector<3x286xbf16>
    %c5_144 = arith.constant 5 : index
    %c0_145 = arith.constant 0 : index
    %c0_146 = arith.constant 0 : index
    %199 = vector.load %arg2[%c5_144, %c0_145, %c0_146] : memref<9x8x3xbf16, #tpu.memory_space<vmem>>, vector<1x8x3xbf16>
    %200 = vector.shape_cast %199 : vector<1x8x3xbf16> to vector<8x3xbf16>
    %cst_147 = arith.constant dense<0.000000e+00> : vector<8x286xf32>
    %201 = tpu.matmul %200, %198, %cst_147 {dimension_numbers = #tpu.dot_dimension_numbers<[1], [0], [0], [1], [0, 0, 1, 1], [], []>} : vector<8x3xbf16>, vector<3x286xbf16>, vector<8x286xf32> -> vector<8x286xf32>
    %202 = arith.addf %197, %201 : vector<8x286xf32>
    %203 = vector.extract_strided_slice %171 {offsets = [0, 36], sizes = [3, 286], strides = [1, 1]} : vector<3x324xbf16> to vector<3x286xbf16>
    %c6_148 = arith.constant 6 : index
    %c0_149 = arith.constant 0 : index
    %c0_150 = arith.constant 0 : index
    %204 = vector.load %arg2[%c6_148, %c0_149, %c0_150] : memref<9x8x3xbf16, #tpu.memory_space<vmem>>, vector<1x8x3xbf16>
    %205 = vector.shape_cast %204 : vector<1x8x3xbf16> to vector<8x3xbf16>
    %cst_151 = arith.constant dense<0.000000e+00> : vector<8x286xf32>
    %206 = tpu.matmul %205, %203, %cst_151 {dimension_numbers = #tpu.dot_dimension_numbers<[1], [0], [0], [1], [0, 0, 1, 1], [], []>} : vector<8x3xbf16>, vector<3x286xbf16>, vector<8x286xf32> -> vector<8x286xf32>
    %207 = arith.addf %202, %206 : vector<8x286xf32>
    %208 = vector.extract_strided_slice %171 {offsets = [0, 37], sizes = [3, 286], strides = [1, 1]} : vector<3x324xbf16> to vector<3x286xbf16>
    %c7_152 = arith.constant 7 : index
    %c0_153 = arith.constant 0 : index
    %c0_154 = arith.constant 0 : index
    %209 = vector.load %arg2[%c7_152, %c0_153, %c0_154] : memref<9x8x3xbf16, #tpu.memory_space<vmem>>, vector<1x8x3xbf16>
    %210 = vector.shape_cast %209 : vector<1x8x3xbf16> to vector<8x3xbf16>
    %cst_155 = arith.constant dense<0.000000e+00> : vector<8x286xf32>
    %211 = tpu.matmul %210, %208, %cst_155 {dimension_numbers = #tpu.dot_dimension_numbers<[1], [0], [0], [1], [0, 0, 1, 1], [], []>} : vector<8x3xbf16>, vector<3x286xbf16>, vector<8x286xf32> -> vector<8x286xf32>
    %212 = arith.addf %207, %211 : vector<8x286xf32>
    %213 = vector.extract_strided_slice %171 {offsets = [0, 38], sizes = [3, 286], strides = [1, 1]} : vector<3x324xbf16> to vector<3x286xbf16>
    %c8_156 = arith.constant 8 : index
    %c0_157 = arith.constant 0 : index
    %c0_158 = arith.constant 0 : index
    %214 = vector.load %arg2[%c8_156, %c0_157, %c0_158] : memref<9x8x3xbf16, #tpu.memory_space<vmem>>, vector<1x8x3xbf16>
    %215 = vector.shape_cast %214 : vector<1x8x3xbf16> to vector<8x3xbf16>
    %cst_159 = arith.constant dense<0.000000e+00> : vector<8x286xf32>
    %216 = tpu.matmul %215, %213, %cst_159 {dimension_numbers = #tpu.dot_dimension_numbers<[1], [0], [0], [1], [0, 0, 1, 1], [], []>} : vector<8x3xbf16>, vector<3x286xbf16>, vector<8x286xf32> -> vector<8x286xf32>
    %217 = arith.addf %212, %216 : vector<8x286xf32>
    %218 = vector.broadcast %1 : vector<8x1xf32> to vector<8x286xf32>
    %219 = arith.addf %217, %218 : vector<8x286xf32>
    %cst_160 = arith.constant 0.000000e+00 : f32
    %220 = vector.broadcast %cst_160 : f32 to vector<8x286xf32>
    %221 = arith.maximumf %219, %220 : vector<8x286xf32>
    %222 = vector.broadcast %0 : vector<1x286xf32> to vector<8x286xf32>
    %223 = arith.mulf %221, %222 : vector<8x286xf32>
    %cst_161 = arith.constant dense<0.000000e+00> : vector<8xf32>
    %224 = vector.multi_reduction <add>, %223, %cst_161 [1] : vector<8x286xf32> to vector<8xf32>
    %225 = vector.shape_cast %224 : vector<8xf32> to vector<8x1xf32>
    %c4_162 = arith.constant 4 : index
    %c0_163 = arith.constant 0 : index
    %c0_164 = arith.constant 0 : index
    %226 = vector.load %arg1[%c4_162, %c0_163, %c0_164] : memref<8x3x324xbf16, #tpu.memory_space<vmem>>, vector<1x3x324xbf16>
    %227 = vector.shape_cast %226 : vector<1x3x324xbf16> to vector<3x324xbf16>
    %cst_165 = arith.constant 0.000000e+00 : f32
    %228 = vector.broadcast %cst_165 : f32 to vector<8x286xf32>
    %229 = vector.extract_strided_slice %227 {offsets = [0, 0], sizes = [3, 286], strides = [1, 1]} : vector<3x324xbf16> to vector<3x286xbf16>
    %c0_166 = arith.constant 0 : index
    %c0_167 = arith.constant 0 : index
    %c0_168 = arith.constant 0 : index
    %230 = vector.load %arg2[%c0_166, %c0_167, %c0_168] : memref<9x8x3xbf16, #tpu.memory_space<vmem>>, vector<1x8x3xbf16>
    %231 = vector.shape_cast %230 : vector<1x8x3xbf16> to vector<8x3xbf16>
    %cst_169 = arith.constant dense<0.000000e+00> : vector<8x286xf32>
    %232 = tpu.matmul %231, %229, %cst_169 {dimension_numbers = #tpu.dot_dimension_numbers<[1], [0], [0], [1], [0, 0, 1, 1], [], []>} : vector<8x3xbf16>, vector<3x286xbf16>, vector<8x286xf32> -> vector<8x286xf32>
    %233 = arith.addf %228, %232 : vector<8x286xf32>
    %234 = vector.extract_strided_slice %227 {offsets = [0, 1], sizes = [3, 286], strides = [1, 1]} : vector<3x324xbf16> to vector<3x286xbf16>
    %c1_170 = arith.constant 1 : index
    %c0_171 = arith.constant 0 : index
    %c0_172 = arith.constant 0 : index
    %235 = vector.load %arg2[%c1_170, %c0_171, %c0_172] : memref<9x8x3xbf16, #tpu.memory_space<vmem>>, vector<1x8x3xbf16>
    %236 = vector.shape_cast %235 : vector<1x8x3xbf16> to vector<8x3xbf16>
    %cst_173 = arith.constant dense<0.000000e+00> : vector<8x286xf32>
    %237 = tpu.matmul %236, %234, %cst_173 {dimension_numbers = #tpu.dot_dimension_numbers<[1], [0], [0], [1], [0, 0, 1, 1], [], []>} : vector<8x3xbf16>, vector<3x286xbf16>, vector<8x286xf32> -> vector<8x286xf32>
    %238 = arith.addf %233, %237 : vector<8x286xf32>
    %239 = vector.extract_strided_slice %227 {offsets = [0, 2], sizes = [3, 286], strides = [1, 1]} : vector<3x324xbf16> to vector<3x286xbf16>
    %c2_174 = arith.constant 2 : index
    %c0_175 = arith.constant 0 : index
    %c0_176 = arith.constant 0 : index
    %240 = vector.load %arg2[%c2_174, %c0_175, %c0_176] : memref<9x8x3xbf16, #tpu.memory_space<vmem>>, vector<1x8x3xbf16>
    %241 = vector.shape_cast %240 : vector<1x8x3xbf16> to vector<8x3xbf16>
    %cst_177 = arith.constant dense<0.000000e+00> : vector<8x286xf32>
    %242 = tpu.matmul %241, %239, %cst_177 {dimension_numbers = #tpu.dot_dimension_numbers<[1], [0], [0], [1], [0, 0, 1, 1], [], []>} : vector<8x3xbf16>, vector<3x286xbf16>, vector<8x286xf32> -> vector<8x286xf32>
    %243 = arith.addf %238, %242 : vector<8x286xf32>
    %244 = vector.extract_strided_slice %227 {offsets = [0, 18], sizes = [3, 286], strides = [1, 1]} : vector<3x324xbf16> to vector<3x286xbf16>
    %c3_178 = arith.constant 3 : index
    %c0_179 = arith.constant 0 : index
    %c0_180 = arith.constant 0 : index
    %245 = vector.load %arg2[%c3_178, %c0_179, %c0_180] : memref<9x8x3xbf16, #tpu.memory_space<vmem>>, vector<1x8x3xbf16>
    %246 = vector.shape_cast %245 : vector<1x8x3xbf16> to vector<8x3xbf16>
    %cst_181 = arith.constant dense<0.000000e+00> : vector<8x286xf32>
    %247 = tpu.matmul %246, %244, %cst_181 {dimension_numbers = #tpu.dot_dimension_numbers<[1], [0], [0], [1], [0, 0, 1, 1], [], []>} : vector<8x3xbf16>, vector<3x286xbf16>, vector<8x286xf32> -> vector<8x286xf32>
    %248 = arith.addf %243, %247 : vector<8x286xf32>
    %249 = vector.extract_strided_slice %227 {offsets = [0, 19], sizes = [3, 286], strides = [1, 1]} : vector<3x324xbf16> to vector<3x286xbf16>
    %c4_182 = arith.constant 4 : index
    %c0_183 = arith.constant 0 : index
    %c0_184 = arith.constant 0 : index
    %250 = vector.load %arg2[%c4_182, %c0_183, %c0_184] : memref<9x8x3xbf16, #tpu.memory_space<vmem>>, vector<1x8x3xbf16>
    %251 = vector.shape_cast %250 : vector<1x8x3xbf16> to vector<8x3xbf16>
    %cst_185 = arith.constant dense<0.000000e+00> : vector<8x286xf32>
    %252 = tpu.matmul %251, %249, %cst_185 {dimension_numbers = #tpu.dot_dimension_numbers<[1], [0], [0], [1], [0, 0, 1, 1], [], []>} : vector<8x3xbf16>, vector<3x286xbf16>, vector<8x286xf32> -> vector<8x286xf32>
    %253 = arith.addf %248, %252 : vector<8x286xf32>
    %254 = vector.extract_strided_slice %227 {offsets = [0, 20], sizes = [3, 286], strides = [1, 1]} : vector<3x324xbf16> to vector<3x286xbf16>
    %c5_186 = arith.constant 5 : index
    %c0_187 = arith.constant 0 : index
    %c0_188 = arith.constant 0 : index
    %255 = vector.load %arg2[%c5_186, %c0_187, %c0_188] : memref<9x8x3xbf16, #tpu.memory_space<vmem>>, vector<1x8x3xbf16>
    %256 = vector.shape_cast %255 : vector<1x8x3xbf16> to vector<8x3xbf16>
    %cst_189 = arith.constant dense<0.000000e+00> : vector<8x286xf32>
    %257 = tpu.matmul %256, %254, %cst_189 {dimension_numbers = #tpu.dot_dimension_numbers<[1], [0], [0], [1], [0, 0, 1, 1], [], []>} : vector<8x3xbf16>, vector<3x286xbf16>, vector<8x286xf32> -> vector<8x286xf32>
    %258 = arith.addf %253, %257 : vector<8x286xf32>
    %259 = vector.extract_strided_slice %227 {offsets = [0, 36], sizes = [3, 286], strides = [1, 1]} : vector<3x324xbf16> to vector<3x286xbf16>
    %c6_190 = arith.constant 6 : index
    %c0_191 = arith.constant 0 : index
    %c0_192 = arith.constant 0 : index
    %260 = vector.load %arg2[%c6_190, %c0_191, %c0_192] : memref<9x8x3xbf16, #tpu.memory_space<vmem>>, vector<1x8x3xbf16>
    %261 = vector.shape_cast %260 : vector<1x8x3xbf16> to vector<8x3xbf16>
    %cst_193 = arith.constant dense<0.000000e+00> : vector<8x286xf32>
    %262 = tpu.matmul %261, %259, %cst_193 {dimension_numbers = #tpu.dot_dimension_numbers<[1], [0], [0], [1], [0, 0, 1, 1], [], []>} : vector<8x3xbf16>, vector<3x286xbf16>, vector<8x286xf32> -> vector<8x286xf32>
    %263 = arith.addf %258, %262 : vector<8x286xf32>
    %264 = vector.extract_strided_slice %227 {offsets = [0, 37], sizes = [3, 286], strides = [1, 1]} : vector<3x324xbf16> to vector<3x286xbf16>
    %c7_194 = arith.constant 7 : index
    %c0_195 = arith.constant 0 : index
    %c0_196 = arith.constant 0 : index
    %265 = vector.load %arg2[%c7_194, %c0_195, %c0_196] : memref<9x8x3xbf16, #tpu.memory_space<vmem>>, vector<1x8x3xbf16>
    %266 = vector.shape_cast %265 : vector<1x8x3xbf16> to vector<8x3xbf16>
    %cst_197 = arith.constant dense<0.000000e+00> : vector<8x286xf32>
    %267 = tpu.matmul %266, %264, %cst_197 {dimension_numbers = #tpu.dot_dimension_numbers<[1], [0], [0], [1], [0, 0, 1, 1], [], []>} : vector<8x3xbf16>, vector<3x286xbf16>, vector<8x286xf32> -> vector<8x286xf32>
    %268 = arith.addf %263, %267 : vector<8x286xf32>
    %269 = vector.extract_strided_slice %227 {offsets = [0, 38], sizes = [3, 286], strides = [1, 1]} : vector<3x324xbf16> to vector<3x286xbf16>
    %c8_198 = arith.constant 8 : index
    %c0_199 = arith.constant 0 : index
    %c0_200 = arith.constant 0 : index
    %270 = vector.load %arg2[%c8_198, %c0_199, %c0_200] : memref<9x8x3xbf16, #tpu.memory_space<vmem>>, vector<1x8x3xbf16>
    %271 = vector.shape_cast %270 : vector<1x8x3xbf16> to vector<8x3xbf16>
    %cst_201 = arith.constant dense<0.000000e+00> : vector<8x286xf32>
    %272 = tpu.matmul %271, %269, %cst_201 {dimension_numbers = #tpu.dot_dimension_numbers<[1], [0], [0], [1], [0, 0, 1, 1], [], []>} : vector<8x3xbf16>, vector<3x286xbf16>, vector<8x286xf32> -> vector<8x286xf32>
    %273 = arith.addf %268, %272 : vector<8x286xf32>
    %274 = vector.broadcast %1 : vector<8x1xf32> to vector<8x286xf32>
    %275 = arith.addf %273, %274 : vector<8x286xf32>
    %cst_202 = arith.constant 0.000000e+00 : f32
    %276 = vector.broadcast %cst_202 : f32 to vector<8x286xf32>
    %277 = arith.maximumf %275, %276 : vector<8x286xf32>
    %278 = vector.broadcast %0 : vector<1x286xf32> to vector<8x286xf32>
    %279 = arith.mulf %277, %278 : vector<8x286xf32>
    %cst_203 = arith.constant dense<0.000000e+00> : vector<8xf32>
    %280 = vector.multi_reduction <add>, %279, %cst_203 [1] : vector<8x286xf32> to vector<8xf32>
    %281 = vector.shape_cast %280 : vector<8xf32> to vector<8x1xf32>
    %c5_204 = arith.constant 5 : index
    %c0_205 = arith.constant 0 : index
    %c0_206 = arith.constant 0 : index
    %282 = vector.load %arg1[%c5_204, %c0_205, %c0_206] : memref<8x3x324xbf16, #tpu.memory_space<vmem>>, vector<1x3x324xbf16>
    %283 = vector.shape_cast %282 : vector<1x3x324xbf16> to vector<3x324xbf16>
    %cst_207 = arith.constant 0.000000e+00 : f32
    %284 = vector.broadcast %cst_207 : f32 to vector<8x286xf32>
    %285 = vector.extract_strided_slice %283 {offsets = [0, 0], sizes = [3, 286], strides = [1, 1]} : vector<3x324xbf16> to vector<3x286xbf16>
    %c0_208 = arith.constant 0 : index
    %c0_209 = arith.constant 0 : index
    %c0_210 = arith.constant 0 : index
    %286 = vector.load %arg2[%c0_208, %c0_209, %c0_210] : memref<9x8x3xbf16, #tpu.memory_space<vmem>>, vector<1x8x3xbf16>
    %287 = vector.shape_cast %286 : vector<1x8x3xbf16> to vector<8x3xbf16>
    %cst_211 = arith.constant dense<0.000000e+00> : vector<8x286xf32>
    %288 = tpu.matmul %287, %285, %cst_211 {dimension_numbers = #tpu.dot_dimension_numbers<[1], [0], [0], [1], [0, 0, 1, 1], [], []>} : vector<8x3xbf16>, vector<3x286xbf16>, vector<8x286xf32> -> vector<8x286xf32>
    %289 = arith.addf %284, %288 : vector<8x286xf32>
    %290 = vector.extract_strided_slice %283 {offsets = [0, 1], sizes = [3, 286], strides = [1, 1]} : vector<3x324xbf16> to vector<3x286xbf16>
    %c1_212 = arith.constant 1 : index
    %c0_213 = arith.constant 0 : index
    %c0_214 = arith.constant 0 : index
    %291 = vector.load %arg2[%c1_212, %c0_213, %c0_214] : memref<9x8x3xbf16, #tpu.memory_space<vmem>>, vector<1x8x3xbf16>
    %292 = vector.shape_cast %291 : vector<1x8x3xbf16> to vector<8x3xbf16>
    %cst_215 = arith.constant dense<0.000000e+00> : vector<8x286xf32>
    %293 = tpu.matmul %292, %290, %cst_215 {dimension_numbers = #tpu.dot_dimension_numbers<[1], [0], [0], [1], [0, 0, 1, 1], [], []>} : vector<8x3xbf16>, vector<3x286xbf16>, vector<8x286xf32> -> vector<8x286xf32>
    %294 = arith.addf %289, %293 : vector<8x286xf32>
    %295 = vector.extract_strided_slice %283 {offsets = [0, 2], sizes = [3, 286], strides = [1, 1]} : vector<3x324xbf16> to vector<3x286xbf16>
    %c2_216 = arith.constant 2 : index
    %c0_217 = arith.constant 0 : index
    %c0_218 = arith.constant 0 : index
    %296 = vector.load %arg2[%c2_216, %c0_217, %c0_218] : memref<9x8x3xbf16, #tpu.memory_space<vmem>>, vector<1x8x3xbf16>
    %297 = vector.shape_cast %296 : vector<1x8x3xbf16> to vector<8x3xbf16>
    %cst_219 = arith.constant dense<0.000000e+00> : vector<8x286xf32>
    %298 = tpu.matmul %297, %295, %cst_219 {dimension_numbers = #tpu.dot_dimension_numbers<[1], [0], [0], [1], [0, 0, 1, 1], [], []>} : vector<8x3xbf16>, vector<3x286xbf16>, vector<8x286xf32> -> vector<8x286xf32>
    %299 = arith.addf %294, %298 : vector<8x286xf32>
    %300 = vector.extract_strided_slice %283 {offsets = [0, 18], sizes = [3, 286], strides = [1, 1]} : vector<3x324xbf16> to vector<3x286xbf16>
    %c3_220 = arith.constant 3 : index
    %c0_221 = arith.constant 0 : index
    %c0_222 = arith.constant 0 : index
    %301 = vector.load %arg2[%c3_220, %c0_221, %c0_222] : memref<9x8x3xbf16, #tpu.memory_space<vmem>>, vector<1x8x3xbf16>
    %302 = vector.shape_cast %301 : vector<1x8x3xbf16> to vector<8x3xbf16>
    %cst_223 = arith.constant dense<0.000000e+00> : vector<8x286xf32>
    %303 = tpu.matmul %302, %300, %cst_223 {dimension_numbers = #tpu.dot_dimension_numbers<[1], [0], [0], [1], [0, 0, 1, 1], [], []>} : vector<8x3xbf16>, vector<3x286xbf16>, vector<8x286xf32> -> vector<8x286xf32>
    %304 = arith.addf %299, %303 : vector<8x286xf32>
    %305 = vector.extract_strided_slice %283 {offsets = [0, 19], sizes = [3, 286], strides = [1, 1]} : vector<3x324xbf16> to vector<3x286xbf16>
    %c4_224 = arith.constant 4 : index
    %c0_225 = arith.constant 0 : index
    %c0_226 = arith.constant 0 : index
    %306 = vector.load %arg2[%c4_224, %c0_225, %c0_226] : memref<9x8x3xbf16, #tpu.memory_space<vmem>>, vector<1x8x3xbf16>
    %307 = vector.shape_cast %306 : vector<1x8x3xbf16> to vector<8x3xbf16>
    %cst_227 = arith.constant dense<0.000000e+00> : vector<8x286xf32>
    %308 = tpu.matmul %307, %305, %cst_227 {dimension_numbers = #tpu.dot_dimension_numbers<[1], [0], [0], [1], [0, 0, 1, 1], [], []>} : vector<8x3xbf16>, vector<3x286xbf16>, vector<8x286xf32> -> vector<8x286xf32>
    %309 = arith.addf %304, %308 : vector<8x286xf32>
    %310 = vector.extract_strided_slice %283 {offsets = [0, 20], sizes = [3, 286], strides = [1, 1]} : vector<3x324xbf16> to vector<3x286xbf16>
    %c5_228 = arith.constant 5 : index
    %c0_229 = arith.constant 0 : index
    %c0_230 = arith.constant 0 : index
    %311 = vector.load %arg2[%c5_228, %c0_229, %c0_230] : memref<9x8x3xbf16, #tpu.memory_space<vmem>>, vector<1x8x3xbf16>
    %312 = vector.shape_cast %311 : vector<1x8x3xbf16> to vector<8x3xbf16>
    %cst_231 = arith.constant dense<0.000000e+00> : vector<8x286xf32>
    %313 = tpu.matmul %312, %310, %cst_231 {dimension_numbers = #tpu.dot_dimension_numbers<[1], [0], [0], [1], [0, 0, 1, 1], [], []>} : vector<8x3xbf16>, vector<3x286xbf16>, vector<8x286xf32> -> vector<8x286xf32>
    %314 = arith.addf %309, %313 : vector<8x286xf32>
    %315 = vector.extract_strided_slice %283 {offsets = [0, 36], sizes = [3, 286], strides = [1, 1]} : vector<3x324xbf16> to vector<3x286xbf16>
    %c6_232 = arith.constant 6 : index
    %c0_233 = arith.constant 0 : index
    %c0_234 = arith.constant 0 : index
    %316 = vector.load %arg2[%c6_232, %c0_233, %c0_234] : memref<9x8x3xbf16, #tpu.memory_space<vmem>>, vector<1x8x3xbf16>
    %317 = vector.shape_cast %316 : vector<1x8x3xbf16> to vector<8x3xbf16>
    %cst_235 = arith.constant dense<0.000000e+00> : vector<8x286xf32>
    %318 = tpu.matmul %317, %315, %cst_235 {dimension_numbers = #tpu.dot_dimension_numbers<[1], [0], [0], [1], [0, 0, 1, 1], [], []>} : vector<8x3xbf16>, vector<3x286xbf16>, vector<8x286xf32> -> vector<8x286xf32>
    %319 = arith.addf %314, %318 : vector<8x286xf32>
    %320 = vector.extract_strided_slice %283 {offsets = [0, 37], sizes = [3, 286], strides = [1, 1]} : vector<3x324xbf16> to vector<3x286xbf16>
    %c7_236 = arith.constant 7 : index
    %c0_237 = arith.constant 0 : index
    %c0_238 = arith.constant 0 : index
    %321 = vector.load %arg2[%c7_236, %c0_237, %c0_238] : memref<9x8x3xbf16, #tpu.memory_space<vmem>>, vector<1x8x3xbf16>
    %322 = vector.shape_cast %321 : vector<1x8x3xbf16> to vector<8x3xbf16>
    %cst_239 = arith.constant dense<0.000000e+00> : vector<8x286xf32>
    %323 = tpu.matmul %322, %320, %cst_239 {dimension_numbers = #tpu.dot_dimension_numbers<[1], [0], [0], [1], [0, 0, 1, 1], [], []>} : vector<8x3xbf16>, vector<3x286xbf16>, vector<8x286xf32> -> vector<8x286xf32>
    %324 = arith.addf %319, %323 : vector<8x286xf32>
    %325 = vector.extract_strided_slice %283 {offsets = [0, 38], sizes = [3, 286], strides = [1, 1]} : vector<3x324xbf16> to vector<3x286xbf16>
    %c8_240 = arith.constant 8 : index
    %c0_241 = arith.constant 0 : index
    %c0_242 = arith.constant 0 : index
    %326 = vector.load %arg2[%c8_240, %c0_241, %c0_242] : memref<9x8x3xbf16, #tpu.memory_space<vmem>>, vector<1x8x3xbf16>
    %327 = vector.shape_cast %326 : vector<1x8x3xbf16> to vector<8x3xbf16>
    %cst_243 = arith.constant dense<0.000000e+00> : vector<8x286xf32>
    %328 = tpu.matmul %327, %325, %cst_243 {dimension_numbers = #tpu.dot_dimension_numbers<[1], [0], [0], [1], [0, 0, 1, 1], [], []>} : vector<8x3xbf16>, vector<3x286xbf16>, vector<8x286xf32> -> vector<8x286xf32>
    %329 = arith.addf %324, %328 : vector<8x286xf32>
    %330 = vector.broadcast %1 : vector<8x1xf32> to vector<8x286xf32>
    %331 = arith.addf %329, %330 : vector<8x286xf32>
    %cst_244 = arith.constant 0.000000e+00 : f32
    %332 = vector.broadcast %cst_244 : f32 to vector<8x286xf32>
    %333 = arith.maximumf %331, %332 : vector<8x286xf32>
    %334 = vector.broadcast %0 : vector<1x286xf32> to vector<8x286xf32>
    %335 = arith.mulf %333, %334 : vector<8x286xf32>
    %cst_245 = arith.constant dense<0.000000e+00> : vector<8xf32>
    %336 = vector.multi_reduction <add>, %335, %cst_245 [1] : vector<8x286xf32> to vector<8xf32>
    %337 = vector.shape_cast %336 : vector<8xf32> to vector<8x1xf32>
    %c6_246 = arith.constant 6 : index
    %c0_247 = arith.constant 0 : index
    %c0_248 = arith.constant 0 : index
    %338 = vector.load %arg1[%c6_246, %c0_247, %c0_248] : memref<8x3x324xbf16, #tpu.memory_space<vmem>>, vector<1x3x324xbf16>
    %339 = vector.shape_cast %338 : vector<1x3x324xbf16> to vector<3x324xbf16>
    %cst_249 = arith.constant 0.000000e+00 : f32
    %340 = vector.broadcast %cst_249 : f32 to vector<8x286xf32>
    %341 = vector.extract_strided_slice %339 {offsets = [0, 0], sizes = [3, 286], strides = [1, 1]} : vector<3x324xbf16> to vector<3x286xbf16>
    %c0_250 = arith.constant 0 : index
    %c0_251 = arith.constant 0 : index
    %c0_252 = arith.constant 0 : index
    %342 = vector.load %arg2[%c0_250, %c0_251, %c0_252] : memref<9x8x3xbf16, #tpu.memory_space<vmem>>, vector<1x8x3xbf16>
    %343 = vector.shape_cast %342 : vector<1x8x3xbf16> to vector<8x3xbf16>
    %cst_253 = arith.constant dense<0.000000e+00> : vector<8x286xf32>
    %344 = tpu.matmul %343, %341, %cst_253 {dimension_numbers = #tpu.dot_dimension_numbers<[1], [0], [0], [1], [0, 0, 1, 1], [], []>} : vector<8x3xbf16>, vector<3x286xbf16>, vector<8x286xf32> -> vector<8x286xf32>
    %345 = arith.addf %340, %344 : vector<8x286xf32>
    %346 = vector.extract_strided_slice %339 {offsets = [0, 1], sizes = [3, 286], strides = [1, 1]} : vector<3x324xbf16> to vector<3x286xbf16>
    %c1_254 = arith.constant 1 : index
    %c0_255 = arith.constant 0 : index
    %c0_256 = arith.constant 0 : index
    %347 = vector.load %arg2[%c1_254, %c0_255, %c0_256] : memref<9x8x3xbf16, #tpu.memory_space<vmem>>, vector<1x8x3xbf16>
    %348 = vector.shape_cast %347 : vector<1x8x3xbf16> to vector<8x3xbf16>
    %cst_257 = arith.constant dense<0.000000e+00> : vector<8x286xf32>
    %349 = tpu.matmul %348, %346, %cst_257 {dimension_numbers = #tpu.dot_dimension_numbers<[1], [0], [0], [1], [0, 0, 1, 1], [], []>} : vector<8x3xbf16>, vector<3x286xbf16>, vector<8x286xf32> -> vector<8x286xf32>
    %350 = arith.addf %345, %349 : vector<8x286xf32>
    %351 = vector.extract_strided_slice %339 {offsets = [0, 2], sizes = [3, 286], strides = [1, 1]} : vector<3x324xbf16> to vector<3x286xbf16>
    %c2_258 = arith.constant 2 : index
    %c0_259 = arith.constant 0 : index
    %c0_260 = arith.constant 0 : index
    %352 = vector.load %arg2[%c2_258, %c0_259, %c0_260] : memref<9x8x3xbf16, #tpu.memory_space<vmem>>, vector<1x8x3xbf16>
    %353 = vector.shape_cast %352 : vector<1x8x3xbf16> to vector<8x3xbf16>
    %cst_261 = arith.constant dense<0.000000e+00> : vector<8x286xf32>
    %354 = tpu.matmul %353, %351, %cst_261 {dimension_numbers = #tpu.dot_dimension_numbers<[1], [0], [0], [1], [0, 0, 1, 1], [], []>} : vector<8x3xbf16>, vector<3x286xbf16>, vector<8x286xf32> -> vector<8x286xf32>
    %355 = arith.addf %350, %354 : vector<8x286xf32>
    %356 = vector.extract_strided_slice %339 {offsets = [0, 18], sizes = [3, 286], strides = [1, 1]} : vector<3x324xbf16> to vector<3x286xbf16>
    %c3_262 = arith.constant 3 : index
    %c0_263 = arith.constant 0 : index
    %c0_264 = arith.constant 0 : index
    %357 = vector.load %arg2[%c3_262, %c0_263, %c0_264] : memref<9x8x3xbf16, #tpu.memory_space<vmem>>, vector<1x8x3xbf16>
    %358 = vector.shape_cast %357 : vector<1x8x3xbf16> to vector<8x3xbf16>
    %cst_265 = arith.constant dense<0.000000e+00> : vector<8x286xf32>
    %359 = tpu.matmul %358, %356, %cst_265 {dimension_numbers = #tpu.dot_dimension_numbers<[1], [0], [0], [1], [0, 0, 1, 1], [], []>} : vector<8x3xbf16>, vector<3x286xbf16>, vector<8x286xf32> -> vector<8x286xf32>
    %360 = arith.addf %355, %359 : vector<8x286xf32>
    %361 = vector.extract_strided_slice %339 {offsets = [0, 19], sizes = [3, 286], strides = [1, 1]} : vector<3x324xbf16> to vector<3x286xbf16>
    %c4_266 = arith.constant 4 : index
    %c0_267 = arith.constant 0 : index
    %c0_268 = arith.constant 0 : index
    %362 = vector.load %arg2[%c4_266, %c0_267, %c0_268] : memref<9x8x3xbf16, #tpu.memory_space<vmem>>, vector<1x8x3xbf16>
    %363 = vector.shape_cast %362 : vector<1x8x3xbf16> to vector<8x3xbf16>
    %cst_269 = arith.constant dense<0.000000e+00> : vector<8x286xf32>
    %364 = tpu.matmul %363, %361, %cst_269 {dimension_numbers = #tpu.dot_dimension_numbers<[1], [0], [0], [1], [0, 0, 1, 1], [], []>} : vector<8x3xbf16>, vector<3x286xbf16>, vector<8x286xf32> -> vector<8x286xf32>
    %365 = arith.addf %360, %364 : vector<8x286xf32>
    %366 = vector.extract_strided_slice %339 {offsets = [0, 20], sizes = [3, 286], strides = [1, 1]} : vector<3x324xbf16> to vector<3x286xbf16>
    %c5_270 = arith.constant 5 : index
    %c0_271 = arith.constant 0 : index
    %c0_272 = arith.constant 0 : index
    %367 = vector.load %arg2[%c5_270, %c0_271, %c0_272] : memref<9x8x3xbf16, #tpu.memory_space<vmem>>, vector<1x8x3xbf16>
    %368 = vector.shape_cast %367 : vector<1x8x3xbf16> to vector<8x3xbf16>
    %cst_273 = arith.constant dense<0.000000e+00> : vector<8x286xf32>
    %369 = tpu.matmul %368, %366, %cst_273 {dimension_numbers = #tpu.dot_dimension_numbers<[1], [0], [0], [1], [0, 0, 1, 1], [], []>} : vector<8x3xbf16>, vector<3x286xbf16>, vector<8x286xf32> -> vector<8x286xf32>
    %370 = arith.addf %365, %369 : vector<8x286xf32>
    %371 = vector.extract_strided_slice %339 {offsets = [0, 36], sizes = [3, 286], strides = [1, 1]} : vector<3x324xbf16> to vector<3x286xbf16>
    %c6_274 = arith.constant 6 : index
    %c0_275 = arith.constant 0 : index
    %c0_276 = arith.constant 0 : index
    %372 = vector.load %arg2[%c6_274, %c0_275, %c0_276] : memref<9x8x3xbf16, #tpu.memory_space<vmem>>, vector<1x8x3xbf16>
    %373 = vector.shape_cast %372 : vector<1x8x3xbf16> to vector<8x3xbf16>
    %cst_277 = arith.constant dense<0.000000e+00> : vector<8x286xf32>
    %374 = tpu.matmul %373, %371, %cst_277 {dimension_numbers = #tpu.dot_dimension_numbers<[1], [0], [0], [1], [0, 0, 1, 1], [], []>} : vector<8x3xbf16>, vector<3x286xbf16>, vector<8x286xf32> -> vector<8x286xf32>
    %375 = arith.addf %370, %374 : vector<8x286xf32>
    %376 = vector.extract_strided_slice %339 {offsets = [0, 37], sizes = [3, 286], strides = [1, 1]} : vector<3x324xbf16> to vector<3x286xbf16>
    %c7_278 = arith.constant 7 : index
    %c0_279 = arith.constant 0 : index
    %c0_280 = arith.constant 0 : index
    %377 = vector.load %arg2[%c7_278, %c0_279, %c0_280] : memref<9x8x3xbf16, #tpu.memory_space<vmem>>, vector<1x8x3xbf16>
    %378 = vector.shape_cast %377 : vector<1x8x3xbf16> to vector<8x3xbf16>
    %cst_281 = arith.constant dense<0.000000e+00> : vector<8x286xf32>
    %379 = tpu.matmul %378, %376, %cst_281 {dimension_numbers = #tpu.dot_dimension_numbers<[1], [0], [0], [1], [0, 0, 1, 1], [], []>} : vector<8x3xbf16>, vector<3x286xbf16>, vector<8x286xf32> -> vector<8x286xf32>
    %380 = arith.addf %375, %379 : vector<8x286xf32>
    %381 = vector.extract_strided_slice %339 {offsets = [0, 38], sizes = [3, 286], strides = [1, 1]} : vector<3x324xbf16> to vector<3x286xbf16>
    %c8_282 = arith.constant 8 : index
    %c0_283 = arith.constant 0 : index
    %c0_284 = arith.constant 0 : index
    %382 = vector.load %arg2[%c8_282, %c0_283, %c0_284] : memref<9x8x3xbf16, #tpu.memory_space<vmem>>, vector<1x8x3xbf16>
    %383 = vector.shape_cast %382 : vector<1x8x3xbf16> to vector<8x3xbf16>
    %cst_285 = arith.constant dense<0.000000e+00> : vector<8x286xf32>
    %384 = tpu.matmul %383, %381, %cst_285 {dimension_numbers = #tpu.dot_dimension_numbers<[1], [0], [0], [1], [0, 0, 1, 1], [], []>} : vector<8x3xbf16>, vector<3x286xbf16>, vector<8x286xf32> -> vector<8x286xf32>
    %385 = arith.addf %380, %384 : vector<8x286xf32>
    %386 = vector.broadcast %1 : vector<8x1xf32> to vector<8x286xf32>
    %387 = arith.addf %385, %386 : vector<8x286xf32>
    %cst_286 = arith.constant 0.000000e+00 : f32
    %388 = vector.broadcast %cst_286 : f32 to vector<8x286xf32>
    %389 = arith.maximumf %387, %388 : vector<8x286xf32>
    %390 = vector.broadcast %0 : vector<1x286xf32> to vector<8x286xf32>
    %391 = arith.mulf %389, %390 : vector<8x286xf32>
    %cst_287 = arith.constant dense<0.000000e+00> : vector<8xf32>
    %392 = vector.multi_reduction <add>, %391, %cst_287 [1] : vector<8x286xf32> to vector<8xf32>
    %393 = vector.shape_cast %392 : vector<8xf32> to vector<8x1xf32>
    %c7_288 = arith.constant 7 : index
    %c0_289 = arith.constant 0 : index
    %c0_290 = arith.constant 0 : index
    %394 = vector.load %arg1[%c7_288, %c0_289, %c0_290] : memref<8x3x324xbf16, #tpu.memory_space<vmem>>, vector<1x3x324xbf16>
    %395 = vector.shape_cast %394 : vector<1x3x324xbf16> to vector<3x324xbf16>
    %cst_291 = arith.constant 0.000000e+00 : f32
    %396 = vector.broadcast %cst_291 : f32 to vector<8x286xf32>
    %397 = vector.extract_strided_slice %395 {offsets = [0, 0], sizes = [3, 286], strides = [1, 1]} : vector<3x324xbf16> to vector<3x286xbf16>
    %c0_292 = arith.constant 0 : index
    %c0_293 = arith.constant 0 : index
    %c0_294 = arith.constant 0 : index
    %398 = vector.load %arg2[%c0_292, %c0_293, %c0_294] : memref<9x8x3xbf16, #tpu.memory_space<vmem>>, vector<1x8x3xbf16>
    %399 = vector.shape_cast %398 : vector<1x8x3xbf16> to vector<8x3xbf16>
    %cst_295 = arith.constant dense<0.000000e+00> : vector<8x286xf32>
    %400 = tpu.matmul %399, %397, %cst_295 {dimension_numbers = #tpu.dot_dimension_numbers<[1], [0], [0], [1], [0, 0, 1, 1], [], []>} : vector<8x3xbf16>, vector<3x286xbf16>, vector<8x286xf32> -> vector<8x286xf32>
    %401 = arith.addf %396, %400 : vector<8x286xf32>
    %402 = vector.extract_strided_slice %395 {offsets = [0, 1], sizes = [3, 286], strides = [1, 1]} : vector<3x324xbf16> to vector<3x286xbf16>
    %c1_296 = arith.constant 1 : index
    %c0_297 = arith.constant 0 : index
    %c0_298 = arith.constant 0 : index
    %403 = vector.load %arg2[%c1_296, %c0_297, %c0_298] : memref<9x8x3xbf16, #tpu.memory_space<vmem>>, vector<1x8x3xbf16>
    %404 = vector.shape_cast %403 : vector<1x8x3xbf16> to vector<8x3xbf16>
    %cst_299 = arith.constant dense<0.000000e+00> : vector<8x286xf32>
    %405 = tpu.matmul %404, %402, %cst_299 {dimension_numbers = #tpu.dot_dimension_numbers<[1], [0], [0], [1], [0, 0, 1, 1], [], []>} : vector<8x3xbf16>, vector<3x286xbf16>, vector<8x286xf32> -> vector<8x286xf32>
    %406 = arith.addf %401, %405 : vector<8x286xf32>
    %407 = vector.extract_strided_slice %395 {offsets = [0, 2], sizes = [3, 286], strides = [1, 1]} : vector<3x324xbf16> to vector<3x286xbf16>
    %c2_300 = arith.constant 2 : index
    %c0_301 = arith.constant 0 : index
    %c0_302 = arith.constant 0 : index
    %408 = vector.load %arg2[%c2_300, %c0_301, %c0_302] : memref<9x8x3xbf16, #tpu.memory_space<vmem>>, vector<1x8x3xbf16>
    %409 = vector.shape_cast %408 : vector<1x8x3xbf16> to vector<8x3xbf16>
    %cst_303 = arith.constant dense<0.000000e+00> : vector<8x286xf32>
    %410 = tpu.matmul %409, %407, %cst_303 {dimension_numbers = #tpu.dot_dimension_numbers<[1], [0], [0], [1], [0, 0, 1, 1], [], []>} : vector<8x3xbf16>, vector<3x286xbf16>, vector<8x286xf32> -> vector<8x286xf32>
    %411 = arith.addf %406, %410 : vector<8x286xf32>
    %412 = vector.extract_strided_slice %395 {offsets = [0, 18], sizes = [3, 286], strides = [1, 1]} : vector<3x324xbf16> to vector<3x286xbf16>
    %c3_304 = arith.constant 3 : index
    %c0_305 = arith.constant 0 : index
    %c0_306 = arith.constant 0 : index
    %413 = vector.load %arg2[%c3_304, %c0_305, %c0_306] : memref<9x8x3xbf16, #tpu.memory_space<vmem>>, vector<1x8x3xbf16>
    %414 = vector.shape_cast %413 : vector<1x8x3xbf16> to vector<8x3xbf16>
    %cst_307 = arith.constant dense<0.000000e+00> : vector<8x286xf32>
    %415 = tpu.matmul %414, %412, %cst_307 {dimension_numbers = #tpu.dot_dimension_numbers<[1], [0], [0], [1], [0, 0, 1, 1], [], []>} : vector<8x3xbf16>, vector<3x286xbf16>, vector<8x286xf32> -> vector<8x286xf32>
    %416 = arith.addf %411, %415 : vector<8x286xf32>
    %417 = vector.extract_strided_slice %395 {offsets = [0, 19], sizes = [3, 286], strides = [1, 1]} : vector<3x324xbf16> to vector<3x286xbf16>
    %c4_308 = arith.constant 4 : index
    %c0_309 = arith.constant 0 : index
    %c0_310 = arith.constant 0 : index
    %418 = vector.load %arg2[%c4_308, %c0_309, %c0_310] : memref<9x8x3xbf16, #tpu.memory_space<vmem>>, vector<1x8x3xbf16>
    %419 = vector.shape_cast %418 : vector<1x8x3xbf16> to vector<8x3xbf16>
    %cst_311 = arith.constant dense<0.000000e+00> : vector<8x286xf32>
    %420 = tpu.matmul %419, %417, %cst_311 {dimension_numbers = #tpu.dot_dimension_numbers<[1], [0], [0], [1], [0, 0, 1, 1], [], []>} : vector<8x3xbf16>, vector<3x286xbf16>, vector<8x286xf32> -> vector<8x286xf32>
    %421 = arith.addf %416, %420 : vector<8x286xf32>
    %422 = vector.extract_strided_slice %395 {offsets = [0, 20], sizes = [3, 286], strides = [1, 1]} : vector<3x324xbf16> to vector<3x286xbf16>
    %c5_312 = arith.constant 5 : index
    %c0_313 = arith.constant 0 : index
    %c0_314 = arith.constant 0 : index
    %423 = vector.load %arg2[%c5_312, %c0_313, %c0_314] : memref<9x8x3xbf16, #tpu.memory_space<vmem>>, vector<1x8x3xbf16>
    %424 = vector.shape_cast %423 : vector<1x8x3xbf16> to vector<8x3xbf16>
    %cst_315 = arith.constant dense<0.000000e+00> : vector<8x286xf32>
    %425 = tpu.matmul %424, %422, %cst_315 {dimension_numbers = #tpu.dot_dimension_numbers<[1], [0], [0], [1], [0, 0, 1, 1], [], []>} : vector<8x3xbf16>, vector<3x286xbf16>, vector<8x286xf32> -> vector<8x286xf32>
    %426 = arith.addf %421, %425 : vector<8x286xf32>
    %427 = vector.extract_strided_slice %395 {offsets = [0, 36], sizes = [3, 286], strides = [1, 1]} : vector<3x324xbf16> to vector<3x286xbf16>
    %c6_316 = arith.constant 6 : index
    %c0_317 = arith.constant 0 : index
    %c0_318 = arith.constant 0 : index
    %428 = vector.load %arg2[%c6_316, %c0_317, %c0_318] : memref<9x8x3xbf16, #tpu.memory_space<vmem>>, vector<1x8x3xbf16>
    %429 = vector.shape_cast %428 : vector<1x8x3xbf16> to vector<8x3xbf16>
    %cst_319 = arith.constant dense<0.000000e+00> : vector<8x286xf32>
    %430 = tpu.matmul %429, %427, %cst_319 {dimension_numbers = #tpu.dot_dimension_numbers<[1], [0], [0], [1], [0, 0, 1, 1], [], []>} : vector<8x3xbf16>, vector<3x286xbf16>, vector<8x286xf32> -> vector<8x286xf32>
    %431 = arith.addf %426, %430 : vector<8x286xf32>
    %432 = vector.extract_strided_slice %395 {offsets = [0, 37], sizes = [3, 286], strides = [1, 1]} : vector<3x324xbf16> to vector<3x286xbf16>
    %c7_320 = arith.constant 7 : index
    %c0_321 = arith.constant 0 : index
    %c0_322 = arith.constant 0 : index
    %433 = vector.load %arg2[%c7_320, %c0_321, %c0_322] : memref<9x8x3xbf16, #tpu.memory_space<vmem>>, vector<1x8x3xbf16>
    %434 = vector.shape_cast %433 : vector<1x8x3xbf16> to vector<8x3xbf16>
    %cst_323 = arith.constant dense<0.000000e+00> : vector<8x286xf32>
    %435 = tpu.matmul %434, %432, %cst_323 {dimension_numbers = #tpu.dot_dimension_numbers<[1], [0], [0], [1], [0, 0, 1, 1], [], []>} : vector<8x3xbf16>, vector<3x286xbf16>, vector<8x286xf32> -> vector<8x286xf32>
    %436 = arith.addf %431, %435 : vector<8x286xf32>
    %437 = vector.extract_strided_slice %395 {offsets = [0, 38], sizes = [3, 286], strides = [1, 1]} : vector<3x324xbf16> to vector<3x286xbf16>
    %c8_324 = arith.constant 8 : index
    %c0_325 = arith.constant 0 : index
    %c0_326 = arith.constant 0 : index
    %438 = vector.load %arg2[%c8_324, %c0_325, %c0_326] : memref<9x8x3xbf16, #tpu.memory_space<vmem>>, vector<1x8x3xbf16>
    %439 = vector.shape_cast %438 : vector<1x8x3xbf16> to vector<8x3xbf16>
    %cst_327 = arith.constant dense<0.000000e+00> : vector<8x286xf32>
    %440 = tpu.matmul %439, %437, %cst_327 {dimension_numbers = #tpu.dot_dimension_numbers<[1], [0], [0], [1], [0, 0, 1, 1], [], []>} : vector<8x3xbf16>, vector<3x286xbf16>, vector<8x286xf32> -> vector<8x286xf32>
    %441 = arith.addf %436, %440 : vector<8x286xf32>
    %442 = vector.broadcast %1 : vector<8x1xf32> to vector<8x286xf32>
    %443 = arith.addf %441, %442 : vector<8x286xf32>
    %cst_328 = arith.constant 0.000000e+00 : f32
    %444 = vector.broadcast %cst_328 : f32 to vector<8x286xf32>
    %445 = arith.maximumf %443, %444 : vector<8x286xf32>
    %446 = vector.broadcast %0 : vector<1x286xf32> to vector<8x286xf32>
    %447 = arith.mulf %445, %446 : vector<8x286xf32>
    %cst_329 = arith.constant dense<0.000000e+00> : vector<8xf32>
    %448 = vector.multi_reduction <add>, %447, %cst_329 [1] : vector<8x286xf32> to vector<8xf32>
    %449 = vector.shape_cast %448 : vector<8xf32> to vector<8x1xf32>
    %450 = tpu.concatenate %57, %113, %169, %225, %281, %337, %393, %449 in 1 : vector<8x1xf32>, vector<8x1xf32>, vector<8x1xf32>, vector<8x1xf32>, vector<8x1xf32>, vector<8x1xf32>, vector<8x1xf32>, vector<8x1xf32> -> vector<8x8xf32>
    %451 = tpu.transpose %450, [1, 0] : vector<8x8xf32> -> vector<8x8xf32>
    %c0_330 = arith.constant 0 : index
    %c0_331 = arith.constant 0 : index
    %452 = vector.load %arg5[%c0_330, %c0_331] : memref<8x128xf32, #tpu.memory_space<vmem>>, vector<8x128xf32>
    %cst_332 = arith.constant dense<0.000000e+00> : vector<8x128xf32>
    %453 = tpu.matmul %451, %452, %cst_332 {dimension_numbers = #tpu.dot_dimension_numbers<[1], [0], [0], [1], [0, 0, 1, 1], [], []>} : vector<8x8xf32>, vector<8x128xf32>, vector<8x128xf32> -> vector<8x128xf32>
    %c0_333 = arith.constant 0 : index
    %c0_334 = arith.constant 0 : index
    %454 = vector.load %arg6[%c0_333, %c0_334] : memref<1x128xf32, #tpu.memory_space<vmem>>, vector<1x128xf32>
    %455 = vector.broadcast %454 : vector<1x128xf32> to vector<8x128xf32>
    %456 = arith.addf %453, %455 : vector<8x128xf32>
    %c0_335 = arith.constant 0 : index
    %c0_336 = arith.constant 0 : index
    %457 = vector.load %arg7[%c0_335, %c0_336] : memref<8x128xf32, #tpu.memory_space<vmem>>, vector<8x128xf32>
    tpu.vector_store %arg7[%c0_335, %c0_336], %456 {strides = array<i32>} : memref<8x128xf32, #tpu.memory_space<vmem>>, vector<8x128xf32>,
    return
  }
  func.func @transform_0(%arg0: i32) -> (i32, i32, i32) {
    %c0_i32 = arith.constant 0 : i32
    %c0_i32_0 = arith.constant 0 : i32
    %c0_i32_1 = arith.constant 0 : i32
    return %arg0, %c0_i32, %c0_i32_0 : i32, i32, i32
  }
  func.func @transform_1(%arg0: i32) -> (i32, i32, i32) {
    %c0_i32 = arith.constant 0 : i32
    %c0_i32_0 = arith.constant 0 : i32
    %c0_i32_1 = arith.constant 0 : i32
    %c0_i32_2 = arith.constant 0 : i32
    return %c0_i32, %c0_i32_0, %c0_i32_1 : i32, i32, i32
  }
  func.func @transform_2(%arg0: i32) -> (i32, i32) {
    %c0_i32 = arith.constant 0 : i32
    %c0_i32_0 = arith.constant 0 : i32
    %c0_i32_1 = arith.constant 0 : i32
    return %c0_i32, %c0_i32_0 : i32, i32
  }
  func.func @transform_3(%arg0: i32) -> (i32, i32) {
    %c0_i32 = arith.constant 0 : i32
    %c0_i32_0 = arith.constant 0 : i32
    %c0_i32_1 = arith.constant 0 : i32
    return %c0_i32, %c0_i32_0 : i32, i32
  }
  func.func @transform_4(%arg0: i32) -> (i32, i32) {
    %c0_i32 = arith.constant 0 : i32
    %c0_i32_0 = arith.constant 0 : i32
    %c0_i32_1 = arith.constant 0 : i32
    return %c0_i32, %c0_i32_0 : i32, i32
  }
  func.func @transform_5(%arg0: i32) -> (i32, i32) {
    %c0_i32 = arith.constant 0 : i32
    %c0_i32_0 = arith.constant 0 : i32
    %c0_i32_1 = arith.constant 0 : i32
    return %c0_i32, %c0_i32_0 : i32, i32
  }
  func.func @transform_6(%arg0: i32) -> (i32, i32) {
    %c0_i32 = arith.constant 0 : i32
    %c0_i32_0 = arith.constant 0 : i32
    return %arg0, %c0_i32 : i32, i32
  }
}

module attributes {stable_mosaic.version = 11 : i64} {
  func.func @_bilstm_mlp_kernel(%arg0: i32, %arg1: memref<4x6x128xf32, #tpu.memory_space<vmem>>, %arg2: memref<128x1024xbf16, #tpu.memory_space<vmem>>, %arg3: memref<1x1024xf32, #tpu.memory_space<vmem>>, %arg4: memref<256x1024xbf16, #tpu.memory_space<vmem>>, %arg5: memref<256x128xbf16, #tpu.memory_space<vmem>>, %arg6: memref<1x128xf32, #tpu.memory_space<vmem>>, %arg7: memref<128x128xbf16, #tpu.memory_space<vmem>>, %arg8: memref<1x128xf32, #tpu.memory_space<vmem>>, %arg9: memref<128x128xbf16, #tpu.memory_space<vmem>>, %arg10: memref<1x128xf32, #tpu.memory_space<vmem>>, %arg11: memref<4x6x128xf32, #tpu.memory_space<vmem>>, %arg12: memref<4x6x1024xf32, #tpu.memory_space<vmem>>, %arg13: memref<4x6x128xf32, #tpu.memory_space<vmem>>, %arg14: memref<4x6x128xf32, #tpu.memory_space<vmem>>) attributes {dimension_semantics = [#tpu.dimension_semantics<parallel>], iteration_bounds = array<i64: 1>, scalar_prefetch = 0 : i64, scratch_operands = 3 : i64, tpu.core_type = #tpu.core_type<tc>, window_params = [{transform_indices = @transform_0, window_bounds = array<i64: 4, 6, 128>}, {pipeline_mode = #tpu.pipeline_mode<synchronous>, transform_indices = @transform_1, window_bounds = array<i64: 128, 1024>}, {pipeline_mode = #tpu.pipeline_mode<synchronous>, transform_indices = @transform_2, window_bounds = array<i64: 1, 1024>}, {pipeline_mode = #tpu.pipeline_mode<synchronous>, transform_indices = @transform_3, window_bounds = array<i64: 256, 1024>}, {pipeline_mode = #tpu.pipeline_mode<synchronous>, transform_indices = @transform_4, window_bounds = array<i64: 256, 128>}, {pipeline_mode = #tpu.pipeline_mode<synchronous>, transform_indices = @transform_5, window_bounds = array<i64: 1, 128>}, {pipeline_mode = #tpu.pipeline_mode<synchronous>, transform_indices = @transform_6, window_bounds = array<i64: 128, 128>}, {pipeline_mode = #tpu.pipeline_mode<synchronous>, transform_indices = @transform_7, window_bounds = array<i64: 1, 128>}, {pipeline_mode = #tpu.pipeline_mode<synchronous>, transform_indices = @transform_8, window_bounds = array<i64: 128, 128>}, {pipeline_mode = #tpu.pipeline_mode<synchronous>, transform_indices = @transform_9, window_bounds = array<i64: 1, 128>}, {transform_indices = @transform_10, window_bounds = array<i64: 4, 6, 128>}]} {
    %c0 = arith.constant 0 : index
    %c0_0 = arith.constant 0 : index
    %c0_1 = arith.constant 0 : index
    %0 = vector.load %arg1[%c0, %c0_0, %c0_1] : memref<4x6x128xf32, #tpu.memory_space<vmem>>, vector<4x6x128xf32>
    %1 = vector.shape_cast %0 : vector<4x6x128xf32> to vector<24x128xf32>
    %2 = arith.truncf %1 : vector<24x128xf32> to vector<24x128xbf16>
    %c0_2 = arith.constant 0 : index
    %c0_3 = arith.constant 0 : index
    %3 = vector.load %arg2[%c0_2, %c0_3] : memref<128x1024xbf16, #tpu.memory_space<vmem>>, vector<128x1024xbf16>
    %cst = arith.constant dense<0.000000e+00> : vector<24x1024xf32>
    %4 = tpu.matmul %2, %3, %cst {dimension_numbers = #tpu.dot_dimension_numbers<[1], [0], [0], [1], [0, 0, 1, 1], [], []>} : vector<24x128xbf16>, vector<128x1024xbf16>, vector<24x1024xf32> -> vector<24x1024xf32>
    %c0_4 = arith.constant 0 : index
    %c0_5 = arith.constant 0 : index
    %5 = vector.load %arg3[%c0_4, %c0_5] : memref<1x1024xf32, #tpu.memory_space<vmem>>, vector<1x1024xf32>
    %6 = vector.broadcast %5 : vector<1x1024xf32> to vector<24x1024xf32>
    %7 = arith.addf %4, %6 : vector<24x1024xf32>
    %8 = vector.shape_cast %7 : vector<24x1024xf32> to vector<4x6x1024xf32>
    %c0_6 = arith.constant 0 : index
    %c0_7 = arith.constant 0 : index
    %c0_8 = arith.constant 0 : index
    %9 = vector.load %arg12[%c0_6, %c0_7, %c0_8] : memref<4x6x1024xf32, #tpu.memory_space<vmem>>, vector<4x6x1024xf32>
    tpu.vector_store %arg12[%c0_6, %c0_7, %c0_8], %8 {strides = array<i32>} : memref<4x6x1024xf32, #tpu.memory_space<vmem>>, vector<4x6x1024xf32>,
    %c0_9 = arith.constant 0 : index
    %c0_10 = arith.constant 0 : index
    %10 = vector.load %arg4[%c0_9, %c0_10] : memref<256x1024xbf16, #tpu.memory_space<vmem>>, vector<256x1024xbf16>
    %cst_11 = arith.constant 0.000000e+00 : f32
    %11 = vector.broadcast %cst_11 : f32 to vector<6x128xf32>
    %cst_12 = arith.constant 0.000000e+00 : f32
    %12 = vector.broadcast %cst_12 : f32 to vector<6x256xf32>
    %c0_i32 = arith.constant 0 : i32
    %c3_i32 = arith.constant 3 : i32
    %13 = arith.subi %c3_i32, %c0_i32 : i32
    %14 = arith.truncf %12 : vector<6x256xf32> to vector<6x256xbf16>
    %cst_13 = arith.constant dense<0.000000e+00> : vector<6x1024xf32>
    %15 = tpu.matmul %14, %10, %cst_13 {dimension_numbers = #tpu.dot_dimension_numbers<[1], [0], [0], [1], [0, 0, 1, 1], [], []>} : vector<6x256xbf16>, vector<256x1024xbf16>, vector<6x1024xf32> -> vector<6x1024xf32>
    %16 = vector.extract_strided_slice %15 {offsets = [0, 0], sizes = [6, 512], strides = [1, 1]} : vector<6x1024xf32> to vector<6x512xf32>
    %17 = arith.index_cast %c0_i32 : i32 to index
    %c0_14 = arith.constant 0 : index
    %c0_15 = arith.constant 0 : index
    %18 = vector.load %arg12[%17, %c0_14, %c0_15] : memref<4x6x1024xf32, #tpu.memory_space<vmem>>, vector<1x6x1024xf32>
    %19 = vector.shape_cast %18 : vector<1x6x1024xf32> to vector<6x1024xf32>
    %20 = vector.extract_strided_slice %19 {offsets = [0, 0], sizes = [6, 512], strides = [1, 1]} : vector<6x1024xf32> to vector<6x512xf32>
    %21 = arith.addf %16, %20 : vector<6x512xf32>
    %22 = vector.extract_strided_slice %15 {offsets = [0, 512], sizes = [6, 512], strides = [1, 1]} : vector<6x1024xf32> to vector<6x512xf32>
    %23 = arith.index_cast %13 : i32 to index
    %c0_16 = arith.constant 0 : index
    %c0_17 = arith.constant 0 : index
    %24 = vector.load %arg12[%23, %c0_16, %c0_17] : memref<4x6x1024xf32, #tpu.memory_space<vmem>>, vector<1x6x1024xf32>
    %25 = vector.shape_cast %24 : vector<1x6x1024xf32> to vector<6x1024xf32>
    %26 = vector.extract_strided_slice %25 {offsets = [0, 512], sizes = [6, 512], strides = [1, 1]} : vector<6x1024xf32> to vector<6x512xf32>
    %27 = arith.addf %22, %26 : vector<6x512xf32>
    %28 = vector.extract_strided_slice %21 {offsets = [0, 0], sizes = [6, 128], strides = [1, 1]} : vector<6x512xf32> to vector<6x128xf32>
    %29 = arith.negf %28 : vector<6x128xf32>
    %30 = math.exp %29 : vector<6x128xf32>
    %cst_18 = arith.constant 1.000000e+00 : f32
    %31 = vector.broadcast %cst_18 : f32 to vector<6x128xf32>
    %32 = arith.addf %31, %30 : vector<6x128xf32>
    %33 = arith.divf %31, %32 : vector<6x128xf32>
    %34 = vector.extract_strided_slice %21 {offsets = [0, 128], sizes = [6, 128], strides = [1, 1]} : vector<6x512xf32> to vector<6x128xf32>
    %35 = arith.negf %34 : vector<6x128xf32>
    %36 = math.exp %35 : vector<6x128xf32>
    %cst_19 = arith.constant 1.000000e+00 : f32
    %37 = vector.broadcast %cst_19 : f32 to vector<6x128xf32>
    %38 = arith.addf %37, %36 : vector<6x128xf32>
    %39 = arith.divf %37, %38 : vector<6x128xf32>
    %40 = vector.extract_strided_slice %21 {offsets = [0, 256], sizes = [6, 128], strides = [1, 1]} : vector<6x512xf32> to vector<6x128xf32>
    %41 = math.tanh %40 : vector<6x128xf32>
    %42 = vector.extract_strided_slice %21 {offsets = [0, 384], sizes = [6, 128], strides = [1, 1]} : vector<6x512xf32> to vector<6x128xf32>
    %43 = arith.negf %42 : vector<6x128xf32>
    %44 = math.exp %43 : vector<6x128xf32>
    %cst_20 = arith.constant 1.000000e+00 : f32
    %45 = vector.broadcast %cst_20 : f32 to vector<6x128xf32>
    %46 = arith.addf %45, %44 : vector<6x128xf32>
    %47 = arith.divf %45, %46 : vector<6x128xf32>
    %48 = arith.mulf %39, %11 : vector<6x128xf32>
    %49 = arith.mulf %33, %41 : vector<6x128xf32>
    %50 = arith.addf %48, %49 : vector<6x128xf32>
    %51 = math.tanh %50 : vector<6x128xf32>
    %52 = arith.mulf %47, %51 : vector<6x128xf32>
    %53 = vector.extract_strided_slice %27 {offsets = [0, 0], sizes = [6, 128], strides = [1, 1]} : vector<6x512xf32> to vector<6x128xf32>
    %54 = arith.negf %53 : vector<6x128xf32>
    %55 = math.exp %54 : vector<6x128xf32>
    %cst_21 = arith.constant 1.000000e+00 : f32
    %56 = vector.broadcast %cst_21 : f32 to vector<6x128xf32>
    %57 = arith.addf %56, %55 : vector<6x128xf32>
    %58 = arith.divf %56, %57 : vector<6x128xf32>
    %59 = vector.extract_strided_slice %27 {offsets = [0, 128], sizes = [6, 128], strides = [1, 1]} : vector<6x512xf32> to vector<6x128xf32>
    %60 = arith.negf %59 : vector<6x128xf32>
    %61 = math.exp %60 : vector<6x128xf32>
    %cst_22 = arith.constant 1.000000e+00 : f32
    %62 = vector.broadcast %cst_22 : f32 to vector<6x128xf32>
    %63 = arith.addf %62, %61 : vector<6x128xf32>
    %64 = arith.divf %62, %63 : vector<6x128xf32>
    %65 = vector.extract_strided_slice %27 {offsets = [0, 256], sizes = [6, 128], strides = [1, 1]} : vector<6x512xf32> to vector<6x128xf32>
    %66 = math.tanh %65 : vector<6x128xf32>
    %67 = vector.extract_strided_slice %27 {offsets = [0, 384], sizes = [6, 128], strides = [1, 1]} : vector<6x512xf32> to vector<6x128xf32>
    %68 = arith.negf %67 : vector<6x128xf32>
    %69 = math.exp %68 : vector<6x128xf32>
    %cst_23 = arith.constant 1.000000e+00 : f32
    %70 = vector.broadcast %cst_23 : f32 to vector<6x128xf32>
    %71 = arith.addf %70, %69 : vector<6x128xf32>
    %72 = arith.divf %70, %71 : vector<6x128xf32>
    %73 = arith.mulf %64, %11 : vector<6x128xf32>
    %74 = arith.mulf %58, %66 : vector<6x128xf32>
    %75 = arith.addf %73, %74 : vector<6x128xf32>
    %76 = math.tanh %75 : vector<6x128xf32>
    %77 = arith.mulf %72, %76 : vector<6x128xf32>
    %78 = vector.shape_cast %52 : vector<6x128xf32> to vector<1x6x128xf32>
    %79 = arith.index_cast %c0_i32 : i32 to index
    %c0_24 = arith.constant 0 : index
    %c0_25 = arith.constant 0 : index
    %80 = vector.load %arg13[%79, %c0_24, %c0_25] : memref<4x6x128xf32, #tpu.memory_space<vmem>>, vector<1x6x128xf32>
    tpu.vector_store %arg13[%79, %c0_24, %c0_25], %78 {strides = array<i32>} : memref<4x6x128xf32, #tpu.memory_space<vmem>>, vector<1x6x128xf32>,
    %81 = vector.shape_cast %77 : vector<6x128xf32> to vector<1x6x128xf32>
    %82 = arith.index_cast %13 : i32 to index
    %c0_26 = arith.constant 0 : index
    %c0_27 = arith.constant 0 : index
    %83 = vector.load %arg14[%82, %c0_26, %c0_27] : memref<4x6x128xf32, #tpu.memory_space<vmem>>, vector<1x6x128xf32>
    tpu.vector_store %arg14[%82, %c0_26, %c0_27], %81 {strides = array<i32>} : memref<4x6x128xf32, #tpu.memory_space<vmem>>, vector<1x6x128xf32>,
    %84 = tpu.concatenate %52, %77 in 1 : vector<6x128xf32>, vector<6x128xf32> -> vector<6x256xf32>
    %c1_i32 = arith.constant 1 : i32
    %c3_i32_28 = arith.constant 3 : i32
    %85 = arith.subi %c3_i32_28, %c1_i32 : i32
    %86 = arith.truncf %84 : vector<6x256xf32> to vector<6x256xbf16>
    %cst_29 = arith.constant dense<0.000000e+00> : vector<6x1024xf32>
    %87 = tpu.matmul %86, %10, %cst_29 {dimension_numbers = #tpu.dot_dimension_numbers<[1], [0], [0], [1], [0, 0, 1, 1], [], []>} : vector<6x256xbf16>, vector<256x1024xbf16>, vector<6x1024xf32> -> vector<6x1024xf32>
    %88 = vector.extract_strided_slice %87 {offsets = [0, 0], sizes = [6, 512], strides = [1, 1]} : vector<6x1024xf32> to vector<6x512xf32>
    %89 = arith.index_cast %c1_i32 : i32 to index
    %c0_30 = arith.constant 0 : index
    %c0_31 = arith.constant 0 : index
    %90 = vector.load %arg12[%89, %c0_30, %c0_31] : memref<4x6x1024xf32, #tpu.memory_space<vmem>>, vector<1x6x1024xf32>
    %91 = vector.shape_cast %90 : vector<1x6x1024xf32> to vector<6x1024xf32>
    %92 = vector.extract_strided_slice %91 {offsets = [0, 0], sizes = [6, 512], strides = [1, 1]} : vector<6x1024xf32> to vector<6x512xf32>
    %93 = arith.addf %88, %92 : vector<6x512xf32>
    %94 = vector.extract_strided_slice %87 {offsets = [0, 512], sizes = [6, 512], strides = [1, 1]} : vector<6x1024xf32> to vector<6x512xf32>
    %95 = arith.index_cast %85 : i32 to index
    %c0_32 = arith.constant 0 : index
    %c0_33 = arith.constant 0 : index
    %96 = vector.load %arg12[%95, %c0_32, %c0_33] : memref<4x6x1024xf32, #tpu.memory_space<vmem>>, vector<1x6x1024xf32>
    %97 = vector.shape_cast %96 : vector<1x6x1024xf32> to vector<6x1024xf32>
    %98 = vector.extract_strided_slice %97 {offsets = [0, 512], sizes = [6, 512], strides = [1, 1]} : vector<6x1024xf32> to vector<6x512xf32>
    %99 = arith.addf %94, %98 : vector<6x512xf32>
    %100 = vector.extract_strided_slice %93 {offsets = [0, 0], sizes = [6, 128], strides = [1, 1]} : vector<6x512xf32> to vector<6x128xf32>
    %101 = arith.negf %100 : vector<6x128xf32>
    %102 = math.exp %101 : vector<6x128xf32>
    %cst_34 = arith.constant 1.000000e+00 : f32
    %103 = vector.broadcast %cst_34 : f32 to vector<6x128xf32>
    %104 = arith.addf %103, %102 : vector<6x128xf32>
    %105 = arith.divf %103, %104 : vector<6x128xf32>
    %106 = vector.extract_strided_slice %93 {offsets = [0, 128], sizes = [6, 128], strides = [1, 1]} : vector<6x512xf32> to vector<6x128xf32>
    %107 = arith.negf %106 : vector<6x128xf32>
    %108 = math.exp %107 : vector<6x128xf32>
    %cst_35 = arith.constant 1.000000e+00 : f32
    %109 = vector.broadcast %cst_35 : f32 to vector<6x128xf32>
    %110 = arith.addf %109, %108 : vector<6x128xf32>
    %111 = arith.divf %109, %110 : vector<6x128xf32>
    %112 = vector.extract_strided_slice %93 {offsets = [0, 256], sizes = [6, 128], strides = [1, 1]} : vector<6x512xf32> to vector<6x128xf32>
    %113 = math.tanh %112 : vector<6x128xf32>
    %114 = vector.extract_strided_slice %93 {offsets = [0, 384], sizes = [6, 128], strides = [1, 1]} : vector<6x512xf32> to vector<6x128xf32>
    %115 = arith.negf %114 : vector<6x128xf32>
    %116 = math.exp %115 : vector<6x128xf32>
    %cst_36 = arith.constant 1.000000e+00 : f32
    %117 = vector.broadcast %cst_36 : f32 to vector<6x128xf32>
    %118 = arith.addf %117, %116 : vector<6x128xf32>
    %119 = arith.divf %117, %118 : vector<6x128xf32>
    %120 = arith.mulf %111, %50 : vector<6x128xf32>
    %121 = arith.mulf %105, %113 : vector<6x128xf32>
    %122 = arith.addf %120, %121 : vector<6x128xf32>
    %123 = math.tanh %122 : vector<6x128xf32>
    %124 = arith.mulf %119, %123 : vector<6x128xf32>
    %125 = vector.extract_strided_slice %99 {offsets = [0, 0], sizes = [6, 128], strides = [1, 1]} : vector<6x512xf32> to vector<6x128xf32>
    %126 = arith.negf %125 : vector<6x128xf32>
    %127 = math.exp %126 : vector<6x128xf32>
    %cst_37 = arith.constant 1.000000e+00 : f32
    %128 = vector.broadcast %cst_37 : f32 to vector<6x128xf32>
    %129 = arith.addf %128, %127 : vector<6x128xf32>
    %130 = arith.divf %128, %129 : vector<6x128xf32>
    %131 = vector.extract_strided_slice %99 {offsets = [0, 128], sizes = [6, 128], strides = [1, 1]} : vector<6x512xf32> to vector<6x128xf32>
    %132 = arith.negf %131 : vector<6x128xf32>
    %133 = math.exp %132 : vector<6x128xf32>
    %cst_38 = arith.constant 1.000000e+00 : f32
    %134 = vector.broadcast %cst_38 : f32 to vector<6x128xf32>
    %135 = arith.addf %134, %133 : vector<6x128xf32>
    %136 = arith.divf %134, %135 : vector<6x128xf32>
    %137 = vector.extract_strided_slice %99 {offsets = [0, 256], sizes = [6, 128], strides = [1, 1]} : vector<6x512xf32> to vector<6x128xf32>
    %138 = math.tanh %137 : vector<6x128xf32>
    %139 = vector.extract_strided_slice %99 {offsets = [0, 384], sizes = [6, 128], strides = [1, 1]} : vector<6x512xf32> to vector<6x128xf32>
    %140 = arith.negf %139 : vector<6x128xf32>
    %141 = math.exp %140 : vector<6x128xf32>
    %cst_39 = arith.constant 1.000000e+00 : f32
    %142 = vector.broadcast %cst_39 : f32 to vector<6x128xf32>
    %143 = arith.addf %142, %141 : vector<6x128xf32>
    %144 = arith.divf %142, %143 : vector<6x128xf32>
    %145 = arith.mulf %136, %75 : vector<6x128xf32>
    %146 = arith.mulf %130, %138 : vector<6x128xf32>
    %147 = arith.addf %145, %146 : vector<6x128xf32>
    %148 = math.tanh %147 : vector<6x128xf32>
    %149 = arith.mulf %144, %148 : vector<6x128xf32>
    %150 = vector.shape_cast %124 : vector<6x128xf32> to vector<1x6x128xf32>
    %151 = arith.index_cast %c1_i32 : i32 to index
    %c0_40 = arith.constant 0 : index
    %c0_41 = arith.constant 0 : index
    %152 = vector.load %arg13[%151, %c0_40, %c0_41] : memref<4x6x128xf32, #tpu.memory_space<vmem>>, vector<1x6x128xf32>
    tpu.vector_store %arg13[%151, %c0_40, %c0_41], %150 {strides = array<i32>} : memref<4x6x128xf32, #tpu.memory_space<vmem>>, vector<1x6x128xf32>,
    %153 = vector.shape_cast %149 : vector<6x128xf32> to vector<1x6x128xf32>
    %154 = arith.index_cast %85 : i32 to index
    %c0_42 = arith.constant 0 : index
    %c0_43 = arith.constant 0 : index
    %155 = vector.load %arg14[%154, %c0_42, %c0_43] : memref<4x6x128xf32, #tpu.memory_space<vmem>>, vector<1x6x128xf32>
    tpu.vector_store %arg14[%154, %c0_42, %c0_43], %153 {strides = array<i32>} : memref<4x6x128xf32, #tpu.memory_space<vmem>>, vector<1x6x128xf32>,
    %156 = tpu.concatenate %124, %149 in 1 : vector<6x128xf32>, vector<6x128xf32> -> vector<6x256xf32>
    %c2_i32 = arith.constant 2 : i32
    %c3_i32_44 = arith.constant 3 : i32
    %157 = arith.subi %c3_i32_44, %c2_i32 : i32
    %158 = arith.truncf %156 : vector<6x256xf32> to vector<6x256xbf16>
    %cst_45 = arith.constant dense<0.000000e+00> : vector<6x1024xf32>
    %159 = tpu.matmul %158, %10, %cst_45 {dimension_numbers = #tpu.dot_dimension_numbers<[1], [0], [0], [1], [0, 0, 1, 1], [], []>} : vector<6x256xbf16>, vector<256x1024xbf16>, vector<6x1024xf32> -> vector<6x1024xf32>
    %160 = vector.extract_strided_slice %159 {offsets = [0, 0], sizes = [6, 512], strides = [1, 1]} : vector<6x1024xf32> to vector<6x512xf32>
    %161 = arith.index_cast %c2_i32 : i32 to index
    %c0_46 = arith.constant 0 : index
    %c0_47 = arith.constant 0 : index
    %162 = vector.load %arg12[%161, %c0_46, %c0_47] : memref<4x6x1024xf32, #tpu.memory_space<vmem>>, vector<1x6x1024xf32>
    %163 = vector.shape_cast %162 : vector<1x6x1024xf32> to vector<6x1024xf32>
    %164 = vector.extract_strided_slice %163 {offsets = [0, 0], sizes = [6, 512], strides = [1, 1]} : vector<6x1024xf32> to vector<6x512xf32>
    %165 = arith.addf %160, %164 : vector<6x512xf32>
    %166 = vector.extract_strided_slice %159 {offsets = [0, 512], sizes = [6, 512], strides = [1, 1]} : vector<6x1024xf32> to vector<6x512xf32>
    %167 = arith.index_cast %157 : i32 to index
    %c0_48 = arith.constant 0 : index
    %c0_49 = arith.constant 0 : index
    %168 = vector.load %arg12[%167, %c0_48, %c0_49] : memref<4x6x1024xf32, #tpu.memory_space<vmem>>, vector<1x6x1024xf32>
    %169 = vector.shape_cast %168 : vector<1x6x1024xf32> to vector<6x1024xf32>
    %170 = vector.extract_strided_slice %169 {offsets = [0, 512], sizes = [6, 512], strides = [1, 1]} : vector<6x1024xf32> to vector<6x512xf32>
    %171 = arith.addf %166, %170 : vector<6x512xf32>
    %172 = vector.extract_strided_slice %165 {offsets = [0, 0], sizes = [6, 128], strides = [1, 1]} : vector<6x512xf32> to vector<6x128xf32>
    %173 = arith.negf %172 : vector<6x128xf32>
    %174 = math.exp %173 : vector<6x128xf32>
    %cst_50 = arith.constant 1.000000e+00 : f32
    %175 = vector.broadcast %cst_50 : f32 to vector<6x128xf32>
    %176 = arith.addf %175, %174 : vector<6x128xf32>
    %177 = arith.divf %175, %176 : vector<6x128xf32>
    %178 = vector.extract_strided_slice %165 {offsets = [0, 128], sizes = [6, 128], strides = [1, 1]} : vector<6x512xf32> to vector<6x128xf32>
    %179 = arith.negf %178 : vector<6x128xf32>
    %180 = math.exp %179 : vector<6x128xf32>
    %cst_51 = arith.constant 1.000000e+00 : f32
    %181 = vector.broadcast %cst_51 : f32 to vector<6x128xf32>
    %182 = arith.addf %181, %180 : vector<6x128xf32>
    %183 = arith.divf %181, %182 : vector<6x128xf32>
    %184 = vector.extract_strided_slice %165 {offsets = [0, 256], sizes = [6, 128], strides = [1, 1]} : vector<6x512xf32> to vector<6x128xf32>
    %185 = math.tanh %184 : vector<6x128xf32>
    %186 = vector.extract_strided_slice %165 {offsets = [0, 384], sizes = [6, 128], strides = [1, 1]} : vector<6x512xf32> to vector<6x128xf32>
    %187 = arith.negf %186 : vector<6x128xf32>
    %188 = math.exp %187 : vector<6x128xf32>
    %cst_52 = arith.constant 1.000000e+00 : f32
    %189 = vector.broadcast %cst_52 : f32 to vector<6x128xf32>
    %190 = arith.addf %189, %188 : vector<6x128xf32>
    %191 = arith.divf %189, %190 : vector<6x128xf32>
    %192 = arith.mulf %183, %122 : vector<6x128xf32>
    %193 = arith.mulf %177, %185 : vector<6x128xf32>
    %194 = arith.addf %192, %193 : vector<6x128xf32>
    %195 = math.tanh %194 : vector<6x128xf32>
    %196 = arith.mulf %191, %195 : vector<6x128xf32>
    %197 = vector.extract_strided_slice %171 {offsets = [0, 0], sizes = [6, 128], strides = [1, 1]} : vector<6x512xf32> to vector<6x128xf32>
    %198 = arith.negf %197 : vector<6x128xf32>
    %199 = math.exp %198 : vector<6x128xf32>
    %cst_53 = arith.constant 1.000000e+00 : f32
    %200 = vector.broadcast %cst_53 : f32 to vector<6x128xf32>
    %201 = arith.addf %200, %199 : vector<6x128xf32>
    %202 = arith.divf %200, %201 : vector<6x128xf32>
    %203 = vector.extract_strided_slice %171 {offsets = [0, 128], sizes = [6, 128], strides = [1, 1]} : vector<6x512xf32> to vector<6x128xf32>
    %204 = arith.negf %203 : vector<6x128xf32>
    %205 = math.exp %204 : vector<6x128xf32>
    %cst_54 = arith.constant 1.000000e+00 : f32
    %206 = vector.broadcast %cst_54 : f32 to vector<6x128xf32>
    %207 = arith.addf %206, %205 : vector<6x128xf32>
    %208 = arith.divf %206, %207 : vector<6x128xf32>
    %209 = vector.extract_strided_slice %171 {offsets = [0, 256], sizes = [6, 128], strides = [1, 1]} : vector<6x512xf32> to vector<6x128xf32>
    %210 = math.tanh %209 : vector<6x128xf32>
    %211 = vector.extract_strided_slice %171 {offsets = [0, 384], sizes = [6, 128], strides = [1, 1]} : vector<6x512xf32> to vector<6x128xf32>
    %212 = arith.negf %211 : vector<6x128xf32>
    %213 = math.exp %212 : vector<6x128xf32>
    %cst_55 = arith.constant 1.000000e+00 : f32
    %214 = vector.broadcast %cst_55 : f32 to vector<6x128xf32>
    %215 = arith.addf %214, %213 : vector<6x128xf32>
    %216 = arith.divf %214, %215 : vector<6x128xf32>
    %217 = arith.mulf %208, %147 : vector<6x128xf32>
    %218 = arith.mulf %202, %210 : vector<6x128xf32>
    %219 = arith.addf %217, %218 : vector<6x128xf32>
    %220 = math.tanh %219 : vector<6x128xf32>
    %221 = arith.mulf %216, %220 : vector<6x128xf32>
    %222 = vector.shape_cast %196 : vector<6x128xf32> to vector<1x6x128xf32>
    %223 = arith.index_cast %c2_i32 : i32 to index
    %c0_56 = arith.constant 0 : index
    %c0_57 = arith.constant 0 : index
    %224 = vector.load %arg13[%223, %c0_56, %c0_57] : memref<4x6x128xf32, #tpu.memory_space<vmem>>, vector<1x6x128xf32>
    tpu.vector_store %arg13[%223, %c0_56, %c0_57], %222 {strides = array<i32>} : memref<4x6x128xf32, #tpu.memory_space<vmem>>, vector<1x6x128xf32>,
    %225 = vector.shape_cast %221 : vector<6x128xf32> to vector<1x6x128xf32>
    %226 = arith.index_cast %157 : i32 to index
    %c0_58 = arith.constant 0 : index
    %c0_59 = arith.constant 0 : index
    %227 = vector.load %arg14[%226, %c0_58, %c0_59] : memref<4x6x128xf32, #tpu.memory_space<vmem>>, vector<1x6x128xf32>
    tpu.vector_store %arg14[%226, %c0_58, %c0_59], %225 {strides = array<i32>} : memref<4x6x128xf32, #tpu.memory_space<vmem>>, vector<1x6x128xf32>,
    %228 = tpu.concatenate %196, %221 in 1 : vector<6x128xf32>, vector<6x128xf32> -> vector<6x256xf32>
    %c3_i32_60 = arith.constant 3 : i32
    %c3_i32_61 = arith.constant 3 : i32
    %229 = arith.subi %c3_i32_61, %c3_i32_60 : i32
    %230 = arith.truncf %228 : vector<6x256xf32> to vector<6x256xbf16>
    %cst_62 = arith.constant dense<0.000000e+00> : vector<6x1024xf32>
    %231 = tpu.matmul %230, %10, %cst_62 {dimension_numbers = #tpu.dot_dimension_numbers<[1], [0], [0], [1], [0, 0, 1, 1], [], []>} : vector<6x256xbf16>, vector<256x1024xbf16>, vector<6x1024xf32> -> vector<6x1024xf32>
    %232 = vector.extract_strided_slice %231 {offsets = [0, 0], sizes = [6, 512], strides = [1, 1]} : vector<6x1024xf32> to vector<6x512xf32>
    %233 = arith.index_cast %c3_i32_60 : i32 to index
    %c0_63 = arith.constant 0 : index
    %c0_64 = arith.constant 0 : index
    %234 = vector.load %arg12[%233, %c0_63, %c0_64] : memref<4x6x1024xf32, #tpu.memory_space<vmem>>, vector<1x6x1024xf32>
    %235 = vector.shape_cast %234 : vector<1x6x1024xf32> to vector<6x1024xf32>
    %236 = vector.extract_strided_slice %235 {offsets = [0, 0], sizes = [6, 512], strides = [1, 1]} : vector<6x1024xf32> to vector<6x512xf32>
    %237 = arith.addf %232, %236 : vector<6x512xf32>
    %238 = vector.extract_strided_slice %231 {offsets = [0, 512], sizes = [6, 512], strides = [1, 1]} : vector<6x1024xf32> to vector<6x512xf32>
    %239 = arith.index_cast %229 : i32 to index
    %c0_65 = arith.constant 0 : index
    %c0_66 = arith.constant 0 : index
    %240 = vector.load %arg12[%239, %c0_65, %c0_66] : memref<4x6x1024xf32, #tpu.memory_space<vmem>>, vector<1x6x1024xf32>
    %241 = vector.shape_cast %240 : vector<1x6x1024xf32> to vector<6x1024xf32>
    %242 = vector.extract_strided_slice %241 {offsets = [0, 512], sizes = [6, 512], strides = [1, 1]} : vector<6x1024xf32> to vector<6x512xf32>
    %243 = arith.addf %238, %242 : vector<6x512xf32>
    %244 = vector.extract_strided_slice %237 {offsets = [0, 0], sizes = [6, 128], strides = [1, 1]} : vector<6x512xf32> to vector<6x128xf32>
    %245 = arith.negf %244 : vector<6x128xf32>
    %246 = math.exp %245 : vector<6x128xf32>
    %cst_67 = arith.constant 1.000000e+00 : f32
    %247 = vector.broadcast %cst_67 : f32 to vector<6x128xf32>
    %248 = arith.addf %247, %246 : vector<6x128xf32>
    %249 = arith.divf %247, %248 : vector<6x128xf32>
    %250 = vector.extract_strided_slice %237 {offsets = [0, 128], sizes = [6, 128], strides = [1, 1]} : vector<6x512xf32> to vector<6x128xf32>
    %251 = arith.negf %250 : vector<6x128xf32>
    %252 = math.exp %251 : vector<6x128xf32>
    %cst_68 = arith.constant 1.000000e+00 : f32
    %253 = vector.broadcast %cst_68 : f32 to vector<6x128xf32>
    %254 = arith.addf %253, %252 : vector<6x128xf32>
    %255 = arith.divf %253, %254 : vector<6x128xf32>
    %256 = vector.extract_strided_slice %237 {offsets = [0, 256], sizes = [6, 128], strides = [1, 1]} : vector<6x512xf32> to vector<6x128xf32>
    %257 = math.tanh %256 : vector<6x128xf32>
    %258 = vector.extract_strided_slice %237 {offsets = [0, 384], sizes = [6, 128], strides = [1, 1]} : vector<6x512xf32> to vector<6x128xf32>
    %259 = arith.negf %258 : vector<6x128xf32>
    %260 = math.exp %259 : vector<6x128xf32>
    %cst_69 = arith.constant 1.000000e+00 : f32
    %261 = vector.broadcast %cst_69 : f32 to vector<6x128xf32>
    %262 = arith.addf %261, %260 : vector<6x128xf32>
    %263 = arith.divf %261, %262 : vector<6x128xf32>
    %264 = arith.mulf %255, %194 : vector<6x128xf32>
    %265 = arith.mulf %249, %257 : vector<6x128xf32>
    %266 = arith.addf %264, %265 : vector<6x128xf32>
    %267 = math.tanh %266 : vector<6x128xf32>
    %268 = arith.mulf %263, %267 : vector<6x128xf32>
    %269 = vector.extract_strided_slice %243 {offsets = [0, 0], sizes = [6, 128], strides = [1, 1]} : vector<6x512xf32> to vector<6x128xf32>
    %270 = arith.negf %269 : vector<6x128xf32>
    %271 = math.exp %270 : vector<6x128xf32>
    %cst_70 = arith.constant 1.000000e+00 : f32
    %272 = vector.broadcast %cst_70 : f32 to vector<6x128xf32>
    %273 = arith.addf %272, %271 : vector<6x128xf32>
    %274 = arith.divf %272, %273 : vector<6x128xf32>
    %275 = vector.extract_strided_slice %243 {offsets = [0, 128], sizes = [6, 128], strides = [1, 1]} : vector<6x512xf32> to vector<6x128xf32>
    %276 = arith.negf %275 : vector<6x128xf32>
    %277 = math.exp %276 : vector<6x128xf32>
    %cst_71 = arith.constant 1.000000e+00 : f32
    %278 = vector.broadcast %cst_71 : f32 to vector<6x128xf32>
    %279 = arith.addf %278, %277 : vector<6x128xf32>
    %280 = arith.divf %278, %279 : vector<6x128xf32>
    %281 = vector.extract_strided_slice %243 {offsets = [0, 256], sizes = [6, 128], strides = [1, 1]} : vector<6x512xf32> to vector<6x128xf32>
    %282 = math.tanh %281 : vector<6x128xf32>
    %283 = vector.extract_strided_slice %243 {offsets = [0, 384], sizes = [6, 128], strides = [1, 1]} : vector<6x512xf32> to vector<6x128xf32>
    %284 = arith.negf %283 : vector<6x128xf32>
    %285 = math.exp %284 : vector<6x128xf32>
    %cst_72 = arith.constant 1.000000e+00 : f32
    %286 = vector.broadcast %cst_72 : f32 to vector<6x128xf32>
    %287 = arith.addf %286, %285 : vector<6x128xf32>
    %288 = arith.divf %286, %287 : vector<6x128xf32>
    %289 = arith.mulf %280, %219 : vector<6x128xf32>
    %290 = arith.mulf %274, %282 : vector<6x128xf32>
    %291 = arith.addf %289, %290 : vector<6x128xf32>
    %292 = math.tanh %291 : vector<6x128xf32>
    %293 = arith.mulf %288, %292 : vector<6x128xf32>
    %294 = vector.shape_cast %268 : vector<6x128xf32> to vector<1x6x128xf32>
    %295 = arith.index_cast %c3_i32_60 : i32 to index
    %c0_73 = arith.constant 0 : index
    %c0_74 = arith.constant 0 : index
    %296 = vector.load %arg13[%295, %c0_73, %c0_74] : memref<4x6x128xf32, #tpu.memory_space<vmem>>, vector<1x6x128xf32>
    tpu.vector_store %arg13[%295, %c0_73, %c0_74], %294 {strides = array<i32>} : memref<4x6x128xf32, #tpu.memory_space<vmem>>, vector<1x6x128xf32>,
    %297 = vector.shape_cast %293 : vector<6x128xf32> to vector<1x6x128xf32>
    %298 = arith.index_cast %229 : i32 to index
    %c0_75 = arith.constant 0 : index
    %c0_76 = arith.constant 0 : index
    %299 = vector.load %arg14[%298, %c0_75, %c0_76] : memref<4x6x128xf32, #tpu.memory_space<vmem>>, vector<1x6x128xf32>
    tpu.vector_store %arg14[%298, %c0_75, %c0_76], %297 {strides = array<i32>} : memref<4x6x128xf32, #tpu.memory_space<vmem>>, vector<1x6x128xf32>,
    %300 = tpu.concatenate %268, %293 in 1 : vector<6x128xf32>, vector<6x128xf32> -> vector<6x256xf32>
    %c4_i32 = arith.constant 4 : i32
    %c0_77 = arith.constant 0 : index
    %c0_78 = arith.constant 0 : index
    %c0_79 = arith.constant 0 : index
    %301 = vector.load %arg13[%c0_77, %c0_78, %c0_79] : memref<4x6x128xf32, #tpu.memory_space<vmem>>, vector<4x6x128xf32>
    %c0_80 = arith.constant 0 : index
    %c0_81 = arith.constant 0 : index
    %c0_82 = arith.constant 0 : index
    %302 = vector.load %arg14[%c0_80, %c0_81, %c0_82] : memref<4x6x128xf32, #tpu.memory_space<vmem>>, vector<4x6x128xf32>
    %303 = tpu.concatenate %301, %302 in 2 : vector<4x6x128xf32>, vector<4x6x128xf32> -> vector<4x6x256xf32>
    %304 = vector.shape_cast %303 : vector<4x6x256xf32> to vector<24x256xf32>
    %305 = arith.truncf %304 : vector<24x256xf32> to vector<24x256xbf16>
    %c0_83 = arith.constant 0 : index
    %c0_84 = arith.constant 0 : index
    %306 = vector.load %arg5[%c0_83, %c0_84] : memref<256x128xbf16, #tpu.memory_space<vmem>>, vector<256x128xbf16>
    %cst_85 = arith.constant dense<0.000000e+00> : vector<24x128xf32>
    %307 = tpu.matmul %305, %306, %cst_85 {dimension_numbers = #tpu.dot_dimension_numbers<[1], [0], [0], [1], [0, 0, 1, 1], [], []>} : vector<24x256xbf16>, vector<256x128xbf16>, vector<24x128xf32> -> vector<24x128xf32>
    %c0_86 = arith.constant 0 : index
    %c0_87 = arith.constant 0 : index
    %308 = vector.load %arg6[%c0_86, %c0_87] : memref<1x128xf32, #tpu.memory_space<vmem>>, vector<1x128xf32>
    %309 = vector.broadcast %308 : vector<1x128xf32> to vector<24x128xf32>
    %310 = arith.addf %307, %309 : vector<24x128xf32>
    %cst_88 = arith.constant 0.000000e+00 : f32
    %311 = vector.broadcast %cst_88 : f32 to vector<24x128xf32>
    %312 = arith.cmpf ogt, %310, %311 : vector<24x128xf32>
    %cst_89 = arith.constant 0.00999999977 : f32
    %313 = vector.broadcast %cst_89 : f32 to vector<24x128xf32>
    %314 = arith.mulf %313, %310 : vector<24x128xf32>
    %315 = arith.select %312, %310, %314 : vector<24x128xi1>, vector<24x128xf32>
    %316 = arith.truncf %315 : vector<24x128xf32> to vector<24x128xbf16>
    %c0_90 = arith.constant 0 : index
    %c0_91 = arith.constant 0 : index
    %317 = vector.load %arg7[%c0_90, %c0_91] : memref<128x128xbf16, #tpu.memory_space<vmem>>, vector<128x128xbf16>
    %cst_92 = arith.constant dense<0.000000e+00> : vector<24x128xf32>
    %318 = tpu.matmul %316, %317, %cst_92 {dimension_numbers = #tpu.dot_dimension_numbers<[1], [0], [0], [1], [0, 0, 1, 1], [], []>} : vector<24x128xbf16>, vector<128x128xbf16>, vector<24x128xf32> -> vector<24x128xf32>
    %c0_93 = arith.constant 0 : index
    %c0_94 = arith.constant 0 : index
    %319 = vector.load %arg8[%c0_93, %c0_94] : memref<1x128xf32, #tpu.memory_space<vmem>>, vector<1x128xf32>
    %320 = vector.broadcast %319 : vector<1x128xf32> to vector<24x128xf32>
    %321 = arith.addf %318, %320 : vector<24x128xf32>
    %cst_95 = arith.constant 0.000000e+00 : f32
    %322 = vector.broadcast %cst_95 : f32 to vector<24x128xf32>
    %323 = arith.cmpf ogt, %321, %322 : vector<24x128xf32>
    %cst_96 = arith.constant 0.00999999977 : f32
    %324 = vector.broadcast %cst_96 : f32 to vector<24x128xf32>
    %325 = arith.mulf %324, %321 : vector<24x128xf32>
    %326 = arith.select %323, %321, %325 : vector<24x128xi1>, vector<24x128xf32>
    %327 = arith.truncf %326 : vector<24x128xf32> to vector<24x128xbf16>
    %c0_97 = arith.constant 0 : index
    %c0_98 = arith.constant 0 : index
    %328 = vector.load %arg9[%c0_97, %c0_98] : memref<128x128xbf16, #tpu.memory_space<vmem>>, vector<128x128xbf16>
    %cst_99 = arith.constant dense<0.000000e+00> : vector<24x128xf32>
    %329 = tpu.matmul %327, %328, %cst_99 {dimension_numbers = #tpu.dot_dimension_numbers<[1], [0], [0], [1], [0, 0, 1, 1], [], []>} : vector<24x128xbf16>, vector<128x128xbf16>, vector<24x128xf32> -> vector<24x128xf32>
    %c0_100 = arith.constant 0 : index
    %c0_101 = arith.constant 0 : index
    %330 = vector.load %arg10[%c0_100, %c0_101] : memref<1x128xf32, #tpu.memory_space<vmem>>, vector<1x128xf32>
    %331 = vector.broadcast %330 : vector<1x128xf32> to vector<24x128xf32>
    %332 = arith.addf %329, %331 : vector<24x128xf32>
    %333 = vector.shape_cast %332 : vector<24x128xf32> to vector<4x6x128xf32>
    %c0_102 = arith.constant 0 : index
    %c0_103 = arith.constant 0 : index
    %c0_104 = arith.constant 0 : index
    %334 = vector.load %arg11[%c0_102, %c0_103, %c0_104] : memref<4x6x128xf32, #tpu.memory_space<vmem>>, vector<4x6x128xf32>
    tpu.vector_store %arg11[%c0_102, %c0_103, %c0_104], %333 {strides = array<i32>} : memref<4x6x128xf32, #tpu.memory_space<vmem>>, vector<4x6x128xf32>,
    return
  }
  func.func @transform_0(%arg0: i32) -> (i32, i32, i32) {
    %c0_i32 = arith.constant 0 : i32
    %c0_i32_0 = arith.constant 0 : i32
    %c0_i32_1 = arith.constant 0 : i32
    return %c0_i32, %arg0, %c0_i32_0 : i32, i32, i32
  }
  func.func @transform_1(%arg0: i32) -> (i32, i32) {
    %c0_i32 = arith.constant 0 : i32
    %c0_i32_0 = arith.constant 0 : i32
    %c0_i32_1 = arith.constant 0 : i32
    return %c0_i32, %c0_i32_0 : i32, i32
  }
  func.func @transform_2(%arg0: i32) -> (i32, i32) {
    %c0_i32 = arith.constant 0 : i32
    %c0_i32_0 = arith.constant 0 : i32
    %c0_i32_1 = arith.constant 0 : i32
    return %c0_i32, %c0_i32_0 : i32, i32
  }
  func.func @transform_3(%arg0: i32) -> (i32, i32) {
    %c0_i32 = arith.constant 0 : i32
    %c0_i32_0 = arith.constant 0 : i32
    %c0_i32_1 = arith.constant 0 : i32
    return %c0_i32, %c0_i32_0 : i32, i32
  }
  func.func @transform_4(%arg0: i32) -> (i32, i32) {
    %c0_i32 = arith.constant 0 : i32
    %c0_i32_0 = arith.constant 0 : i32
    %c0_i32_1 = arith.constant 0 : i32
    return %c0_i32, %c0_i32_0 : i32, i32
  }
  func.func @transform_5(%arg0: i32) -> (i32, i32) {
    %c0_i32 = arith.constant 0 : i32
    %c0_i32_0 = arith.constant 0 : i32
    %c0_i32_1 = arith.constant 0 : i32
    return %c0_i32, %c0_i32_0 : i32, i32
  }
  func.func @transform_6(%arg0: i32) -> (i32, i32) {
    %c0_i32 = arith.constant 0 : i32
    %c0_i32_0 = arith.constant 0 : i32
    %c0_i32_1 = arith.constant 0 : i32
    return %c0_i32, %c0_i32_0 : i32, i32
  }
  func.func @transform_7(%arg0: i32) -> (i32, i32) {
    %c0_i32 = arith.constant 0 : i32
    %c0_i32_0 = arith.constant 0 : i32
    %c0_i32_1 = arith.constant 0 : i32
    return %c0_i32, %c0_i32_0 : i32, i32
  }
  func.func @transform_8(%arg0: i32) -> (i32, i32) {
    %c0_i32 = arith.constant 0 : i32
    %c0_i32_0 = arith.constant 0 : i32
    %c0_i32_1 = arith.constant 0 : i32
    return %c0_i32, %c0_i32_0 : i32, i32
  }
  func.func @transform_9(%arg0: i32) -> (i32, i32) {
    %c0_i32 = arith.constant 0 : i32
    %c0_i32_0 = arith.constant 0 : i32
    %c0_i32_1 = arith.constant 0 : i32
    return %c0_i32, %c0_i32_0 : i32, i32
  }
  func.func @transform_10(%arg0: i32) -> (i32, i32, i32) {
    %c0_i32 = arith.constant 0 : i32
    %c0_i32_0 = arith.constant 0 : i32
    %c0_i32_1 = arith.constant 0 : i32
    return %c0_i32, %arg0, %c0_i32_0 : i32, i32, i32
  }
}

</mosaic_0001>

<bundles_post_ra>
// kernel: baseline_seq_forward.3
= control target key start
LH: loop header
LB: loop body
LE: loop exit
PB: predicated region body
PF: predicated region fallthrough
CT: control target
= control target key end

     0   :  { %v48_v0 = vlaneseq  ;;  %v6103_v4 = vmov 0   ;;  %v4324_v5 = vmov 1983009808   ;;  %s6092_s1 = inlined_call_operand.vmem [shape: bf16[128,1024], index: 1, kind: input, shape index: {}]   ;;  %s6093_s0 = inlined_call_operand.vmem [shape: f32[4,6,128], index: 0, kind: input, shape index: {}]   ;;  %s6094_s3 = inlined_call_operand.vmem [shape: bf16[256,1024], index: 3, kind: input, shape index: {}]   ;;  %s6095_s2 = inlined_call_operand.vmem [shape: f32[1,1024], index: 2, kind: input, shape index: {}]   ;;  %s6096_s4 = inlined_call_operand.vmem [shape: bf16[256,128], index: 4, kind: input, shape index: {}]   ;;  %s6097_s6 = inlined_call_operand.vmem [shape: bf16[128,128], index: 6, kind: input, shape index: {}]   ;;  %s6098_s8 = inlined_call_operand.vmem [shape: bf16[128,128], index: 8, kind: input, shape index: {}]   ;;  %s6099_s5 = inlined_call_operand.vmem [shape: f32[1,128], index: 5, kind: input, shape index: {}]   ;;  %s6100_s7 = inlined_call_operand.vmem [shape: f32[1,128], index: 7, kind: input, shape index: {}]   ;;  %s6101_s9 = inlined_call_operand.vmem [shape: f32[1,128], index: 9, kind: input, shape index: {}]   ;;  %s6102_s10 = inlined_call_operand.vmem [shape: f32[4,6,128], index: 10, kind: output, shape index: {}]  }
   0x1   :  { %v164_v1 = vld [vmem:[%s6092_s1] sm:$0xff]  ;;  %v165_v3 = vld [vmem:[%s6092_s1 + $0x8] sm:$0xff]  ;;  %622 = vmatprep.mubr.bf16.mxu0 %v6103_v4  ;;  %673 = vmatprep.mubr.bf16.mxu1 %v6103_v4  ;;  %v46_v6 = vunpack.c.l.s4 %v4324_v5  ;;  %v38_v43 = vld [vmem:[%s6093_s0 + $0x10] sm:$0x3f] }
   0x2   :  { %v168_v2 = vld [vmem:[%s6092_s1 + $0x20] sm:$0xff]  ;;  %v169_v8 = vld [vmem:[%s6092_s1 + $0x28] sm:$0xff]  ;;  %v4418_v23 = vshrl.u32 %v48_v0, 7  ;;  %v39_v63 = vld [vmem:[%s6093_s0 + $0x18] sm:$0x3f] }
   0x3   :  { %v3803_v7 = vcombine.high %v164_v1, %v168_v2  ;;  %v3802_v9 = vcombine.low %v164_v1, %v168_v2  ;;  %v172_v10 = vld [vmem:[%s6092_s1 + $0x40] sm:$0xff]  ;;  %v3805_v12 = vcombine.high %v165_v3, %v169_v8  ;;  %v3804_v13 = vcombine.low %v165_v3, %v169_v8  ;;  %v173_v15 = vld [vmem:[%s6092_s1 + $0x48] sm:$0xff] }
   0x4   :  { %v176_v11 = vld [vmem:[%s6092_s1 + $0x60] sm:$0xff]  ;;  %v177_v16 = vld [vmem:[%s6092_s1 + $0x68] sm:$0xff]  ;;  %v47_v22 = vunpack.c.0.s8 %v46_v6  ;;  %6357 = vst [vmem:[#allocation5_spill] sm:$0xff] %v4418_v23 }
   0x5   :  { %v3811_v14 = vcombine.high %v172_v10, %v176_v11  ;;  %v180_v17 = vld [vmem:[%s6092_s1 + $0x80] sm:$0xff]  ;;  %590 = vmatprep.subr.bf16.mxu0 %v3803_v7  ;;  %v3813_v18 = vcombine.high %v173_v15, %v177_v16  ;;  %v181_v20 = vld [vmem:[%s6092_s1 + $0x88] sm:$0xff]  ;;  %641 = vmatprep.subr.bf16.mxu1 %v3805_v12  ;;  %v3810_v24 = vcombine.low %v172_v10, %v176_v11 }
   0x6   :  { %v184_v19 = vld [vmem:[%s6092_s1 + $0xa0] sm:$0xff]  ;;  %v185_v21 = vld [vmem:[%s6092_s1 + $0xa8] sm:$0xff]  ;;  %591 = vmatpush1.bf16.msra.mxu0 %v3802_v9  ;;  %642 = vmatpush1.bf16.msra.mxu1 %v3804_v13  ;;  %v3812_v25 = vcombine.low %v173_v15, %v177_v16  ;;  %v4433_v32 = vsub.s32 %v47_v22, %v4418_v23  ;;  %v76_v12 = vcombine.high %v38_v43, %v38_v43  ;;  %v1404_v23 = vld [vmem:[%s6094_s3 + $0xd0] sm:$0xff] }
   0x7   :  { %592 = vmatprep.subr.bf16.mxu0 %v3811_v14  ;;  %v3819_v26 = vcombine.high %v180_v17, %v184_v19  ;;  %643 = vmatprep.subr.bf16.mxu1 %v3813_v18  ;;  %v3821_v27 = vcombine.high %v181_v20, %v185_v21  ;;  %v188_v28 = vld [vmem:[%s6092_s1 + $0xc0] sm:$0xff]  ;;  %v189_v30 = vld [vmem:[%s6092_s1 + $0xc8] sm:$0xff]  ;;  %v3818_v33 = vcombine.low %v180_v17, %v184_v19 }
   0x8   :  { %v192_v29 = vld [vmem:[%s6092_s1 + $0xe0] sm:$0xff]  ;;  %v193_v31 = vld [vmem:[%s6092_s1 + $0xe8] sm:$0xff]  ;;  %6358 = vst [vmem:[#allocation6_spill] sm:$0xff] %v4433_v32  ;;  %v3820_v34 = vcombine.low %v181_v20, %v185_v21  ;;  %v83_v49 = vrot.slane %v38_v43, %v4433_v32  ;;  %v92_v13 = vcombine.high %v39_v63, %v39_v63  ;;  %v99_v14 = vrot.slane %v39_v63, %v4433_v32  ;;  %v187_v63 = vld [vmem:[%s6092_s1 + $0xb8] sm:$0xff] }
   0x9   :  { %v3827_v35 = vcombine.high %v188_v28, %v192_v29  ;;  %v196_v36 = vld [vmem:[%s6092_s1 + $0x100] sm:$0xff]  ;;  %v3829_v38 = vcombine.high %v189_v30, %v193_v31  ;;  %v197_v39 = vld [vmem:[%s6092_s1 + $0x108] sm:$0xff]  ;;  %v3826_v46 = vcombine.low %v188_v28, %v192_v29  ;;  %v3828_v50 = vcombine.low %v189_v30, %v193_v31 }
   0xa   :  { %593 = vmatpush1.bf16.msra.mxu0 %v3810_v24  ;;  %644 = vmatpush1.bf16.msra.mxu1 %v3812_v25  ;;  %v200_v37 = vld [vmem:[%s6092_s1 + $0x120] sm:$0xff]  ;;  %v201_v40 = vld [vmem:[%s6092_s1 + $0x128] sm:$0xff]  ;;  %v91_v61 = vcombine.high %v83_v49, %v83_v49  ;;  %v90_v28 = vrot.slane %v76_v12, %v4433_v32  ;;  %v106_v29 = vrot.slane %v92_v13, %v4433_v32 }
   0xb   :  { %594 = vmatprep.subr.bf16.mxu0 %v3819_v26  ;;  %645 = vmatprep.subr.bf16.mxu1 %v3821_v27  ;;  %v36_v41 = vld [vmem:[%s6093_s0] sm:$0x3f]  ;;  %v37_v42 = vld [vmem:[%s6093_s0 + $0x8] sm:$0x3f]  ;;  %v3835_v51 = vcombine.high %v196_v36, %v200_v37  ;;  %v3837_v52 = vcombine.high %v197_v39, %v201_v40  ;;  %v3834_v62 = vcombine.low %v196_v36, %v200_v37  ;;  %v166_v36 = vld [vmem:[%s6092_s1 + $0x10] sm:$0xff] }
   0xc   :  { %v44_v44 = vcombine.high %v36_v41, %v36_v41  ;;  %v51_v45 = vrot.slane %v36_v41, %v4433_v32  ;;  %v60_v47 = vcombine.high %v37_v42, %v37_v42  ;;  %v67_v48 = vrot.slane %v37_v42, %v4433_v32  ;;  %v204_v53 = vld [vmem:[%s6092_s1 + $0x140] sm:$0xff]  ;;  %v205_v59 = vld [vmem:[%s6092_s1 + $0x148] sm:$0xff]  ;;  %v170_v37 = vld [vmem:[%s6092_s1 + $0x30] sm:$0xff] }
   0xd   :  { %v208_v54 = vld [vmem:[%s6092_s1 + $0x160] sm:$0xff]  ;;  %v209_v60 = vld [vmem:[%s6092_s1 + $0x168] sm:$0xff]  ;;  %v3836_v0 = vcombine.low %v197_v39, %v201_v40  ;;  %v126_v11 = vcombine.low %v83_v49, %v91_v61  ;;  %v107_v30 = vcombine.high %v99_v14, %v99_v14  ;;  %v167_v40 = vld [vmem:[%s6092_s1 + $0x18] sm:$0xff]  ;;  %v142_v42 = vcombine.low %v90_v28, %v99_v14 }
   0xe   :  { %595 = vmatpush1.bf16.msra.mxu0 %v3818_v33  ;;  %646 = vmatpush1.bf16.msra.mxu1 %v3820_v34  ;;  %v58_v55 = vrot.slane %v44_v44, %v4433_v32  ;;  %v59_v56 = vcombine.high %v51_v45, %v51_v45  ;;  %v74_v57 = vrot.slane %v60_v47, %v4433_v32  ;;  %v212_v3 = vld [vmem:[%s6092_s1 + $0x180] sm:$0xff]  ;;  %v213_v9 = vld [vmem:[%s6092_s1 + $0x188] sm:$0xff]  ;;  %v171_v41 = vld [vmem:[%s6092_s1 + $0x38] sm:$0xff] }
   0xf   :  { %596 = vmatprep.subr.bf16.mxu0 %v3827_v35  ;;  %647 = vmatprep.subr.bf16.mxu1 %v3829_v38  ;;  %v75_v58 = vcombine.high %v67_v48, %v67_v48  ;;  %v3843_v1 = vcombine.high %v204_v53, %v208_v54  ;;  %v3845_v2 = vcombine.high %v205_v59, %v209_v60  ;;  %v216_v5 = vld [vmem:[%s6092_s1 + $0x1a0] sm:$0xff]  ;;  %v217_v10 = vld [vmem:[%s6092_s1 + $0x1a8] sm:$0xff]  ;;  %v178_v49 = vld [vmem:[%s6092_s1 + $0x70] sm:$0xff] }
  0x10   :  { %v108_v6 = vcombine.low %v51_v45, %v59_v56  ;;  %v109_v7 = vcombine.low %v58_v55, %v67_v48  ;;  %v3842_v15 = vcombine.low %v204_v53, %v208_v54  ;;  %v3844_v16 = vcombine.low %v205_v59, %v209_v60  ;;  %v220_v19 = vld [vmem:[%s6092_s1 + $0x1c0] sm:$0xff]  ;;  %v221_v25 = vld [vmem:[%s6092_s1 + $0x1c8] sm:$0xff]  ;;  %v174_v48 = vld [vmem:[%s6092_s1 + $0x50] sm:$0xff] }
  0x11   :  { %v125_v8 = vcombine.low %v75_v58, %v74_v57  ;;  %v3851_v17 = vcombine.high %v212_v3, %v216_v5  ;;  %v3853_v18 = vcombine.high %v213_v9, %v217_v10  ;;  %v224_v20 = vld [vmem:[%s6092_s1 + $0x1e0] sm:$0xff]  ;;  %v225_v26 = vld [vmem:[%s6092_s1 + $0x1e8] sm:$0xff]  ;;  %v140_v27 = vrot.slane %v126_v11, %v4433_v32  ;;  %v182_v59 = vld [vmem:[%s6092_s1 + $0x90] sm:$0xff] }
  0x12   :  { %597 = vmatpush1.bf16.msra.mxu0 %v3826_v46  ;;  %648 = vmatpush1.bf16.msra.mxu1 %v3828_v50  ;;  %v116_v21 = vrot.slane %v108_v6, %v4433_v32  ;;  %v123_v22 = vrot.slane %v109_v7, %v4433_v32  ;;  %v3850_v31 = vcombine.low %v212_v3, %v216_v5  ;;  %v186_v60 = vld [vmem:[%s6092_s1 + $0xb0] sm:$0xff] }
  0x13   :  { %598 = vmatprep.subr.bf16.mxu0 %v3835_v51  ;;  %649 = vmatprep.subr.bf16.mxu1 %v3837_v52  ;;  %v133_v24 = vrot.slane %v125_v8, %v4433_v32  ;;  %v3852_v33 = vcombine.low %v213_v9, %v217_v10  ;;  %v3859_v34 = vcombine.high %v220_v19, %v224_v20  ;;  %v175_v51 = vld [vmem:[%s6092_s1 + $0x58] sm:$0xff]  ;;  %v190_v5 = vld [vmem:[%s6092_s1 + $0xd0] sm:$0xff] }
  0x14   :  { %v3861_v35 = vcombine.high %v221_v25, %v225_v26  ;;  %v124_v38 = vcombine.low %v116_v21, %v123_v22  ;;  %v143_v43 = vcombine.low %v107_v30, %v106_v29  ;;  %v3858_v44 = vcombine.low %v220_v19, %v224_v20  ;;  %v179_v52 = vld [vmem:[%s6092_s1 + $0x78] sm:$0xff]  ;;  %v194_v6 = vld [vmem:[%s6092_s1 + $0xf0] sm:$0xff] }
  0x15   :  { %v141_v39 = vcombine.low %v133_v24, %v140_v27  ;;  %v3860_v45 = vcombine.low %v221_v25, %v225_v26  ;;  %v3807_v46 = vcombine.high %v166_v36, %v170_v37  ;;  %v3809_v47 = vcombine.high %v167_v40, %v171_v41  ;;  %v191_v8 = vld [vmem:[%s6092_s1 + $0xd8] sm:$0xff]  ;;  %v198_v14 = vld [vmem:[%s6092_s1 + $0x110] sm:$0xff] }
  0x16   :  { %599 = vmatpush1.bf16.msra.mxu0 %v3834_v62  ;;  %650 = vmatpush1.bf16.msra.mxu1 %v3836_v0  ;;  %v150_v53 = vrot.slane %v142_v42, %v4433_v32  ;;  %v157_v54 = vrot.slane %v143_v43, %v4433_v32  ;;  %v3806_v55 = vcombine.low %v166_v36, %v170_v37  ;;  %v183_v62 = vld [vmem:[%s6092_s1 + $0x98] sm:$0xff]  ;;  %v206_v22 = vld [vmem:[%s6092_s1 + $0x150] sm:$0xff]  ;;  %v1490_v32 = vld [vmem:[%s6094_s3 + $0x380] sm:$0xff] }
  0x17   :  { %600 = vmatprep.subr.bf16.mxu0 %v3843_v1  ;;  %651 = vmatprep.subr.bf16.mxu1 %v3845_v2  ;;  %v4525_v50 = vpack.c.bf16 %v141_v39, %v124_v38  ;;  %v3808_v56 = vcombine.low %v167_v40, %v171_v41  ;;  %v3815_v57 = vcombine.high %v174_v48, %v178_v49  ;;  %v195_v9 = vld [vmem:[%s6092_s1 + $0xf8] sm:$0xff]  ;;  %v210_v24 = vld [vmem:[%s6092_s1 + $0x170] sm:$0xff] }
  0x18   :  { %v3817_v58 = vcombine.high %v175_v51, %v179_v52  ;;  %v158_v61 = vcombine.low %v150_v53, %v157_v54  ;;  %v3814_v0 = vcombine.low %v174_v48, %v178_v49  ;;  %v3816_v1 = vcombine.low %v175_v51, %v179_v52  ;;  %v207_v25 = vld [vmem:[%s6092_s1 + $0x158] sm:$0xff]  ;;  %v222_v40 = vld [vmem:[%s6092_s1 + $0x1d0] sm:$0xff]  ;;  %v1378_v48 = vld [vmem:[%s6094_s3] sm:$0xff] }
  0x19   :  { %v3823_v2 = vcombine.high %v182_v59, %v186_v60  ;;  %v3825_v3 = vcombine.high %v183_v62, %v187_v63  ;;  %v3822_v10 = vcombine.low %v182_v59, %v186_v60  ;;  %v3824_v11 = vcombine.low %v183_v62, %v187_v63  ;;  %v211_v26 = vld [vmem:[%s6092_s1 + $0x178] sm:$0xff]  ;;  %v226_v41 = vld [vmem:[%s6092_s1 + $0x1f0] sm:$0xff]  ;;  %v1382_v49 = vld [vmem:[%s6094_s3 + $0x20] sm:$0xff] }
  0x1a   :  { %601 = vmatpush1.bf16.msra.mxu0 %v3842_v15  ;;  %652 = vmatpush1.bf16.msra.mxu1 %v3844_v16  ;;  %v4557_v7 = vpack.c.bf16 %v158_v61, %v158_v61  ;;  %v3831_v12 = vcombine.high %v190_v5, %v194_v6  ;;  %v3833_v13 = vcombine.high %v191_v8, %v195_v9  ;;  %v202_v15 = vld [vmem:[%s6092_s1 + $0x130] sm:$0xff]  ;;  %v199_v16 = vld [vmem:[%s6092_s1 + $0x118] sm:$0xff]  ;;  %v1379_v51 = vld [vmem:[%s6094_s3 + $0x8] sm:$0xff] }
  0x1b   :  { %602 = vmatprep.subr.bf16.mxu0 %v3851_v17  ;;  %653 = vmatprep.subr.bf16.mxu1 %v3853_v18  ;;  %v203_v17 = vld [vmem:[%s6092_s1 + $0x138] sm:$0xff]  ;;  %v3830_v18 = vcombine.low %v190_v5, %v194_v6  ;;  %v3832_v19 = vcombine.low %v191_v8, %v195_v9  ;;  %v3839_v20 = vcombine.high %v198_v14, %v202_v15  ;;  %v1383_v52 = vld [vmem:[%s6094_s3 + $0x28] sm:$0xff] }
  0x1c   :  { %v3841_v21 = vcombine.high %v199_v16, %v203_v17  ;;  %v3838_v27 = vcombine.low %v198_v14, %v202_v15  ;;  %v3840_v28 = vcombine.low %v199_v16, %v203_v17  ;;  %v3847_v29 = vcombine.high %v206_v22, %v210_v24  ;;  %v223_v42 = vld [vmem:[%s6092_s1 + $0x1d8] sm:$0xff]  ;;  %v1387_v59 = vld [vmem:[%s6094_s3 + $0x48] sm:$0xff] }
  0x1d   :  { %v3849_v30 = vcombine.high %v207_v25, %v211_v26  ;;  %v3846_v36 = vcombine.low %v206_v22, %v210_v24  ;;  %v3848_v37 = vcombine.low %v207_v25, %v211_v26  ;;  %v227_v43 = vld [vmem:[%s6092_s1 + $0x1f8] sm:$0xff]  ;;  %v3862_v53 = vcombine.low %v222_v40, %v226_v41  ;;  %v1391_v60 = vld [vmem:[%s6094_s3 + $0x68] sm:$0xff] }
  0x1e   :  { %603 = vmatpush1.bf16.msra.mxu0 %v3850_v31  ;;  %654 = vmatpush1.bf16.msra.mxu1 %v3852_v33  ;;  %v214_v31 = vld [vmem:[%s6092_s1 + $0x190] sm:$0xff]  ;;  %v3864_v54 = vcombine.low %v223_v42, %v227_v43  ;;  %v4645_v61 = vcombine.low %v1378_v48, %v1382_v49  ;;  %v4648_v62 = vcombine.low %v1379_v51, %v1383_v52  ;;  %v1399_v5 = vld [vmem:[%s6094_s3 + $0xa8] sm:$0xff] }
  0x1f   :  { %604 = vmatprep.subr.bf16.mxu0 %v3859_v34  ;;  %655 = vmatprep.subr.bf16.mxu1 %v3861_v35  ;;  %v218_v33 = vld [vmem:[%s6092_s1 + $0x1b0] sm:$0xff]  ;;  %v215_v34 = vld [vmem:[%s6092_s1 + $0x198] sm:$0xff]  ;;  %v4674_v8 = vcombine.low %v1387_v59, %v1391_v60 }
  0x20   :  { %v219_v35 = vld [vmem:[%s6092_s1 + $0x1b8] sm:$0xff]  ;;  %v3855_v38 = vcombine.high %v214_v31, %v218_v33  ;;  %6361 = vst [vmem:[#allocation9_spill] sm:$0xff] %v4645_v61  ;;  %6362 = vst [vmem:[#allocation10_spill] sm:$0xff] %v4648_v62 }
  0x21   :  { %v3857_v39 = vcombine.high %v215_v34, %v219_v35  ;;  %6366 = vst [vmem:[#allocation14_spill] sm:$0xff] %v4674_v8 }
  0x22   :  { %605 = vmatpush1.bf16.msra.mxu0 %v3858_v44  ;;  %656 = vmatpush1.bf16.msra.mxu1 %v3860_v45  ;;  %v3854_v44 = vcombine.low %v214_v31, %v218_v33  ;;  %v3856_v45 = vcombine.low %v215_v34, %v219_v35  ;;  %v1426_v35 = vld [vmem:[%s6094_s3 + $0x180] sm:$0xff] }
  0x23   :  { %692 = vmatprep.subr.bf16.mxu0 %v3807_v46  ;;  %743 = vmatprep.subr.bf16.mxu1 %v3809_v47  ;;  %v3863_v46 = vcombine.high %v222_v40, %v226_v41  ;;  %v3865_v47 = vcombine.high %v223_v42, %v227_v43  ;;  %v1434_v43 = vld [vmem:[%s6094_s3 + $0x1c0] sm:$0xff] }
  0x25   :  { %623 = vmatmul.mubr.bf16.vlgmr.msra.gmra.mrb[0].mxu0 %v4525_v50  ;;  %674 = vmatmul.mubr.bf16.vlgmr.msra.gmra.mrb[0].mxu1 %v4525_v50 }
  0x26   :  { %693 = vmatpush1.bf16.msra.mxu0 %v3806_v55  ;;  %744 = vmatpush1.bf16.msra.mxu1 %v3808_v56  ;;  %v4629_v55 = vcombine.high %v1378_v48, %v1382_v49  ;;  %v4631_v56 = vcombine.high %v1379_v51, %v1383_v52  ;;  %v1442_v52 = vld [vmem:[%s6094_s3 + $0x200] sm:$0xff] }
  0x27   :  { %694 = vmatprep.subr.bf16.mxu0 %v3815_v57  ;;  %745 = vmatprep.subr.bf16.mxu1 %v3817_v58  ;;  %v1386_v57 = vld [vmem:[%s6094_s3 + $0x40] sm:$0xff] }
  0x28   :  { %632 = vmatprep.mubr.bf16.mxu0 %v6103_v4  ;;  %683 = vmatprep.mubr.bf16.mxu1 %v6103_v4  ;;  %6359 = vst [vmem:[#allocation7_spill] sm:$0xff] %v4629_v55  ;;  %6360 = vst [vmem:[#allocation8_spill] sm:$0xff] %v4631_v56  ;;  %v1390_v58 = vld [vmem:[%s6094_s3 + $0x60] sm:$0xff] }
  0x29   :  { %v4650_v63 = vcombine.high %v1386_v57, %v1390_v58  ;;  %v4670_v6 = vcombine.low %v1386_v57, %v1390_v58  ;;  %v1447_v57 = vld [vmem:[%s6094_s3 + $0x228] sm:$0xff] }
  0x2a   :  { %695 = vmatpush1.bf16.msra.mxu0 %v3814_v0  ;;  %746 = vmatpush1.bf16.msra.mxu1 %v3816_v1  ;;  %v4653_v0 = vcombine.high %v1387_v59, %v1391_v60  ;;  %v1394_v1 = vld [vmem:[%s6094_s3 + $0x80] sm:$0xff] }
  0x2b   :  { %696 = vmatprep.subr.bf16.mxu0 %v3823_v2  ;;  %747 = vmatprep.subr.bf16.mxu1 %v3825_v3  ;;  %6363 = vst [vmem:[#allocation11_spill] sm:$0xff] %v4650_v63  ;;  %v1398_v2 = vld [vmem:[%s6094_s3 + $0xa0] sm:$0xff]  ;;  %v1395_v3 = vld [vmem:[%s6094_s3 + $0x88] sm:$0xff]  ;;  %6365 = vst [vmem:[#allocation13_spill] sm:$0xff] %v4670_v6 }
  0x2c   :  { %6364 = vst [vmem:[#allocation12_spill] sm:$0xff] %v4653_v0  ;;  %v4676_v9 = vcombine.high %v1394_v1, %v1398_v2  ;;  %v4696_v14 = vcombine.low %v1394_v1, %v1398_v2  ;;  %v4700_v15 = vcombine.low %v1395_v3, %v1399_v5  ;;  %v1450_v2 = vld [vmem:[%s6094_s3 + $0x240] sm:$0xff] }
  0x2d   :  { %633 = vmatmul.mubr.bf16.gmra.mrb[4].mxu0 %v4557_v7  ;;  %684 = vmatmul.mubr.bf16.gmra.mrb[4].mxu1 %v4557_v7 }
  0x2e   :  { %697 = vmatpush1.bf16.msra.mxu0 %v3822_v10  ;;  %748 = vmatpush1.bf16.msra.mxu1 %v3824_v11  ;;  %6367 = vst [vmem:[#allocation15_spill] sm:$0xff] %v4676_v9  ;;  %v4680_v10 = vcombine.high %v1395_v3, %v1399_v5  ;;  %v1406_v11 = vld [vmem:[%s6094_s3 + $0xe0] sm:$0xff]  ;;  %6369 = vst [vmem:[#allocation17_spill] sm:$0xff] %v4696_v14  ;;  %v1451_v5 = vld [vmem:[%s6094_s3 + $0x248] sm:$0xff] }
  0x2f   :  { %698 = vmatprep.subr.bf16.mxu0 %v3831_v12  ;;  %749 = vmatprep.subr.bf16.mxu1 %v3833_v13  ;;  %v1403_v12 = vld [vmem:[%s6094_s3 + $0xc8] sm:$0xff]  ;;  %6370 = vst [vmem:[#allocation18_spill] sm:$0xff] %v4700_v15  ;;  %v1454_v3 = vld [vmem:[%s6094_s3 + $0x260] sm:$0xff] }
  0x30   :  { %724 = vmatprep.mubr.bf16.mxu0 %v6103_v4  ;;  %775 = vmatprep.mubr.bf16.mxu1 %v6103_v4  ;;  %6368 = vst [vmem:[#allocation16_spill] sm:$0xff] %v4680_v10  ;;  %v1407_v13 = vld [vmem:[%s6094_s3 + $0xe8] sm:$0xff] }
  0x31   :  { %v4705_v17 = vcombine.high %v1403_v12, %v1407_v13  ;;  %v4726_v24 = vcombine.low %v1403_v12, %v1407_v13  ;;  %v4850_v13 = vcombine.high %v1450_v2, %v1454_v3 }
  0x32   :  { %699 = vmatpush1.bf16.msra.mxu0 %v3830_v18  ;;  %750 = vmatpush1.bf16.msra.mxu1 %v3832_v19  ;;  %v1410_v18 = vld [vmem:[%s6094_s3 + $0x100] sm:$0xff] }
  0x33   :  { %700 = vmatprep.subr.bf16.mxu0 %v3839_v20  ;;  %751 = vmatprep.subr.bf16.mxu1 %v3841_v21  ;;  %6372 = vst [vmem:[#allocation20_spill] sm:$0xff] %v4705_v17  ;;  %v1414_v19 = vld [vmem:[%s6094_s3 + $0x120] sm:$0xff]  ;;  %v1411_v20 = vld [vmem:[%s6094_s3 + $0x108] sm:$0xff]  ;;  %6374 = vst [vmem:[#allocation22_spill] sm:$0xff] %v4726_v24 }
  0x34   :  { %v1415_v21 = vld [vmem:[%s6094_s3 + $0x128] sm:$0xff]  ;;  %v4728_v25 = vcombine.high %v1410_v18, %v1414_v19  ;;  %6395 = vst [vmem:[#allocation43_spill] sm:$0xff] %v4850_v13 }
  0x35   :  { %v4731_v26 = vcombine.high %v1411_v20, %v1415_v21  ;;  %v4752_v31 = vcombine.low %v1411_v20, %v1415_v21  ;;  %v1462_v20 = vld [vmem:[%s6094_s3 + $0x2a0] sm:$0xff]  ;;  %v1459_v21 = vld [vmem:[%s6094_s3 + $0x288] sm:$0xff] }
  0x36   :  { %701 = vmatpush1.bf16.msra.mxu0 %v3838_v27  ;;  %752 = vmatpush1.bf16.msra.mxu1 %v3840_v28  ;;  %6375 = vst [vmem:[#allocation23_spill] sm:$0xff] %v4728_v25  ;;  %v1422_v27 = vld [vmem:[%s6094_s3 + $0x160] sm:$0xff]  ;;  %v1419_v28 = vld [vmem:[%s6094_s3 + $0x148] sm:$0xff] }
  0x37   :  { %702 = vmatprep.subr.bf16.mxu0 %v3847_v29  ;;  %753 = vmatprep.subr.bf16.mxu1 %v3849_v30  ;;  %6376 = vst [vmem:[#allocation24_spill] sm:$0xff] %v4731_v26  ;;  %v1423_v29 = vld [vmem:[%s6094_s3 + $0x168] sm:$0xff]  ;;  %v4748_v30 = vcombine.low %v1410_v18, %v1414_v19  ;;  %6378 = vst [vmem:[#allocation26_spill] sm:$0xff] %v4752_v31  ;;  %v1458_v19 = vld [vmem:[%s6094_s3 + $0x280] sm:$0xff] }
  0x38   :  { %v4757_v34 = vcombine.high %v1419_v28, %v1423_v29  ;;  %v4776_v40 = vcombine.low %v1419_v28, %v1423_v29  ;;  %v4874_v29 = vcombine.high %v1458_v19, %v1462_v20 }
  0x39   :  { %6377 = vst [vmem:[#allocation25_spill] sm:$0xff] %v4748_v30 }
  0x3a   :  { %703 = vmatpush1.bf16.msra.mxu0 %v3846_v36  ;;  %754 = vmatpush1.bf16.msra.mxu1 %v3848_v37  ;;  %6380 = vst [vmem:[#allocation28_spill] sm:$0xff] %v4757_v34  ;;  %v1430_v36 = vld [vmem:[%s6094_s3 + $0x1a0] sm:$0xff]  ;;  %v1427_v37 = vld [vmem:[%s6094_s3 + $0x188] sm:$0xff]  ;;  %6382 = vst [vmem:[#allocation30_spill] sm:$0xff] %v4776_v40 }
  0x3b   :  { %704 = vmatprep.subr.bf16.mxu0 %v3855_v38  ;;  %755 = vmatprep.subr.bf16.mxu1 %v3857_v39  ;;  %v1431_v38 = vld [vmem:[%s6094_s3 + $0x1a8] sm:$0xff]  ;;  %v4778_v41 = vcombine.high %v1426_v35, %v1430_v36  ;;  %6399 = vst [vmem:[#allocation47_spill] sm:$0xff] %v4874_v29 }
  0x3c   :  { %v4781_v42 = vcombine.high %v1427_v37, %v1431_v38  ;;  %v4800_v48 = vcombine.low %v1427_v37, %v1431_v38  ;;  %v1470_v37 = vld [vmem:[%s6094_s3 + $0x2e0] sm:$0xff]  ;;  %v1467_v38 = vld [vmem:[%s6094_s3 + $0x2c8] sm:$0xff] }
  0x3d   :  { %6383 = vst [vmem:[#allocation31_spill] sm:$0xff] %v4778_v41 }
  0x3e   :  { %705 = vmatpush1.bf16.msra.mxu0 %v3854_v44  ;;  %756 = vmatpush1.bf16.msra.mxu1 %v3856_v45  ;;  %6384 = vst [vmem:[#allocation32_spill] sm:$0xff] %v4781_v42  ;;  %v1438_v44 = vld [vmem:[%s6094_s3 + $0x1e0] sm:$0xff]  ;;  %v1435_v45 = vld [vmem:[%s6094_s3 + $0x1c8] sm:$0xff]  ;;  %6386 = vst [vmem:[#allocation34_spill] sm:$0xff] %v4800_v48 }
  0x3f   :  { %706 = vmatprep.subr.bf16.mxu0 %v3863_v46  ;;  %757 = vmatprep.subr.bf16.mxu1 %v3865_v47  ;;  %v1439_v46 = vld [vmem:[%s6094_s3 + $0x1e8] sm:$0xff]  ;;  %v4796_v47 = vcombine.low %v1426_v35, %v1430_v36  ;;  %v4802_v49 = vcombine.high %v1434_v43, %v1438_v44  ;;  %v4820_v58 = vcombine.low %v1434_v43, %v1438_v44  ;;  %v1466_v36 = vld [vmem:[%s6094_s3 + $0x2c0] sm:$0xff] }
  0x40   :  { %v4805_v51 = vcombine.high %v1435_v45, %v1439_v46  ;;  %v4824_v59 = vcombine.low %v1435_v45, %v1439_v46  ;;  %v1471_v43 = vld [vmem:[%s6094_s3 + $0x2e8] sm:$0xff]  ;;  %v4892_v44 = vcombine.low %v1458_v19, %v1462_v20  ;;  %v4898_v46 = vcombine.high %v1466_v36, %v1470_v37  ;;  %v1482_v20 = vld [vmem:[%s6094_s3 + $0x340] sm:$0xff] }
  0x41   :  { %6385 = vst [vmem:[#allocation33_spill] sm:$0xff] %v4796_v47  ;;  %6387 = vst [vmem:[#allocation35_spill] sm:$0xff] %v4802_v49 }
  0x42   :  { %707 = vmatpush1.bf16.msra.mxu0 %v3862_v53  ;;  %758 = vmatpush1.bf16.msra.mxu1 %v3864_v54  ;;  %6388 = vst [vmem:[#allocation36_spill] sm:$0xff] %v4805_v51  ;;  %v1446_v53 = vld [vmem:[%s6094_s3 + $0x220] sm:$0xff]  ;;  %v1443_v54 = vld [vmem:[%s6094_s3 + $0x208] sm:$0xff]  ;;  %6389 = vst [vmem:[#allocation37_spill] sm:$0xff] %v4820_v58 }
  0x43   :  { %2146 = vmatprep.subr.bf16.mxu0 %v4629_v55  ;;  %2187 = vmatprep.subr.bf16.mxu1 %v4631_v56  ;;  %6390 = vst [vmem:[#allocation38_spill] sm:$0xff] %v4824_v59  ;;  %v4826_v60 = vcombine.high %v1442_v52, %v1446_v53  ;;  %v4829_v1 = vcombine.high %v1443_v54, %v1447_v57  ;;  %6401 = vst [vmem:[#allocation49_spill] sm:$0xff] %v4892_v44 }
  0x44   :  { %v4848_v12 = vcombine.low %v1443_v54, %v1447_v57  ;;  %6403 = vst [vmem:[#allocation51_spill] sm:$0xff] %v4898_v46  ;;  %v1478_v54 = vld [vmem:[%s6094_s3 + $0x320] sm:$0xff]  ;;  %v1475_v57 = vld [vmem:[%s6094_s3 + $0x308] sm:$0xff] }
  0x45   :  { %725 = vmatmul.mubr.bf16.vlgmr.msra.gmra.mrb[8].mxu0 %v4525_v50  ;;  %776 = vmatmul.mubr.bf16.vlgmr.msra.gmra.mrb[8].mxu1 %v4525_v50  ;;  %v1402_v50 = vld [vmem:[%s6094_s3 + $0xc0] sm:$0xff]  ;;  %6391 = vst [vmem:[#allocation39_spill] sm:$0xff] %v4826_v60  ;;  %6392 = vst [vmem:[#allocation40_spill] sm:$0xff] %v4829_v1 }
  0x46   :  { %2147 = vmatpush1.bf16.msra.mxu0 %v4645_v61  ;;  %2188 = vmatpush1.bf16.msra.mxu1 %v4648_v62  ;;  %v4702_v16 = vcombine.high %v1402_v50, %v1406_v11  ;;  %v4722_v22 = vcombine.low %v1402_v50, %v1406_v11  ;;  %v1455_v50 = vld [vmem:[%s6094_s3 + $0x268] sm:$0xff]  ;;  %v4844_v11 = vcombine.low %v1442_v52, %v1446_v53  ;;  %v1474_v53 = vld [vmem:[%s6094_s3 + $0x300] sm:$0xff] }
  0x47   :  { %2148 = vmatprep.subr.bf16.mxu0 %v4650_v63  ;;  %2189 = vmatprep.subr.bf16.mxu1 %v4653_v0  ;;  %6394 = vst [vmem:[#allocation42_spill] sm:$0xff] %v4848_v12  ;;  %v4853_v18 = vcombine.high %v1451_v5, %v1455_v50  ;;  %v4872_v28 = vcombine.low %v1451_v5, %v1455_v50 }
  0x48   :  { %734 = vmatprep.mubr.bf16.mxu0 %v6103_v4  ;;  %785 = vmatprep.mubr.bf16.mxu1 %v6103_v4  ;;  %6371 = vst [vmem:[#allocation19_spill] sm:$0xff] %v4702_v16  ;;  %6373 = vst [vmem:[#allocation21_spill] sm:$0xff] %v4722_v22  ;;  %v4901_v52 = vcombine.high %v1467_v38, %v1471_v43  ;;  %v4920_v5 = vcombine.low %v1467_v38, %v1471_v43 }
  0x49   :  { %6393 = vst [vmem:[#allocation41_spill] sm:$0xff] %v4844_v11  ;;  %6396 = vst [vmem:[#allocation44_spill] sm:$0xff] %v4853_v18  ;;  %v4922_v50 = vcombine.high %v1474_v53, %v1478_v54 }
  0x4a   :  { %2149 = vmatpush1.bf16.msra.mxu0 %v4670_v6  ;;  %2190 = vmatpush1.bf16.msra.mxu1 %v4674_v8  ;;  %6398 = vst [vmem:[#allocation46_spill] sm:$0xff] %v4872_v28  ;;  %6404 = vst [vmem:[#allocation52_spill] sm:$0xff] %v4901_v52 }
  0x4b   :  { %2150 = vmatprep.subr.bf16.mxu0 %v4676_v9  ;;  %2191 = vmatprep.subr.bf16.mxu1 %v4680_v10  ;;  %6406 = vst [vmem:[#allocation54_spill] sm:$0xff] %v4920_v5  ;;  %6407 = vst [vmem:[#allocation55_spill] sm:$0xff] %v4922_v50 }
  0x4d   :  { %735 = vmatmul.mubr.bf16.gmra.mrb[12].mxu0 %v4557_v7  ;;  %786 = vmatmul.mubr.bf16.gmra.mrb[12].mxu1 %v4557_v7  ;;  %v1418_v7 = vld [vmem:[%s6094_s3 + $0x140] sm:$0xff] }
  0x4e   :  { %2151 = vmatpush1.bf16.msra.mxu0 %v4696_v14  ;;  %2192 = vmatpush1.bf16.msra.mxu1 %v4700_v15  ;;  %v4754_v33 = vcombine.high %v1418_v7, %v1422_v27  ;;  %v4772_v39 = vcombine.low %v1418_v7, %v1422_v27  ;;  %v1463_v7 = vld [vmem:[%s6094_s3 + $0x2a8] sm:$0xff]  ;;  %v4868_v27 = vcombine.low %v1450_v2, %v1454_v3 }
  0x4f   :  { %2152 = vmatprep.subr.bf16.mxu0 %v4702_v16  ;;  %2193 = vmatprep.subr.bf16.mxu1 %v4705_v17  ;;  %v4877_v35 = vcombine.high %v1459_v21, %v1463_v7  ;;  %v4896_v45 = vcombine.low %v1459_v21, %v1463_v7  ;;  %v1479_v2 = vld [vmem:[%s6094_s3 + $0x328] sm:$0xff]  ;;  %v4916_v3 = vcombine.low %v1466_v36, %v1470_v37  ;;  %v1486_v21 = vld [vmem:[%s6094_s3 + $0x360] sm:$0xff] }
  0x50   :  { %2178 = vmatprep.mubr.bf16.mxu0 %v6103_v4  ;;  %2219 = vmatprep.mubr.bf16.mxu1 %v6103_v4  ;;  %6379 = vst [vmem:[#allocation27_spill] sm:$0xff] %v4754_v33  ;;  %6381 = vst [vmem:[#allocation29_spill] sm:$0xff] %v4772_v39  ;;  %v4925_v19 = vcombine.high %v1475_v57, %v1479_v2  ;;  %v1483_v7 = vld [vmem:[%s6094_s3 + $0x348] sm:$0xff]  ;;  %v4940_v37 = vcombine.low %v1474_v53, %v1478_v54  ;;  %v1494_v53 = vld [vmem:[%s6094_s3 + $0x3a0] sm:$0xff] }
  0x51   :  { %6397 = vst [vmem:[#allocation45_spill] sm:$0xff] %v4868_v27  ;;  %6400 = vst [vmem:[#allocation48_spill] sm:$0xff] %v4877_v35  ;;  %v1487_v36 = vld [vmem:[%s6094_s3 + $0x368] sm:$0xff]  ;;  %v4944_v38 = vcombine.low %v1475_v57, %v1479_v2  ;;  %v4946_v43 = vcombine.high %v1482_v20, %v1486_v21  ;;  %v4964_v2 = vcombine.low %v1482_v20, %v1486_v21  ;;  %v1502_v20 = vld [vmem:[%s6094_s3 + $0x3e0] sm:$0xff] }
  0x52   :  { %2153 = vmatpush1.bf16.msra.mxu0 %v4722_v22  ;;  %2194 = vmatpush1.bf16.msra.mxu1 %v4726_v24  ;;  %6402 = vst [vmem:[#allocation50_spill] sm:$0xff] %v4896_v45  ;;  %6405 = vst [vmem:[#allocation53_spill] sm:$0xff] %v4916_v3  ;;  %v4949_v4 = vcombine.high %v1483_v7, %v1487_v36  ;;  %v1491_v54 = vld [vmem:[%s6094_s3 + $0x388] sm:$0xff] }
  0x53   :  { %2154 = vmatprep.subr.bf16.mxu0 %v4728_v25  ;;  %2195 = vmatprep.subr.bf16.mxu1 %v4731_v26  ;;  %6408 = vst [vmem:[#allocation56_spill] sm:$0xff] %v4925_v19  ;;  %6409 = vst [vmem:[#allocation57_spill] sm:$0xff] %v4940_v37  ;;  %v1495_v57 = vld [vmem:[%s6094_s3 + $0x3a8] sm:$0xff] }
  0x54   :  { %6410 = vst [vmem:[#allocation58_spill] sm:$0xff] %v4944_v38  ;;  %6411 = vst [vmem:[#allocation59_spill] sm:$0xff] %v4946_v43  ;;  %v1499_v21 = vld [vmem:[%s6094_s3 + $0x3c8] sm:$0xff] }
  0x55   :  { %6412 = vst [vmem:[#allocation60_spill] sm:$0xff] %v4949_v4  ;;  %6413 = vst [vmem:[#allocation61_spill] sm:$0xff] %v4964_v2 }
  0x56   :  { %2155 = vmatpush1.bf16.msra.mxu0 %v4748_v30  ;;  %2196 = vmatpush1.bf16.msra.mxu1 %v4752_v31 }
  0x57   :  { %2156 = vmatprep.subr.bf16.mxu0 %v4754_v33  ;;  %2197 = vmatprep.subr.bf16.mxu1 %v4757_v34 }
  0x5a   :  { %2157 = vmatpush1.bf16.msra.mxu0 %v4772_v39  ;;  %2198 = vmatpush1.bf16.msra.mxu1 %v4776_v40 }
  0x5b   :  { %2158 = vmatprep.subr.bf16.mxu0 %v4778_v41  ;;  %2199 = vmatprep.subr.bf16.mxu1 %v4781_v42 }
  0x5e   :  { %2159 = vmatpush1.bf16.msra.mxu0 %v4796_v47  ;;  %2200 = vmatpush1.bf16.msra.mxu1 %v4800_v48 }
  0x5f   :  { %2160 = vmatprep.subr.bf16.mxu0 %v4802_v49  ;;  %2201 = vmatprep.subr.bf16.mxu1 %v4805_v51 }
  0x62   :  { %2161 = vmatpush1.bf16.msra.mxu0 %v4820_v58  ;;  %2202 = vmatpush1.bf16.msra.mxu1 %v4824_v59 }
  0x63   :  { %2162 = vmatprep.subr.bf16.mxu0 %v4826_v60  ;;  %2203 = vmatprep.subr.bf16.mxu1 %v4829_v1 }
  0x66   :  { %2163 = vmatpush1.bf16.msra.mxu0 %v4844_v11  ;;  %2204 = vmatpush1.bf16.msra.mxu1 %v4848_v12 }
  0x67   :  { %2164 = vmatprep.subr.bf16.mxu0 %v4850_v13  ;;  %2205 = vmatprep.subr.bf16.mxu1 %v4853_v18 }
  0x6a   :  { %2165 = vmatpush1.bf16.msra.mxu0 %v4868_v27  ;;  %2206 = vmatpush1.bf16.msra.mxu1 %v4872_v28 }
  0x6b   :  { %2166 = vmatprep.subr.bf16.mxu0 %v4874_v29  ;;  %2207 = vmatprep.subr.bf16.mxu1 %v4877_v35 }
  0x6e   :  { %2167 = vmatpush1.bf16.msra.mxu0 %v4892_v44  ;;  %2208 = vmatpush1.bf16.msra.mxu1 %v4896_v45 }
  0x6f   :  { %2168 = vmatprep.subr.bf16.mxu0 %v4898_v46  ;;  %2209 = vmatprep.subr.bf16.mxu1 %v4901_v52 }
  0x72   :  { %2169 = vmatpush1.bf16.msra.mxu0 %v4916_v3  ;;  %2210 = vmatpush1.bf16.msra.mxu1 %v4920_v5  ;;  %v4973_v5 = vcombine.high %v1491_v54, %v1495_v57  ;;  %v1498_v3 = vld [vmem:[%s6094_s3 + $0x3c0] sm:$0xff] }
  0x73   :  { %2170 = vmatprep.subr.bf16.mxu0 %v4922_v50  ;;  %2211 = vmatprep.subr.bf16.mxu1 %v4925_v19  ;;  %v4968_v19 = vcombine.low %v1483_v7, %v1487_v36  ;;  %v4970_v50 = vcombine.high %v1490_v32, %v1494_v53  ;;  %v1503_v7 = vld [vmem:[%s6094_s3 + $0x3e8] sm:$0xff]  ;;  %v4988_v36 = vcombine.low %v1490_v32, %v1494_v53  ;;  %v1384_v32 = vld [vmem:[%s6094_s3 + $0x30] sm:$0xff]  ;;  %v1381_v53 = vld [vmem:[%s6094_s3 + $0x18] sm:$0xff] }
  0x74   :  { %6416 = vst [vmem:[#allocation64_spill] sm:$0xff] %v4973_v5 }
  0x75   :  { %6414 = vst [vmem:[#allocation62_spill] sm:$0xff] %v4968_v19  ;;  %6415 = vst [vmem:[#allocation63_spill] sm:$0xff] %v4970_v50 }
  0x76   :  { %2171 = vmatpush1.bf16.msra.mxu0 %v4940_v37  ;;  %2212 = vmatpush1.bf16.msra.mxu1 %v4944_v38  ;;  %6417 = vst [vmem:[#allocation65_spill] sm:$0xff] %v4988_v36  ;;  %v4997_v38 = vcombine.high %v1499_v21, %v1503_v7  ;;  %v1380_v37 = vld [vmem:[%s6094_s3 + $0x10] sm:$0xff] }
  0x77   :  { %2172 = vmatprep.subr.bf16.mxu0 %v4946_v43  ;;  %2213 = vmatprep.subr.bf16.mxu1 %v4949_v4  ;;  %v4992_v4 = vcombine.low %v1491_v54, %v1495_v57  ;;  %v4994_v43 = vcombine.high %v1498_v3, %v1502_v20  ;;  %v1385_v54 = vld [vmem:[%s6094_s3 + $0x38] sm:$0xff]  ;;  %v5012_v57 = vcombine.low %v1498_v3, %v1502_v20  ;;  %v1392_v3 = vld [vmem:[%s6094_s3 + $0x70] sm:$0xff] }
  0x78   :  { %6420 = vst [vmem:[#allocation68_spill] sm:$0xff] %v4997_v38  ;;  %v1389_v20 = vld [vmem:[%s6094_s3 + $0x58] sm:$0xff] }
  0x79   :  { %6418 = vst [vmem:[#allocation66_spill] sm:$0xff] %v4992_v4  ;;  %6419 = vst [vmem:[#allocation67_spill] sm:$0xff] %v4994_v43 }
  0x7a   :  { %2173 = vmatpush1.bf16.msra.mxu0 %v4964_v2  ;;  %2214 = vmatpush1.bf16.msra.mxu1 %v4968_v19  ;;  %6421 = vst [vmem:[#allocation69_spill] sm:$0xff] %v5012_v57  ;;  %v5021_v19 = vcombine.high %v1381_v53, %v1385_v54  ;;  %v1388_v2 = vld [vmem:[%s6094_s3 + $0x50] sm:$0xff] }
  0x7b   :  { %2174 = vmatprep.subr.bf16.mxu0 %v4970_v50  ;;  %2215 = vmatprep.subr.bf16.mxu1 %v4973_v5  ;;  %v5016_v5 = vcombine.low %v1499_v21, %v1503_v7  ;;  %v5018_v50 = vcombine.high %v1380_v37, %v1384_v32  ;;  %v1393_v21 = vld [vmem:[%s6094_s3 + $0x78] sm:$0xff]  ;;  %v5036_v7 = vcombine.low %v1380_v37, %v1384_v32  ;;  %v1400_v37 = vld [vmem:[%s6094_s3 + $0xb0] sm:$0xff]  ;;  %v6429_v32 = vmov 0  }
  0x7c   :  { %6424 = vst [vmem:[#allocation72_spill] sm:$0xff] %v5021_v19 }
  0x7d   :  { %6422 = vst [vmem:[#allocation70_spill] sm:$0xff] %v5016_v5  ;;  %6423 = vst [vmem:[#allocation71_spill] sm:$0xff] %v5018_v50 }
  0x7e   :  { %2175 = vmatpush1.bf16.msra.mxu0 %v4988_v36  ;;  %2216 = vmatpush1.bf16.msra.mxu1 %v4992_v4  ;;  %6425 = vst [vmem:[#allocation73_spill] sm:$0xff] %v5036_v7  ;;  %v5045_v4 = vcombine.high %v1389_v20, %v1393_v21  ;;  %v1396_v36 = vld [vmem:[%s6094_s3 + $0x90] sm:$0xff] }
  0x7f   :  { %2176 = vmatprep.subr.bf16.mxu0 %v4994_v43  ;;  %2217 = vmatprep.subr.bf16.mxu1 %v4997_v38  ;;  %v5040_v38 = vcombine.low %v1381_v53, %v1385_v54  ;;  %v5042_v43 = vcombine.high %v1388_v2, %v1392_v3  ;;  %v1397_v53 = vld [vmem:[%s6094_s3 + $0x98] sm:$0xff] }
  0x80   :  { %6428 = vst [vmem:[#allocation76_spill] sm:$0xff] %v5045_v4  ;;  %v1401_v54 = vld [vmem:[%s6094_s3 + $0xb8] sm:$0xff] }
  0x81   :  { %6426 = vst [vmem:[#allocation74_spill] sm:$0xff] %v5040_v38  ;;  %6427 = vst [vmem:[#allocation75_spill] sm:$0xff] %v5042_v43 }
  0x82   :  { %2177 = vmatpush1.bf16.msra.mxu0 %v5012_v57  ;;  %2218 = vmatpush1.bf16.msra.mxu1 %v5016_v5  ;;  %v5068_v5 = vcombine.high %v1396_v36, %v1400_v37  ;;  %v5071_v57 = vcombine.high %v1397_v53, %v1401_v54 }
  0x83   :  { %2228 = vmatprep.subr.bf16.mxu0 %v5018_v50  ;;  %2269 = vmatprep.subr.bf16.mxu1 %v5021_v19  ;;  %v5062_v19 = vcombine.low %v1388_v2, %v1392_v3  ;;  %v5066_v50 = vcombine.low %v1389_v20, %v1393_v21  ;;  %v1408_v2 = vld [vmem:[%s6094_s3 + $0xf0] sm:$0xff]  ;;  %v1405_v3 = vld [vmem:[%s6094_s3 + $0xd8] sm:$0xff]  ;;  %v5088_v21 = vcombine.low %v1396_v36, %v1400_v37 }
  0x84   :  { %6432 = vst [vmem:[#allocation79_spill] sm:$0xff] %v5068_v5  ;;  %6433 = vst [vmem:[#allocation80_spill] sm:$0xff] %v5071_v57  ;;  %v1409_v20 = vld [vmem:[%s6094_s3 + $0xf8] sm:$0xff]  ;;  %v1416_v36 = vld [vmem:[%s6094_s3 + $0x130] sm:$0xff] }
  0x85   :  { %2179 = vmatmul.mubr.bf16.vlgmr.msra.gmra.mrb[16].mxu0 %v6429_v32  ;;  %2220 = vmatmul.mubr.bf16.vlgmr.msra.gmra.mrb[16].mxu1 %v6429_v32  ;;  %6430 = vst [vmem:[#allocation77_spill] sm:$0xff] %v5062_v19  ;;  %6431 = vst [vmem:[#allocation78_spill] sm:$0xff] %v5066_v50  ;;  %v1413_v37 = vld [vmem:[%s6094_s3 + $0x118] sm:$0xff] }
  0x86   :  { %2229 = vmatpush1.bf16.msra.mxu0 %v5036_v7  ;;  %2270 = vmatpush1.bf16.msra.mxu1 %v5040_v38  ;;  %6434 = vst [vmem:[#allocation81_spill] sm:$0xff] %v5088_v21  ;;  %v5097_v38 = vcombine.high %v1405_v3, %v1409_v20  ;;  %v1412_v7 = vld [vmem:[%s6094_s3 + $0x110] sm:$0xff] }
  0x87   :  { %2230 = vmatprep.subr.bf16.mxu0 %v5042_v43  ;;  %2271 = vmatprep.subr.bf16.mxu1 %v5045_v4  ;;  %v5092_v4 = vcombine.low %v1397_v53, %v1401_v54  ;;  %v5094_v43 = vcombine.high %v1404_v23, %v1408_v2  ;;  %v1417_v53 = vld [vmem:[%s6094_s3 + $0x138] sm:$0xff]  ;;  %v5112_v54 = vcombine.low %v1404_v23, %v1408_v2  ;;  %v1424_v23 = vld [vmem:[%s6094_s3 + $0x170] sm:$0xff] }
  0x88   :  { %2260 = vmatprep.mubr.bf16.mxu0 %v6429_v32  ;;  %2301 = vmatprep.mubr.bf16.mxu1 %v6429_v32  ;;  %6437 = vst [vmem:[#allocation84_spill] sm:$0xff] %v5097_v38  ;;  %v1421_v2 = vld [vmem:[%s6094_s3 + $0x158] sm:$0xff] }
  0x89   :  { %6435 = vst [vmem:[#allocation82_spill] sm:$0xff] %v5092_v4  ;;  %6436 = vst [vmem:[#allocation83_spill] sm:$0xff] %v5094_v43 }
  0x8a   :  { %2231 = vmatpush1.bf16.msra.mxu0 %v5062_v19  ;;  %2272 = vmatpush1.bf16.msra.mxu1 %v5066_v50  ;;  %6438 = vst [vmem:[#allocation85_spill] sm:$0xff] %v5112_v54  ;;  %v5121_v50 = vcombine.high %v1413_v37, %v1417_v53  ;;  %v1420_v19 = vld [vmem:[%s6094_s3 + $0x150] sm:$0xff] }
  0x8b   :  { %2232 = vmatprep.subr.bf16.mxu0 %v5068_v5  ;;  %2273 = vmatprep.subr.bf16.mxu1 %v5071_v57  ;;  %v5116_v57 = vcombine.low %v1405_v3, %v1409_v20  ;;  %v5118_v5 = vcombine.high %v1412_v7, %v1416_v36  ;;  %v1425_v3 = vld [vmem:[%s6094_s3 + $0x178] sm:$0xff]  ;;  %v5136_v20 = vcombine.low %v1412_v7, %v1416_v36  ;;  %v1432_v7 = vld [vmem:[%s6094_s3 + $0x1b0] sm:$0xff] }
  0x8c   :  { %6441 = vst [vmem:[#allocation88_spill] sm:$0xff] %v5121_v50  ;;  %v1429_v36 = vld [vmem:[%s6094_s3 + $0x198] sm:$0xff] }
  0x8d   :  { %6439 = vst [vmem:[#allocation86_spill] sm:$0xff] %v5116_v57  ;;  %6440 = vst [vmem:[#allocation87_spill] sm:$0xff] %v5118_v5 }
  0x8e   :  { %2233 = vmatpush1.bf16.msra.mxu0 %v5088_v21  ;;  %2274 = vmatpush1.bf16.msra.mxu1 %v5092_v4  ;;  %6442 = vst [vmem:[#allocation89_spill] sm:$0xff] %v5136_v20  ;;  %v5145_v4 = vcombine.high %v1421_v2, %v1425_v3  ;;  %v1428_v21 = vld [vmem:[%s6094_s3 + $0x190] sm:$0xff] }
  0x8f   :  { %2234 = vmatprep.subr.bf16.mxu0 %v5094_v43  ;;  %2275 = vmatprep.subr.bf16.mxu1 %v5097_v38  ;;  %v5140_v38 = vcombine.low %v1413_v37, %v1417_v53  ;;  %v5142_v43 = vcombine.high %v1420_v19, %v1424_v23  ;;  %v1433_v37 = vld [vmem:[%s6094_s3 + $0x1b8] sm:$0xff]  ;;  %v5160_v53 = vcombine.low %v1420_v19, %v1424_v23  ;;  %v1440_v19 = vld [vmem:[%s6094_s3 + $0x1f0] sm:$0xff] }
  0x90   :  { %6445 = vst [vmem:[#allocation92_spill] sm:$0xff] %v5145_v4  ;;  %v1437_v23 = vld [vmem:[%s6094_s3 + $0x1d8] sm:$0xff] }
  0x91   :  { %6443 = vst [vmem:[#allocation90_spill] sm:$0xff] %v5140_v38  ;;  %6444 = vst [vmem:[#allocation91_spill] sm:$0xff] %v5142_v43 }
  0x92   :  { %2235 = vmatpush1.bf16.msra.mxu0 %v5112_v54  ;;  %2276 = vmatpush1.bf16.msra.mxu1 %v5116_v57  ;;  %6446 = vst [vmem:[#allocation93_spill] sm:$0xff] %v5160_v53  ;;  %v5169_v57 = vcombine.high %v1429_v36, %v1433_v37  ;;  %v1436_v54 = vld [vmem:[%s6094_s3 + $0x1d0] sm:$0xff] }
  0x93   :  { %2236 = vmatprep.subr.bf16.mxu0 %v5118_v5  ;;  %2277 = vmatprep.subr.bf16.mxu1 %v5121_v50  ;;  %v5164_v50 = vcombine.low %v1421_v2, %v1425_v3  ;;  %v5166_v5 = vcombine.high %v1428_v21, %v1432_v7  ;;  %v1441_v2 = vld [vmem:[%s6094_s3 + $0x1f8] sm:$0xff]  ;;  %v5184_v3 = vcombine.low %v1428_v21, %v1432_v7  ;;  %v1448_v21 = vld [vmem:[%s6094_s3 + $0x230] sm:$0xff] }
  0x94   :  { %6449 = vst [vmem:[#allocation96_spill] sm:$0xff] %v5169_v57  ;;  %v1445_v7 = vld [vmem:[%s6094_s3 + $0x218] sm:$0xff] }
  0x95   :  { %6447 = vst [vmem:[#allocation94_spill] sm:$0xff] %v5164_v50  ;;  %6448 = vst [vmem:[#allocation95_spill] sm:$0xff] %v5166_v5 }
  0x96   :  { %2237 = vmatpush1.bf16.msra.mxu0 %v5136_v20  ;;  %2278 = vmatpush1.bf16.msra.mxu1 %v5140_v38  ;;  %6450 = vst [vmem:[#allocation97_spill] sm:$0xff] %v5184_v3  ;;  %v5193_v38 = vcombine.high %v1437_v23, %v1441_v2  ;;  %v1444_v20 = vld [vmem:[%s6094_s3 + $0x210] sm:$0xff] }
  0x97   :  { %2238 = vmatprep.subr.bf16.mxu0 %v5142_v43  ;;  %2279 = vmatprep.subr.bf16.mxu1 %v5145_v4  ;;  %v5188_v4 = vcombine.low %v1429_v36, %v1433_v37  ;;  %v5190_v43 = vcombine.high %v1436_v54, %v1440_v19  ;;  %v1449_v36 = vld [vmem:[%s6094_s3 + $0x238] sm:$0xff]  ;;  %v5208_v37 = vcombine.low %v1436_v54, %v1440_v19  ;;  %v1456_v54 = vld [vmem:[%s6094_s3 + $0x270] sm:$0xff] }
  0x98   :  { %6453 = vst [vmem:[#allocation100_spill] sm:$0xff] %v5193_v38  ;;  %v1453_v19 = vld [vmem:[%s6094_s3 + $0x258] sm:$0xff] }
  0x99   :  { %6451 = vst [vmem:[#allocation98_spill] sm:$0xff] %v5188_v4  ;;  %6452 = vst [vmem:[#allocation99_spill] sm:$0xff] %v5190_v43 }
  0x9a   :  { %2239 = vmatpush1.bf16.msra.mxu0 %v5160_v53  ;;  %2280 = vmatpush1.bf16.msra.mxu1 %v5164_v50  ;;  %6454 = vst [vmem:[#allocation101_spill] sm:$0xff] %v5208_v37  ;;  %v5217_v50 = vcombine.high %v1445_v7, %v1449_v36  ;;  %v1452_v53 = vld [vmem:[%s6094_s3 + $0x250] sm:$0xff] }
  0x9b   :  { %2240 = vmatprep.subr.bf16.mxu0 %v5166_v5  ;;  %2281 = vmatprep.subr.bf16.mxu1 %v5169_v57  ;;  %v5212_v57 = vcombine.low %v1437_v23, %v1441_v2  ;;  %v5214_v5 = vcombine.high %v1444_v20, %v1448_v21  ;;  %v1457_v23 = vld [vmem:[%s6094_s3 + $0x278] sm:$0xff]  ;;  %v5232_v2 = vcombine.low %v1444_v20, %v1448_v21  ;;  %v1464_v20 = vld [vmem:[%s6094_s3 + $0x2b0] sm:$0xff] }
  0x9c   :  { %6457 = vst [vmem:[#allocation104_spill] sm:$0xff] %v5217_v50  ;;  %v1461_v21 = vld [vmem:[%s6094_s3 + $0x298] sm:$0xff] }
  0x9d   :  { %6455 = vst [vmem:[#allocation102_spill] sm:$0xff] %v5212_v57  ;;  %6456 = vst [vmem:[#allocation103_spill] sm:$0xff] %v5214_v5 }
  0x9e   :  { %2241 = vmatpush1.bf16.msra.mxu0 %v5184_v3  ;;  %2282 = vmatpush1.bf16.msra.mxu1 %v5188_v4  ;;  %6458 = vst [vmem:[#allocation105_spill] sm:$0xff] %v5232_v2  ;;  %v5241_v4 = vcombine.high %v1453_v19, %v1457_v23  ;;  %v1460_v3 = vld [vmem:[%s6094_s3 + $0x290] sm:$0xff] }
  0x9f   :  { %2242 = vmatprep.subr.bf16.mxu0 %v5190_v43  ;;  %2283 = vmatprep.subr.bf16.mxu1 %v5193_v38  ;;  %v5236_v38 = vcombine.low %v1445_v7, %v1449_v36  ;;  %v5238_v43 = vcombine.high %v1452_v53, %v1456_v54  ;;  %v1465_v7 = vld [vmem:[%s6094_s3 + $0x2b8] sm:$0xff]  ;;  %v5256_v36 = vcombine.low %v1452_v53, %v1456_v54  ;;  %v1472_v53 = vld [vmem:[%s6094_s3 + $0x2f0] sm:$0xff] }
  0xa0   :  { %6461 = vst [vmem:[#allocation108_spill] sm:$0xff] %v5241_v4  ;;  %v1469_v54 = vld [vmem:[%s6094_s3 + $0x2d8] sm:$0xff] }
  0xa1   :  { %6459 = vst [vmem:[#allocation106_spill] sm:$0xff] %v5236_v38  ;;  %6460 = vst [vmem:[#allocation107_spill] sm:$0xff] %v5238_v43 }
  0xa2   :  { %2243 = vmatpush1.bf16.msra.mxu0 %v5208_v37  ;;  %2284 = vmatpush1.bf16.msra.mxu1 %v5212_v57  ;;  %6462 = vst [vmem:[#allocation109_spill] sm:$0xff] %v5256_v36  ;;  %v5265_v57 = vcombine.high %v1461_v21, %v1465_v7  ;;  %v1468_v37 = vld [vmem:[%s6094_s3 + $0x2d0] sm:$0xff] }
  0xa3   :  { %2244 = vmatprep.subr.bf16.mxu0 %v5214_v5  ;;  %2285 = vmatprep.subr.bf16.mxu1 %v5217_v50  ;;  %v5260_v50 = vcombine.low %v1453_v19, %v1457_v23  ;;  %v5262_v5 = vcombine.high %v1460_v3, %v1464_v20  ;;  %v1473_v19 = vld [vmem:[%s6094_s3 + $0x2f8] sm:$0xff]  ;;  %v5280_v23 = vcombine.low %v1460_v3, %v1464_v20  ;;  %v1480_v3 = vld [vmem:[%s6094_s3 + $0x330] sm:$0xff] }
  0xa4   :  { %6465 = vst [vmem:[#allocation112_spill] sm:$0xff] %v5265_v57  ;;  %v1477_v20 = vld [vmem:[%s6094_s3 + $0x318] sm:$0xff] }
  0xa5   :  { %6463 = vst [vmem:[#allocation110_spill] sm:$0xff] %v5260_v50  ;;  %6464 = vst [vmem:[#allocation111_spill] sm:$0xff] %v5262_v5 }
  0xa6   :  { %2245 = vmatpush1.bf16.msra.mxu0 %v5232_v2  ;;  %2286 = vmatpush1.bf16.msra.mxu1 %v5236_v38  ;;  %6466 = vst [vmem:[#allocation113_spill] sm:$0xff] %v5280_v23  ;;  %v5289_v38 = vcombine.high %v1469_v54, %v1473_v19  ;;  %v1476_v2 = vld [vmem:[%s6094_s3 + $0x310] sm:$0xff] }
  0xa7   :  { %2246 = vmatprep.subr.bf16.mxu0 %v5238_v43  ;;  %2287 = vmatprep.subr.bf16.mxu1 %v5241_v4  ;;  %v5284_v4 = vcombine.low %v1461_v21, %v1465_v7  ;;  %v5286_v43 = vcombine.high %v1468_v37, %v1472_v53  ;;  %v1481_v21 = vld [vmem:[%s6094_s3 + $0x338] sm:$0xff]  ;;  %v5304_v7 = vcombine.low %v1468_v37, %v1472_v53  ;;  %v1488_v37 = vld [vmem:[%s6094_s3 + $0x370] sm:$0xff] }
  0xa8   :  { %6469 = vst [vmem:[#allocation116_spill] sm:$0xff] %v5289_v38  ;;  %v1485_v53 = vld [vmem:[%s6094_s3 + $0x358] sm:$0xff] }
  0xa9   :  { %6467 = vst [vmem:[#allocation114_spill] sm:$0xff] %v5284_v4  ;;  %6468 = vst [vmem:[#allocation115_spill] sm:$0xff] %v5286_v43 }
  0xaa   :  { %2247 = vmatpush1.bf16.msra.mxu0 %v5256_v36  ;;  %2288 = vmatpush1.bf16.msra.mxu1 %v5260_v50  ;;  %6470 = vst [vmem:[#allocation117_spill] sm:$0xff] %v5304_v7  ;;  %v5313_v50 = vcombine.high %v1477_v20, %v1481_v21  ;;  %v1484_v36 = vld [vmem:[%s6094_s3 + $0x350] sm:$0xff] }
  0xab   :  { %2248 = vmatprep.subr.bf16.mxu0 %v5262_v5  ;;  %2289 = vmatprep.subr.bf16.mxu1 %v5265_v57  ;;  %v5308_v57 = vcombine.low %v1469_v54, %v1473_v19  ;;  %v5310_v5 = vcombine.high %v1476_v2, %v1480_v3  ;;  %v1489_v54 = vld [vmem:[%s6094_s3 + $0x378] sm:$0xff]  ;;  %v5328_v19 = vcombine.low %v1476_v2, %v1480_v3  ;;  %v1496_v2 = vld [vmem:[%s6094_s3 + $0x3b0] sm:$0xff] }
  0xac   :  { %6473 = vst [vmem:[#allocation120_spill] sm:$0xff] %v5313_v50  ;;  %v1493_v3 = vld [vmem:[%s6094_s3 + $0x398] sm:$0xff] }
  0xad   :  { %6471 = vst [vmem:[#allocation118_spill] sm:$0xff] %v5308_v57  ;;  %6472 = vst [vmem:[#allocation119_spill] sm:$0xff] %v5310_v5 }
  0xae   :  { %2249 = vmatpush1.bf16.msra.mxu0 %v5280_v23  ;;  %2290 = vmatpush1.bf16.msra.mxu1 %v5284_v4  ;;  %6474 = vst [vmem:[#allocation121_spill] sm:$0xff] %v5328_v19  ;;  %v5337_v4 = vcombine.high %v1485_v53, %v1489_v54  ;;  %v1492_v23 = vld [vmem:[%s6094_s3 + $0x390] sm:$0xff] }
  0xaf   :  { %2250 = vmatprep.subr.bf16.mxu0 %v5286_v43  ;;  %2291 = vmatprep.subr.bf16.mxu1 %v5289_v38  ;;  %v5332_v38 = vcombine.low %v1477_v20, %v1481_v21  ;;  %v5334_v43 = vcombine.high %v1484_v36, %v1488_v37  ;;  %v1497_v20 = vld [vmem:[%s6094_s3 + $0x3b8] sm:$0xff]  ;;  %v5352_v21 = vcombine.low %v1484_v36, %v1488_v37  ;;  %v1504_v36 = vld [vmem:[%s6094_s3 + $0x3f0] sm:$0xff] }
  0xb0   :  { %6477 = vst [vmem:[#allocation124_spill] sm:$0xff] %v5337_v4  ;;  %v1501_v37 = vld [vmem:[%s6094_s3 + $0x3d8] sm:$0xff] }
  0xb1   :  { %6475 = vst [vmem:[#allocation122_spill] sm:$0xff] %v5332_v38  ;;  %6476 = vst [vmem:[#allocation123_spill] sm:$0xff] %v5334_v43 }
  0xb2   :  { %2251 = vmatpush1.bf16.msra.mxu0 %v5304_v7  ;;  %2292 = vmatpush1.bf16.msra.mxu1 %v5308_v57  ;;  %6478 = vst [vmem:[#allocation125_spill] sm:$0xff] %v5352_v21  ;;  %v5361_v57 = vcombine.high %v1493_v3, %v1497_v20  ;;  %v1500_v7 = vld [vmem:[%s6094_s3 + $0x3d0] sm:$0xff] }
  0xb3   :  { %2252 = vmatprep.subr.bf16.mxu0 %v5310_v5  ;;  %2293 = vmatprep.subr.bf16.mxu1 %v5313_v50  ;;  %v5356_v50 = vcombine.low %v1485_v53, %v1489_v54  ;;  %v5358_v5 = vcombine.high %v1492_v23, %v1496_v2  ;;  %v1505_v53 = vld [vmem:[%s6094_s3 + $0x3f8] sm:$0xff]  ;;  %v5376_v54 = vcombine.low %v1492_v23, %v1496_v2  ;;  %v5449_v2 = vld [vmem:[%s6095_s2] sm:$0xff] }
  0xb4   :  { %6481 = vst [vmem:[#allocation128_spill] sm:$0xff] %v5361_v57  ;;  %v5392_v23 = vcombine.low %v1501_v37, %v1505_v53 }
  0xb5   :  { %6479 = vst [vmem:[#allocation126_spill] sm:$0xff] %v5356_v50  ;;  %6480 = vst [vmem:[#allocation127_spill] sm:$0xff] %v5358_v5 }
  0xb6   :  { %2253 = vmatpush1.bf16.msra.mxu0 %v5328_v19  ;;  %2294 = vmatpush1.bf16.msra.mxu1 %v5332_v38  ;;  %6482 = vst [vmem:[#allocation129_spill] sm:$0xff] %v5376_v54  ;;  %v5385_v38 = vcombine.high %v1501_v37, %v1505_v53  ;;  %v5388_v19 = vcombine.low %v1500_v7, %v1504_v36  ;;  %6487 = vst [vmem:[#allocation134_spill] sm:$0xff] %v5392_v23  ;;  %v6490_v53 = vld [vmem:[#allocation54_spill] sm:$0xff] }
  0xb7   :  { %2254 = vmatprep.subr.bf16.mxu0 %v5334_v43  ;;  %2295 = vmatprep.subr.bf16.mxu1 %v5337_v4  ;;  %v5380_v4 = vcombine.low %v1493_v3, %v1497_v20  ;;  %v5382_v43 = vcombine.high %v1500_v7, %v1504_v36  ;;  %v6489_v36 = vld [vmem:[#allocation53_spill] sm:$0xff] }
  0xb8   :  { %6485 = vst [vmem:[#allocation132_spill] sm:$0xff] %v5385_v38  ;;  %6486 = vst [vmem:[#allocation133_spill] sm:$0xff] %v5388_v19 }
  0xb9   :  { %6483 = vst [vmem:[#allocation130_spill] sm:$0xff] %v5380_v4  ;;  %6484 = vst [vmem:[#allocation131_spill] sm:$0xff] %v5382_v43 }
  0xba   :  { %2255 = vmatpush1.bf16.msra.mxu0 %v5352_v21  ;;  %2296 = vmatpush1.bf16.msra.mxu1 %v5356_v50 }
  0xbb   :  { %2256 = vmatprep.subr.bf16.mxu0 %v5358_v5  ;;  %2297 = vmatprep.subr.bf16.mxu1 %v5361_v57 }
  0xbe   :  { %2257 = vmatpush1.bf16.msra.mxu0 %v5376_v54  ;;  %2298 = vmatpush1.bf16.msra.mxu1 %v5380_v4 }
  0xbf   :  { %2258 = vmatprep.subr.bf16.mxu0 %v5382_v43  ;;  %2299 = vmatprep.subr.bf16.mxu1 %v5385_v38 }
  0xc2   :  { %2259 = vmatpush1.bf16.msra.mxu0 %v5388_v19  ;;  %2300 = vmatpush1.bf16.msra.mxu1 %v5392_v23 }
  0xc3   :  { %2380 = vmatprep.subr.bf16.mxu0 %v4629_v55  ;;  %2421 = vmatprep.subr.bf16.mxu1 %v4631_v56 }
  0xc5   :  { %2261 = vmatmul.mubr.bf16.vlgmr.msra.gmra.mrb[20].mxu0 %v6429_v32  ;;  %2302 = vmatmul.mubr.bf16.vlgmr.msra.gmra.mrb[20].mxu1 %v6429_v32  ;;  %v6488_v32 = vld [vmem:[#allocation5_spill] sm:$0xff] }
  0xc6   :  { %2381 = vmatpush1.bf16.msra.mxu0 %v4645_v61  ;;  %2422 = vmatpush1.bf16.msra.mxu1 %v4648_v62  ;;  %v232_v7 = vsub.s32 0, %v6488_v32  ;;  %v240_v3 = vsub.s32 2, %v6488_v32  ;;  %v236_v20 = vsub.s32 1, %v6488_v32  ;;  %v244_v37 = vsub.s32 3, %v6488_v32 }
  0xc7   :  { %2382 = vmatprep.subr.bf16.mxu0 %v4650_v63  ;;  %2423 = vmatprep.subr.bf16.mxu1 %v4653_v0 }
  0xca   :  { %2383 = vmatpush1.bf16.msra.mxu0 %v4670_v6  ;;  %2424 = vmatpush1.bf16.msra.mxu1 %v4674_v8 }
  0xcb   :  { %2384 = vmatprep.subr.bf16.mxu0 %v4676_v9  ;;  %2425 = vmatprep.subr.bf16.mxu1 %v4680_v10 }
  0xce   :  { %2385 = vmatpush1.bf16.msra.mxu0 %v4696_v14  ;;  %2426 = vmatpush1.bf16.msra.mxu1 %v4700_v15 }
  0xcf   :  { %2386 = vmatprep.subr.bf16.mxu0 %v4702_v16  ;;  %2427 = vmatprep.subr.bf16.mxu1 %v4705_v17 }
  0xd2   :  { %2387 = vmatpush1.bf16.msra.mxu0 %v4722_v22  ;;  %2428 = vmatpush1.bf16.msra.mxu1 %v4726_v24 }
  0xd3   :  { %2388 = vmatprep.subr.bf16.mxu0 %v4728_v25  ;;  %2429 = vmatprep.subr.bf16.mxu1 %v4731_v26  ;;  %v6509_v25 = vld [vmem:[#allocation72_spill] sm:$0xff] }
  0xd6   :  { %2389 = vmatpush1.bf16.msra.mxu0 %v4748_v30  ;;  %2430 = vmatpush1.bf16.msra.mxu1 %v4752_v31  ;;  %v6508_v30 = vld [vmem:[#allocation71_spill] sm:$0xff] }
  0xd7   :  { %2390 = vmatprep.subr.bf16.mxu0 %v4754_v33  ;;  %2431 = vmatprep.subr.bf16.mxu1 %v4757_v34 }
  0xda   :  { %2391 = vmatpush1.bf16.msra.mxu0 %v4772_v39  ;;  %2432 = vmatpush1.bf16.msra.mxu1 %v4776_v40 }
  0xdb   :  { %2392 = vmatprep.subr.bf16.mxu0 %v4778_v41  ;;  %2433 = vmatprep.subr.bf16.mxu1 %v4781_v42  ;;  %v6506_v41 = vld [vmem:[#allocation69_spill] sm:$0xff] }
  0xde   :  { %2393 = vmatpush1.bf16.msra.mxu0 %v4796_v47  ;;  %2434 = vmatpush1.bf16.msra.mxu1 %v4800_v48 }
  0xdf   :  { %2394 = vmatprep.subr.bf16.mxu0 %v4802_v49  ;;  %2435 = vmatprep.subr.bf16.mxu1 %v4805_v51  ;;  %v6501_v51 = vld [vmem:[#allocation6_spill] sm:$0xff]  ;;  %v6504_v49 = vld [vmem:[#allocation67_spill] sm:$0xff] }
  0xe2   :  { %2395 = vmatpush1.bf16.msra.mxu0 %v4820_v58  ;;  %2436 = vmatpush1.bf16.msra.mxu1 %v4824_v59 }
  0xe3   :  { %2396 = vmatprep.subr.bf16.mxu0 %v4826_v60  ;;  %2437 = vmatprep.subr.bf16.mxu1 %v4829_v1  ;;  %v6498_v1 = vld [vmem:[#allocation62_spill] sm:$0xff] }
  0xe6   :  { %2397 = vmatpush1.bf16.msra.mxu0 %v4844_v11  ;;  %2438 = vmatpush1.bf16.msra.mxu1 %v4848_v12 }
  0xe7   :  { %2398 = vmatprep.subr.bf16.mxu0 %v4850_v13  ;;  %2439 = vmatprep.subr.bf16.mxu1 %v4853_v18 }
  0xea   :  { %2399 = vmatpush1.bf16.msra.mxu0 %v4868_v27  ;;  %2440 = vmatpush1.bf16.msra.mxu1 %v4872_v28  ;;  %v6494_v28 = vld [vmem:[#allocation58_spill] sm:$0xff]  ;;  %v6496_v27 = vld [vmem:[#allocation60_spill] sm:$0xff] }
  0xeb   :  { %2400 = vmatprep.subr.bf16.mxu0 %v4874_v29  ;;  %2441 = vmatprep.subr.bf16.mxu1 %v4877_v35  ;;  %v5463_v35 = vrot.slane %v5449_v2, %v236_v20  ;;  %v6493_v29 = vld [vmem:[#allocation57_spill] sm:$0xff] }
  0xee   :  { %2401 = vmatpush1.bf16.msra.mxu0 %v4892_v44  ;;  %2442 = vmatpush1.bf16.msra.mxu1 %v4896_v45  ;;  %v233_v45 = vrot.slane %v5449_v2, %v232_v7  ;;  %v5460_v44 = vrot.slane %v5449_v2, %v240_v3 }
  0xef   :  { %2402 = vmatprep.subr.bf16.mxu0 %v4898_v46  ;;  %2443 = vmatprep.subr.bf16.mxu1 %v4901_v52  ;;  %v6491_v46 = vld [vmem:[#allocation55_spill] sm:$0xff]  ;;  %v6492_v52 = vld [vmem:[#allocation56_spill] sm:$0xff] }
  0xf2   :  { %2403 = vmatpush1.bf16.msra.mxu0 %v6489_v36  ;;  %2444 = vmatpush1.bf16.msra.mxu1 %v6490_v53  ;;  %v5467_v36 = vrot.slane %v5449_v2, %v244_v37  ;;  %v6495_v53 = vld [vmem:[#allocation59_spill] sm:$0xff] }
  0xf3   :  { %2404 = vmatprep.subr.bf16.mxu0 %v6491_v46  ;;  %2445 = vmatprep.subr.bf16.mxu1 %v6492_v52 }
  0xf6   :  { %2405 = vmatpush1.bf16.msra.mxu0 %v6493_v29  ;;  %2446 = vmatpush1.bf16.msra.mxu1 %v6494_v28  ;;  %v6497_v29 = vld [vmem:[#allocation61_spill] sm:$0xff] }
  0xf7   :  { %2406 = vmatprep.subr.bf16.mxu0 %v6495_v53  ;;  %2447 = vmatprep.subr.bf16.mxu1 %v6496_v27  ;;  %v6499_v27 = vld [vmem:[#allocation63_spill] sm:$0xff] }
  0xf8   :  { %v624_v46 = vpop.f32.mrb[0].mxu0  ;;  %v675_v7 = vpop.f32.mrb[0].mxu1 }
  0xf9   :  { %v625_v52 = vadd.f32 %v624_v46, %v233_v45  ;;  %v626_v18 = vpop.f32.mrb[1].mxu0  ;;  %v676_v3 = vadd.f32 %v675_v7, %v5460_v44  ;;  %v677_v13 = vpop.f32.mrb[1].mxu1 }
  0xfa   :  { %v627_v20 = vadd.f32 %v626_v18, %v5463_v35  ;;  %v628_v12 = vpop.f32.mrb[2].mxu0  ;;  %2407 = vmatpush1.bf16.msra.mxu0 %v6497_v29  ;;  %v678_v37 = vadd.f32 %v677_v13, %v5467_v36  ;;  %v679_v28 = vpop.f32.mrb[2].mxu1  ;;  %2448 = vmatpush1.bf16.msra.mxu1 %v6498_v1  ;;  %v6500_v29 = vld [vmem:[#allocation64_spill] sm:$0xff] }
  0xfb   :  { %v5476_v11 = vadd.f32 %v628_v12, %v233_v45  ;;  %v630_v53 = vpop.f32.mrb[3].mxu0  ;;  %2408 = vmatprep.subr.bf16.mxu0 %v6499_v27  ;;  %v5481_v7 = vadd.f32 %v679_v28, %v5460_v44  ;;  %v681_v59 = vpop.f32.mrb[3].mxu1  ;;  %2449 = vmatprep.subr.bf16.mxu1 %v6500_v29 }
  0xfc   :  { %v818_v46 = vcombine.low %v625_v52, %v627_v20  ;;  %v819_v60 = vcombine.high %v625_v52, %v627_v20  ;;  %v5484_v18 = vadd.f32 %v630_v53, %v5463_v35  ;;  %v820_v13 = vcombine.low %v676_v3, %v678_v37  ;;  %v6502_v53 = vld [vmem:[#allocation65_spill] sm:$0xff] }
  0xfd   :  { %v821_v12 = vcombine.high %v676_v3, %v678_v37  ;;  %v5488_v58 = vadd.f32 %v681_v59, %v5467_v36  ;;  %v6503_v37 = vld [vmem:[#allocation66_spill] sm:$0xff] }
  0xfe   :  { %v828_v1 = vrot.slane %v818_v46, %v6501_v51  ;;  %v835_v27 = vrot.slane %v819_v60, %v6501_v51  ;;  %v890_v52 = vcombine.low %v5476_v11, %v5484_v18  ;;  %v891_v28 = vcombine.high %v5476_v11, %v5484_v18  ;;  %2409 = vmatpush1.bf16.msra.mxu0 %v6502_v53  ;;  %v6505_v11 = vld [vmem:[#allocation68_spill] sm:$0xff] }
  0xff   :  { %v842_v20 = vrot.slane %v820_v13, %v6501_v51  ;;  %v849_v29 = vrot.slane %v821_v12, %v6501_v51  ;;  %v892_v59 = vcombine.low %v5481_v7, %v5488_v58  ;;  %v893_v3 = vcombine.high %v5481_v7, %v5488_v58  ;;  %2450 = vmatpush1.bf16.msra.mxu1 %v6503_v37 }
 0x100   :  { %v900_v60 = vrot.slane %v890_v52, %v6501_v51  ;;  %v634_v46 = vpop.f32.mrb[4].mxu0  ;;  %2410 = vmatprep.subr.bf16.mxu0 %v6504_v49  ;;  %2451 = vmatprep.subr.bf16.mxu1 %v6505_v11  ;;  %v685_v48 = vpop.f32.mrb[4].mxu1  ;;  %v1043_v42 = vrot.slane %v828_v1, %v6501_v51 }
 0x101   :  { %v852_v18 = vcombine.low %v835_v27, %v849_v29  ;;  %v3866_v53 = vcombine.low %v849_v29, %v849_v29  ;;  %v1050_v13 = vrot.slane %v842_v20, %v6501_v51  ;;  %v853_v12 = vcombine.high %v835_v27, %v849_v29  ;;  %v636_v47 = vpop.f32.mrb[5].mxu0  ;;  %v687_v7 = vpop.f32.mrb[5].mxu1  ;;  %v6507_v20 = vld [vmem:[#allocation70_spill] sm:$0xff] }
 0x102   :  { %v914_v58 = vrot.slane %v892_v59, %v6501_v51  ;;  %v638_v37 = vpop.f32.mrb[6].mxu0  ;;  %2411 = vmatpush1.bf16.msra.mxu0 %v6506_v41  ;;  %v635_v40 = vadd.f32 %v634_v46, %v233_v45  ;;  %v689_v34 = vpop.f32.mrb[6].mxu1  ;;  %v686_v1 = vadd.f32 %v685_v48, %v5460_v44  ;;  %v637_v48 = vadd.f32 %v636_v47, %v5463_v35 }
 0x103   :  { %v1057_v52 = vrot.slane %v852_v18, %v6501_v51  ;;  %v1064_v49 = vrot.slane %v3866_v53, %v6501_v51  ;;  %v3868_v11 = vcombine.low %v853_v12, %v900_v60  ;;  %v639_v39 = vpop.f32.mrb[7].mxu0  ;;  %2452 = vmatpush1.bf16.msra.mxu1 %v6507_v20  ;;  %v690_v59 = vpop.f32.mrb[7].mxu1  ;;  %2462 = vmatprep.subr.bf16.mxu0 %v6508_v30 }
 0x104   :  { %v922_v27 = vcombine.low %v900_v60, %v914_v58  ;;  %v923_v33 = vcombine.high %v900_v60, %v914_v58  ;;  %v3870_v31 = vcombine.high %v914_v58, %v914_v58  ;;  %2503 = vmatprep.subr.bf16.mxu1 %v6509_v25  ;;  %v688_v44 = vadd.f32 %v687_v7, %v5467_v36 }
 0x105   :  { %v1065_v37 = vcombine.low %v1043_v42, %v1057_v52  ;;  %v1066_v41 = vcombine.high %v1043_v42, %v1057_v52  ;;  %v1067_v26 = vcombine.low %v1050_v13, %v1064_v49  ;;  %v1068_v18 = vcombine.high %v1050_v13, %v1064_v49 }
 0x106   :  { %v1113_v45 = vrot.slane %v3868_v11, %v6501_v51  ;;  %v3869_v39 = vcombine.high %v849_v29, %v922_v27  ;;  %v1127_v34 = vrot.slane %v923_v33, %v6501_v51  ;;  %v1134_v53 = vrot.slane %v3870_v31, %v6501_v51 }
 0x107   :  { %1346 = vst [vmem:[#allocation2] sm:$0x3f] %v1065_v37  ;;  %1347 = vst [vmem:[#allocation2 + $0x8] sm:$0x3f] %v1066_v41  ;;  %v962_v46 = vcombine.low %v635_v40, %v637_v48  ;;  %v963_v13 = vcombine.high %v635_v40, %v637_v48  ;;  %v964_v11 = vcombine.low %v686_v1, %v688_v44  ;;  %v256_v48 = vsub.s32 6, %v6488_v32 }
 0x108   :  { %1348 = vst [vmem:[#allocation2 + $0x10] sm:$0x3f] %v1067_v26  ;;  %1349 = vst [vmem:[#allocation2 + $0x18] sm:$0x3f] %v1068_v18  ;;  %v1120_v42 = vrot.slane %v3869_v39, %v6501_v51  ;;  %v1135_v49 = vcombine.low %v1113_v45, %v1127_v34  ;;  %v1136_v60 = vcombine.high %v1113_v45, %v1127_v34 }
 0x109   :  { %v965_v29 = vcombine.high %v686_v1, %v688_v44  ;;  %v907_v33 = vrot.slane %v891_v28, %v6501_v51  ;;  %v921_v31 = vrot.slane %v893_v3, %v6501_v51  ;;  %v972_v26 = vrot.slane %v962_v46, %v6501_v51 }
 0x10a   :  { %v1137_v12 = vcombine.low %v1120_v42, %v1134_v53  ;;  %v1138_v41 = vcombine.high %v1120_v42, %v1134_v53  ;;  %1354 = vst [vmem:[#allocation2 + $0x40] sm:$0x3f] %v1135_v49  ;;  %1355 = vst [vmem:[#allocation2 + $0x48] sm:$0x3f] %v1136_v60  ;;  %v979_v47 = vrot.slane %v963_v13, %v6501_v51  ;;  %v248_v53 = vsub.s32 4, %v6488_v32 }
 0x10b   :  { %v986_v35 = vrot.slane %v964_v11, %v6501_v51  ;;  %v993_v36 = vrot.slane %v965_v29, %v6501_v51  ;;  %v1183_v3 = vrot.slane %v907_v33, %v6501_v51  ;;  %v1190_v52 = vrot.slane %v921_v31, %v6501_v51 }
 0x10c   :  { %1356 = vst [vmem:[#allocation2 + $0x50] sm:$0x3f] %v1137_v12  ;;  %1357 = vst [vmem:[#allocation2 + $0x58] sm:$0x3f] %v1138_v41  ;;  %v252_v11 = vsub.s32 5, %v6488_v32  ;;  %v260_v29 = vsub.s32 7, %v6488_v32 }
 0x10d   :  { %v994_v40 = vcombine.low %v972_v26, %v986_v35  ;;  %v995_v58 = vcombine.high %v972_v26, %v986_v35  ;;  %v996_v7 = vcombine.low %v979_v47, %v993_v36  ;;  %v997_v28 = vcombine.high %v979_v47, %v993_v36 }
 0x10e   :  { %v3874_v27 = vcombine.low %v986_v35, %v986_v35  ;;  %v3878_v1 = vcombine.high %v993_v36, %v993_v36  ;;  %v249_v26 = vrot.slane %v5449_v2, %v248_v53  ;;  %v5547_v32 = vrot.slane %v5449_v2, %v260_v29 }
 0x10f   :  { %v1197_v59 = vrot.slane %v994_v40, %v6501_v51  ;;  %v3876_v37 = vcombine.low %v995_v58, %v979_v47  ;;  %v3877_v18 = vcombine.high %v986_v35, %v996_v7  ;;  %v1267_v45 = vrot.slane %v997_v28, %v6501_v51 }
 0x110   :  { %v1204_v39 = vrot.slane %v3874_v27, %v6501_v51  ;;  %v1274_v34 = vrot.slane %v3878_v1, %v6501_v51  ;;  %v257_v47 = vrot.slane %v5449_v2, %v256_v48  ;;  %v5544_v35 = vrot.slane %v5449_v2, %v252_v11 }
 0x111   :  { %v1205_v44 = vcombine.low %v1183_v3, %v1197_v59  ;;  %v1206_v42 = vcombine.high %v1183_v3, %v1197_v59  ;;  %v1253_v49 = vrot.slane %v3876_v37, %v6501_v51  ;;  %v1260_v60 = vrot.slane %v3877_v18, %v6501_v51 }
 0x112   :  { %v1207_v46 = vcombine.low %v1190_v52, %v1204_v39  ;;  %v1208_v13 = vcombine.high %v1190_v52, %v1204_v39 }
 0x113   :  { %v1275_v33 = vcombine.low %v1253_v49, %v1267_v45  ;;  %v1276_v31 = vcombine.high %v1253_v49, %v1267_v45  ;;  %v1277_v12 = vcombine.low %v1260_v60, %v1274_v34  ;;  %v1278_v41 = vcombine.high %v1260_v60, %v1274_v34  ;;  %1362 = vst [vmem:[#allocation2 + $0x80] sm:$0x3f] %v1205_v44 }
 0x114   :  { %1363 = vst [vmem:[#allocation2 + $0x88] sm:$0x3f] %v1206_v42  ;;  %1364 = vst [vmem:[#allocation2 + $0x90] sm:$0x3f] %v1207_v46 }
 0x115   :  { %1365 = vst [vmem:[#allocation2 + $0x98] sm:$0x3f] %v1208_v13  ;;  %1370 = vst [vmem:[#allocation2 + $0xc0] sm:$0x3f] %v1275_v33 }
 0x116   :  { %1371 = vst [vmem:[#allocation2 + $0xc8] sm:$0x3f] %v1276_v31  ;;  %1372 = vst [vmem:[#allocation2 + $0xd0] sm:$0x3f] %v1277_v12 }
 0x117   :  { %1373 = vst [vmem:[#allocation2 + $0xd8] sm:$0x3f] %v1278_v41 }
 0x118   :  { %v726_v36 = vpop.f32.mrb[8].mxu0  ;;  %v777_v58 = vpop.f32.mrb[8].mxu1 }
 0x119   :  { %v727_v40 = vadd.f32 %v726_v36, %v249_v26  ;;  %v728_v7 = vpop.f32.mrb[9].mxu0  ;;  %v778_v28 = vadd.f32 %v777_v58, %v257_v47  ;;  %v779_v52 = vpop.f32.mrb[9].mxu1 }
 0x11a   :  { %v729_v3 = vadd.f32 %v728_v7, %v5544_v35  ;;  %v730_v27 = vpop.f32.mrb[10].mxu0  ;;  %v780_v1 = vadd.f32 %v779_v52, %v5547_v32  ;;  %v781_v37 = vpop.f32.mrb[10].mxu1 }
 0x11b   :  { %v5551_v59 = vadd.f32 %v730_v27, %v249_v26  ;;  %v732_v18 = vpop.f32.mrb[11].mxu0  ;;  %v782_v34 = vadd.f32 %v781_v37, %v257_v47  ;;  %v783_v53 = vpop.f32.mrb[11].mxu1 }
 0x11c   :  { %v854_v45 = vcombine.low %v727_v40, %v729_v3  ;;  %v855_v39 = vcombine.high %v727_v40, %v729_v3  ;;  %v733_v2 = vadd.f32 %v732_v18, %v5544_v35  ;;  %v856_v48 = vcombine.low %v778_v28, %v780_v1 }
 0x11d   :  { %v857_v44 = vcombine.high %v778_v28, %v780_v1  ;;  %v784_v42 = vadd.f32 %v783_v53, %v5547_v32 }
 0x11e   :  { %v864_v49 = vrot.slane %v854_v45, %v6501_v51  ;;  %v871_v60 = vrot.slane %v855_v39, %v6501_v51  ;;  %v926_v46 = vcombine.low %v5551_v59, %v733_v2  ;;  %v927_v13 = vcombine.high %v5551_v59, %v733_v2 }
 0x11f   :  { %v878_v11 = vrot.slane %v856_v48, %v6501_v51  ;;  %v885_v29 = vrot.slane %v857_v44, %v6501_v51  ;;  %v928_v33 = vcombine.low %v782_v34, %v784_v42  ;;  %v929_v31 = vcombine.high %v782_v34, %v784_v42 }
 0x120   :  { %v936_v12 = vrot.slane %v926_v46, %v6501_v51  ;;  %v736_v41 = vpop.f32.mrb[12].mxu0  ;;  %v787_v28 = vpop.f32.mrb[12].mxu1  ;;  %v1078_v52 = vrot.slane %v864_v49, %v6501_v51 }
 0x121   :  { %v888_v36 = vcombine.low %v871_v60, %v885_v29  ;;  %v3867_v40 = vcombine.low %v885_v29, %v885_v29  ;;  %v1085_v58 = vrot.slane %v878_v11, %v6501_v51  ;;  %v889_v7 = vcombine.high %v871_v60, %v885_v29  ;;  %v738_v3 = vpop.f32.mrb[13].mxu0  ;;  %v789_v1 = vpop.f32.mrb[13].mxu1 }
 0x122   :  { %v950_v27 = vrot.slane %v928_v33, %v6501_v51  ;;  %v740_v59 = vpop.f32.mrb[14].mxu0  ;;  %v737_v39 = vadd.f32 %v736_v41, %v249_v26  ;;  %v791_v2 = vpop.f32.mrb[14].mxu1  ;;  %v788_v42 = vadd.f32 %v787_v28, %v257_v47  ;;  %v739_v26 = vadd.f32 %v738_v3, %v5544_v35 }
 0x123   :  { %v1092_v37 = vrot.slane %v888_v36, %v6501_v51  ;;  %v1099_v18 = vrot.slane %v3867_v40, %v6501_v51  ;;  %v3871_v45 = vcombine.low %v889_v7, %v936_v12  ;;  %v741_v34 = vpop.f32.mrb[15].mxu0  ;;  %v792_v60 = vpop.f32.mrb[15].mxu1  ;;  %v790_v47 = vadd.f32 %v789_v1, %v5547_v32 }
 0x124   :  { %v958_v53 = vcombine.low %v936_v12, %v950_v27  ;;  %v959_v48 = vcombine.high %v936_v12, %v950_v27  ;;  %v3873_v44 = vcombine.high %v950_v27, %v950_v27  ;;  %v999_v28 = vcombine.high %v737_v39, %v739_v26 }
 0x125   :  { %v1100_v46 = vcombine.low %v1078_v52, %v1092_v37  ;;  %v1101_v11 = vcombine.high %v1078_v52, %v1092_v37  ;;  %v1102_v49 = vcombine.low %v1085_v58, %v1099_v18  ;;  %v1103_v25 = vcombine.high %v1085_v58, %v1099_v18 }
 0x126   :  { %v1148_v33 = vrot.slane %v3871_v45, %v6501_v51  ;;  %v3872_v59 = vcombine.high %v885_v29, %v958_v53  ;;  %v1162_v36 = vrot.slane %v959_v48, %v6501_v51  ;;  %v1169_v40 = vrot.slane %v3873_v44, %v6501_v51 }
 0x127   :  { %1350 = vst [vmem:[#allocation2 + $0x20] sm:$0x3f] %v1100_v46  ;;  %1351 = vst [vmem:[#allocation2 + $0x28] sm:$0x3f] %v1101_v11  ;;  %v998_v58 = vcombine.low %v737_v39, %v739_v26  ;;  %v1000_v52 = vcombine.low %v788_v42, %v790_v47  ;;  %v1001_v29 = vcombine.high %v788_v42, %v790_v47 }
 0x128   :  { %1352 = vst [vmem:[#allocation2 + $0x30] sm:$0x3f] %v1102_v49  ;;  %1353 = vst [vmem:[#allocation2 + $0x38] sm:$0x3f] %v1103_v25  ;;  %v1155_v12 = vrot.slane %v3872_v59, %v6501_v51  ;;  %v1170_v41 = vcombine.low %v1148_v33, %v1162_v36  ;;  %v1171_v7 = vcombine.high %v1148_v33, %v1162_v36 }
 0x129   :  { %v943_v27 = vrot.slane %v927_v13, %v6501_v51  ;;  %v957_v37 = vrot.slane %v929_v31, %v6501_v51  ;;  %v1008_v25 = vrot.slane %v998_v58, %v6501_v51  ;;  %v1015_v35 = vrot.slane %v999_v28, %v6501_v51 }
 0x12a   :  { %v1172_v18 = vcombine.low %v1155_v12, %v1169_v40  ;;  %v1173_v45 = vcombine.high %v1155_v12, %v1169_v40  ;;  %1358 = vst [vmem:[#allocation2 + $0x60] sm:$0x3f] %v1170_v41  ;;  %1359 = vst [vmem:[#allocation2 + $0x68] sm:$0x3f] %v1171_v7  ;;  %v1022_v32 = vrot.slane %v1000_v52, %v6501_v51  ;;  %v2310_v52 = vld [vmem:[#allocation2] sm:$0x3f] }
 0x12b   :  { %v1029_v3 = vrot.slane %v1001_v29, %v6501_v51  ;;  %v1218_v31 = vrot.slane %v943_v27, %v6501_v51  ;;  %v1225_v2 = vrot.slane %v957_v37, %v6501_v51 }
 0x12c   :  { %1360 = vst [vmem:[#allocation2 + $0x70] sm:$0x3f] %v1172_v18  ;;  %1361 = vst [vmem:[#allocation2 + $0x78] sm:$0x3f] %v1173_v45  ;;  %v1030_v1 = vcombine.low %v1008_v25, %v1022_v32  ;;  %v1031_v39 = vcombine.high %v1008_v25, %v1022_v32  ;;  %v3875_v53 = vcombine.low %v1022_v32, %v1022_v32  ;;  %v2311_v18 = vld [vmem:[#allocation2 + $0x8] sm:$0x3f] }
 0x12d   :  { %v1032_v34 = vcombine.low %v1015_v35, %v1029_v3  ;;  %v1033_v13 = vcombine.high %v1015_v35, %v1029_v3  ;;  %v3881_v48 = vcombine.high %v1029_v3, %v1029_v3 }
 0x12e   :  { %v1232_v44 = vrot.slane %v1030_v1, %v6501_v51  ;;  %v3879_v42 = vcombine.low %v1031_v39, %v1015_v35  ;;  %v1239_v11 = vrot.slane %v3875_v53, %v6501_v51 }
 0x12f   :  { %v3880_v60 = vcombine.high %v1022_v32, %v1032_v34  ;;  %v1302_v46 = vrot.slane %v1033_v13, %v6501_v51  ;;  %v1309_v49 = vrot.slane %v3881_v48, %v6501_v51  ;;  %v2313_v13 = vld [vmem:[#allocation2 + $0x18] sm:$0x3f] }
 0x130   :  { %v1240_v33 = vcombine.low %v1218_v31, %v1232_v44  ;;  %v1241_v59 = vcombine.high %v1218_v31, %v1232_v44  ;;  %v1288_v36 = vrot.slane %v3879_v42, %v6501_v51  ;;  %v1242_v26 = vcombine.low %v1225_v2, %v1239_v11 }
 0x131   :  { %v1295_v40 = vrot.slane %v3880_v60, %v6501_v51  ;;  %v1243_v47 = vcombine.high %v1225_v2, %v1239_v11  ;;  %v2312_v2 = vld [vmem:[#allocation2 + $0x10] sm:$0x3f]  ;;  %v6542_v51 = vld [vmem:[#allocation105_spill] sm:$0xff] }
 0x132   :  { %v1310_v12 = vcombine.low %v1288_v36, %v1302_v46  ;;  %v1311_v41 = vcombine.high %v1288_v36, %v1302_v46  ;;  %1366 = vst [vmem:[#allocation2 + $0xa0] sm:$0x3f] %v1240_v33  ;;  %1367 = vst [vmem:[#allocation2 + $0xa8] sm:$0x3f] %v1241_v59 }
 0x133   :  { %v1312_v7 = vcombine.low %v1295_v40, %v1309_v49  ;;  %v1313_v58 = vcombine.high %v1295_v40, %v1309_v49  ;;  %1368 = vst [vmem:[#allocation2 + $0xb0] sm:$0x3f] %v1242_v26  ;;  %1369 = vst [vmem:[#allocation2 + $0xb8] sm:$0x3f] %v1243_v47 }
 0x134   :  { %1374 = vst [vmem:[#allocation2 + $0xe0] sm:$0x3f] %v1310_v12  ;;  %1375 = vst [vmem:[#allocation2 + $0xe8] sm:$0x3f] %v1311_v41 }
 0x135   :  { %1376 = vst [vmem:[#allocation2 + $0xf0] sm:$0x3f] %v1312_v7  ;;  %1377 = vst [vmem:[#allocation2 + $0xf8] sm:$0x3f] %v1313_v58 }
 0x158   :  { %v2180_v28 = vpop.f32.mrb[16].mxu0  ;;  %v2221_v27 = vpop.f32.mrb[16].mxu1 }
 0x159   :  { %v2314_v29 = vadd.f32 %v2310_v52, %v2180_v28  ;;  %v2182_v37 = vpop.f32.mrb[17].mxu0  ;;  %v2223_v25 = vpop.f32.mrb[17].mxu1  ;;  %v2316_v48 = vadd.f32 %v2312_v2, %v2221_v27  ;;  %v2319_v28 = vld [vmem:[#allocation2 + $0xe0] sm:$0x3f] }
 0x15a   :  { %v2315_v45 = vadd.f32 %v2311_v18, %v2182_v37  ;;  %v2184_v35 = vpop.f32.mrb[18].mxu0  ;;  %v2225_v1 = vpop.f32.mrb[18].mxu1  ;;  %v2317_v31 = vadd.f32 %v2313_v13, %v2223_v25  ;;  %v2320_v37 = vld [vmem:[#allocation2 + $0xe8] sm:$0x3f] }
 0x15b   :  { %v4010_v32 = vmul.f32 -1.442695, %v2314_v29  ;;  %v2185_v3 = vpop.f32.mrb[19].mxu0  ;;  %v2226_v34 = vpop.f32.mrb[19].mxu1 }
 0x15c   :  { %v4011_v39 = vmul.f32 -1.442695, %v2315_v45  ;;  %v4012_v53 = vmul.f32 -1.442695, %v2317_v31  ;;  %v2322_v34 = vld [vmem:[#allocation2 + $0xf8] sm:$0x3f] }
 0x15d   :  { %4195 = vpow2.f32 %v4010_v32  ;;  %v2321_v31 = vld [vmem:[#allocation2 + $0xf0] sm:$0x3f] }
 0x15e   :  { %4197 = vpow2.f32 %v4011_v39 }
 0x15f   :  { %4199 = vpow2.f32 %v4012_v53 }
 0x160   :  { %4201 = vtanh.f32 %v2316_v48 }
 0x167   :  { %v4196_v44 = vpop.eup %4195 }
 0x168   :  { %v4198_v42 = vpop.eup %4197  ;;  %v2330_v60 = vadd.f32 1.0, %v4196_v44 }
 0x169   :  { %v2336_v46 = vadd.f32 1.0, %v4198_v42  ;;  %v4200_v11 = vpop.eup %4199 }
 0x16a   :  { %4203 = vrcp.f32 %v2330_v60  ;;  %v4202_v49 = vpop.eup %4201  ;;  %v2343_v40 = vadd.f32 1.0, %v4200_v11 }
 0x16b   :  { %4205 = vrcp.f32 %v2336_v46 }
 0x16c   :  { %4207 = vrcp.f32 %v2343_v40 }
 0x174   :  { %v4204_v33 = vpop.eup %4203 }
 0x175   :  { %v4206_v59 = vpop.eup %4205  ;;  %v2347_v36 = vmul.f32 %v4204_v33, %v4202_v49 }
 0x176   :  { %v2346_v26 = vmul.f32 0.0, %v4206_v59  ;;  %v4208_v12 = vpop.eup %4207 }
 0x178   :  { %v5587_v47 = vadd.f32 %v2347_v36, %v2346_v26 }
 0x17a   :  { %4209 = vtanh.f32 %v5587_v47 }
 0x184   :  { %v4210_v41 = vpop.eup %4209 }
 0x185   :  { %v2350_v7 = vmul.f32 %v4210_v41, %v4208_v12 }
 0x187   :  { %2375 = vst [vmem:[#allocation3] sm:$0x3f] %v2350_v7 }
 0x198   :  { %v2262_v58 = vpop.f32.mrb[20].mxu0  ;;  %v2303_v29 = vpop.f32.mrb[20].mxu1 }
 0x199   :  { %v2323_v52 = vadd.f32 %v2319_v28, %v2262_v58  ;;  %v2264_v27 = vpop.f32.mrb[21].mxu0  ;;  %v2305_v45 = vpop.f32.mrb[21].mxu1  ;;  %v2325_v53 = vadd.f32 %v2321_v31, %v2303_v29  ;;  %v6510_v29 = vld [vmem:[#allocation73_spill] sm:$0xff]  ;;  %v6524_v31 = vld [vmem:[#allocation87_spill] sm:$0xff] }
 0x19a   :  { %v2324_v18 = vadd.f32 %v2320_v37, %v2264_v27  ;;  %v2266_v25 = vpop.f32.mrb[22].mxu0  ;;  %v2307_v3 = vpop.f32.mrb[22].mxu1  ;;  %v2326_v13 = vadd.f32 %v2322_v34, %v2305_v45  ;;  %v6511_v27 = vld [vmem:[#allocation74_spill] sm:$0xff]  ;;  %v6512_v37 = vld [vmem:[#allocation75_spill] sm:$0xff]  ;;  %v6514_v45 = vld [vmem:[#allocation77_spill] sm:$0xff] }
 0x19b   :  { %v4013_v35 = vmul.f32 -1.442695, %v2323_v52  ;;  %v2267_v32 = vpop.f32.mrb[23].mxu0  ;;  %v2308_v39 = vpop.f32.mrb[23].mxu1  ;;  %v5593_v52 = vpack.c.bf16 %v2350_v7, %v2350_v7  ;;  %v6515_v7 = vld [vmem:[#allocation78_spill] sm:$0xff]  ;;  %v6516_v25 = vld [vmem:[#allocation79_spill] sm:$0xff] }
 0x19c   :  { %v4014_v1 = vmul.f32 -1.442695, %v2324_v18  ;;  %v4015_v2 = vmul.f32 -1.442695, %v2326_v13  ;;  %v6513_v18 = vld [vmem:[#allocation76_spill] sm:$0xff]  ;;  %v6518_v32 = vld [vmem:[#allocation81_spill] sm:$0xff] }
 0x19d   :  { %4211 = vpow2.f32 %v4013_v35  ;;  %v6517_v35 = vld [vmem:[#allocation80_spill] sm:$0xff]  ;;  %v6519_v3 = vld [vmem:[#allocation82_spill] sm:$0xff]  ;;  %v6522_v34 = vld [vmem:[#allocation85_spill] sm:$0xff] }
 0x19e   :  { %4213 = vpow2.f32 %v4014_v1  ;;  %v6520_v1 = vld [vmem:[#allocation83_spill] sm:$0xff]  ;;  %v6521_v39 = vld [vmem:[#allocation84_spill] sm:$0xff]  ;;  %v6523_v13 = vld [vmem:[#allocation86_spill] sm:$0xff] }
 0x19f   :  { %4215 = vpow2.f32 %v4015_v2  ;;  %v6525_v2 = vld [vmem:[#allocation88_spill] sm:$0xff] }
 0x1a0   :  { %4217 = vtanh.f32 %v2325_v53  ;;  %v6526_v53 = vld [vmem:[#allocation89_spill] sm:$0xff] }
 0x1a7   :  { %v4212_v48 = vpop.eup %4211 }
 0x1a8   :  { %v4214_v44 = vpop.eup %4213  ;;  %v2354_v42 = vadd.f32 1.0, %v4212_v48  ;;  %v6527_v48 = vld [vmem:[#allocation90_spill] sm:$0xff] }
 0x1a9   :  { %v2360_v60 = vadd.f32 1.0, %v4214_v44  ;;  %v4216_v46 = vpop.eup %4215  ;;  %v6528_v44 = vld [vmem:[#allocation91_spill] sm:$0xff] }
 0x1aa   :  { %4219 = vrcp.f32 %v2354_v42  ;;  %v4218_v11 = vpop.eup %4217  ;;  %v2367_v36 = vadd.f32 1.0, %v4216_v46  ;;  %v6529_v42 = vld [vmem:[#allocation92_spill] sm:$0xff]  ;;  %v6531_v46 = vld [vmem:[#allocation94_spill] sm:$0xff] }
 0x1ab   :  { %4221 = vrcp.f32 %v2360_v60  ;;  %v6530_v60 = vld [vmem:[#allocation93_spill] sm:$0xff] }
 0x1ac   :  { %4223 = vrcp.f32 %v2367_v36  ;;  %v6536_v36 = vld [vmem:[#allocation99_spill] sm:$0xff] }
 0x1b4   :  { %v4220_v49 = vpop.eup %4219 }
 0x1b5   :  { %v4222_v33 = vpop.eup %4221  ;;  %v2371_v59 = vmul.f32 %v4220_v49, %v4218_v11  ;;  %v6532_v11 = vld [vmem:[#allocation95_spill] sm:$0xff]  ;;  %v6533_v49 = vld [vmem:[#allocation96_spill] sm:$0xff] }
 0x1b6   :  { %v2370_v40 = vmul.f32 0.0, %v4222_v33  ;;  %v4224_v12 = vpop.eup %4223  ;;  %v6534_v33 = vld [vmem:[#allocation97_spill] sm:$0xff] }
 0x1b8   :  { %v5590_v26 = vadd.f32 %v2371_v59, %v2370_v40  ;;  %v6535_v59 = vld [vmem:[#allocation98_spill] sm:$0xff]  ;;  %v6537_v40 = vld [vmem:[#allocation100_spill] sm:$0xff] }
 0x1ba   :  { %4225 = vtanh.f32 %v5590_v26 }
 0x1c4   :  { %v4226_v41 = vpop.eup %4225 }
 0x1c5   :  { %v2374_v58 = vmul.f32 %v4226_v41, %v4224_v12  ;;  %v6538_v12 = vld [vmem:[#allocation101_spill] sm:$0xff]  ;;  %v6539_v41 = vld [vmem:[#allocation102_spill] sm:$0xff] }
 0x1c7   :  { %2377 = vst [vmem:[#allocation4 + $0x18] sm:$0x3f] %v2374_v58  ;;  %v2379_v28 = vpack.c.bf16 %v2374_v58, %v2374_v58  ;;  %v6540_v58 = vld [vmem:[#allocation103_spill] sm:$0xff] }
 0x1c9   :  { %2412 = vmatprep.mubr.bf16.mxu0 %v2379_v28  ;;  %2453 = vmatprep.mubr.bf16.mxu1 %v2379_v28 }
 0x1ca   :  { %2413 = vmatmul.mubr.bf16.vlgmr.msra.gmra.mrb[24].mxu0 %v5593_v52  ;;  %2454 = vmatmul.mubr.bf16.vlgmr.msra.gmra.mrb[24].mxu1 %v5593_v52 }
 0x1cb   :  { %2463 = vmatpush1.bf16.msra.mxu0 %v6510_v29  ;;  %2504 = vmatpush1.bf16.msra.mxu1 %v6511_v27 }
 0x1cc   :  { %2494 = vmatprep.mubr.bf16.mxu0 %v2379_v28  ;;  %2535 = vmatprep.mubr.bf16.mxu1 %v2379_v28  ;;  %v6541_v28 = vld [vmem:[#allocation104_spill] sm:$0xff] }
 0x1cd   :  { %2464 = vmatprep.subr.bf16.mxu0 %v6512_v37  ;;  %2505 = vmatprep.subr.bf16.mxu1 %v6513_v18 }
 0x1cf   :  { %2465 = vmatpush1.bf16.msra.mxu0 %v6514_v45  ;;  %2506 = vmatpush1.bf16.msra.mxu1 %v6515_v7 }
 0x1d0   :  { %2466 = vmatprep.subr.bf16.mxu0 %v6516_v25  ;;  %2507 = vmatprep.subr.bf16.mxu1 %v6517_v35 }
 0x1d3   :  { %2467 = vmatpush1.bf16.msra.mxu0 %v6518_v32  ;;  %2508 = vmatpush1.bf16.msra.mxu1 %v6519_v3 }
 0x1d4   :  { %2468 = vmatprep.subr.bf16.mxu0 %v6520_v1  ;;  %2509 = vmatprep.subr.bf16.mxu1 %v6521_v39 }
 0x1d7   :  { %2469 = vmatpush1.bf16.msra.mxu0 %v6522_v34  ;;  %2510 = vmatpush1.bf16.msra.mxu1 %v6523_v13 }
 0x1d8   :  { %2470 = vmatprep.subr.bf16.mxu0 %v6524_v31  ;;  %2511 = vmatprep.subr.bf16.mxu1 %v6525_v2 }
 0x1db   :  { %2471 = vmatpush1.bf16.msra.mxu0 %v6526_v53  ;;  %2512 = vmatpush1.bf16.msra.mxu1 %v6527_v48 }
 0x1dc   :  { %2472 = vmatprep.subr.bf16.mxu0 %v6528_v44  ;;  %2513 = vmatprep.subr.bf16.mxu1 %v6529_v42 }
 0x1df   :  { %2473 = vmatpush1.bf16.msra.mxu0 %v6530_v60  ;;  %2514 = vmatpush1.bf16.msra.mxu1 %v6531_v46 }
 0x1e0   :  { %2474 = vmatprep.subr.bf16.mxu0 %v6532_v11  ;;  %2515 = vmatprep.subr.bf16.mxu1 %v6533_v49  ;;  %v6543_v11 = vld [vmem:[#allocation106_spill] sm:$0xff]  ;;  %v6544_v49 = vld [vmem:[#allocation107_spill] sm:$0xff] }
 0x1e3   :  { %2475 = vmatpush1.bf16.msra.mxu0 %v6534_v33  ;;  %2516 = vmatpush1.bf16.msra.mxu1 %v6535_v59  ;;  %v6545_v33 = vld [vmem:[#allocation108_spill] sm:$0xff]  ;;  %v6546_v59 = vld [vmem:[#allocation109_spill] sm:$0xff] }
 0x1e4   :  { %2476 = vmatprep.subr.bf16.mxu0 %v6536_v36  ;;  %2517 = vmatprep.subr.bf16.mxu1 %v6537_v40  ;;  %v6547_v36 = vld [vmem:[#allocation110_spill] sm:$0xff]  ;;  %v6548_v40 = vld [vmem:[#allocation111_spill] sm:$0xff] }
 0x1e7   :  { %2477 = vmatpush1.bf16.msra.mxu0 %v6538_v12  ;;  %2518 = vmatpush1.bf16.msra.mxu1 %v6539_v41  ;;  %v6549_v12 = vld [vmem:[#allocation112_spill] sm:$0xff]  ;;  %v6550_v41 = vld [vmem:[#allocation113_spill] sm:$0xff] }
 0x1e8   :  { %2478 = vmatprep.subr.bf16.mxu0 %v6540_v58  ;;  %2519 = vmatprep.subr.bf16.mxu1 %v6541_v28  ;;  %v6551_v58 = vld [vmem:[#allocation114_spill] sm:$0xff]  ;;  %v6552_v28 = vld [vmem:[#allocation115_spill] sm:$0xff] }
 0x1eb   :  { %2479 = vmatpush1.bf16.msra.mxu0 %v6542_v51  ;;  %2520 = vmatpush1.bf16.msra.mxu1 %v6543_v11  ;;  %v6553_v51 = vld [vmem:[#allocation116_spill] sm:$0xff]  ;;  %v6554_v11 = vld [vmem:[#allocation117_spill] sm:$0xff] }
 0x1ec   :  { %2480 = vmatprep.subr.bf16.mxu0 %v6544_v49  ;;  %2521 = vmatprep.subr.bf16.mxu1 %v6545_v33  ;;  %v6555_v49 = vld [vmem:[#allocation118_spill] sm:$0xff]  ;;  %v6556_v33 = vld [vmem:[#allocation119_spill] sm:$0xff] }
 0x1ef   :  { %2481 = vmatpush1.bf16.msra.mxu0 %v6546_v59  ;;  %2522 = vmatpush1.bf16.msra.mxu1 %v6547_v36  ;;  %v6557_v59 = vld [vmem:[#allocation120_spill] sm:$0xff]  ;;  %v6558_v36 = vld [vmem:[#allocation121_spill] sm:$0xff] }
 0x1f0   :  { %2482 = vmatprep.subr.bf16.mxu0 %v6548_v40  ;;  %2523 = vmatprep.subr.bf16.mxu1 %v6549_v12  ;;  %v6559_v40 = vld [vmem:[#allocation122_spill] sm:$0xff]  ;;  %v6560_v12 = vld [vmem:[#allocation123_spill] sm:$0xff] }
 0x1f3   :  { %2483 = vmatpush1.bf16.msra.mxu0 %v6550_v41  ;;  %2524 = vmatpush1.bf16.msra.mxu1 %v6551_v58  ;;  %v6561_v41 = vld [vmem:[#allocation124_spill] sm:$0xff] }
 0x1f4   :  { %2484 = vmatprep.subr.bf16.mxu0 %v6552_v28  ;;  %2525 = vmatprep.subr.bf16.mxu1 %v6553_v51 }
 0x1f7   :  { %2485 = vmatpush1.bf16.msra.mxu0 %v6554_v11  ;;  %2526 = vmatpush1.bf16.msra.mxu1 %v6555_v49 }
 0x1f8   :  { %2486 = vmatprep.subr.bf16.mxu0 %v6556_v33  ;;  %2527 = vmatprep.subr.bf16.mxu1 %v6557_v59 }
 0x1fb   :  { %2487 = vmatpush1.bf16.msra.mxu0 %v6558_v36  ;;  %2528 = vmatpush1.bf16.msra.mxu1 %v6559_v40 }
 0x1fc   :  { %2488 = vmatprep.subr.bf16.mxu0 %v6560_v12  ;;  %2529 = vmatprep.subr.bf16.mxu1 %v6561_v41 }
 0x1ff   :  { %2489 = vmatpush1.bf16.msra.mxu0 %v5352_v21  ;;  %2530 = vmatpush1.bf16.msra.mxu1 %v5356_v50 }
 0x200   :  { %2490 = vmatprep.subr.bf16.mxu0 %v5358_v5  ;;  %2531 = vmatprep.subr.bf16.mxu1 %v5361_v57 }
 0x203   :  { %2491 = vmatpush1.bf16.msra.mxu0 %v5376_v54  ;;  %2532 = vmatpush1.bf16.msra.mxu1 %v5380_v4 }
 0x204   :  { %2492 = vmatprep.subr.bf16.mxu0 %v5382_v43  ;;  %2533 = vmatprep.subr.bf16.mxu1 %v5385_v38 }
 0x207   :  { %2493 = vmatpush1.bf16.msra.mxu0 %v5388_v19  ;;  %2534 = vmatpush1.bf16.msra.mxu1 %v5392_v23 }
 0x208   :  { %2616 = vmatprep.subr.bf16.mxu0 %v4629_v55  ;;  %2657 = vmatprep.subr.bf16.mxu1 %v4631_v56  ;;  %v2547_v56 = vld [vmem:[#allocation2 + $0x50] sm:$0x3f] }
 0x20a   :  { %2495 = vmatmul.mubr.bf16.vlgmr.msra.gmra.mrb[28].mxu0 %v5593_v52  ;;  %2536 = vmatmul.mubr.bf16.vlgmr.msra.gmra.mrb[28].mxu1 %v5593_v52  ;;  %v6562_v52 = vld [vmem:[#allocation23_spill] sm:$0xff] }
 0x20b   :  { %2617 = vmatpush1.bf16.msra.mxu0 %v4645_v61  ;;  %2658 = vmatpush1.bf16.msra.mxu1 %v4648_v62 }
 0x20c   :  { %2618 = vmatprep.subr.bf16.mxu0 %v4650_v63  ;;  %2659 = vmatprep.subr.bf16.mxu1 %v4653_v0 }
 0x20f   :  { %2619 = vmatpush1.bf16.msra.mxu0 %v4670_v6  ;;  %2660 = vmatpush1.bf16.msra.mxu1 %v4674_v8  ;;  %v6563_v6 = vld [vmem:[#allocation24_spill] sm:$0xff]  ;;  %v6564_v8 = vld [vmem:[#allocation25_spill] sm:$0xff] }
 0x210   :  { %2620 = vmatprep.subr.bf16.mxu0 %v4676_v9  ;;  %2661 = vmatprep.subr.bf16.mxu1 %v4680_v10  ;;  %v6565_v9 = vld [vmem:[#allocation26_spill] sm:$0xff]  ;;  %v6566_v10 = vld [vmem:[#allocation27_spill] sm:$0xff] }
 0x213   :  { %2621 = vmatpush1.bf16.msra.mxu0 %v4696_v14  ;;  %2662 = vmatpush1.bf16.msra.mxu1 %v4700_v15  ;;  %v6567_v14 = vld [vmem:[#allocation28_spill] sm:$0xff]  ;;  %v6568_v15 = vld [vmem:[#allocation29_spill] sm:$0xff] }
 0x214   :  { %2622 = vmatprep.subr.bf16.mxu0 %v4702_v16  ;;  %2663 = vmatprep.subr.bf16.mxu1 %v4705_v17  ;;  %v6569_v16 = vld [vmem:[#allocation30_spill] sm:$0xff]  ;;  %v6570_v17 = vld [vmem:[#allocation31_spill] sm:$0xff] }
 0x217   :  { %2623 = vmatpush1.bf16.msra.mxu0 %v4722_v22  ;;  %2664 = vmatpush1.bf16.msra.mxu1 %v4726_v24  ;;  %v6571_v22 = vld [vmem:[#allocation32_spill] sm:$0xff]  ;;  %v6572_v24 = vld [vmem:[#allocation33_spill] sm:$0xff] }
 0x218   :  { %2624 = vmatprep.subr.bf16.mxu0 %v6562_v52  ;;  %2665 = vmatprep.subr.bf16.mxu1 %v6563_v6  ;;  %v6573_v52 = vld [vmem:[#allocation34_spill] sm:$0xff]  ;;  %v6574_v6 = vld [vmem:[#allocation35_spill] sm:$0xff] }
 0x21b   :  { %2625 = vmatpush1.bf16.msra.mxu0 %v6564_v8  ;;  %2666 = vmatpush1.bf16.msra.mxu1 %v6565_v9  ;;  %v6575_v8 = vld [vmem:[#allocation36_spill] sm:$0xff]  ;;  %v6576_v9 = vld [vmem:[#allocation37_spill] sm:$0xff] }
 0x21c   :  { %2626 = vmatprep.subr.bf16.mxu0 %v6566_v10  ;;  %2667 = vmatprep.subr.bf16.mxu1 %v6567_v14  ;;  %v6577_v10 = vld [vmem:[#allocation38_spill] sm:$0xff]  ;;  %v6578_v14 = vld [vmem:[#allocation39_spill] sm:$0xff] }
 0x21f   :  { %2627 = vmatpush1.bf16.msra.mxu0 %v6568_v15  ;;  %2668 = vmatpush1.bf16.msra.mxu1 %v6569_v16  ;;  %v6579_v15 = vld [vmem:[#allocation40_spill] sm:$0xff]  ;;  %v6580_v16 = vld [vmem:[#allocation41_spill] sm:$0xff] }
 0x220   :  { %2628 = vmatprep.subr.bf16.mxu0 %v6570_v17  ;;  %2669 = vmatprep.subr.bf16.mxu1 %v6571_v22  ;;  %v6581_v17 = vld [vmem:[#allocation42_spill] sm:$0xff]  ;;  %v6582_v22 = vld [vmem:[#allocation43_spill] sm:$0xff] }
 0x223   :  { %2629 = vmatpush1.bf16.msra.mxu0 %v6572_v24  ;;  %2670 = vmatpush1.bf16.msra.mxu1 %v6573_v52  ;;  %v6583_v24 = vld [vmem:[#allocation44_spill] sm:$0xff]  ;;  %v6584_v52 = vld [vmem:[#allocation45_spill] sm:$0xff] }
 0x224   :  { %2630 = vmatprep.subr.bf16.mxu0 %v6574_v6  ;;  %2671 = vmatprep.subr.bf16.mxu1 %v6575_v8  ;;  %v6585_v6 = vld [vmem:[#allocation46_spill] sm:$0xff]  ;;  %v6586_v8 = vld [vmem:[#allocation47_spill] sm:$0xff] }
 0x227   :  { %2631 = vmatpush1.bf16.msra.mxu0 %v6576_v9  ;;  %2672 = vmatpush1.bf16.msra.mxu1 %v6577_v10  ;;  %v6587_v9 = vld [vmem:[#allocation48_spill] sm:$0xff]  ;;  %v6588_v10 = vld [vmem:[#allocation49_spill] sm:$0xff] }
 0x228   :  { %2632 = vmatprep.subr.bf16.mxu0 %v6578_v14  ;;  %2673 = vmatprep.subr.bf16.mxu1 %v6579_v15  ;;  %v6589_v14 = vld [vmem:[#allocation50_spill] sm:$0xff]  ;;  %v6590_v15 = vld [vmem:[#allocation51_spill] sm:$0xff] }
 0x22b   :  { %2633 = vmatpush1.bf16.msra.mxu0 %v6580_v16  ;;  %2674 = vmatpush1.bf16.msra.mxu1 %v6581_v17  ;;  %v6591_v16 = vld [vmem:[#allocation52_spill] sm:$0xff]  ;;  %v6592_v17 = vld [vmem:[#allocation53_spill] sm:$0xff] }
 0x22c   :  { %2634 = vmatprep.subr.bf16.mxu0 %v6582_v22  ;;  %2675 = vmatprep.subr.bf16.mxu1 %v6583_v24  ;;  %v6593_v22 = vld [vmem:[#allocation54_spill] sm:$0xff]  ;;  %v6594_v24 = vld [vmem:[#allocation55_spill] sm:$0xff] }
 0x22f   :  { %2635 = vmatpush1.bf16.msra.mxu0 %v6584_v52  ;;  %2676 = vmatpush1.bf16.msra.mxu1 %v6585_v6  ;;  %v6595_v52 = vld [vmem:[#allocation56_spill] sm:$0xff]  ;;  %v6596_v6 = vld [vmem:[#allocation57_spill] sm:$0xff] }
 0x230   :  { %2636 = vmatprep.subr.bf16.mxu0 %v6586_v8  ;;  %2677 = vmatprep.subr.bf16.mxu1 %v6587_v9  ;;  %v6597_v8 = vld [vmem:[#allocation58_spill] sm:$0xff]  ;;  %v6598_v9 = vld [vmem:[#allocation59_spill] sm:$0xff] }
 0x233   :  { %2637 = vmatpush1.bf16.msra.mxu0 %v6588_v10  ;;  %2678 = vmatpush1.bf16.msra.mxu1 %v6589_v14  ;;  %v6599_v10 = vld [vmem:[#allocation60_spill] sm:$0xff]  ;;  %v6600_v14 = vld [vmem:[#allocation61_spill] sm:$0xff] }
 0x234   :  { %2638 = vmatprep.subr.bf16.mxu0 %v6590_v15  ;;  %2679 = vmatprep.subr.bf16.mxu1 %v6591_v16  ;;  %v6601_v15 = vld [vmem:[#allocation62_spill] sm:$0xff]  ;;  %v6602_v16 = vld [vmem:[#allocation63_spill] sm:$0xff] }
 0x237   :  { %2639 = vmatpush1.bf16.msra.mxu0 %v6592_v17  ;;  %2680 = vmatpush1.bf16.msra.mxu1 %v6593_v22  ;;  %v6603_v17 = vld [vmem:[#allocation64_spill] sm:$0xff]  ;;  %v6604_v22 = vld [vmem:[#allocation65_spill] sm:$0xff] }
 0x238   :  { %2640 = vmatprep.subr.bf16.mxu0 %v6594_v24  ;;  %2681 = vmatprep.subr.bf16.mxu1 %v6595_v52  ;;  %v6605_v24 = vld [vmem:[#allocation66_spill] sm:$0xff]  ;;  %v6606_v52 = vld [vmem:[#allocation67_spill] sm:$0xff] }
 0x23b   :  { %2641 = vmatpush1.bf16.msra.mxu0 %v6596_v6  ;;  %2682 = vmatpush1.bf16.msra.mxu1 %v6597_v8  ;;  %v6607_v6 = vld [vmem:[#allocation68_spill] sm:$0xff]  ;;  %v6608_v8 = vld [vmem:[#allocation69_spill] sm:$0xff] }
 0x23c   :  { %2642 = vmatprep.subr.bf16.mxu0 %v6598_v9  ;;  %2683 = vmatprep.subr.bf16.mxu1 %v6599_v10 }
 0x23f   :  { %2643 = vmatpush1.bf16.msra.mxu0 %v6600_v14  ;;  %2684 = vmatpush1.bf16.msra.mxu1 %v6601_v15  ;;  %v6609_v14 = vld [vmem:[#allocation72_spill] sm:$0xff] }
 0x240   :  { %2644 = vmatprep.subr.bf16.mxu0 %v6602_v16  ;;  %2685 = vmatprep.subr.bf16.mxu1 %v6603_v17  ;;  %v2545_v16 = vld [vmem:[#allocation2 + $0x40] sm:$0x3f] }
 0x243   :  { %2645 = vmatpush1.bf16.msra.mxu0 %v6604_v22  ;;  %2686 = vmatpush1.bf16.msra.mxu1 %v6605_v24  ;;  %v2546_v22 = vld [vmem:[#allocation2 + $0x48] sm:$0x3f] }
 0x244   :  { %2646 = vmatprep.subr.bf16.mxu0 %v6606_v52  ;;  %2687 = vmatprep.subr.bf16.mxu1 %v6607_v6 }
 0x247   :  { %2647 = vmatpush1.bf16.msra.mxu0 %v6608_v8  ;;  %2688 = vmatpush1.bf16.msra.mxu1 %v6507_v20  ;;  %v2548_v20 = vld [vmem:[#allocation2 + $0x58] sm:$0x3f] }
 0x248   :  { %2698 = vmatprep.subr.bf16.mxu0 %v6508_v30  ;;  %2739 = vmatprep.subr.bf16.mxu1 %v6609_v14 }
 0x29d   :  { %v2414_v15 = vpop.f32.mrb[24].mxu0  ;;  %v2455_v10 = vpop.f32.mrb[24].mxu1 }
 0x29e   :  { %v2549_v17 = vadd.f32 %v2545_v16, %v2414_v15  ;;  %v2416_v9 = vpop.f32.mrb[25].mxu0  ;;  %v2457_v0 = vpop.f32.mrb[25].mxu1  ;;  %v2551_v55 = vadd.f32 %v2547_v56, %v2455_v10 }
 0x29f   :  { %v2550_v24 = vadd.f32 %v2546_v22, %v2416_v9  ;;  %v2418_v63 = vpop.f32.mrb[26].mxu0  ;;  %v2459_v52 = vpop.f32.mrb[26].mxu1  ;;  %v2552_v30 = vadd.f32 %v2548_v20, %v2457_v0  ;;  %v2554_v22 = vld [vmem:[#allocation2 + $0xa0] sm:$0x3f] }
 0x2a0   :  { %v4016_v62 = vmul.f32 -1.442695, %v2549_v17  ;;  %v2419_v6 = vpop.f32.mrb[27].mxu0  ;;  %v2460_v61 = vpop.f32.mrb[27].mxu1 }
 0x2a1   :  { %v4017_v8 = vmul.f32 -1.442695, %v2550_v24  ;;  %v4018_v14 = vmul.f32 -1.442695, %v2552_v30 }
 0x2a2   :  { %4227 = vpow2.f32 %v4016_v62 }
 0x2a3   :  { %4229 = vpow2.f32 %v4017_v8 }
 0x2a4   :  { %4231 = vpow2.f32 %v4018_v14 }
 0x2a5   :  { %4233 = vtanh.f32 %v2551_v55 }
 0x2ac   :  { %v4228_v23 = vpop.eup %4227 }
 0x2ad   :  { %v4230_v19 = vpop.eup %4229  ;;  %v2565_v15 = vadd.f32 1.0, %v4228_v23  ;;  %v2555_v23 = vld [vmem:[#allocation2 + $0xa8] sm:$0x3f] }
 0x2ae   :  { %v2571_v16 = vadd.f32 1.0, %v4230_v19  ;;  %v4232_v63 = vpop.eup %4231 }
 0x2af   :  { %4235 = vrcp.f32 %v2565_v15  ;;  %v4234_v9 = vpop.eup %4233  ;;  %v2578_v62 = vadd.f32 1.0, %v4232_v63 }
 0x2b0   :  { %4237 = vrcp.f32 %v2571_v16 }
 0x2b1   :  { %4239 = vrcp.f32 %v2578_v62  ;;  %v2556_v62 = vld [vmem:[#allocation2 + $0xb0] sm:$0x3f] }
 0x2b9   :  { %v4236_v6 = vpop.eup %4235 }
 0x2ba   :  { %v4238_v61 = vpop.eup %4237  ;;  %v2582_v17 = vmul.f32 %v4236_v6, %v4234_v9 }
 0x2bb   :  { %v2581_v8 = vmul.f32 %v4238_v61, %v5587_v47  ;;  %v4240_v56 = vpop.eup %4239  ;;  %v2557_v61 = vld [vmem:[#allocation2 + $0xb8] sm:$0x3f] }
 0x2bd   :  { %v5728_v0 = vadd.f32 %v2582_v17, %v2581_v8 }
 0x2bf   :  { %6610 = vst [vmem:[#allocation5_spill] sm:$0xff] %v5728_v0  ;;  %4241 = vtanh.f32 %v5728_v0 }
 0x2c9   :  { %v4242_v10 = vpop.eup %4241 }
 0x2ca   :  { %v2585_v14 = vmul.f32 %v4242_v10, %v4240_v56 }
 0x2cc   :  { %2611 = vst [vmem:[#allocation3 + $0x8] sm:$0x3f] %v2585_v14 }
 0x2dd   :  { %v2496_v55 = vpop.f32.mrb[28].mxu0  ;;  %v2537_v24 = vpop.f32.mrb[28].mxu1 }
 0x2de   :  { %v2558_v30 = vadd.f32 %v2554_v22, %v2496_v55  ;;  %v2498_v19 = vpop.f32.mrb[29].mxu0  ;;  %v2539_v20 = vpop.f32.mrb[29].mxu1  ;;  %v2560_v56 = vadd.f32 %v2556_v62, %v2537_v24  ;;  %v6615_v62 = vld [vmem:[#allocation99_spill] sm:$0xff] }
 0x2df   :  { %v2559_v52 = vadd.f32 %v2555_v23, %v2498_v19  ;;  %v2500_v15 = vpop.f32.mrb[30].mxu0  ;;  %v2541_v16 = vpop.f32.mrb[30].mxu1  ;;  %v2561_v17 = vadd.f32 %v2557_v61, %v2539_v20  ;;  %v6613_v61 = vld [vmem:[#allocation97_spill] sm:$0xff] }
 0x2e0   :  { %v4019_v47 = vmul.f32 -1.442695, %v2558_v30  ;;  %v2501_v63 = vpop.f32.mrb[31].mxu0  ;;  %v2542_v9 = vpop.f32.mrb[31].mxu1 }
 0x2e1   :  { %v4020_v6 = vmul.f32 -1.442695, %v2559_v52  ;;  %v4021_v8 = vmul.f32 -1.442695, %v2561_v17  ;;  %v6614_v17 = vld [vmem:[#allocation98_spill] sm:$0xff] }
 0x2e2   :  { %4243 = vpow2.f32 %v4019_v47 }
 0x2e3   :  { %4245 = vpow2.f32 %v4020_v6  ;;  %v5735_v6 = vpack.c.bf16 %v2585_v14, %v2585_v14  ;;  %v6612_v14 = vld [vmem:[#allocation96_spill] sm:$0xff] }
 0x2e4   :  { %4247 = vpow2.f32 %v4021_v8  ;;  %v6616_v8 = vld [vmem:[#allocation100_spill] sm:$0xff] }
 0x2e5   :  { %4249 = vtanh.f32 %v2560_v56  ;;  %v6617_v56 = vld [vmem:[#allocation101_spill] sm:$0xff] }
 0x2ec   :  { %v4244_v10 = vpop.eup %4243 }
 0x2ed   :  { %v4246_v0 = vpop.eup %4245  ;;  %v2589_v55 = vadd.f32 1.0, %v4244_v10  ;;  %v6618_v10 = vld [vmem:[#allocation102_spill] sm:$0xff] }
 0x2ee   :  { %v2595_v22 = vadd.f32 1.0, %v4246_v0  ;;  %v4248_v19 = vpop.eup %4247 }
 0x2ef   :  { %4251 = vrcp.f32 %v2589_v55  ;;  %v4250_v30 = vpop.eup %4249  ;;  %v2602_v16 = vadd.f32 1.0, %v4248_v19  ;;  %v6619_v55 = vld [vmem:[#allocation103_spill] sm:$0xff]  ;;  %v6621_v19 = vld [vmem:[#allocation105_spill] sm:$0xff] }
 0x2f0   :  { %4253 = vrcp.f32 %v2595_v22  ;;  %v6620_v22 = vld [vmem:[#allocation104_spill] sm:$0xff] }
 0x2f1   :  { %4255 = vrcp.f32 %v2602_v16  ;;  %v6626_v16 = vld [vmem:[#allocation110_spill] sm:$0xff] }
 0x2f9   :  { %v4252_v23 = vpop.eup %4251 }
 0x2fa   :  { %v4254_v15 = vpop.eup %4253  ;;  %v2606_v52 = vmul.f32 %v4252_v23, %v4250_v30  ;;  %v6622_v30 = vld [vmem:[#allocation106_spill] sm:$0xff]  ;;  %v6623_v23 = vld [vmem:[#allocation107_spill] sm:$0xff] }
 0x2fb   :  { %v2605_v47 = vmul.f32 %v4254_v15, %v5590_v26  ;;  %v4256_v24 = vpop.eup %4255  ;;  %v6611_v26 = vld [vmem:[#allocation95_spill] sm:$0xff]  ;;  %v6624_v15 = vld [vmem:[#allocation108_spill] sm:$0xff] }
 0x2fd   :  { %v5732_v20 = vadd.f32 %v2606_v52, %v2605_v47  ;;  %v6625_v52 = vld [vmem:[#allocation109_spill] sm:$0xff]  ;;  %v6627_v47 = vld [vmem:[#allocation111_spill] sm:$0xff] }
 0x2ff   :  { %4257 = vtanh.f32 %v5732_v20 }
 0x309   :  { %v4258_v63 = vpop.eup %4257 }
 0x30a   :  { %v2609_v9 = vmul.f32 %v4258_v63, %v4256_v24  ;;  %v6628_v24 = vld [vmem:[#allocation112_spill] sm:$0xff]  ;;  %v6629_v63 = vld [vmem:[#allocation113_spill] sm:$0xff] }
 0x30c   :  { %2613 = vst [vmem:[#allocation4 + $0x10] sm:$0x3f] %v2609_v9  ;;  %v2615_v0 = vpack.c.bf16 %v2609_v9, %v2609_v9  ;;  %v6630_v9 = vld [vmem:[#allocation133_spill] sm:$0xff] }
 0x30e   :  { %2648 = vmatprep.mubr.bf16.mxu0 %v2615_v0  ;;  %2689 = vmatprep.mubr.bf16.mxu1 %v2615_v0 }
 0x30f   :  { %2649 = vmatmul.mubr.bf16.vlgmr.msra.gmra.mrb[32].mxu0 %v5735_v6  ;;  %2690 = vmatmul.mubr.bf16.vlgmr.msra.gmra.mrb[32].mxu1 %v5735_v6 }
 0x310   :  { %2699 = vmatpush1.bf16.msra.mxu0 %v6510_v29  ;;  %2740 = vmatpush1.bf16.msra.mxu1 %v6511_v27 }
 0x311   :  { %2730 = vmatprep.mubr.bf16.mxu0 %v2615_v0  ;;  %2771 = vmatprep.mubr.bf16.mxu1 %v2615_v0  ;;  %v6631_v0 = vld [vmem:[#allocation134_spill] sm:$0xff] }
 0x312   :  { %2700 = vmatprep.subr.bf16.mxu0 %v6512_v37  ;;  %2741 = vmatprep.subr.bf16.mxu1 %v6513_v18 }
 0x314   :  { %2701 = vmatpush1.bf16.msra.mxu0 %v6514_v45  ;;  %2742 = vmatpush1.bf16.msra.mxu1 %v6515_v7 }
 0x315   :  { %2702 = vmatprep.subr.bf16.mxu0 %v6516_v25  ;;  %2743 = vmatprep.subr.bf16.mxu1 %v6517_v35 }
 0x318   :  { %2703 = vmatpush1.bf16.msra.mxu0 %v6518_v32  ;;  %2744 = vmatpush1.bf16.msra.mxu1 %v6519_v3 }
 0x319   :  { %2704 = vmatprep.subr.bf16.mxu0 %v6520_v1  ;;  %2745 = vmatprep.subr.bf16.mxu1 %v6521_v39 }
 0x31c   :  { %2705 = vmatpush1.bf16.msra.mxu0 %v6522_v34  ;;  %2746 = vmatpush1.bf16.msra.mxu1 %v6523_v13 }
 0x31d   :  { %2706 = vmatprep.subr.bf16.mxu0 %v6524_v31  ;;  %2747 = vmatprep.subr.bf16.mxu1 %v6525_v2 }
 0x320   :  { %2707 = vmatpush1.bf16.msra.mxu0 %v6526_v53  ;;  %2748 = vmatpush1.bf16.msra.mxu1 %v6527_v48 }
 0x321   :  { %2708 = vmatprep.subr.bf16.mxu0 %v6528_v44  ;;  %2749 = vmatprep.subr.bf16.mxu1 %v6529_v42 }
 0x324   :  { %2709 = vmatpush1.bf16.msra.mxu0 %v6530_v60  ;;  %2750 = vmatpush1.bf16.msra.mxu1 %v6531_v46 }
 0x325   :  { %2710 = vmatprep.subr.bf16.mxu0 %v6611_v26  ;;  %2751 = vmatprep.subr.bf16.mxu1 %v6612_v14 }
 0x328   :  { %2711 = vmatpush1.bf16.msra.mxu0 %v6613_v61  ;;  %2752 = vmatpush1.bf16.msra.mxu1 %v6614_v17 }
 0x329   :  { %2712 = vmatprep.subr.bf16.mxu0 %v6615_v62  ;;  %2753 = vmatprep.subr.bf16.mxu1 %v6616_v8 }
 0x32c   :  { %2713 = vmatpush1.bf16.msra.mxu0 %v6617_v56  ;;  %2754 = vmatpush1.bf16.msra.mxu1 %v6618_v10 }
 0x32d   :  { %2714 = vmatprep.subr.bf16.mxu0 %v6619_v55  ;;  %2755 = vmatprep.subr.bf16.mxu1 %v6620_v22 }
 0x330   :  { %2715 = vmatpush1.bf16.msra.mxu0 %v6621_v19  ;;  %2756 = vmatpush1.bf16.msra.mxu1 %v6622_v30 }
 0x331   :  { %2716 = vmatprep.subr.bf16.mxu0 %v6623_v23  ;;  %2757 = vmatprep.subr.bf16.mxu1 %v6624_v15 }
 0x334   :  { %2717 = vmatpush1.bf16.msra.mxu0 %v6625_v52  ;;  %2758 = vmatpush1.bf16.msra.mxu1 %v6626_v16 }
 0x335   :  { %2718 = vmatprep.subr.bf16.mxu0 %v6627_v47  ;;  %2759 = vmatprep.subr.bf16.mxu1 %v6628_v24 }
 0x338   :  { %2719 = vmatpush1.bf16.msra.mxu0 %v6629_v63  ;;  %2760 = vmatpush1.bf16.msra.mxu1 %v6551_v58 }
 0x339   :  { %2720 = vmatprep.subr.bf16.mxu0 %v6552_v28  ;;  %2761 = vmatprep.subr.bf16.mxu1 %v6553_v51 }
 0x33c   :  { %2721 = vmatpush1.bf16.msra.mxu0 %v6554_v11  ;;  %2762 = vmatpush1.bf16.msra.mxu1 %v6555_v49  ;;  %v2782_v49 = vld [vmem:[#allocation2 + $0x90] sm:$0x3f] }
 0x33d   :  { %2722 = vmatprep.subr.bf16.mxu0 %v6556_v33  ;;  %2763 = vmatprep.subr.bf16.mxu1 %v6557_v59 }
 0x340   :  { %2723 = vmatpush1.bf16.msra.mxu0 %v6558_v36  ;;  %2764 = vmatpush1.bf16.msra.mxu1 %v6559_v40 }
 0x341   :  { %2724 = vmatprep.subr.bf16.mxu0 %v6560_v12  ;;  %2765 = vmatprep.subr.bf16.mxu1 %v6561_v41  ;;  %v6632_v41 = vld [vmem:[#allocation7_spill] sm:$0xff] }
 0x344   :  { %2725 = vmatpush1.bf16.msra.mxu0 %v5352_v21  ;;  %2766 = vmatpush1.bf16.msra.mxu1 %v5356_v50  ;;  %v6633_v21 = vld [vmem:[#allocation8_spill] sm:$0xff] }
 0x345   :  { %2726 = vmatprep.subr.bf16.mxu0 %v5358_v5  ;;  %2767 = vmatprep.subr.bf16.mxu1 %v5361_v57  ;;  %v6634_v57 = vld [vmem:[#allocation9_spill] sm:$0xff]  ;;  %v6643_v5 = vld [vmem:[#allocation18_spill] sm:$0xff] }
 0x348   :  { %2727 = vmatpush1.bf16.msra.mxu0 %v5376_v54  ;;  %2768 = vmatpush1.bf16.msra.mxu1 %v5380_v4  ;;  %v6635_v54 = vld [vmem:[#allocation10_spill] sm:$0xff]  ;;  %v6636_v4 = vld [vmem:[#allocation11_spill] sm:$0xff] }
 0x349   :  { %2728 = vmatprep.subr.bf16.mxu0 %v5382_v43  ;;  %2769 = vmatprep.subr.bf16.mxu1 %v5385_v38  ;;  %v6637_v43 = vld [vmem:[#allocation12_spill] sm:$0xff]  ;;  %v6638_v38 = vld [vmem:[#allocation13_spill] sm:$0xff] }
 0x34c   :  { %2729 = vmatpush1.bf16.msra.mxu0 %v6630_v9  ;;  %2770 = vmatpush1.bf16.msra.mxu1 %v6631_v0  ;;  %v6639_v9 = vld [vmem:[#allocation14_spill] sm:$0xff]  ;;  %v6640_v0 = vld [vmem:[#allocation15_spill] sm:$0xff] }
 0x34d   :  { %2850 = vmatprep.subr.bf16.mxu0 %v6632_v41  ;;  %2891 = vmatprep.subr.bf16.mxu1 %v6633_v21  ;;  %v6641_v41 = vld [vmem:[#allocation16_spill] sm:$0xff]  ;;  %v6642_v21 = vld [vmem:[#allocation17_spill] sm:$0xff] }
 0x34f   :  { %2731 = vmatmul.mubr.bf16.vlgmr.msra.gmra.mrb[36].mxu0 %v5735_v6  ;;  %2772 = vmatmul.mubr.bf16.vlgmr.msra.gmra.mrb[36].mxu1 %v5735_v6  ;;  %v6644_v6 = vld [vmem:[#allocation19_spill] sm:$0xff] }
 0x350   :  { %2851 = vmatpush1.bf16.msra.mxu0 %v6634_v57  ;;  %2892 = vmatpush1.bf16.msra.mxu1 %v6635_v54  ;;  %v6645_v57 = vld [vmem:[#allocation20_spill] sm:$0xff]  ;;  %v6646_v54 = vld [vmem:[#allocation21_spill] sm:$0xff] }
 0x351   :  { %2852 = vmatprep.subr.bf16.mxu0 %v6636_v4  ;;  %2893 = vmatprep.subr.bf16.mxu1 %v6637_v43  ;;  %v6647_v4 = vld [vmem:[#allocation22_spill] sm:$0xff]  ;;  %v6648_v43 = vld [vmem:[#allocation23_spill] sm:$0xff] }
 0x354   :  { %2853 = vmatpush1.bf16.msra.mxu0 %v6638_v38  ;;  %2894 = vmatpush1.bf16.msra.mxu1 %v6639_v9  ;;  %v6649_v38 = vld [vmem:[#allocation24_spill] sm:$0xff]  ;;  %v6650_v9 = vld [vmem:[#allocation25_spill] sm:$0xff] }
 0x355   :  { %2854 = vmatprep.subr.bf16.mxu0 %v6640_v0  ;;  %2895 = vmatprep.subr.bf16.mxu1 %v6641_v41  ;;  %v6651_v0 = vld [vmem:[#allocation26_spill] sm:$0xff]  ;;  %v6652_v41 = vld [vmem:[#allocation27_spill] sm:$0xff] }
 0x358   :  { %2855 = vmatpush1.bf16.msra.mxu0 %v6642_v21  ;;  %2896 = vmatpush1.bf16.msra.mxu1 %v6643_v5  ;;  %v6653_v21 = vld [vmem:[#allocation28_spill] sm:$0xff]  ;;  %v6654_v5 = vld [vmem:[#allocation29_spill] sm:$0xff] }
 0x359   :  { %2856 = vmatprep.subr.bf16.mxu0 %v6644_v6  ;;  %2897 = vmatprep.subr.bf16.mxu1 %v6645_v57  ;;  %v6655_v6 = vld [vmem:[#allocation30_spill] sm:$0xff]  ;;  %v6656_v57 = vld [vmem:[#allocation31_spill] sm:$0xff] }
 0x35c   :  { %2857 = vmatpush1.bf16.msra.mxu0 %v6646_v54  ;;  %2898 = vmatpush1.bf16.msra.mxu1 %v6647_v4  ;;  %v6657_v54 = vld [vmem:[#allocation32_spill] sm:$0xff]  ;;  %v6658_v4 = vld [vmem:[#allocation33_spill] sm:$0xff] }
 0x35d   :  { %2858 = vmatprep.subr.bf16.mxu0 %v6648_v43  ;;  %2899 = vmatprep.subr.bf16.mxu1 %v6649_v38  ;;  %v6659_v43 = vld [vmem:[#allocation34_spill] sm:$0xff]  ;;  %v6660_v38 = vld [vmem:[#allocation35_spill] sm:$0xff] }
 0x360   :  { %2859 = vmatpush1.bf16.msra.mxu0 %v6650_v9  ;;  %2900 = vmatpush1.bf16.msra.mxu1 %v6651_v0  ;;  %v6661_v9 = vld [vmem:[#allocation36_spill] sm:$0xff]  ;;  %v6662_v0 = vld [vmem:[#allocation37_spill] sm:$0xff] }
 0x361   :  { %2860 = vmatprep.subr.bf16.mxu0 %v6652_v41  ;;  %2901 = vmatprep.subr.bf16.mxu1 %v6653_v21  ;;  %v6663_v41 = vld [vmem:[#allocation38_spill] sm:$0xff]  ;;  %v6664_v21 = vld [vmem:[#allocation39_spill] sm:$0xff] }
 0x364   :  { %2861 = vmatpush1.bf16.msra.mxu0 %v6654_v5  ;;  %2902 = vmatpush1.bf16.msra.mxu1 %v6655_v6  ;;  %v6665_v5 = vld [vmem:[#allocation40_spill] sm:$0xff]  ;;  %v6666_v6 = vld [vmem:[#allocation41_spill] sm:$0xff] }
 0x365   :  { %2862 = vmatprep.subr.bf16.mxu0 %v6656_v57  ;;  %2903 = vmatprep.subr.bf16.mxu1 %v6657_v54  ;;  %v6667_v57 = vld [vmem:[#allocation42_spill] sm:$0xff]  ;;  %v6668_v54 = vld [vmem:[#allocation43_spill] sm:$0xff] }
 0x368   :  { %2863 = vmatpush1.bf16.msra.mxu0 %v6658_v4  ;;  %2904 = vmatpush1.bf16.msra.mxu1 %v6659_v43  ;;  %v6669_v4 = vld [vmem:[#allocation44_spill] sm:$0xff]  ;;  %v6670_v43 = vld [vmem:[#allocation45_spill] sm:$0xff] }
 0x369   :  { %2864 = vmatprep.subr.bf16.mxu0 %v6660_v38  ;;  %2905 = vmatprep.subr.bf16.mxu1 %v6661_v9  ;;  %v6671_v38 = vld [vmem:[#allocation46_spill] sm:$0xff]  ;;  %v6672_v9 = vld [vmem:[#allocation47_spill] sm:$0xff] }
 0x36c   :  { %2865 = vmatpush1.bf16.msra.mxu0 %v6662_v0  ;;  %2906 = vmatpush1.bf16.msra.mxu1 %v6663_v41  ;;  %v6673_v0 = vld [vmem:[#allocation48_spill] sm:$0xff]  ;;  %v6674_v41 = vld [vmem:[#allocation49_spill] sm:$0xff] }
 0x36d   :  { %2866 = vmatprep.subr.bf16.mxu0 %v6664_v21  ;;  %2907 = vmatprep.subr.bf16.mxu1 %v6665_v5  ;;  %v6675_v21 = vld [vmem:[#allocation50_spill] sm:$0xff]  ;;  %v6676_v5 = vld [vmem:[#allocation51_spill] sm:$0xff] }
 0x370   :  { %2867 = vmatpush1.bf16.msra.mxu0 %v6666_v6  ;;  %2908 = vmatpush1.bf16.msra.mxu1 %v6667_v57  ;;  %v6677_v6 = vld [vmem:[#allocation52_spill] sm:$0xff]  ;;  %v6678_v57 = vld [vmem:[#allocation53_spill] sm:$0xff] }
 0x371   :  { %2868 = vmatprep.subr.bf16.mxu0 %v6668_v54  ;;  %2909 = vmatprep.subr.bf16.mxu1 %v6669_v4  ;;  %v6679_v54 = vld [vmem:[#allocation54_spill] sm:$0xff]  ;;  %v6680_v4 = vld [vmem:[#allocation55_spill] sm:$0xff] }
 0x374   :  { %2869 = vmatpush1.bf16.msra.mxu0 %v6670_v43  ;;  %2910 = vmatpush1.bf16.msra.mxu1 %v6671_v38  ;;  %v6681_v43 = vld [vmem:[#allocation56_spill] sm:$0xff]  ;;  %v6682_v38 = vld [vmem:[#allocation57_spill] sm:$0xff] }
 0x375   :  { %2870 = vmatprep.subr.bf16.mxu0 %v6672_v9  ;;  %2911 = vmatprep.subr.bf16.mxu1 %v6673_v0  ;;  %v6683_v9 = vld [vmem:[#allocation58_spill] sm:$0xff]  ;;  %v6684_v0 = vld [vmem:[#allocation59_spill] sm:$0xff] }
 0x378   :  { %2871 = vmatpush1.bf16.msra.mxu0 %v6674_v41  ;;  %2912 = vmatpush1.bf16.msra.mxu1 %v6675_v21  ;;  %v6685_v41 = vld [vmem:[#allocation60_spill] sm:$0xff]  ;;  %v6686_v21 = vld [vmem:[#allocation61_spill] sm:$0xff] }
 0x379   :  { %2872 = vmatprep.subr.bf16.mxu0 %v6676_v5  ;;  %2913 = vmatprep.subr.bf16.mxu1 %v6677_v6  ;;  %v6687_v5 = vld [vmem:[#allocation62_spill] sm:$0xff]  ;;  %v6688_v6 = vld [vmem:[#allocation63_spill] sm:$0xff] }
 0x37c   :  { %2873 = vmatpush1.bf16.msra.mxu0 %v6678_v57  ;;  %2914 = vmatpush1.bf16.msra.mxu1 %v6679_v54  ;;  %v6689_v57 = vld [vmem:[#allocation64_spill] sm:$0xff]  ;;  %v6690_v54 = vld [vmem:[#allocation65_spill] sm:$0xff] }
 0x37d   :  { %2874 = vmatprep.subr.bf16.mxu0 %v6680_v4  ;;  %2915 = vmatprep.subr.bf16.mxu1 %v6681_v43  ;;  %v6691_v4 = vld [vmem:[#allocation66_spill] sm:$0xff]  ;;  %v6692_v43 = vld [vmem:[#allocation67_spill] sm:$0xff] }
 0x380   :  { %2875 = vmatpush1.bf16.msra.mxu0 %v6682_v38  ;;  %2916 = vmatpush1.bf16.msra.mxu1 %v6683_v9  ;;  %v6693_v38 = vld [vmem:[#allocation68_spill] sm:$0xff]  ;;  %v6694_v9 = vld [vmem:[#allocation69_spill] sm:$0xff] }
 0x381   :  { %2876 = vmatprep.subr.bf16.mxu0 %v6684_v0  ;;  %2917 = vmatprep.subr.bf16.mxu1 %v6685_v41  ;;  %v6695_v0 = vld [vmem:[#allocation70_spill] sm:$0xff]  ;;  %v6696_v41 = vld [vmem:[#allocation71_spill] sm:$0xff] }
 0x384   :  { %2877 = vmatpush1.bf16.msra.mxu0 %v6686_v21  ;;  %2918 = vmatpush1.bf16.msra.mxu1 %v6687_v5  ;;  %v6697_v21 = vld [vmem:[#allocation72_spill] sm:$0xff] }
 0x385   :  { %2878 = vmatprep.subr.bf16.mxu0 %v6688_v6  ;;  %2919 = vmatprep.subr.bf16.mxu1 %v6689_v57  ;;  %v2780_v6 = vld [vmem:[#allocation2 + $0x80] sm:$0x3f] }
 0x388   :  { %2879 = vmatpush1.bf16.msra.mxu0 %v6690_v54  ;;  %2920 = vmatpush1.bf16.msra.mxu1 %v6691_v4  ;;  %v2781_v54 = vld [vmem:[#allocation2 + $0x88] sm:$0x3f] }
 0x389   :  { %2880 = vmatprep.subr.bf16.mxu0 %v6692_v43  ;;  %2921 = vmatprep.subr.bf16.mxu1 %v6693_v38 }
 0x38c   :  { %2881 = vmatpush1.bf16.msra.mxu0 %v6694_v9  ;;  %2922 = vmatpush1.bf16.msra.mxu1 %v6695_v0  ;;  %v2783_v0 = vld [vmem:[#allocation2 + $0x98] sm:$0x3f] }
 0x38d   :  { %2932 = vmatprep.subr.bf16.mxu0 %v6696_v41  ;;  %2973 = vmatprep.subr.bf16.mxu1 %v6697_v21 }
 0x3e2   :  { %v2650_v5 = vpop.f32.mrb[32].mxu0  ;;  %v2691_v50 = vpop.f32.mrb[32].mxu1 }
 0x3e3   :  { %v2784_v57 = vadd.f32 %v2780_v6, %v2650_v5  ;;  %v2652_v12 = vpop.f32.mrb[33].mxu0  ;;  %v2693_v40 = vpop.f32.mrb[33].mxu1  ;;  %v2786_v11 = vadd.f32 %v2782_v49, %v2691_v50 }
 0x3e4   :  { %v2785_v4 = vadd.f32 %v2781_v54, %v2652_v12  ;;  %v2654_v36 = vpop.f32.mrb[34].mxu0  ;;  %v2695_v43 = vpop.f32.mrb[34].mxu1  ;;  %v2787_v41 = vadd.f32 %v2783_v0, %v2693_v40 }
 0x3e5   :  { %v4022_v59 = vmul.f32 -1.442695, %v2784_v57  ;;  %v2655_v38 = vpop.f32.mrb[35].mxu0  ;;  %v2696_v33 = vpop.f32.mrb[35].mxu1 }
 0x3e6   :  { %v4023_v9 = vmul.f32 -1.442695, %v2785_v4  ;;  %v4024_v21 = vmul.f32 -1.442695, %v2787_v41  ;;  %v6698_v4 = vld [vmem:[#allocation5_spill] sm:$0xff] }
 0x3e7   :  { %4259 = vpow2.f32 %v4022_v59  ;;  %v2789_v41 = vld [vmem:[#allocation2 + $0x68] sm:$0x3f] }
 0x3e8   :  { %4261 = vpow2.f32 %v4023_v9 }
 0x3e9   :  { %4263 = vpow2.f32 %v4024_v21 }
 0x3ea   :  { %4265 = vtanh.f32 %v2786_v11 }
 0x3f1   :  { %v4260_v51 = vpop.eup %4259 }
 0x3f2   :  { %v4262_v28 = vpop.eup %4261  ;;  %v2799_v5 = vadd.f32 1.0, %v4260_v51 }
 0x3f3   :  { %v2805_v6 = vadd.f32 1.0, %v4262_v28  ;;  %v4264_v36 = vpop.eup %4263  ;;  %v2788_v28 = vld [vmem:[#allocation2 + $0x60] sm:$0x3f] }
 0x3f4   :  { %4267 = vrcp.f32 %v2799_v5  ;;  %v4266_v12 = vpop.eup %4265  ;;  %v2812_v59 = vadd.f32 1.0, %v4264_v36 }
 0x3f5   :  { %4269 = vrcp.f32 %v2805_v6 }
 0x3f6   :  { %4271 = vrcp.f32 %v2812_v59  ;;  %v2791_v59 = vld [vmem:[#allocation2 + $0x78] sm:$0x3f] }
 0x3fe   :  { %v4268_v57 = vpop.eup %4267 }
 0x3ff   :  { %v4270_v33 = vpop.eup %4269  ;;  %v2816_v54 = vmul.f32 %v4268_v57, %v4266_v12 }
 0x400   :  { %v2815_v43 = vmul.f32 %v4270_v33, %v6698_v4  ;;  %v4272_v50 = vpop.eup %4271 }
 0x402   :  { %v5870_v40 = vadd.f32 %v2816_v54, %v2815_v43  ;;  %v2790_v43 = vld [vmem:[#allocation2 + $0x70] sm:$0x3f] }
 0x404   :  { %6699 = vst [vmem:[#allocation73_spill] sm:$0xff] %v5870_v40  ;;  %4273 = vtanh.f32 %v5870_v40 }
 0x40e   :  { %v4274_v51 = vpop.eup %4273 }
 0x40f   :  { %v2819_v49 = vmul.f32 %v4274_v51, %v4272_v50 }
 0x411   :  { %2845 = vst [vmem:[#allocation3 + $0x10] sm:$0x3f] %v2819_v49 }
 0x422   :  { %v2732_v11 = vpop.f32.mrb[36].mxu0  ;;  %v2773_v38 = vpop.f32.mrb[36].mxu1 }
 0x423   :  { %v2792_v9 = vadd.f32 %v2788_v28, %v2732_v11  ;;  %v2734_v0 = vpop.f32.mrb[37].mxu0  ;;  %v2775_v21 = vpop.f32.mrb[37].mxu1  ;;  %v2794_v51 = vadd.f32 %v2790_v43, %v2773_v38 }
 0x424   :  { %v2793_v5 = vadd.f32 %v2789_v41, %v2734_v0  ;;  %v2736_v6 = vpop.f32.mrb[38].mxu0  ;;  %v2777_v36 = vpop.f32.mrb[38].mxu1  ;;  %v2795_v4 = vadd.f32 %v2791_v59, %v2775_v21 }
 0x425   :  { %v4025_v12 = vmul.f32 -1.442695, %v2792_v9  ;;  %v2737_v57 = vpop.f32.mrb[39].mxu0  ;;  %v2778_v33 = vpop.f32.mrb[39].mxu1 }
 0x426   :  { %v4026_v54 = vmul.f32 -1.442695, %v2793_v5  ;;  %v4027_v50 = vmul.f32 -1.442695, %v2795_v4  ;;  %v5877_v33 = vpack.c.bf16 %v2819_v49, %v2819_v49 }
 0x427   :  { %4275 = vpow2.f32 %v4025_v12 }
 0x428   :  { %4277 = vpow2.f32 %v4026_v54  ;;  %v4178_v54 = vld [vmem:[%s6096_s4 + $0x38] sm:$0xff]  }
 0x429   :  { %4279 = vpow2.f32 %v4027_v50 }
 0x42a   :  { %4281 = vtanh.f32 %v2794_v51 }
 0x431   :  { %v4276_v40 = vpop.eup %4275 }
 0x432   :  { %v4278_v58 = vpop.eup %4277  ;;  %v2823_v11 = vadd.f32 1.0, %v4276_v40 }
 0x433   :  { %v2829_v28 = vadd.f32 1.0, %v4278_v58  ;;  %v4280_v0 = vpop.eup %4279 }
 0x434   :  { %4283 = vrcp.f32 %v2823_v11  ;;  %v4282_v9 = vpop.eup %4281  ;;  %v2836_v36 = vadd.f32 1.0, %v4280_v0  ;;  %v3017_v0 = vld [vmem:[#allocation2 + $0xd8] sm:$0x3f] }
 0x435   :  { %4285 = vrcp.f32 %v2829_v28 }
 0x436   :  { %4287 = vrcp.f32 %v2836_v36 }
 0x43e   :  { %v4284_v41 = vpop.eup %4283 }
 0x43f   :  { %v4286_v6 = vpop.eup %4285  ;;  %v2840_v5 = vmul.f32 %v4284_v41, %v4282_v9  ;;  %v3016_v41 = vld [vmem:[#allocation2 + $0xd0] sm:$0x3f] }
 0x440   :  { %v2839_v12 = vmul.f32 %v4286_v6, %v5732_v20  ;;  %v4288_v38 = vpop.eup %4287  ;;  %v4164_v20 = vld [vmem:[%s6096_s4] sm:$0xff]  }
 0x442   :  { %v5874_v21 = vadd.f32 %v2840_v5, %v2839_v12  ;;  %v4179_v12 = vld [vmem:[%s6097_s6] sm:$0xff]  }
 0x444   :  { %4289 = vtanh.f32 %v5874_v21 }
 0x44e   :  { %v4290_v40 = vpop.eup %4289 }
 0x44f   :  { %v2843_v57 = vmul.f32 %v4290_v40, %v4288_v38 }
 0x451   :  { %2847 = vst [vmem:[#allocation4 + $0x8] sm:$0x3f] %v2843_v57  ;;  %v2849_v58 = vpack.c.bf16 %v2843_v57, %v2843_v57  ;;  %v4180_v57 = vld [vmem:[%s6097_s6 + $0x8] sm:$0xff]  }
 0x453   :  { %2882 = vmatprep.mubr.bf16.mxu0 %v2849_v58  ;;  %2923 = vmatprep.mubr.bf16.mxu1 %v2849_v58 }
 0x454   :  { %2883 = vmatmul.mubr.bf16.vlgmr.msra.gmra.mrb[40].mxu0 %v5877_v33  ;;  %2924 = vmatmul.mubr.bf16.vlgmr.msra.gmra.mrb[40].mxu1 %v5877_v33 }
 0x455   :  { %2933 = vmatpush1.bf16.msra.mxu0 %v6510_v29  ;;  %2974 = vmatpush1.bf16.msra.mxu1 %v6511_v27  ;;  %v6700_v29 = vld [vmem:[#allocation114_spill] sm:$0xff]  ;;  %v6701_v27 = vld [vmem:[#allocation115_spill] sm:$0xff] }
 0x456   :  { %2964 = vmatprep.mubr.bf16.mxu0 %v2849_v58  ;;  %3005 = vmatprep.mubr.bf16.mxu1 %v2849_v58 }
 0x457   :  { %2934 = vmatprep.subr.bf16.mxu0 %v6512_v37  ;;  %2975 = vmatprep.subr.bf16.mxu1 %v6513_v18  ;;  %v6702_v37 = vld [vmem:[#allocation116_spill] sm:$0xff]  ;;  %v6703_v18 = vld [vmem:[#allocation117_spill] sm:$0xff] }
 0x459   :  { %2935 = vmatpush1.bf16.msra.mxu0 %v6514_v45  ;;  %2976 = vmatpush1.bf16.msra.mxu1 %v6515_v7  ;;  %v6704_v45 = vld [vmem:[#allocation118_spill] sm:$0xff]  ;;  %v6705_v7 = vld [vmem:[#allocation119_spill] sm:$0xff] }
 0x45a   :  { %2936 = vmatprep.subr.bf16.mxu0 %v6516_v25  ;;  %2977 = vmatprep.subr.bf16.mxu1 %v6517_v35  ;;  %v6706_v25 = vld [vmem:[#allocation120_spill] sm:$0xff]  ;;  %v6707_v35 = vld [vmem:[#allocation121_spill] sm:$0xff] }
 0x45d   :  { %2937 = vmatpush1.bf16.msra.mxu0 %v6518_v32  ;;  %2978 = vmatpush1.bf16.msra.mxu1 %v6519_v3  ;;  %v6708_v32 = vld [vmem:[#allocation122_spill] sm:$0xff]  ;;  %v6709_v3 = vld [vmem:[#allocation123_spill] sm:$0xff] }
 0x45e   :  { %2938 = vmatprep.subr.bf16.mxu0 %v6520_v1  ;;  %2979 = vmatprep.subr.bf16.mxu1 %v6521_v39  ;;  %v6710_v1 = vld [vmem:[#allocation124_spill] sm:$0xff]  ;;  %v6711_v39 = vld [vmem:[#allocation125_spill] sm:$0xff] }
 0x461   :  { %2939 = vmatpush1.bf16.msra.mxu0 %v6522_v34  ;;  %2980 = vmatpush1.bf16.msra.mxu1 %v6523_v13  ;;  %v6712_v34 = vld [vmem:[#allocation126_spill] sm:$0xff]  ;;  %v6713_v13 = vld [vmem:[#allocation127_spill] sm:$0xff] }
 0x462   :  { %2940 = vmatprep.subr.bf16.mxu0 %v6524_v31  ;;  %2981 = vmatprep.subr.bf16.mxu1 %v6525_v2  ;;  %v6714_v31 = vld [vmem:[#allocation128_spill] sm:$0xff]  ;;  %v6715_v2 = vld [vmem:[#allocation129_spill] sm:$0xff] }
 0x465   :  { %2941 = vmatpush1.bf16.msra.mxu0 %v6526_v53  ;;  %2982 = vmatpush1.bf16.msra.mxu1 %v6527_v48  ;;  %v6716_v53 = vld [vmem:[#allocation130_spill] sm:$0xff]  ;;  %v6717_v48 = vld [vmem:[#allocation131_spill] sm:$0xff] }
 0x466   :  { %2942 = vmatprep.subr.bf16.mxu0 %v6528_v44  ;;  %2983 = vmatprep.subr.bf16.mxu1 %v6529_v42  ;;  %v6718_v44 = vld [vmem:[#allocation132_spill] sm:$0xff]  ;;  %v6719_v42 = vld [vmem:[#allocation133_spill] sm:$0xff] }
 0x469   :  { %2943 = vmatpush1.bf16.msra.mxu0 %v6530_v60  ;;  %2984 = vmatpush1.bf16.msra.mxu1 %v6531_v46  ;;  %v6720_v60 = vld [vmem:[#allocation134_spill] sm:$0xff]  ;;  %v4163_v46 = vld [vmem:[%s6096_s4 + $0x40] sm:$0xff]  }
 0x46a   :  { %2944 = vmatprep.subr.bf16.mxu0 %v6611_v26  ;;  %2985 = vmatprep.subr.bf16.mxu1 %v6612_v14  ;;  %v4165_v26 = vld [vmem:[%s6096_s4 + $0x48] sm:$0xff]  }
 0x46b   :  { %v4166_v14 = vld [vmem:[%s6096_s4 + $0x8] sm:$0xff]  }
 0x46d   :  { %2945 = vmatpush1.bf16.msra.mxu0 %v6613_v61  ;;  %2986 = vmatpush1.bf16.msra.mxu1 %v6614_v17  ;;  %v4167_v61 = vld [vmem:[%s6096_s4 + $0x50] sm:$0xff]  }
 0x46e   :  { %2946 = vmatprep.subr.bf16.mxu0 %v6615_v62  ;;  %2987 = vmatprep.subr.bf16.mxu1 %v6616_v8  ;;  %v4168_v17 = vld [vmem:[%s6096_s4 + $0x10] sm:$0xff]   ;;  %v4169_v62 = vld [vmem:[%s6096_s4 + $0x58] sm:$0xff]  }
 0x46f   :  { %v4170_v8 = vld [vmem:[%s6096_s4 + $0x18] sm:$0xff]  }
 0x471   :  { %2947 = vmatpush1.bf16.msra.mxu0 %v6617_v56  ;;  %2988 = vmatpush1.bf16.msra.mxu1 %v6618_v10  ;;  %v4171_v56 = vld [vmem:[%s6096_s4 + $0x60] sm:$0xff]  }
 0x472   :  { %2948 = vmatprep.subr.bf16.mxu0 %v6619_v55  ;;  %2989 = vmatprep.subr.bf16.mxu1 %v6620_v22  ;;  %v4172_v10 = vld [vmem:[%s6096_s4 + $0x20] sm:$0xff]   ;;  %v4173_v55 = vld [vmem:[%s6096_s4 + $0x68] sm:$0xff]  }
 0x473   :  { %v4174_v22 = vld [vmem:[%s6096_s4 + $0x28] sm:$0xff]  }
 0x475   :  { %2949 = vmatpush1.bf16.msra.mxu0 %v6621_v19  ;;  %2990 = vmatpush1.bf16.msra.mxu1 %v6622_v30  ;;  %v4175_v19 = vld [vmem:[%s6096_s4 + $0x70] sm:$0xff]  }
 0x476   :  { %2950 = vmatprep.subr.bf16.mxu0 %v6623_v23  ;;  %2991 = vmatprep.subr.bf16.mxu1 %v6624_v15  ;;  %v4176_v30 = vld [vmem:[%s6096_s4 + $0x30] sm:$0xff]   ;;  %v4177_v23 = vld [vmem:[%s6096_s4 + $0x78] sm:$0xff]  }
 0x479   :  { %2951 = vmatpush1.bf16.msra.mxu0 %v6625_v52  ;;  %2992 = vmatpush1.bf16.msra.mxu1 %v6626_v16  ;;  %v3014_v52 = vld [vmem:[#allocation2 + $0xc0] sm:$0x3f] }
 0x47a   :  { %2952 = vmatprep.subr.bf16.mxu0 %v6627_v47  ;;  %2993 = vmatprep.subr.bf16.mxu1 %v6628_v24 }
 0x47d   :  { %2953 = vmatpush1.bf16.msra.mxu0 %v6629_v63  ;;  %2994 = vmatpush1.bf16.msra.mxu1 %v6700_v29  ;;  %v3015_v63 = vld [vmem:[#allocation2 + $0xc8] sm:$0x3f]  ;;  %v4182_v29 = vld [vmem:[%s6097_s6 + $0x18] sm:$0xff]  }
 0x47e   :  { %2954 = vmatprep.subr.bf16.mxu0 %v6701_v27  ;;  %2995 = vmatprep.subr.bf16.mxu1 %v6702_v37 }
 0x481   :  { %2955 = vmatpush1.bf16.msra.mxu0 %v6703_v18  ;;  %2996 = vmatpush1.bf16.msra.mxu1 %v6704_v45 }
 0x482   :  { %2956 = vmatprep.subr.bf16.mxu0 %v6705_v7  ;;  %2997 = vmatprep.subr.bf16.mxu1 %v6706_v25 }
 0x485   :  { %2957 = vmatpush1.bf16.msra.mxu0 %v6707_v35  ;;  %2998 = vmatpush1.bf16.msra.mxu1 %v6708_v32  ;;  %v6721_v35 = vld [vmem:[#allocation73_spill] sm:$0xff] }
 0x486   :  { %2958 = vmatprep.subr.bf16.mxu0 %v6709_v3  ;;  %2999 = vmatprep.subr.bf16.mxu1 %v6710_v1 }
 0x489   :  { %2959 = vmatpush1.bf16.msra.mxu0 %v6711_v39  ;;  %3000 = vmatpush1.bf16.msra.mxu1 %v6712_v34 }
 0x48a   :  { %2960 = vmatprep.subr.bf16.mxu0 %v6713_v13  ;;  %3001 = vmatprep.subr.bf16.mxu1 %v6714_v31  ;;  %v3022_v31 = vld [vmem:[#allocation2 + $0x20] sm:$0x3f] }
 0x48d   :  { %2961 = vmatpush1.bf16.msra.mxu0 %v6715_v2  ;;  %3002 = vmatpush1.bf16.msra.mxu1 %v6716_v53 }
 0x48e   :  { %2962 = vmatprep.subr.bf16.mxu0 %v6717_v48  ;;  %3003 = vmatprep.subr.bf16.mxu1 %v6718_v44  ;;  %v3023_v44 = vld [vmem:[#allocation2 + $0x28] sm:$0x3f] }
 0x491   :  { %2963 = vmatpush1.bf16.msra.mxu0 %v6719_v42  ;;  %3004 = vmatpush1.bf16.msra.mxu1 %v6720_v60 }
 0x492   :  { %4069 = vmatprep.subr.bf16.mxu0 %v4163_v46  ;;  %4117 = vmatprep.subr.bf16.mxu1 %v4179_v12 }
 0x494   :  { %2965 = vmatmul.mubr.bf16.vlgmr.msra.gmra.mrb[44].mxu0 %v5877_v33  ;;  %3006 = vmatmul.mubr.bf16.vlgmr.msra.gmra.mrb[44].mxu1 %v5877_v33  ;;  %v4181_v33 = vld [vmem:[%s6097_s6 + $0x10] sm:$0xff]  }
 0x495   :  { %4070 = vmatpush3.bf16.msra.mxu0 %v4164_v20  ;;  %4118 = vmatpush3.bf16.msra.mxu1 %v4179_v12 }
 0x496   :  { %4071 = vmatprep.subr.bf16.mxu0 %v4165_v26  ;;  %4119 = vmatprep.subr.bf16.mxu1 %v4180_v57 }
 0x499   :  { %4072 = vmatpush3.bf16.msra.mxu0 %v4166_v14  ;;  %4120 = vmatpush3.bf16.msra.mxu1 %v4180_v57 }
 0x49a   :  { %4073 = vmatprep.subr.bf16.mxu0 %v4167_v61  ;;  %4121 = vmatprep.subr.bf16.mxu1 %v4181_v33 }
 0x49d   :  { %4074 = vmatpush3.bf16.msra.mxu0 %v4168_v17  ;;  %4122 = vmatpush3.bf16.msra.mxu1 %v4181_v33 }
 0x49e   :  { %4075 = vmatprep.subr.bf16.mxu0 %v4169_v62  ;;  %4123 = vmatprep.subr.bf16.mxu1 %v4182_v29  ;;  %v3025_v62 = vld [vmem:[#allocation2 + $0x38] sm:$0x3f] }
 0x4a1   :  { %4076 = vmatpush3.bf16.msra.mxu0 %v4170_v8  ;;  %4124 = vmatpush3.bf16.msra.mxu1 %v4182_v29 }
 0x4a2   :  { %4077 = vmatprep.subr.bf16.mxu0 %v4171_v56  ;;  %v3024_v56 = vld [vmem:[#allocation2 + $0x30] sm:$0x3f] }
 0x4a5   :  { %4078 = vmatpush3.bf16.msra.mxu0 %v4172_v10 }
 0x4a6   :  { %4079 = vmatprep.subr.bf16.mxu0 %v4173_v55 }
 0x4a9   :  { %4080 = vmatpush3.bf16.msra.mxu0 %v4174_v22 }
 0x4aa   :  { %4081 = vmatprep.subr.bf16.mxu0 %v4175_v19 }
 0x4ad   :  { %4082 = vmatpush3.bf16.msra.mxu0 %v4176_v30 }
 0x4ae   :  { %4083 = vmatprep.subr.bf16.mxu0 %v4177_v23 }
 0x4b1   :  { %4084 = vmatpush3.bf16.msra.mxu0 %v4178_v54 }
 0x527   :  { %v2884_v15 = vpop.f32.mrb[40].mxu0  ;;  %v2925_v16 = vpop.f32.mrb[40].mxu1 }
 0x528   :  { %v3018_v47 = vadd.f32 %v3014_v52, %v2884_v15  ;;  %v2886_v24 = vpop.f32.mrb[41].mxu0  ;;  %v2927_v49 = vpop.f32.mrb[41].mxu1  ;;  %v3020_v5 = vadd.f32 %v3016_v41, %v2925_v16  ;;  %v3087_v41 = vld [vmem:[#allocation4 + $0x10] sm:$0x3f] }
 0x529   :  { %v3019_v59 = vadd.f32 %v3015_v63, %v2886_v24  ;;  %v2888_v4 = vpop.f32.mrb[42].mxu0  ;;  %v2929_v43 = vpop.f32.mrb[42].mxu1  ;;  %v3021_v9 = vadd.f32 %v3017_v0, %v2927_v49  ;;  %v3088_v0 = vld [vmem:[#allocation4 + $0x18] sm:$0x3f] }
 0x52a   :  { %v4028_v50 = vmul.f32 -1.442695, %v3018_v47  ;;  %v2889_v51 = vpop.f32.mrb[43].mxu0  ;;  %v2930_v11 = vpop.f32.mrb[43].mxu1 }
 0x52b   :  { %v4029_v28 = vmul.f32 -1.442695, %v3019_v59  ;;  %v4030_v6 = vmul.f32 -1.442695, %v3021_v9  ;;  %v3086_v59 = vld [vmem:[#allocation4 + $0x8] sm:$0x3f] }
 0x52c   :  { %4291 = vpow2.f32 %v4028_v50  ;;  %v3082_v50 = vld [vmem:[#allocation3 + $0x8] sm:$0x3f]  ;;  %v3083_v51 = vld [vmem:[#allocation3 + $0x10] sm:$0x3f] }
 0x52d   :  { %4293 = vpow2.f32 %v4029_v28  ;;  %v3114_v28 = vcombine.low %v3082_v50, %v3086_v59  ;;  %v3132_v33 = vcombine.high %v3083_v51, %v3087_v41 }
 0x52e   :  { %4295 = vpow2.f32 %v4030_v6 }
 0x52f   :  { %4297 = vtanh.f32 %v3020_v5  ;;  %v3131_v5 = vcombine.low %v3083_v51, %v3087_v41 }
 0x536   :  { %v4292_v36 = vpop.eup %4291 }
 0x537   :  { %v4294_v38 = vpop.eup %4293  ;;  %v3033_v40 = vadd.f32 1.0, %v4292_v36  ;;  %v6722_v36 = vld [vmem:[#allocation6_spill] sm:$0xff] }
 0x538   :  { %v3039_v58 = vadd.f32 1.0, %v4294_v38  ;;  %v4296_v27 = vpop.eup %4295  ;;  %v3122_v12 = vrot.slane %v3114_v28, %v6722_v36  ;;  %v3115_v38 = vcombine.high %v3082_v50, %v3086_v59  ;;  %v4034_v59 = vld [vmem:[%s6099_s5] ss:$0 sm:$0xff] }
 0x539   :  { %4299 = vrcp.f32 %v3033_v40  ;;  %v4298_v37 = vpop.eup %4297  ;;  %v3046_v25 = vadd.f32 1.0, %v4296_v27  ;;  %v3139_v40 = vrot.slane %v3131_v5, %v6722_v36  ;;  %v3081_v27 = vld [vmem:[#allocation3] sm:$0x3f] }
 0x53a   :  { %4301 = vrcp.f32 %v3039_v58  ;;  %v3130_v58 = vcombine.high %v3122_v12, %v3122_v12 }
 0x53b   :  { %4303 = vrcp.f32 %v3046_v25 }
 0x543   :  { %v4300_v18 = vpop.eup %4299 }
 0x544   :  { %v4302_v45 = vpop.eup %4301  ;;  %v3050_v7 = vmul.f32 %v4300_v18, %v4298_v37  ;;  %v3129_v18 = vrot.slane %v3115_v38, %v6722_v36 }
 0x545   :  { %v3049_v32 = vmul.f32 %v4302_v45, %v6721_v35  ;;  %v4304_v1 = vpop.eup %4303  ;;  %v3147_v45 = vcombine.high %v3139_v40, %v3139_v40 }
 0x547   :  { %v3051_v3 = vadd.f32 %v3050_v7, %v3049_v32  ;;  %v3183_v32 = vcombine.low %v3130_v58, %v3129_v18  ;;  %v4192_v18 = vld [vmem:[%s6098_s8 + $0x28] sm:$0xff]  }
 0x549   :  { %4305 = vtanh.f32 %v3051_v3 }
 0x553   :  { %v4306_v39 = vpop.eup %4305 }
 0x554   :  { %v3053_v34 = vmul.f32 %v4306_v39, %v4304_v1  ;;  %v3146_v39 = vrot.slane %v3132_v33, %v6722_v36 }
 0x556   :  { %3079 = vst [vmem:[#allocation3 + $0x18] sm:$0x3f] %v3053_v34 }
 0x55d   :  { %v3084_v4 = vld [vmem:[#allocation3 + $0x18] sm:$0x3f] }
 0x55e   :  { %v3148_v6 = vcombine.low %v3084_v4, %v3088_v0  ;;  %v3149_v57 = vcombine.high %v3084_v4, %v3088_v0 }
 0x560   :  { %v3163_v35 = vrot.slane %v3149_v57, %v6722_v36 }
 0x567   :  { %v2966_v13 = vpop.f32.mrb[44].mxu0  ;;  %v3007_v2 = vpop.f32.mrb[44].mxu1 }
 0x568   :  { %v3026_v53 = vadd.f32 %v3022_v31, %v2966_v13  ;;  %v2968_v48 = vpop.f32.mrb[45].mxu0  ;;  %v3009_v42 = vpop.f32.mrb[45].mxu1  ;;  %v3028_v55 = vadd.f32 %v3024_v56, %v3007_v2  ;;  %v3184_v13 = vcombine.low %v3139_v40, %v3147_v45  ;;  %v4193_v45 = vld [vmem:[%s6098_s8 + $0x30] sm:$0xff]  }
 0x569   :  { %v3027_v60 = vadd.f32 %v3023_v44, %v2968_v48  ;;  %v2970_v46 = vpop.f32.mrb[46].mxu0  ;;  %v3011_v20 = vpop.f32.mrb[46].mxu1  ;;  %v3029_v8 = vadd.f32 %v3025_v62, %v3009_v42  ;;  %v3191_v48 = vrot.slane %v3183_v32, %v6722_v36 }
 0x56a   :  { %v4031_v26 = vmul.f32 -1.442695, %v3026_v53  ;;  %v2971_v14 = vpop.f32.mrb[47].mxu0  ;;  %v3012_v61 = vpop.f32.mrb[47].mxu1 }
 0x56b   :  { %v4032_v17 = vmul.f32 -1.442695, %v3027_v60  ;;  %v4033_v10 = vmul.f32 -1.442695, %v3029_v8  ;;  %v3198_v60 = vrot.slane %v3184_v13, %v6722_v36 }
 0x56c   :  { %4307 = vpow2.f32 %v4031_v26 }
 0x56d   :  { %4309 = vpow2.f32 %v4032_v17  ;;  %v3200_v14 = vcombine.high %v3191_v48, %v3198_v60  ;;  %v3199_v62 = vcombine.low %v3191_v48, %v3198_v60 }
 0x56e   :  { %4311 = vpow2.f32 %v4033_v10 }
 0x56f   :  { %4313 = vtanh.f32 %v3028_v55 }
 0x576   :  { %v4308_v22 = vpop.eup %4307 }
 0x577   :  { %v4310_v19 = vpop.eup %4309  ;;  %v3057_v30 = vadd.f32 1.0, %v4308_v22 }
 0x578   :  { %v3063_v23 = vadd.f32 1.0, %v4310_v19  ;;  %v4312_v15 = vpop.eup %4311 }
 0x579   :  { %4315 = vrcp.f32 %v3057_v30  ;;  %v4314_v52 = vpop.eup %4313  ;;  %v3070_v63 = vadd.f32 1.0, %v4312_v15  ;;  %v4183_v30 = vld [vmem:[%s6097_s6 + $0x20] sm:$0xff]   ;;  %v4185_v15 = vld [vmem:[%s6097_s6 + $0x30] sm:$0xff]  }
 0x57a   :  { %4317 = vrcp.f32 %v3063_v23  ;;  %4125 = vmatprep.subr.bf16.mxu1 %v4183_v30  ;;  %v4184_v23 = vld [vmem:[%s6097_s6 + $0x28] sm:$0xff]  }
 0x57b   :  { %4319 = vrcp.f32 %v3070_v63  ;;  %4126 = vmatpush3.bf16.msra.mxu1 %v4183_v30  ;;  %v4190_v63 = vld [vmem:[%s6098_s8 + $0x18] sm:$0xff]  }
 0x57c   :  { %4127 = vmatprep.subr.bf16.mxu1 %v4184_v23 }
 0x57f   :  { %4128 = vmatpush3.bf16.msra.mxu1 %v4184_v23 }
 0x580   :  { %4129 = vmatprep.subr.bf16.mxu1 %v4185_v15 }
 0x583   :  { %v4316_v16 = vpop.eup %4315  ;;  %4130 = vmatpush3.bf16.msra.mxu1 %v4185_v15 }
 0x584   :  { %v4318_v47 = vpop.eup %4317  ;;  %v3074_v24 = vmul.f32 %v4316_v16, %v4314_v52  ;;  %v4186_v52 = vld [vmem:[%s6097_s6 + $0x38] sm:$0xff]   ;;  %v4187_v16 = vld [vmem:[%s6098_s8] sm:$0xff]  }
 0x585   :  { %v3073_v49 = vmul.f32 %v4318_v47, %v5874_v21  ;;  %v4320_v43 = vpop.eup %4319  ;;  %v3156_v21 = vrot.slane %v3148_v6, %v6722_v36  ;;  %4131 = vmatprep.subr.bf16.mxu1 %v4186_v52  ;;  %v4188_v47 = vld [vmem:[%s6098_s8 + $0x8] sm:$0xff]   ;;  %4137 = vmatprep.subr.bf16.mxu0 %v4187_v16 }
 0x587   :  { %v3075_v54 = vadd.f32 %v3074_v24, %v3073_v49  ;;  %v3164_v29 = vcombine.high %v3156_v21, %v3156_v21  ;;  %v3201_v53 = vcombine.low %v3146_v39, %v3156_v21  ;;  %4132 = vmatpush3.bf16.msra.mxu1 %v4186_v52  ;;  %v4189_v24 = vld [vmem:[%s6098_s8 + $0x10] sm:$0xff]   ;;  %v4191_v49 = vld [vmem:[%s6098_s8 + $0x20] sm:$0xff]  }
 0x589   :  { %4321 = vtanh.f32 %v3075_v54  ;;  %v3202_v34 = vcombine.low %v3164_v29, %v3163_v35  ;;  %v3209_v26 = vrot.slane %v3201_v53, %v6722_v36 }
 0x58b   :  { %v3216_v42 = vrot.slane %v3202_v34, %v6722_v36 }
 0x58d   :  { %v3218_v8 = vcombine.high %v3209_v26, %v3216_v42  ;;  %v3217_v22 = vcombine.low %v3209_v26, %v3216_v42 }
 0x58f   :  { %v3228_v55 = vpack.c.bf16 %v3218_v8, %v3218_v8  ;;  %v3227_v19 = vpack.c.bf16 %v3217_v22, %v3217_v22 }
 0x593   :  { %v4322_v11 = vpop.eup %4321 }
 0x594   :  { %v3077_v9 = vmul.f32 %v4322_v11, %v4320_v43 }
 0x596   :  { %3080 = vst [vmem:[#allocation4] sm:$0x3f] %v3077_v9 }
 0x59d   :  { %v3085_v37 = vld [vmem:[#allocation4] sm:$0x3f] }
 0x59e   :  { %v3097_v7 = vcombine.low %v3081_v27, %v3085_v37  ;;  %v3098_v25 = vcombine.high %v3081_v27, %v3085_v37 }
 0x5a0   :  { %v3105_v3 = vrot.slane %v3097_v7, %v6722_v36  ;;  %v3112_v1 = vrot.slane %v3098_v25, %v6722_v36  ;;  %v4194_v7 = vld [vmem:[%s6098_s8 + $0x38] sm:$0xff]   ;;  %v4051_v25 = vld [vmem:[%s6100_s7] ss:$0 sm:$0xff] }
 0x5a2   :  { %v3113_v31 = vcombine.high %v3105_v3, %v3105_v3  ;;  %v3166_v2 = vcombine.low %v3112_v1, %v3122_v12 }
 0x5a4   :  { %v3165_v44 = vcombine.low %v3105_v3, %v3113_v31  ;;  %v3180_v20 = vrot.slane %v3166_v2, %v6722_v36 }
 0x5a6   :  { %v3173_v46 = vrot.slane %v3165_v44, %v6722_v36 }
 0x5a8   :  { %v3182_v61 = vcombine.high %v3173_v46, %v3180_v20  ;;  %v3181_v17 = vcombine.low %v3173_v46, %v3180_v20  ;;  %v4060_v20 = vld [vmem:[%s6101_s9] ss:$0 sm:$0xff] }
 0x5aa   :  { %v3226_v56 = vpack.c.bf16 %v3200_v14, %v3182_v61  ;;  %v3225_v10 = vpack.c.bf16 %v3199_v62, %v3181_v17 }
 0x5ac   :  { %3396 = vmatprep.mubr.bf16.mxu0 %v3226_v56 }
 0x5ad   :  { %3397 = vmatmul.mubr.bf16.vlgmr.msra.gmra.mrb[48].mxu0 %v3225_v10 }
 0x5ae   :  { %3404 = vmatprep.mubr.bf16.mxu0 %v3228_v55  ;;  %4138 = vmatpush3.bf16.msra.mxu0 %v4187_v16 }
 0x5af   :  { %4139 = vmatprep.subr.bf16.mxu0 %v4188_v47 }
 0x5b2   :  { %4140 = vmatpush3.bf16.msra.mxu0 %v4188_v47 }
 0x5b3   :  { %4141 = vmatprep.subr.bf16.mxu0 %v4189_v24 }
 0x5b5   :  { %3405 = vmatmul.mubr.bf16.gmra.mrb[52].mxu0 %v3227_v19 }
 0x5b6   :  { %4142 = vmatpush3.bf16.msra.mxu0 %v4189_v24 }
 0x5b7   :  { %4143 = vmatprep.subr.bf16.mxu0 %v4190_v63 }
 0x5ba   :  { %4144 = vmatpush3.bf16.msra.mxu0 %v4190_v63 }
 0x5bb   :  { %4145 = vmatprep.subr.bf16.mxu0 %v4191_v49 }
 0x5be   :  { %4146 = vmatpush3.bf16.msra.mxu0 %v4191_v49 }
 0x5bf   :  { %4147 = vmatprep.subr.bf16.mxu0 %v4192_v18 }
 0x5c2   :  { %4148 = vmatpush3.bf16.msra.mxu0 %v4192_v18 }
 0x5c3   :  { %4149 = vmatprep.subr.bf16.mxu0 %v4193_v45 }
 0x5c6   :  { %4150 = vmatpush3.bf16.msra.mxu0 %v4193_v45 }
 0x5c7   :  { %4151 = vmatprep.subr.bf16.mxu0 %v4194_v7 }
 0x5ca   :  { %4152 = vmatpush3.bf16.msra.mxu0 %v4194_v7 }
 0x680   :  { %v4085_v54 = vpop.f32.mrb[48].mxu0 }
 0x681   :  { %v4086_v4 = vpop.f32.mrb[49].mxu0 }
 0x682   :  { %v4087_v43 = vadd.f32 %v4086_v4, %v4085_v54  ;;  %v4088_v50 = vpop.f32.mrb[50].mxu0 }
 0x683   :  { %v4089_v51 = vpop.f32.mrb[51].mxu0 }
 0x684   :  { %v3399_v11 = vadd.f32 %v4087_v43, %v4034_v59  ;;  %v4090_v28 = vadd.f32 %v4089_v51, %v4088_v50 }
 0x686   :  { %v3415_v0 = vmul.f32 0.01, %v3399_v11  ;;  %v3402_v9 = vadd.f32 %v4090_v28, %v4034_v59  ;;  %vm3412_vm0 = vcmp.gt.f32.partialorder %v3399_v11, 0.0 }
 0x688   :  { %vm3413_vm1 = vcmp.gt.f32.partialorder %v3402_v9, 0.0  ;;  %v3416_v41 = vmul.f32 0.01, %v3402_v9  ;;  %v4091_v6 = vpop.f32.mrb[52].mxu0  ;;  %v3418_v38 = vsel %vm3412_vm0, %v3399_v11, %v3415_v0 }
 0x689   :  { %v4092_v5 = vpop.f32.mrb[53].mxu0 }
 0x68a   :  { %v4093_v12 = vadd.f32 %v4092_v5, %v4091_v6  ;;  %v4094_v21 = vpop.f32.mrb[54].mxu0  ;;  %v3419_v40 = vsel %vm3413_vm1, %v3402_v9, %v3416_v41 }
 0x68b   :  { %v4095_v57 = vpop.f32.mrb[55].mxu0  ;;  %v3421_v58 = vpack.c.bf16 %v3419_v40, %v3418_v38 }
 0x68c   :  { %v3407_v33 = vadd.f32 %v4093_v12, %v4034_v59 }
 0x68d   :  { %4133 = vmatprep.mubr.bf16.mxu1 %v3421_v58 }
 0x68e   :  { %vm3414_vm2 = vcmp.gt.f32.partialorder %v3407_v33, 0.0  ;;  %v3417_v29 = vmul.f32 0.01, %v3407_v33 }
 0x690   :  { %v3420_v27 = vsel %vm3414_vm2, %v3407_v33, %v3417_v29 }
 0x691   :  { %v3422_v37 = vpack.c.bf16 %v3420_v27, %v3420_v27 }
 0x693   :  { %4134 = vmatmul.mubr.bf16.vlgmr.msra.gmra.mrb[48].mxu1 %v3422_v37 }
 0x766   :  { %v4135_v35 = vpop.f32.mrb[48].mxu1 }
 0x767   :  { %v3537_v32 = vadd.f32 %v4135_v35, %v4051_v25  ;;  %v3528_v3 = vpop.f32.mrb[49].mxu1 }
 0x768   :  { %v3529_v1 = vadd.f32 %v4051_v25, %v3528_v3  ;;  %v4136_v39 = vpop.f32.mrb[50].mxu1 }
 0x769   :  { %v3547_v34 = vmul.f32 0.01, %v3537_v32  ;;  %v3531_v13 = vpop.f32.mrb[51].mxu1  ;;  %vm3544_vm3 = vcmp.gt.f32.partialorder %v3537_v32, 0.0 }
 0x76a   :  { %v3545_v31 = vmul.f32 0.01, %v3529_v1  ;;  %v3532_v2 = vadd.f32 %v4051_v25, %v3531_v13  ;;  %vm3542_vm4 = vcmp.gt.f32.partialorder %v3529_v1, 0.0 }
 0x76b   :  { %v3550_v48 = vsel %vm3544_vm3, %v3537_v32, %v3547_v34 }
 0x76c   :  { %vm3543_vm5 = vcmp.gt.f32.partialorder %v3532_v2, 0.0  ;;  %v3546_v53 = vmul.f32 0.01, %v3532_v2  ;;  %v3548_v44 = vsel %vm3542_vm4, %v3529_v1, %v3545_v31  ;;  %v3552_v46 = vpack.c.bf16 %v3550_v48, %v3550_v48 }
 0x76e   :  { %v3549_v42 = vsel %vm3543_vm5, %v3532_v2, %v3546_v53 }
 0x76f   :  { %v3551_v60 = vpack.c.bf16 %v3549_v42, %v3548_v44 }
 0x771   :  { %4153 = vmatprep.mubr.bf16.mxu0 %v3551_v60 }
 0x772   :  { %4154 = vmatmul.mubr.bf16.vlgmr.msra.gmra.mrb[56].mxu0 %v3552_v46 }
 0x845   :  { %v4155_v26 = vpop.f32.mrb[56].mxu0 }
 0x846   :  { %v3667_v14 = vadd.f32 %v4155_v26, %v4060_v20  ;;  %v3658_v61 = vpop.f32.mrb[57].mxu0 }
 0x847   :  { %v3659_v17 = vadd.f32 %v4060_v20, %v3658_v61  ;;  %v4156_v62 = vpop.f32.mrb[58].mxu0 }
 0x848   :  { %v3709_v8 = vcombine.high %v3667_v14, %v3667_v14  ;;  %v3716_v56 = vrot.slane %v3667_v14, %v6722_v36  ;;  %v3661_v10 = vpop.f32.mrb[59].mxu0 }
 0x849   :  { %v3675_v55 = vcombine.high %v3659_v17, %v3659_v17  ;;  %v3682_v22 = vrot.slane %v3659_v17, %v6722_v36  ;;  %v3662_v19 = vadd.f32 %v4060_v20, %v3661_v10 }
 0x84a   :  { %v3723_v30 = vrot.slane %v3709_v8, %v6722_v36  ;;  %v3724_v23 = vcombine.high %v3716_v56, %v3716_v56  ;;  %v3772_v21 = vrot.slane %v3716_v56, %v6722_v36 }
 0x84b   :  { %v3689_v15 = vrot.slane %v3675_v55, %v6722_v36  ;;  %v3690_v52 = vcombine.high %v3682_v22, %v3682_v22  ;;  %v3692_v16 = vcombine.high %v3662_v19, %v3662_v19  ;;  %v3699_v47 = vrot.slane %v3662_v19, %v6722_v36 }
 0x84c   :  { %v3725_v24 = vcombine.high %v3723_v30, %v3723_v30  ;;  %v3774_v63 = vcombine.low %v3724_v23, %v3723_v30 }
 0x84d   :  { %v3726_v49 = vcombine.low %v3682_v22, %v3690_v52  ;;  %v3691_v54 = vcombine.high %v3689_v15, %v3689_v15  ;;  %v3706_v59 = vrot.slane %v3692_v16, %v6722_v36  ;;  %v3707_v50 = vcombine.high %v3699_v47, %v3699_v47 }
 0x84e   :  { %v3781_v4 = vrot.slane %v3774_v63, %v6722_v36  ;;  %v3788_v43 = vrot.slane %v3725_v24, %v6722_v36  ;;  %v3740_v11 = vrot.slane %v3689_v15, %v6722_v36 }
 0x84f   :  { %v3733_v51 = vrot.slane %v3726_v49, %v6722_v36  ;;  %v3708_v28 = vcombine.high %v3706_v59, %v3706_v59  ;;  %v3742_v0 = vcombine.low %v3691_v54, %v3699_v47  ;;  %v3756_v5 = vrot.slane %v3707_v50, %v6722_v36 }
 0x850   :  { %v3789_v9 = vcombine.low %v3781_v4, %v3788_v43 }
 0x851   :  { %v3741_v41 = vcombine.low %v3733_v51, %v3740_v11  ;;  %v3749_v6 = vrot.slane %v3742_v0, %v6722_v36  ;;  %v3758_v12 = vcombine.low %v3706_v59, %v3708_v28 }
 0x852   :  { %3797 = vst [vmem:[%s6102_s10 + $0x18] sm:$0x3f] %v3789_v9 }
 0x853   :  { %3794 = vst [vmem:[%s6102_s10] sm:$0x3f] %v3741_v41  ;;  %v3757_v38 = vcombine.low %v3749_v6, %v3756_v5  ;;  %v3765_v40 = vrot.slane %v3758_v12, %v6722_v36 }
 0x855   :  { %v3773_v57 = vcombine.low %v3765_v40, %v3772_v21  ;;  %3795 = vst [vmem:[%s6102_s10 + $0x8] sm:$0x3f] %v3757_v38 }
 0x857   :  { %3796 = vst [vmem:[%s6102_s10 + $0x10] sm:$0x3f] %v3773_v57 }

// kernel: baseline_seq_forward.2
= control target key start
LH: loop header
LB: loop body
LE: loop exit
PB: predicated region body
PF: predicated region fallthrough
CT: control target
= control target key end

     0   :  { %s8802_s21 = smov 0   ;;  %s10941_s0 = inlined_call_operand.vmem [shape: bf16[24,3,324], index: 0, kind: input, shape index: {}]   ;;  %s10942_s1 = inlined_call_operand.vmem [shape: bf16[9,8,3], index: 1, kind: input, shape index: {}]   ;;  %s10943_s2 = inlined_call_operand.vmem [shape: f32[8,1], index: 2, kind: input, shape index: {}]   ;;  %s10944_s3 = inlined_call_operand.vmem [shape: f32[1,286], index: 3, kind: input, shape index: {}]   ;;  %s10945_s4 = inlined_call_operand.vmem [shape: f32[8,128], index: 4, kind: input, shape index: {}]   ;;  %s10946_s5 = inlined_call_operand.vmem [shape: f32[1,128], index: 5, kind: input, shape index: {}]   ;;  %s10947_s6 = inlined_call_operand.vmem [shape: f32[24,128], index: 6, kind: output, shape index: {}]  }
   0x1 LB: > { %s8808_s22 = sadd.s32 4294967295, %s8752_s21   ;;  %p7945_p0 = scmp.ge.s32.totalorder %s8752_s21, 1  ;;  %s8752_s21 = sphi %s8802_s21, %s16_s21  }
   0x2   : > { %p214_p1 = scmp.lt.s32.totalorder %s8752_s21, 4 }
   0x4   : > { %p215_p2 = pnand %p7945_p0, %p214_p1 }
   0x6   : > { %218 = sbr.rel (%p215_p2) target bundleno = 1431 (0x597), region = 44 }
   0xd   : > { %s7946_s23 = sshll.u32 %s8808_s22, 3  ;;  %v267_v0 = vlaneseq  ;;  %v8754_v1 = vmov 1983009808   ;;  %v10948_v5 = vmov 0.0   ;;  %vm8756_vm0 = vmmov 0   ;;  %s8757_s28 = smov 127  }
   0xe   : > { %p245_p3 = scmp.lt.s32.totalorder %s7946_s23, 23  ;;  %v265_v2 = vunpack.c.l.s4 %v8754_v1  ;;  %8258 = vmatprep.subr.bf16.mxu1 %v10948_v5  ;;  %8260 = vmatprep.mubr.msk.bf16.mxu1 %vm8756_vm0, %v10948_v5  ;;  %v10950_v12 = vmov 0   ;;  %s8759_s29 = smov 126   ;;  %vm292_vm1 = vcmask 1040384   ;;  %vm293_vm2 = vcmask 1041408  }
   0xf   : > { %v8813_v3 = vshrl.u32 %v267_v0, 7  ;;  %337 = vmatprep.mubr.bf16.mxu0 %v10950_v12  ;;  %8717 = vset.pattern.permute.xlu0 %v10950_v12  ;;  %s8760_s30 = smov 110   ;;  %s8761_s7 = smov 109   ;;  %v8766_v25 = vmov 65535   ;;  %vm285_vm3 = vcmask 1039360   ;;  %vm487_vm4 = vcmask 1031168  }
  0x10   : > { %s10990_s23 = smov (!%p245_p3, %s7946_s23), 23  ;;  %v266_v4 = vunpack.c.0.s8 %v265_v2  ;;  %s8762_s8 = smov 108   ;;  %v294_v26 = vsel %vm292_vm1, 4294967295, %v8766_v25  ;;  %v8995_v35 = vld [vmem:[%s10942_s1 + $0x4] sm:$0xf]  ;;  %vm288_vm5 = vcmask 23552  }
  0x11   : > { %s8695_s24 = smul.u32 6, %s10990_s23  ;;  %s8763_s9 = smov 92   ;;  %v8981_v29 = vsel %vm293_vm2, %v294_v26, 0  ;;  %vm594_vm6 = vcmask 900096   ;;  %v9024_v47 = vld [vmem:[%s10942_s1] sm:$0xf] }
  0x12   : > { %v8817_v6 = vsub.s32 %v266_v4, %v8813_v3  ;;  %s8764_s10 = smov 91   ;;  %s8765_s11 = smov 90   ;;  %vm701_vm7 = vcmask 891904   ;;  %v9053_v58 = vld [vmem:[%s10942_s1 + $0x8] sm:$0xf]  ;;  %vm808_vm8 = vcmask 883712  }
  0x13   : > { %s8822_s27 = scalar_lea.vmem %s10941_s0, %s8695_s24  ;;  %vm915_vm9 = vcmask 752640   ;;  %v9108_v26 = vld [vmem:[%s10942_s1 + $0x10] sm:$0xf]  ;;  %vm1022_vm10 = vcmask 744448   ;;  %vm1129_vm11 = vcmask 736256   ;;  %vm1259_vm12 = vcmask 244736  }
  0x14   : > { %v258_v7 = vld [vmem:[%s8822_s27] sm:$0x3f]  ;;  %v7975_v13 = vld [vmem:[%s8822_s27 + $0x6] sm:$0x3f]  ;;  %v7994_v18 = vld [vmem:[%s8822_s27 + $0xc] sm:$0x3f] }
  0x15   : > { %v8828_v8 = vrot.slane %v258_v7, %v8817_v6  ;;  %v263_v9 = vcombine.high %v258_v7, %v258_v7  ;;  %v8883_v14 = vrot.slane %v7975_v13, %v8817_v6  ;;  %v1267_v15 = vcombine.high %v7975_v13, %v7975_v13  ;;  %v8013_v53 = vld [vmem:[%s8822_s27 + $0x12] sm:$0x3f]  ;;  %p251_p4 = scmp.lt.s32.totalorder %s8808_s22, 2 }
  0x16   : > { %v8942_v19 = vrot.slane %v7994_v18, %v8817_v6  ;;  %v2195_v20 = vcombine.high %v7994_v18, %v7994_v18  ;;  %v9044_v55 = vrot.slane %v8013_v53, %v8817_v6  ;;  %v3123_v7 = vcombine.high %v8013_v53, %v8013_v53 }
  0x17   : > { %279 = vrot.lane.b32.xlu1 %v8828_v8, %s8757_s28  ;;  %v8834_v10 = vcombine.high %v8828_v8, %v8828_v8  ;;  %v8839_v11 = vrot.slane %v263_v9, %v8817_v6  ;;  %v8893_v16 = vcombine.high %v8883_v14, %v8883_v14  ;;  %v8896_v17 = vrot.slane %v1267_v15, %v8817_v6  ;;  %v9081_v9 = vld [vmem:[%s10942_s1 + $0xc] sm:$0xf]  ;;  %s10992_s22 = smov (!%p251_p4, %s8808_s22), 2 }
  0x18   : > { %v8952_v21 = vcombine.high %v8942_v19, %v8942_v19  ;;  %v8955_v22 = vrot.slane %v2195_v20, %v8817_v6  ;;  %v390_v40 = vand.u32 %v8981_v29, %v8828_v8  ;;  %v9065_v63 = vcombine.high %v9044_v55, %v9044_v55 }
  0x19   : > { %281 = vrot.lane.b32.xlu0 %v8834_v10, %s8757_s28  ;;  %v393_v36 = vand.u32 %v8981_v29, %v8834_v10  ;;  %v396_v37 = vand.u32 %v8981_v29, %v8839_v11  ;;  %v9092_v15 = vrot.slane %v3123_v7, %v8817_v6  ;;  %vm7760_vm13 = vcmask 7168  }
  0x1a   : > { %vm7762_vm14 = vcmask 15360   ;;  %vm7765_vm15 = vcmask 31744   ;;  %vm7769_vm1 = vcmask 48128   ;;  %vm7771_vm2 = vcmask 56320  }
  0x1b   : > { %483 = vrot.lane.b32.xlu1 %v8834_v10, %s8759_s29 }
  0x1d   : > { %283 = vrot.lane.b32.xlu0 %v8839_v11, %s8757_s28 }
  0x1f   : > { %481 = vrot.lane.b32.xlu1 %v8828_v8, %s8759_s29 }
  0x21   : > { %485 = vrot.lane.b32.xlu0 %v8839_v11, %s8759_s29 }
  0x23   : > { %592 = vrot.lane.b32.xlu1 %v8839_v11, %s8760_s30 }
  0x25   : > { %590 = vrot.lane.b32.xlu0 %v8834_v10, %s8760_s30 }
  0x27   : > { %697 = vrot.lane.b32.xlu1 %v8834_v10, %s8761_s7 }
  0x29   : > { %588 = vrot.lane.b32.xlu0 %v8828_v8, %s8760_s30 }
  0x2b   : > { %695 = vrot.lane.b32.xlu1 %v8828_v8, %s8761_s7 }
  0x2d   : > { %699 = vrot.lane.b32.xlu0 %v8839_v11, %s8761_s7 }
  0x2f   : > { %806 = vrot.lane.b32.xlu1 %v8839_v11, %s8762_s8 }
  0x31   : > { %804 = vrot.lane.b32.xlu0 %v8834_v10, %s8762_s8 }
  0x33   : > { %911 = vrot.lane.b32.xlu1 %v8834_v10, %s8763_s9 }
  0x35   : > { %802 = vrot.lane.b32.xlu0 %v8828_v8, %s8762_s8 }
  0x37   : > { %909 = vrot.lane.b32.xlu1 %v8828_v8, %s8763_s9 }
  0x39   : > { %913 = vrot.lane.b32.xlu0 %v8839_v11, %s8763_s9 }
  0x3b   : > { %1020 = vrot.lane.b32.xlu1 %v8839_v11, %s8764_s10 }
  0x3d   : > { %1018 = vrot.lane.b32.xlu0 %v8834_v10, %s8764_s10 }
  0x3f   : > { %1125 = vrot.lane.b32.xlu1 %v8834_v10, %s8765_s11 }
  0x41   : > { %1016 = vrot.lane.b32.xlu0 %v8828_v8, %s8764_s10 }
  0x43   : > { %1123 = vrot.lane.b32.xlu1 %v8828_v8, %s8765_s11 }
  0x45   : > { %1127 = vrot.lane.b32.xlu0 %v8839_v11, %s8765_s11 }
  0x47   : > { %1287 = vrot.lane.b32.xlu1 %v8896_v17, %s8757_s28 }
  0x49   : > { %1285 = vrot.lane.b32.xlu0 %v8893_v16, %s8757_s28 }
  0x4b   : > { %1473 = vrot.lane.b32.xlu1 %v8893_v16, %s8759_s29 }
  0x4d   : > { %1283 = vrot.lane.b32.xlu0 %v8883_v14, %s8757_s28 }
  0x4f   : > { %1471 = vrot.lane.b32.xlu1 %v8883_v14, %s8759_s29 }
  0x51   : > { %1475 = vrot.lane.b32.xlu0 %v8896_v17, %s8759_s29 }
  0x53   : > { %1576 = vrot.lane.b32.xlu1 %v8896_v17, %s8760_s30 }
  0x55   : > { %1574 = vrot.lane.b32.xlu0 %v8893_v16, %s8760_s30 }
  0x57   : > { %1675 = vrot.lane.b32.xlu1 %v8893_v16, %s8761_s7 }
  0x59   : > { %1572 = vrot.lane.b32.xlu0 %v8883_v14, %s8760_s30 }
  0x5b   : > { %1673 = vrot.lane.b32.xlu1 %v8883_v14, %s8761_s7 }
  0x5d   : > { %1677 = vrot.lane.b32.xlu0 %v8896_v17, %s8761_s7 }
  0x5f   : > { %1778 = vrot.lane.b32.xlu1 %v8896_v17, %s8762_s8 }
  0x61   : > { %1776 = vrot.lane.b32.xlu0 %v8893_v16, %s8762_s8 }
  0x63   : > { %1877 = vrot.lane.b32.xlu1 %v8893_v16, %s8763_s9 }
  0x65   : > { %1774 = vrot.lane.b32.xlu0 %v8883_v14, %s8762_s8 }
  0x67   : > { %1875 = vrot.lane.b32.xlu1 %v8883_v14, %s8763_s9 }
  0x69   : > { %1879 = vrot.lane.b32.xlu0 %v8896_v17, %s8763_s9 }
  0x6b   : > { %1980 = vrot.lane.b32.xlu1 %v8896_v17, %s8764_s10 }
  0x6d   : > { %1978 = vrot.lane.b32.xlu0 %v8893_v16, %s8764_s10 }
  0x6f   : > { %2079 = vrot.lane.b32.xlu1 %v8893_v16, %s8765_s11 }
  0x71   : > { %1976 = vrot.lane.b32.xlu0 %v8883_v14, %s8764_s10 }
  0x73   : > { %2077 = vrot.lane.b32.xlu1 %v8883_v14, %s8765_s11 }
  0x75   : > { %2081 = vrot.lane.b32.xlu0 %v8896_v17, %s8765_s11 }
  0x77   : > { %2215 = vrot.lane.b32.xlu1 %v8955_v22, %s8757_s28 }
  0x79   : > { %2213 = vrot.lane.b32.xlu0 %v8952_v21, %s8757_s28 }
  0x7b   : > { %2401 = vrot.lane.b32.xlu1 %v8952_v21, %s8759_s29 }
  0x7d   : > { %2211 = vrot.lane.b32.xlu0 %v8942_v19, %s8757_s28 }
  0x7f   : > { %2399 = vrot.lane.b32.xlu1 %v8942_v19, %s8759_s29 }
  0x81   : > { %2403 = vrot.lane.b32.xlu0 %v8955_v22, %s8759_s29 }
  0x83   : > { %2504 = vrot.lane.b32.xlu1 %v8955_v22, %s8760_s30 }
  0x85   : > { %2502 = vrot.lane.b32.xlu0 %v8952_v21, %s8760_s30 }
  0x87   : > { %2603 = vrot.lane.b32.xlu1 %v8952_v21, %s8761_s7 }
  0x89   : > { %2500 = vrot.lane.b32.xlu0 %v8942_v19, %s8760_s30  ;;  %v280_v23 = vpop.permute.xlu1 %279 }
  0x8b   : > { %v282_v24 = vpop.permute.xlu0 %281  ;;  %2601 = vrot.lane.b32.xlu1 %v8942_v19, %s8761_s7 }
  0x8c   : > { %v286_v30 = vsel %vm285_vm3, %v280_v23, %v282_v24 }
  0x8d   : > { %2605 = vrot.lane.b32.xlu0 %v8955_v22, %s8761_s7  ;;  %v484_v27 = vpop.permute.xlu1 %483  ;;  %v297_v34 = vand.u32 %v8981_v29, %v286_v30 }
  0x8f   : > { %v284_v28 = vpop.permute.xlu0 %283  ;;  %2706 = vrot.lane.b32.xlu1 %v8955_v22, %s8762_s8 }
  0x90   : > { %v303_v31 = vand.u32 %v8981_v29, %v284_v28  ;;  %v287_v32 = vsel %vm285_vm3, %v282_v24, %v284_v28 }
  0x91   : > { %2704 = vrot.lane.b32.xlu0 %v8952_v21, %s8762_s8  ;;  %v300_v33 = vand.u32 %v8981_v29, %v287_v32  ;;  %v482_v38 = vpop.permute.xlu1 %481 }
  0x92   : > { %8259 = vmatpush3.bf16.msra.mxu1 %v303_v31  ;;  %v488_v45 = vsel %vm487_vm4, %v482_v38, %v484_v27  ;;  %v9132_v38 = vld [vmem:[%s10942_s1 + $0x14] sm:$0xf] }
  0x93   : > { %305 = vmatprep.subr.bf16.mxu0 %v300_v33  ;;  %v486_v39 = vpop.permute.xlu0 %485  ;;  %8264 = vmatprep.subr.bf16.mxu1 %v10948_v5  ;;  %v494_v50 = vand.u32 %v488_v45, %v8981_v29 }
  0x94   : > { %306 = vmatpush1.bf16.msra.mxu0 %v297_v34  ;;  %v489_v41 = vsel %vm487_vm4, %v484_v27, %v486_v39  ;;  %2805 = vrot.lane.b32.xlu1 %v8952_v21, %s8763_s9  ;;  %v500_v46 = vand.u32 %v486_v39, %v8981_v29 }
  0x95   : > { %2702 = vrot.lane.b32.xlu0 %v8942_v19, %s8762_s8  ;;  %8261 = vmatmul.mubr.msk.bf16.vlgmr.msra.gmra.mrb[0].mxu1 %vm288_vm5, %v8995_v35  ;;  %v497_v42 = vand.u32 %v489_v41, %v8981_v29  ;;  %v593_v44 = vpop.permute.xlu1 %592 }
  0x96   : > { %398 = vmatprep.subr.bf16.mxu0 %v393_v36  ;;  %8265 = vmatpush3.bf16.msra.mxu1 %v396_v37  ;;  %v607_v57 = vand.u32 %v593_v44, %v8981_v29 }
  0x97   : > { %7950 = vmatmul.mubr.msk.bf16.vlgmr.msra.gmra.mrb[0].mxu0 %vm288_vm5, %v8995_v35  ;;  %8266 = vmatprep.mubr.msk.bf16.mxu1 %vm8756_vm0, %v10948_v5  ;;  %v591_v43 = vpop.permute.xlu0 %590 }
  0x98   : > { %399 = vmatpush1.bf16.msra.mxu0 %v390_v40  ;;  %8270 = vmatprep.subr.bf16.mxu1 %v10948_v5  ;;  %v596_v48 = vsel %vm594_vm6, %v591_v43, %v593_v44 }
  0x99   : > { %2807 = vrot.lane.b32.xlu0 %v8955_v22, %s8763_s9  ;;  %502 = vmatprep.subr.bf16.mxu0 %v497_v42  ;;  %v698_v51 = vpop.permute.xlu1 %697  ;;  %v604_v52 = vand.u32 %v596_v48, %v8981_v29 }
  0x9a   : > { %430 = vmatprep.mubr.bf16.mxu0 %v10950_v12  ;;  %2803 = vrot.lane.b32.xlu1 %v8942_v19, %s8763_s9 }
  0x9b   : > { %v589_v49 = vpop.permute.xlu0 %588 }
  0x9c   : > { %v595_v56 = vsel %vm594_vm6, %v589_v49, %v591_v43  ;;  %v9157_v49 = vld [vmem:[%s10942_s1 + $0x18] sm:$0xf] }
  0x9d   : > { %2906 = vrot.lane.b32.xlu0 %v8952_v21, %s8764_s10  ;;  %8267 = vmatmul.mubr.msk.bf16.vlgmr.msra.gmra.mrb[4].mxu1 %vm288_vm5, %v9024_v47  ;;  %v696_v60 = vpop.permute.xlu1 %695  ;;  %v601_v62 = vand.u32 %v595_v56, %v8981_v29 }
  0x9e   : > { %8271 = vmatpush3.bf16.msra.mxu1 %v500_v46  ;;  %8272 = vmatprep.mubr.msk.bf16.mxu1 %vm8756_vm0, %v10948_v5  ;;  %v702_v4 = vsel %vm701_vm7, %v696_v60, %v698_v51  ;;  %v9184_v60 = vld [vmem:[%s10942_s1 + $0x1c] sm:$0xf] }
  0x9f   : > { %7952 = vmatmul.mubr.msk.bf16.vlgmr.msra.gmra.mrb[4].mxu0 %vm288_vm5, %v9024_v47  ;;  %8276 = vmatprep.subr.bf16.mxu1 %v10948_v5  ;;  %v700_v54 = vpop.permute.xlu0 %699  ;;  %v708_v13 = vand.u32 %v702_v4, %v8981_v29 }
  0xa0   : > { %503 = vmatpush1.bf16.msra.mxu0 %v494_v50  ;;  %534 = vmatprep.mubr.bf16.mxu0 %v10950_v12  ;;  %v703_v59 = vsel %vm701_vm7, %v698_v51, %v700_v54  ;;  %v714_v8 = vand.u32 %v700_v54, %v8981_v29 }
  0xa1   : > { %2904 = vrot.lane.b32.xlu0 %v8942_v19, %s8764_s10  ;;  %609 = vmatprep.subr.bf16.mxu0 %v604_v52  ;;  %v711_v0 = vand.u32 %v703_v59, %v8981_v29  ;;  %v807_v1 = vpop.permute.xlu1 %806 }
  0xa2   : > { %2908 = vrot.lane.b32.xlu1 %v8955_v22, %s8764_s10  ;;  %v821_v25 = vand.u32 %v807_v1, %v8981_v29 }
  0xa3   : > { %v805_v61 = vpop.permute.xlu0 %804 }
  0xa4   : > { %v810_v10 = vsel %vm808_vm8, %v805_v61, %v807_v1 }
  0xa5   : > { %3009 = vrot.lane.b32.xlu0 %v8955_v22, %s8765_s11  ;;  %8273 = vmatmul.mubr.msk.bf16.vlgmr.msra.gmra.mrb[8].mxu1 %vm288_vm5, %v9053_v58  ;;  %v912_v18 = vpop.permute.xlu1 %911  ;;  %v818_v20 = vand.u32 %v810_v10, %v8981_v29 }
  0xa6   : > { %8277 = vmatpush3.bf16.msra.mxu1 %v607_v57  ;;  %8278 = vmatprep.mubr.msk.bf16.mxu1 %vm8756_vm0, %v10948_v5 }
  0xa7   : > { %7955 = vmatmul.mubr.msk.bf16.vlgmr.msra.gmra.mrb[8].mxu0 %vm288_vm5, %v9053_v58  ;;  %8282 = vmatprep.subr.bf16.mxu1 %v10948_v5  ;;  %v803_v2 = vpop.permute.xlu0 %802 }
  0xa8   : > { %610 = vmatpush1.bf16.msra.mxu0 %v601_v62  ;;  %641 = vmatprep.mubr.bf16.mxu0 %v10950_v12  ;;  %v809_v24 = vsel %vm808_vm8, %v803_v2, %v805_v61  ;;  %v8032_v2 = vld [vmem:[%s8822_s27 + $0x18] sm:$0x3f] }
  0xa9   : > { %3141 = vrot.lane.b32.xlu0 %v9065_v63, %s8757_s28  ;;  %716 = vmatprep.subr.bf16.mxu0 %v711_v0  ;;  %v910_v28 = vpop.permute.xlu1 %909  ;;  %v815_v31 = vand.u32 %v809_v24, %v8981_v29  ;;  %v9207_v7 = vrot.slane %v8032_v2, %v8817_v6  ;;  %v1385_v24 = vand.u32 %v8893_v16, %v8981_v29 }
  0xaa   : > { %3007 = vrot.lane.b32.xlu1 %v8952_v21, %s8765_s11  ;;  %v916_v36 = vsel %vm915_vm9, %v910_v28, %v912_v18  ;;  %v1388_v28 = vand.u32 %v8896_v17, %v8981_v29 }
  0xab   : > { %v914_v11 = vpop.permute.xlu0 %913  ;;  %v922_v41 = vand.u32 %v916_v36, %v8981_v29 }
  0xac   : > { %v917_v27 = vsel %vm915_vm9, %v912_v18, %v914_v11  ;;  %v928_v37 = vand.u32 %v914_v11, %v8981_v29  ;;  %v9216_v11 = vld [vmem:[%s10942_s1 + $0x20] sm:$0xf] }
  0xad   : > { %3139 = vrot.lane.b32.xlu0 %v9044_v55, %s8757_s28  ;;  %8279 = vmatmul.mubr.msk.bf16.vlgmr.msra.gmra.mrb[12].mxu1 %vm288_vm5, %v9081_v9  ;;  %v925_v32 = vand.u32 %v917_v27, %v8981_v29  ;;  %v1021_v33 = vpop.permute.xlu1 %1020  ;;  %v4051_v27 = vcombine.high %v8032_v2, %v8032_v2 }
  0xae   : > { %8283 = vmatpush3.bf16.msra.mxu1 %v714_v8  ;;  %8284 = vmatprep.mubr.msk.bf16.mxu1 %vm8756_vm0, %v10948_v5  ;;  %v1035_v46 = vand.u32 %v1021_v33, %v8981_v29 }
  0xaf   : > { %7958 = vmatmul.mubr.msk.bf16.vlgmr.msra.gmra.mrb[12].mxu0 %vm288_vm5, %v9081_v9  ;;  %8288 = vmatprep.subr.bf16.mxu1 %v10948_v5  ;;  %v1019_v23 = vpop.permute.xlu0 %1018 }
  0xb0   : > { %717 = vmatpush1.bf16.msra.mxu0 %v708_v13  ;;  %748 = vmatprep.mubr.bf16.mxu0 %v10950_v12  ;;  %v1024_v39 = vsel %vm1022_vm10, %v1019_v23, %v1021_v33  ;;  %v9258_v33 = vrot.slane %v4051_v27, %v8817_v6 }
  0xb1   : > { %3331 = vrot.lane.b32.xlu0 %v9092_v15, %s8759_s29  ;;  %823 = vmatprep.subr.bf16.mxu0 %v818_v20  ;;  %v1126_v42 = vpop.permute.xlu1 %1125  ;;  %v1032_v43 = vand.u32 %v1024_v39, %v8981_v29  ;;  %v9229_v20 = vcombine.high %v9207_v7, %v9207_v7 }
  0xb2   : > { %3005 = vrot.lane.b32.xlu1 %v8942_v19, %s8765_s11 }
  0xb3   : > { %v1017_v30 = vpop.permute.xlu0 %1016 }
  0xb4   : > { %v1023_v45 = vsel %vm1022_vm10, %v1017_v30, %v1019_v23 }
  0xb5   : > { %3430 = vrot.lane.b32.xlu0 %v9065_v63, %s8760_s30  ;;  %8285 = vmatmul.mubr.msk.bf16.vlgmr.msra.gmra.mrb[16].mxu1 %vm288_vm5, %v9108_v26  ;;  %v1124_v50 = vpop.permute.xlu1 %1123  ;;  %v1029_v52 = vand.u32 %v1023_v45, %v8981_v29 }
  0xb6   : > { %8289 = vmatpush3.bf16.msra.mxu1 %v821_v25  ;;  %8290 = vmatprep.mubr.msk.bf16.mxu1 %vm8756_vm0, %v10948_v5  ;;  %v1130_v57 = vsel %vm1129_vm11, %v1124_v50, %v1126_v42 }
  0xb7   : > { %7961 = vmatmul.mubr.msk.bf16.vlgmr.msra.gmra.mrb[16].mxu0 %vm288_vm5, %v9108_v26  ;;  %8294 = vmatprep.subr.bf16.mxu1 %v10948_v5  ;;  %v1128_v34 = vpop.permute.xlu0 %1127  ;;  %v1136_v0 = vand.u32 %v1130_v57, %v8981_v29 }
  0xb8   : > { %824 = vmatpush1.bf16.msra.mxu0 %v815_v31  ;;  %855 = vmatprep.mubr.bf16.mxu0 %v10950_v12  ;;  %v1131_v48 = vsel %vm1129_vm11, %v1126_v42, %v1128_v34  ;;  %v1142_v59 = vand.u32 %v1128_v34, %v8981_v29 }
  0xb9   : > { %3428 = vrot.lane.b32.xlu0 %v9044_v55, %s8760_s30  ;;  %930 = vmatprep.subr.bf16.mxu0 %v925_v32  ;;  %v1139_v53 = vand.u32 %v1131_v48, %v8981_v29  ;;  %v1288_v54 = vpop.permute.xlu1 %1287  ;;  %v1382_v32 = vand.u32 %v8883_v14, %v8981_v29 }
  0xba   : > { %3143 = vrot.lane.b32.xlu1 %v9092_v15, %s8757_s28  ;;  %v1298_v10 = vand.u32 %v1288_v54, %v8981_v29 }
  0xbb   : > { %v1286_v40 = vpop.permute.xlu0 %1285 }
  0xbc   : > { %v1290_v61 = vsel %vm285_vm3, %v1286_v40, %v1288_v54 }
  0xbd   : > { %3533 = vrot.lane.b32.xlu0 %v9092_v15, %s8761_s7  ;;  %8291 = vmatmul.mubr.msk.bf16.vlgmr.msra.gmra.mrb[20].mxu1 %vm288_vm5, %v9132_v38  ;;  %v1295_v1 = vand.u32 %v1290_v61, %v8981_v29  ;;  %v1474_v23 = vpop.permute.xlu1 %1473 }
  0xbe   : > { %8295 = vmatpush3.bf16.msra.mxu1 %v928_v37  ;;  %8296 = vmatprep.mubr.msk.bf16.mxu1 %vm8756_vm0, %v10948_v5 }
  0xbf   : > { %7964 = vmatmul.mubr.msk.bf16.vlgmr.msra.gmra.mrb[20].mxu0 %vm288_vm5, %v9132_v38  ;;  %8300 = vmatprep.subr.bf16.mxu1 %v10948_v5  ;;  %v1284_v44 = vpop.permute.xlu0 %1283 }
  0xc0   : > { %931 = vmatpush1.bf16.msra.mxu0 %v922_v41  ;;  %962 = vmatprep.mubr.bf16.mxu0 %v10950_v12  ;;  %v1289_v8 = vsel %vm285_vm3, %v1284_v44, %v1286_v40 }
  0xc1   : > { %3632 = vrot.lane.b32.xlu0 %v9065_v63, %s8762_s8  ;;  %1037 = vmatprep.subr.bf16.mxu0 %v1032_v43  ;;  %v1292_v18 = vand.u32 %v1289_v8, %v8981_v29  ;;  %v1472_v30 = vpop.permute.xlu1 %1471 }
  0xc2   : > { %3329 = vrot.lane.b32.xlu1 %v9065_v63, %s8759_s29  ;;  %v1477_v36 = vsel %vm487_vm4, %v1472_v30, %v1474_v23 }
  0xc3   : > { %v9161_v51 = vpop.permute.xlu0 %1475  ;;  %v1480_v41 = vand.u32 %v1477_v36, %v8981_v29 }
  0xc4   : > { %v1478_v16 = vsel %vm487_vm4, %v1474_v23, %v9161_v51  ;;  %v1486_v37 = vand.u32 %v9161_v51, %v8981_v29 }
  0xc5   : > { %3630 = vrot.lane.b32.xlu0 %v9044_v55, %s8762_s8  ;;  %8297 = vmatmul.mubr.msk.bf16.vlgmr.msra.gmra.mrb[24].mxu1 %vm288_vm5, %v9157_v49  ;;  %v1483_v17 = vand.u32 %v1478_v16, %v8981_v29  ;;  %v1577_v14 = vpop.permute.xlu1 %1576 }
  0xc6   : > { %8301 = vmatpush3.bf16.msra.mxu1 %v1035_v46  ;;  %8302 = vmatprep.mubr.msk.bf16.mxu1 %vm8756_vm0, %v10948_v5  ;;  %v1587_v46 = vand.u32 %v1577_v14, %v8981_v29 }
  0xc7   : > { %7967 = vmatmul.mubr.msk.bf16.vlgmr.msra.gmra.mrb[24].mxu0 %vm288_vm5, %v9157_v49  ;;  %8306 = vmatprep.subr.bf16.mxu1 %v10948_v5  ;;  %v9174_v56 = vpop.permute.xlu0 %1574 }
  0xc8   : > { %1038 = vmatpush1.bf16.msra.mxu0 %v1029_v52  ;;  %1069 = vmatprep.mubr.bf16.mxu0 %v10950_v12  ;;  %v1579_v39 = vsel %vm594_vm6, %v9174_v56, %v1577_v14 }
  0xc9   : > { %3735 = vrot.lane.b32.xlu0 %v9092_v15, %s8763_s9  ;;  %1144 = vmatprep.subr.bf16.mxu0 %v1139_v53  ;;  %v1676_v42 = vpop.permute.xlu1 %1675  ;;  %v1584_v43 = vand.u32 %v1579_v39, %v8981_v29 }
  0xca   : > { %3327 = vrot.lane.b32.xlu1 %v9044_v55, %s8759_s29 }
  0xcb   : > { %v9189_v62 = vpop.permute.xlu0 %1572 }
  0xcc   : > { %v1578_v45 = vsel %vm594_vm6, %v9189_v62, %v9174_v56 }
  0xcd   : > { %3834 = vrot.lane.b32.xlu0 %v9065_v63, %s8764_s10  ;;  %8303 = vmatmul.mubr.msk.bf16.vlgmr.msra.gmra.mrb[28].mxu1 %vm288_vm5, %v9184_v60  ;;  %v1674_v50 = vpop.permute.xlu1 %1673  ;;  %v1581_v52 = vand.u32 %v1578_v45, %v8981_v29 }
  0xce   : > { %8307 = vmatpush3.bf16.msra.mxu1 %v1142_v59  ;;  %8308 = vmatprep.mubr.msk.bf16.mxu1 %vm8756_vm0, %v10948_v5  ;;  %v1679_v57 = vsel %vm701_vm7, %v1674_v50, %v1676_v42 }
  0xcf   : > { %7970 = vmatmul.mubr.msk.bf16.vlgmr.msra.gmra.mrb[28].mxu0 %vm288_vm5, %v9184_v60  ;;  %8312 = vmatprep.subr.bf16.mxu1 %v10948_v5  ;;  %v9203_v4 = vpop.permute.xlu0 %1677 }
  0xd0   : > { %1145 = vmatpush1.bf16.msra.mxu0 %v1136_v0  ;;  %1176 = vmatprep.mubr.bf16.mxu0 %v10950_v12  ;;  %v1680_v48 = vsel %vm701_vm7, %v1676_v42, %v9203_v4  ;;  %v1688_v59 = vand.u32 %v9203_v4, %v8981_v29  ;;  %v1682_v0 = vand.u32 %v1679_v57, %v8981_v29 }
  0xd1   : > { %3832 = vrot.lane.b32.xlu0 %v9044_v55, %s8764_s10  ;;  %1300 = vmatprep.subr.bf16.mxu0 %v1295_v1  ;;  %v1685_v53 = vand.u32 %v1680_v48, %v8981_v29  ;;  %v1779_v54 = vpop.permute.xlu1 %1778 }
  0xd2   : > { %3432 = vrot.lane.b32.xlu1 %v9092_v15, %s8760_s30 }
  0xd3   : > { %v9220_v13 = vpop.permute.xlu0 %1776 }
  0xd4   : > { %v1781_v61 = vsel %vm808_vm8, %v9220_v13, %v1779_v54 }
  0xd5   : > { %3937 = vrot.lane.b32.xlu0 %v9092_v15, %s8765_s11  ;;  %8309 = vmatmul.mubr.msk.bf16.vlgmr.msra.gmra.mrb[32].mxu1 %vm288_vm5, %v9216_v11  ;;  %v1878_v1 = vpop.permute.xlu1 %1877  ;;  %v1786_v2 = vand.u32 %v1781_v61, %v8981_v29 }
  0xd6   : > { %8313 = vmatpush3.bf16.msra.mxu1 %v1298_v10  ;;  %8314 = vmatprep.mubr.msk.bf16.mxu1 %vm8756_vm0, %v10948_v5  ;;  %v1789_v10 = vand.u32 %v1779_v54, %v8981_v29 }
  0xd7   : > { %7973 = vmatmul.mubr.msk.bf16.vlgmr.msra.gmra.mrb[32].mxu0 %vm288_vm5, %v9216_v11  ;;  %8318 = vmatprep.subr.bf16.mxu1 %v10948_v5  ;;  %v9238_v25 = vpop.permute.xlu0 %1774 }
  0xd8   : > { %1301 = vmatpush1.bf16.msra.mxu0 %v1292_v18  ;;  %1332 = vmatprep.mubr.bf16.mxu0 %v10950_v12  ;;  %v1780_v8 = vsel %vm808_vm8, %v9238_v25, %v9220_v13  ;;  %v8051_v25 = vld [vmem:[%s8822_s27 + $0x1e] sm:$0x3f] }
  0xd9   : > { %4069 = vrot.lane.b32.xlu0 %v9229_v20, %s8757_s28  ;;  %1390 = vmatprep.subr.bf16.mxu0 %v1385_v24  ;;  %v1876_v23 = vpop.permute.xlu1 %1875  ;;  %v1783_v27 = vand.u32 %v1780_v8, %v8981_v29  ;;  %v9373_v30 = vrot.slane %v8051_v25, %v8817_v6  ;;  %v4979_v45 = vcombine.high %v8051_v25, %v8051_v25 }
  0xda   : > { %3531 = vrot.lane.b32.xlu1 %v9065_v63, %s8761_s7  ;;  %v2316_v25 = vand.u32 %v8955_v22, %v8981_v29 }
  0xdb   : > { %v9249_v31 = vpop.permute.xlu0 %1879  ;;  %v9393_v39 = vcombine.high %v9373_v30, %v9373_v30 }
  0xdc   : > { %v1882_v18 = vsel %vm915_vm9, %v1878_v1, %v9249_v31 }
  0xdd   : > { %4067 = vrot.lane.b32.xlu0 %v9207_v7, %s8757_s28  ;;  %8315 = vmatmul.mubr.msk.bf16.vlgmr.msra.gmra.mrb[36].mxu1 %vm288_vm5, %v8995_v35  ;;  %v1887_v13 = vand.u32 %v1882_v18, %v8981_v29  ;;  %v1981_v16 = vpop.permute.xlu1 %1980 }
  0xde   : > { %8319 = vmatpush3.bf16.msra.mxu1 %v1388_v28  ;;  %8320 = vmatprep.mubr.msk.bf16.mxu1 %vm8756_vm0, %v10948_v5 }
  0xdf   : > { %7976 = vmatmul.mubr.msk.bf16.vlgmr.msra.gmra.mrb[36].mxu0 %vm288_vm5, %v8995_v35  ;;  %8324 = vmatprep.subr.bf16.mxu1 %v10948_v5  ;;  %v9266_v34 = vpop.permute.xlu0 %1978 }
  0xe0   : > { %1391 = vmatpush1.bf16.msra.mxu0 %v1382_v32  ;;  %1422 = vmatprep.mubr.bf16.mxu0 %v10950_v12  ;;  %v1881_v32 = vsel %vm915_vm9, %v1876_v23, %v1878_v1  ;;  %v1983_v14 = vsel %vm1022_vm10, %v9266_v34, %v1981_v16 }
  0xe1   : > { %4259 = vrot.lane.b32.xlu0 %v9258_v33, %s8759_s29  ;;  %1488 = vmatprep.subr.bf16.mxu0 %v1483_v17  ;;  %v1890_v17 = vand.u32 %v9249_v31, %v8981_v29  ;;  %v2080_v31 = vpop.permute.xlu1 %2079 }
  0xe2   : > { %3529 = vrot.lane.b32.xlu1 %v9044_v55, %s8761_s7 }
  0xe3   : > { %v9278_v40 = vpop.permute.xlu0 %1976 }
  0xe5   : > { %4358 = vrot.lane.b32.xlu0 %v9229_v20, %s8760_s30  ;;  %8321 = vmatmul.mubr.msk.bf16.vlgmr.msra.gmra.mrb[40].mxu1 %vm288_vm5, %v9024_v47  ;;  %v2078_v50 = vpop.permute.xlu1 %2077 }
  0xe6   : > { %8325 = vmatpush3.bf16.msra.mxu1 %v1486_v37  ;;  %8326 = vmatprep.mubr.msk.bf16.mxu1 %vm8756_vm0, %v10948_v5  ;;  %v1884_v37 = vand.u32 %v1881_v32, %v8981_v29 }
  0xe7   : > { %7978 = vmatmul.mubr.msk.bf16.vlgmr.msra.gmra.mrb[40].mxu0 %vm288_vm5, %v9024_v47  ;;  %8330 = vmatprep.subr.bf16.mxu1 %v10948_v5  ;;  %v9291_v44 = vpop.permute.xlu0 %2081 }
  0xe8   : > { %1489 = vmatpush1.bf16.msra.mxu0 %v1480_v41  ;;  %1520 = vmatprep.mubr.bf16.mxu0 %v10950_v12  ;;  %v1988_v41 = vand.u32 %v1983_v14, %v8981_v29  ;;  %v2084_v48 = vsel %vm1129_vm11, %v2080_v31, %v9291_v44  ;;  %v2092_v61 = vand.u32 %v9291_v44, %v8981_v29 }
  0xe9   : > { %4356 = vrot.lane.b32.xlu0 %v9207_v7, %s8760_s30  ;;  %1589 = vmatprep.subr.bf16.mxu0 %v1584_v43  ;;  %v1982_v43 = vsel %vm1022_vm10, %v9278_v40, %v9266_v34  ;;  %v9422_v34 = vrot.slane %v4979_v45, %v8817_v6  ;;  %v2089_v40 = vand.u32 %v2084_v48, %v8981_v29  ;;  %v2216_v54 = vpop.permute.xlu1 %2215 }
  0xea   : > { %3634 = vrot.lane.b32.xlu1 %v9092_v15, %s8762_s8  ;;  %v2226_v18 = vand.u32 %v2216_v54, %v8981_v29 }
  0xeb   : > { %v9304_v51 = vpop.permute.xlu0 %2213 }
  0xed   : > { %4461 = vrot.lane.b32.xlu0 %v9258_v33, %s8761_s7  ;;  %8327 = vmatmul.mubr.msk.bf16.vlgmr.msra.gmra.mrb[44].mxu1 %vm288_vm5, %v9053_v58 }
  0xee   : > { %8331 = vmatpush3.bf16.msra.mxu1 %v1587_v46  ;;  %8332 = vmatprep.mubr.msk.bf16.mxu1 %vm8756_vm0, %v10948_v5  ;;  %v1991_v46 = vand.u32 %v1981_v16, %v8981_v29 }
  0xef   : > { %7980 = vmatmul.mubr.msk.bf16.vlgmr.msra.gmra.mrb[44].mxu0 %vm288_vm5, %v9053_v58  ;;  %8336 = vmatprep.subr.bf16.mxu1 %v10948_v5  ;;  %v9317_v56 = vpop.permute.xlu0 %2211 }
  0xf0   : > { %1590 = vmatpush1.bf16.msra.mxu0 %v1581_v52  ;;  %1621 = vmatprep.mubr.bf16.mxu0 %v10950_v12 }
  0xf1   : > { %4560 = vrot.lane.b32.xlu0 %v9229_v20, %s8762_s8  ;;  %1690 = vmatprep.subr.bf16.mxu0 %v1685_v53  ;;  %v1985_v53 = vand.u32 %v1982_v43, %v8981_v29 }
  0xf2   : > { %3733 = vrot.lane.b32.xlu1 %v9065_v63, %s8763_s9 }
  0xf3   : > { %v9329_v62 = vpop.permute.xlu0 %2403 }
  0xf5   : > { %4558 = vrot.lane.b32.xlu0 %v9207_v7, %s8762_s8  ;;  %8333 = vmatmul.mubr.msk.bf16.vlgmr.msra.gmra.mrb[48].mxu1 %vm288_vm5, %v9081_v9 }
  0xf6   : > { %8337 = vmatpush3.bf16.msra.mxu1 %v1688_v59  ;;  %8338 = vmatprep.mubr.msk.bf16.mxu1 %vm8756_vm0, %v10948_v5  ;;  %v2083_v59 = vsel %vm1129_vm11, %v2078_v50, %v2080_v31  ;;  %v2414_v31 = vand.u32 %v9329_v62, %v8981_v29 }
  0xf7   : > { %7982 = vmatmul.mubr.msk.bf16.vlgmr.msra.gmra.mrb[48].mxu0 %vm288_vm5, %v9081_v9  ;;  %8342 = vmatprep.subr.bf16.mxu1 %v10948_v5  ;;  %v9342_v4 = vpop.permute.xlu0 %2502 }
  0xf8   : > { %1691 = vmatpush1.bf16.msra.mxu0 %v1682_v0  ;;  %1722 = vmatprep.mubr.bf16.mxu0 %v10950_v12  ;;  %v2218_v0 = vsel %vm285_vm3, %v9304_v51, %v2216_v54 }
  0xf9   : > { %4663 = vrot.lane.b32.xlu0 %v9258_v33, %s8763_s9  ;;  %1791 = vmatprep.subr.bf16.mxu0 %v1786_v2  ;;  %v2086_v2 = vand.u32 %v2083_v59, %v8981_v29  ;;  %v2223_v8 = vand.u32 %v2218_v0, %v8981_v29 }
  0xfa   : > { %3731 = vrot.lane.b32.xlu1 %v9044_v55, %s8763_s9 }
  0xfb   : > { %v9355_v24 = vpop.permute.xlu0 %2500 }
  0xfd   : > { %4762 = vrot.lane.b32.xlu0 %v9229_v20, %s8764_s10  ;;  %8339 = vmatmul.mubr.msk.bf16.vlgmr.msra.gmra.mrb[52].mxu1 %vm288_vm5, %v9108_v26 }
  0xfe   : > { %8343 = vmatpush3.bf16.msra.mxu1 %v1789_v10  ;;  %8344 = vmatprep.mubr.msk.bf16.mxu1 %vm8756_vm0, %v10948_v5  ;;  %v2217_v10 = vsel %vm285_vm3, %v9317_v56, %v9304_v51  ;;  %v2402_v51 = vpop.permute.xlu1 %2401  ;;  %v2313_v56 = vand.u32 %v8952_v21, %v8981_v29 }
  0xff   : > { %7984 = vmatmul.mubr.msk.bf16.vlgmr.msra.gmra.mrb[52].mxu0 %vm288_vm5, %v9108_v26  ;;  %8348 = vmatprep.subr.bf16.mxu1 %v10948_v5  ;;  %v9369_v28 = vpop.permute.xlu0 %2605  ;;  %v2406_v21 = vsel %vm487_vm4, %v2402_v51, %v9329_v62  ;;  %v8070_v62 = vld [vmem:[%s8822_s27 + $0x24] sm:$0x3f] }
 0x100   : > { %1792 = vmatpush1.bf16.msra.mxu0 %v1783_v27  ;;  %1823 = vmatprep.mubr.bf16.mxu0 %v10950_v12  ;;  %v2220_v27 = vand.u32 %v2217_v10, %v8981_v29  ;;  %v2411_v14 = vand.u32 %v2406_v21, %v8981_v29  ;;  %v9535_v50 = vrot.slane %v8070_v62, %v8817_v6 }
 0x101   : > { %4760 = vrot.lane.b32.xlu0 %v9207_v7, %s8764_s10  ;;  %1892 = vmatprep.subr.bf16.mxu0 %v1887_v13  ;;  %v5907_v10 = vcombine.high %v8070_v62, %v8070_v62 }
 0x102   : > { %3836 = vrot.lane.b32.xlu1 %v9092_v15, %s8764_s10  ;;  %v2400_v16 = vpop.permute.xlu1 %2399 }
 0x103   : > { %v9384_v36 = vpop.permute.xlu0 %2704 }
 0x105   : > { %4865 = vrot.lane.b32.xlu0 %v9258_v33, %s8765_s11  ;;  %8345 = vmatmul.mubr.msk.bf16.vlgmr.msra.gmra.mrb[56].mxu1 %vm288_vm5, %v9132_v38 }
 0x106   : > { %8349 = vmatpush3.bf16.msra.mxu1 %v1890_v17  ;;  %8350 = vmatprep.mubr.msk.bf16.mxu1 %vm8756_vm0, %v10948_v5  ;;  %v2310_v17 = vand.u32 %v8942_v19, %v8981_v29  ;;  %v2505_v22 = vpop.permute.xlu1 %2504 }
 0x107   : > { %7986 = vmatmul.mubr.msk.bf16.vlgmr.msra.gmra.mrb[56].mxu0 %vm288_vm5, %v9132_v38  ;;  %8354 = vmatprep.subr.bf16.mxu1 %v10948_v5  ;;  %v9401_v42 = vpop.permute.xlu0 %2702 }
 0x108   : > { %1893 = vmatpush1.bf16.msra.mxu0 %v1884_v37  ;;  %1924 = vmatprep.mubr.bf16.mxu0 %v10950_v12  ;;  %v2405_v37 = vsel %vm487_vm4, %v2400_v16, %v2402_v51  ;;  %v2708_v16 = vsel %vm808_vm8, %v9401_v42, %v9384_v36 }
 0x109   : > { %4997 = vrot.lane.b32.xlu0 %v9393_v39, %s8757_s28  ;;  %1993 = vmatprep.subr.bf16.mxu0 %v1988_v41  ;;  %v2408_v43 = vand.u32 %v2405_v37, %v8981_v29  ;;  %v2711_v37 = vand.u32 %v2708_v16, %v8981_v29 }
 0x10a   : > { %3935 = vrot.lane.b32.xlu1 %v9065_v63, %s8765_s11  ;;  %v2604_v45 = vpop.permute.xlu1 %2603 }
 0x10b   : > { %v9414_v52 = vpop.permute.xlu0 %2807 }
 0x10d   : > { %4995 = vrot.lane.b32.xlu0 %v9373_v30, %s8757_s28  ;;  %8351 = vmatmul.mubr.msk.bf16.vlgmr.msra.gmra.mrb[60].mxu1 %vm288_vm5, %v9157_v49 }
 0x10e   : > { %8355 = vmatpush3.bf16.msra.mxu1 %v1991_v46  ;;  %8356 = vmatprep.mubr.msk.bf16.mxu1 %vm8756_vm0, %v10948_v5  ;;  %v2602_v54 = vpop.permute.xlu1 %2601 }
 0x10f   : > { %7988 = vmatmul.mubr.msk.bf16.vlgmr.msra.gmra.mrb[60].mxu0 %vm288_vm5, %v9157_v49  ;;  %8360 = vmatprep.subr.bf16.mxu1 %v10948_v5  ;;  %v9430_v57 = vpop.permute.xlu0 %2906 }
 0x110   : > { %1994 = vmatpush1.bf16.msra.mxu0 %v1985_v53  ;;  %2025 = vmatprep.mubr.bf16.mxu0 %v10950_v12  ;;  %v2506_v53 = vsel %vm594_vm6, %v9355_v24, %v9342_v4 }
 0x111   : > { %5187 = vrot.lane.b32.xlu0 %v9422_v34, %s8759_s29  ;;  %2094 = vmatprep.subr.bf16.mxu0 %v2089_v40  ;;  %v2608_v40 = vsel %vm701_vm7, %v2604_v45, %v9369_v28 }
 0x112   : > { %3933 = vrot.lane.b32.xlu1 %v9044_v55, %s8765_s11  ;;  %v2613_v24 = vand.u32 %v2608_v40, %v8981_v29  ;;  %v2707_v0 = vpop.permute.xlu1 %2706 }
 0x113   : > { %v9442_v1 = vpop.permute.xlu0 %2904 }
 0x115   : > { %5286 = vrot.lane.b32.xlu0 %v9393_v39, %s8760_s30  ;;  %8357 = vmatmul.mubr.msk.bf16.vlgmr.msra.gmra.mrb[64].mxu1 %vm288_vm5, %v9184_v60 }
 0x116   : > { %8361 = vmatpush3.bf16.msra.mxu1 %v2092_v61  ;;  %8362 = vmatprep.mubr.msk.bf16.mxu1 %vm8756_vm0, %v10948_v5  ;;  %v2509_v61 = vand.u32 %v2506_v53, %v8981_v29 }
 0x117   : > { %7990 = vmatmul.mubr.msk.bf16.vlgmr.msra.gmra.mrb[64].mxu0 %vm288_vm5, %v9184_v60  ;;  %8366 = vmatprep.subr.bf16.mxu1 %v10948_v5  ;;  %v9455_v44 = vpop.permute.xlu0 %3009 }
 0x118   : > { %2095 = vmatpush1.bf16.msra.mxu0 %v2086_v2  ;;  %2126 = vmatprep.mubr.bf16.mxu0 %v10950_v12 }
 0x119   : > { %5284 = vrot.lane.b32.xlu0 %v9373_v30, %s8760_s30  ;;  %2228 = vmatprep.subr.bf16.mxu0 %v2223_v8  ;;  %v2607_v8 = vsel %vm701_vm7, %v2602_v54, %v2604_v45 }
 0x11a   : > { %4071 = vrot.lane.b32.xlu1 %v9258_v33, %s8757_s28  ;;  %v2610_v51 = vand.u32 %v2607_v8, %v8981_v29 }
 0x11b   : > { %v9466_v23 = vpop.permute.xlu0 %3141 }
 0x11d   : > { %5389 = vrot.lane.b32.xlu0 %v9422_v34, %s8761_s7  ;;  %8363 = vmatmul.mubr.msk.bf16.vlgmr.msra.gmra.mrb[68].mxu1 %vm288_vm5, %v9216_v11 }
 0x11e   : > { %8367 = vmatpush3.bf16.msra.mxu1 %v2226_v18  ;;  %8368 = vmatprep.mubr.msk.bf16.mxu1 %vm8756_vm0, %v10948_v5  ;;  %v2616_v18 = vand.u32 %v9369_v28, %v8981_v29  ;;  %v2806_v28 = vpop.permute.xlu1 %2805 }
 0x11f   : > { %7992 = vmatmul.mubr.msk.bf16.vlgmr.msra.gmra.mrb[68].mxu0 %vm288_vm5, %v9216_v11  ;;  %8372 = vmatprep.subr.bf16.mxu1 %v10948_v5  ;;  %v9480_v13 = vpop.permute.xlu0 %3139 }
 0x120   : > { %2229 = vmatpush1.bf16.msra.mxu0 %v2220_v27  ;;  %2260 = vmatprep.mubr.bf16.mxu0 %v10950_v12 }
 0x121   : > { %5488 = vrot.lane.b32.xlu0 %v9393_v39, %s8762_s8  ;;  %2318 = vmatprep.subr.bf16.mxu0 %v2313_v56  ;;  %v9584_v56 = vrot.slane %v5907_v10, %v8817_v6  ;;  %v3020_v10 = vand.u32 %v9455_v44, %v8981_v29 }
 0x122   : > { %4257 = vrot.lane.b32.xlu1 %v9229_v20, %s8759_s29 }
 0x123   : > { %v9491_v32 = vpop.permute.xlu0 %3331 }
 0x125   : > { %5486 = vrot.lane.b32.xlu0 %v9373_v30, %s8762_s8  ;;  %8369 = vmatmul.mubr.msk.bf16.vlgmr.msra.gmra.mrb[72].mxu1 %vm288_vm5, %v8995_v35 }
 0x126   : > { %8373 = vmatpush3.bf16.msra.mxu1 %v2316_v25  ;;  %8374 = vmatprep.mubr.msk.bf16.mxu1 %vm8756_vm0, %v10948_v5 }
 0x127   : > { %7995 = vmatmul.mubr.msk.bf16.vlgmr.msra.gmra.mrb[72].mxu0 %vm288_vm5, %v8995_v35  ;;  %8378 = vmatprep.subr.bf16.mxu1 %v10948_v5  ;;  %v9505_v19 = vpop.permute.xlu0 %3430  ;;  %v2507_v35 = vsel %vm594_vm6, %v9342_v4, %v2505_v22  ;;  %v9556_v4 = vcombine.high %v9535_v50, %v9535_v50 }
 0x128   : > { %2319 = vmatpush1.bf16.msra.mxu0 %v2310_v17  ;;  %2350 = vmatprep.mubr.bf16.mxu0 %v10950_v12  ;;  %v2512_v46 = vand.u32 %v2507_v35, %v8981_v29  ;;  %v2717_v17 = vand.u32 %v2707_v0, %v8981_v29 }
 0x129   : > { %5591 = vrot.lane.b32.xlu0 %v9422_v34, %s8763_s9  ;;  %2416 = vmatprep.subr.bf16.mxu0 %v2411_v14  ;;  %v2804_v14 = vpop.permute.xlu1 %2803 }
 0x12a   : > { %4255 = vrot.lane.b32.xlu1 %v9207_v7, %s8759_s29  ;;  %v2809_v35 = vsel %vm915_vm9, %v2804_v14, %v2806_v28 }
 0x12b   : > { %v9517_v41 = vpop.permute.xlu0 %3428 }
 0x12d   : > { %5690 = vrot.lane.b32.xlu0 %v9393_v39, %s8764_s10  ;;  %8375 = vmatmul.mubr.msk.bf16.vlgmr.msra.gmra.mrb[76].mxu1 %vm288_vm5, %v9024_v47  ;;  %v2909_v42 = vpop.permute.xlu1 %2908 }
 0x12e   : > { %8379 = vmatpush3.bf16.msra.mxu1 %v2414_v31  ;;  %8380 = vmatprep.mubr.msk.bf16.mxu1 %vm8756_vm0, %v10948_v5  ;;  %v2919_v40 = vand.u32 %v2909_v42, %v8981_v29 }
 0x12f   : > { %7997 = vmatmul.mubr.msk.bf16.vlgmr.msra.gmra.mrb[76].mxu0 %vm288_vm5, %v9024_v47  ;;  %8384 = vmatprep.subr.bf16.mxu1 %v10948_v5  ;;  %v9531_v48 = vpop.permute.xlu0 %3533  ;;  %v2515_v47 = vand.u32 %v2505_v22, %v8981_v29 }
 0x130   : > { %2417 = vmatpush1.bf16.msra.mxu0 %v2408_v43  ;;  %2448 = vmatprep.mubr.bf16.mxu0 %v10950_v12  ;;  %v2818_v43 = vand.u32 %v9414_v52, %v8981_v29 }
 0x131   : > { %5688 = vrot.lane.b32.xlu0 %v9373_v30, %s8764_s10  ;;  %2517 = vmatprep.subr.bf16.mxu0 %v2512_v46  ;;  %v2812_v46 = vand.u32 %v2809_v35, %v8981_v29  ;;  %v3008_v62 = vpop.permute.xlu1 %3007 }
 0x132   : > { %4360 = vrot.lane.b32.xlu1 %v9258_v33, %s8760_s30 }
 0x133   : > { %v9547_v59 = vpop.permute.xlu0 %3632 }
 0x135   : > { %5793 = vrot.lane.b32.xlu0 %v9422_v34, %s8765_s11  ;;  %8381 = vmatmul.mubr.msk.bf16.vlgmr.msra.gmra.mrb[80].mxu1 %vm288_vm5, %v9053_v58  ;;  %v3006_v54 = vpop.permute.xlu1 %3005 }
 0x136   : > { %8385 = vmatpush3.bf16.msra.mxu1 %v2515_v47  ;;  %8386 = vmatprep.mubr.msk.bf16.mxu1 %vm8756_vm0, %v10948_v5  ;;  %v2910_v47 = vsel %vm1022_vm10, %v9442_v1, %v9430_v57  ;;  %v3011_v8 = vsel %vm1129_vm11, %v3006_v54, %v3008_v62 }
 0x137   : > { %7999 = vmatmul.mubr.msk.bf16.vlgmr.msra.gmra.mrb[80].mxu0 %vm288_vm5, %v9053_v58  ;;  %8390 = vmatprep.subr.bf16.mxu1 %v10948_v5  ;;  %v9564_v2 = vpop.permute.xlu0 %3630  ;;  %v2709_v58 = vsel %vm808_vm8, %v9384_v36, %v2707_v0 }
 0x138   : > { %2518 = vmatpush1.bf16.msra.mxu0 %v2509_v61  ;;  %2549 = vmatprep.mubr.bf16.mxu0 %v10950_v12  ;;  %v2714_v21 = vand.u32 %v2709_v58, %v8981_v29  ;;  %v3014_v58 = vand.u32 %v3011_v8, %v8981_v29 }
 0x139   : > { %5925 = vrot.lane.b32.xlu0 %v9556_v4, %s8757_s28  ;;  %2618 = vmatprep.subr.bf16.mxu0 %v2613_v24  ;;  %v2913_v24 = vand.u32 %v2910_v47, %v8981_v29  ;;  %v3144_v1 = vpop.permute.xlu1 %3143 }
 0x13a   : > { %4459 = vrot.lane.b32.xlu1 %v9229_v20, %s8761_s7 }
 0x13b   : > { %v9576_v27 = vpop.permute.xlu0 %3735 }
 0x13d   : > { %5923 = vrot.lane.b32.xlu0 %v9535_v50, %s8757_s28  ;;  %8387 = vmatmul.mubr.msk.bf16.vlgmr.msra.gmra.mrb[84].mxu1 %vm288_vm5, %v9081_v9 }
 0x13e   : > { %8391 = vmatpush3.bf16.msra.mxu1 %v2616_v18  ;;  %8392 = vmatprep.mubr.msk.bf16.mxu1 %vm8756_vm0, %v10948_v5 }
 0x13f   : > { %8001 = vmatmul.mubr.msk.bf16.vlgmr.msra.gmra.mrb[84].mxu0 %vm288_vm5, %v9081_v9  ;;  %8396 = vmatprep.subr.bf16.mxu1 %v10948_v5  ;;  %v9592_v25 = vpop.permute.xlu0 %3834  ;;  %v2810_v9 = vsel %vm915_vm9, %v2806_v28, %v9414_v52  ;;  %v8089_v28 = vld [vmem:[%s8822_s27 + $0x2a] sm:$0x3f] }
 0x140   : > { %2619 = vmatpush1.bf16.msra.mxu0 %v2610_v51  ;;  %2650 = vmatprep.mubr.bf16.mxu0 %v10950_v12  ;;  %v2815_v36 = vand.u32 %v2810_v9, %v8981_v29  ;;  %v9699_v16 = vrot.slane %v8089_v28, %v8817_v6  ;;  %v6835_v35 = vcombine.high %v8089_v28, %v8089_v28 }
 0x141   : > { %6115 = vrot.lane.b32.xlu0 %v9584_v56, %s8759_s29  ;;  %2719 = vmatprep.subr.bf16.mxu0 %v2714_v21 }
 0x142   : > { %4457 = vrot.lane.b32.xlu1 %v9207_v7, %s8761_s7 }
 0x143   : > { %v9605_v22 = vpop.permute.xlu0 %3832 }
 0x145   : > { %6214 = vrot.lane.b32.xlu0 %v9556_v4, %s8760_s30  ;;  %8393 = vmatmul.mubr.msk.bf16.vlgmr.msra.gmra.mrb[88].mxu1 %vm288_vm5, %v9108_v26 }
 0x146   : > { %8397 = vmatpush3.bf16.msra.mxu1 %v2717_v17  ;;  %8398 = vmatprep.mubr.msk.bf16.mxu1 %vm8756_vm0, %v10948_v5  ;;  %v3145_v17 = vsel %vm285_vm3, %v9480_v13, %v9466_v23  ;;  %v3241_v13 = vand.u32 %v9065_v63, %v8981_v29 }
 0x147   : > { %8003 = vmatmul.mubr.msk.bf16.vlgmr.msra.gmra.mrb[88].mxu0 %vm288_vm5, %v9108_v26  ;;  %8402 = vmatprep.subr.bf16.mxu1 %v10948_v5  ;;  %v9618_v31 = vpop.permute.xlu0 %3937  ;;  %v2911_v26 = vsel %vm1022_vm10, %v9430_v57, %v2909_v42  ;;  %v3148_v14 = vand.u32 %v3145_v17, %v8981_v29 }
 0x148   : > { %2720 = vmatpush1.bf16.msra.mxu0 %v2711_v37  ;;  %2751 = vmatprep.mubr.bf16.mxu0 %v10950_v12  ;;  %v2916_v53 = vand.u32 %v2911_v26, %v8981_v29 }
 0x149   : > { %6212 = vrot.lane.b32.xlu0 %v9535_v50, %s8760_s30  ;;  %2820 = vmatprep.subr.bf16.mxu0 %v2815_v36 }
 0x14a   : > { %4562 = vrot.lane.b32.xlu1 %v9258_v33, %s8762_s8 }
 0x14b   : > { %v9630_v45 = vpop.permute.xlu0 %4069 }
 0x14d   : > { %6317 = vrot.lane.b32.xlu0 %v9584_v56, %s8761_s7  ;;  %8399 = vmatmul.mubr.msk.bf16.vlgmr.msra.gmra.mrb[92].mxu1 %vm288_vm5, %v9132_v38 }
 0x14e   : > { %8403 = vmatpush3.bf16.msra.mxu1 %v2818_v43  ;;  %8404 = vmatprep.mubr.msk.bf16.mxu1 %vm8756_vm0, %v10948_v5 }
 0x14f   : > { %8005 = vmatmul.mubr.msk.bf16.vlgmr.msra.gmra.mrb[92].mxu0 %vm288_vm5, %v9132_v38  ;;  %8408 = vmatprep.subr.bf16.mxu1 %v10948_v5  ;;  %v9643_v52 = vpop.permute.xlu0 %4067  ;;  %v3012_v38 = vsel %vm1129_vm11, %v3008_v62, %v9455_v44  ;;  %v3330_v44 = vpop.permute.xlu1 %3329  ;;  %v3244_v62 = vand.u32 %v9092_v15, %v8981_v29  ;;  %v9756_v15 = vrot.slane %v6835_v35, %v8817_v6 }
 0x150   : > { %2821 = vmatpush1.bf16.msra.mxu0 %v2812_v46  ;;  %2852 = vmatprep.mubr.bf16.mxu0 %v10950_v12  ;;  %v3017_v57 = vand.u32 %v3012_v38, %v8981_v29  ;;  %v3238_v38 = vand.u32 %v9044_v55, %v8981_v29 }
 0x151   : > { %6416 = vrot.lane.b32.xlu0 %v9556_v4, %s8762_s8  ;;  %2921 = vmatprep.subr.bf16.mxu0 %v2916_v53 }
 0x152   : > { %4661 = vrot.lane.b32.xlu1 %v9229_v20, %s8763_s9 }
 0x153   : > { %v9656_v61 = vpop.permute.xlu0 %4259  ;;  %v3328_v37 = vpop.permute.xlu1 %3327 }
 0x155   : > { %6414 = vrot.lane.b32.xlu0 %v9535_v50, %s8762_s8  ;;  %8405 = vmatmul.mubr.msk.bf16.vlgmr.msra.gmra.mrb[96].mxu1 %vm288_vm5, %v9157_v49 }
 0x156   : > { %8409 = vmatpush3.bf16.msra.mxu1 %v2919_v40  ;;  %8410 = vmatprep.mubr.msk.bf16.mxu1 %vm8756_vm0, %v10948_v5 }
 0x157   : > { %8007 = vmatmul.mubr.msk.bf16.vlgmr.msra.gmra.mrb[96].mxu0 %vm288_vm5, %v9157_v49  ;;  %8414 = vmatprep.subr.bf16.mxu1 %v10948_v5  ;;  %v9669_v0 = vpop.permute.xlu0 %4358  ;;  %v3146_v49 = vsel %vm285_vm3, %v9466_v23, %v3144_v1  ;;  %v9718_v23 = vcombine.high %v9699_v16, %v9699_v16  ;;  %v9733_v43 = vpop.permute.xlu1 %3432 }
 0x158   : > { %2922 = vmatpush1.bf16.msra.mxu0 %v2913_v24  ;;  %2953 = vmatprep.mubr.bf16.mxu0 %v10950_v12  ;;  %v3151_v51 = vand.u32 %v3146_v49, %v8981_v29 }
 0x159   : > { %6519 = vrot.lane.b32.xlu0 %v9584_v56, %s8763_s9  ;;  %3022 = vmatprep.subr.bf16.mxu0 %v3017_v57  ;;  %v9751_v57 = vld [vmem:[%s10942_s1 + $0x4] sm:$0xf] }
 0x15a   : > { %4659 = vrot.lane.b32.xlu1 %v9207_v7, %s8763_s9 }
 0x15b   : > { %v9681_v18 = vpop.permute.xlu0 %4356  ;;  %v9765_v55 = vpop.permute.xlu1 %3531 }
 0x15d   : > { %6618 = vrot.lane.b32.xlu0 %v9556_v4, %s8764_s10  ;;  %8411 = vmatmul.mubr.msk.bf16.vlgmr.msra.gmra.mrb[100].mxu1 %vm288_vm5, %v9184_v60 }
 0x15e   : > { %8415 = vmatpush3.bf16.msra.mxu1 %v3020_v10  ;;  %8416 = vmatprep.mubr.msk.bf16.mxu1 %vm8756_vm0, %v10948_v5  ;;  %v3333_v10 = vsel %vm487_vm4, %v3328_v37, %v3330_v44 }
 0x15f   : > { %8009 = vmatmul.mubr.msk.bf16.vlgmr.msra.gmra.mrb[100].mxu0 %vm288_vm5, %v9184_v60  ;;  %8420 = vmatprep.subr.bf16.mxu1 %v10948_v5  ;;  %v9695_v21 = vpop.permute.xlu0 %4461  ;;  %v3154_v60 = vand.u32 %v3144_v1, %v8981_v29  ;;  %v3336_v37 = vand.u32 %v3333_v10, %v8981_v29  ;;  %v3536_v10 = vsel %vm701_vm7, %v9765_v55, %v9531_v48 }
 0x160   : > { %3023 = vmatpush1.bf16.msra.mxu0 %v3014_v58  ;;  %3054 = vmatprep.mubr.bf16.mxu0 %v10950_v12 }
 0x161   : > { %6616 = vrot.lane.b32.xlu0 %v9535_v50, %s8764_s10  ;;  %3156 = vmatprep.subr.bf16.mxu0 %v3151_v51  ;;  %v3342_v51 = vand.u32 %v9491_v32, %v8981_v29 }
 0x162   : > { %4764 = vrot.lane.b32.xlu1 %v9258_v33, %s8764_s10 }
 0x163   : > { %v9709_v9 = vpop.permute.xlu0 %4560 }
 0x165   : > { %6721 = vrot.lane.b32.xlu0 %v9584_v56, %s8765_s11  ;;  %8417 = vmatmul.mubr.msk.bf16.vlgmr.msra.gmra.mrb[104].mxu1 %vm288_vm5, %v9216_v11 }
 0x166   : > { %8421 = vmatpush3.bf16.msra.mxu1 %v3154_v60  ;;  %4863 = vrot.lane.b32.xlu1 %v9229_v20, %s8765_s11 }
 0x167   : > { %8011 = vmatmul.mubr.msk.bf16.vlgmr.msra.gmra.mrb[104].mxu0 %vm288_vm5, %v9216_v11  ;;  %8422 = vmatprep.mubr.msk.bf16.mxu1 %vm8756_vm0, %v10948_v5  ;;  %v9728_v36 = vpop.permute.xlu0 %4558  ;;  %v3334_v11 = vsel %vm487_vm4, %v3330_v44, %v9491_v32  ;;  %v3435_v44 = vsel %vm594_vm6, %v9505_v19, %v9733_v43 }
 0x168   : > { %3157 = vmatpush1.bf16.msra.mxu0 %v3148_v14  ;;  %v380_v42 = vpop.f32.mrb[0].mxu1  ;;  %3188 = vmatprep.mubr.bf16.mxu0 %v10950_v12  ;;  %v3339_v1 = vand.u32 %v3334_v11, %v8981_v29  ;;  %v9789_v11 = vld [vmem:[%s10942_s1] sm:$0xf] }
 0x169   : > { %6853 = vrot.lane.b32.xlu0 %v9718_v23, %s8757_s28  ;;  %v8262_v63 = vpop.f32.mrb[1].mxu1  ;;  %3246 = vmatprep.subr.bf16.mxu0 %v3241_v13 }
 0x16a   : > { %v339_v26 = vpop.f32.mrb[0].mxu0  ;;  %v383_v46 = vpop.f32.mrb[2].mxu1  ;;  %4861 = vrot.lane.b32.xlu1 %v9207_v7, %s8765_s11  ;;  %8426 = vmatprep.subr.bf16.mxu1 %v10948_v5 }
 0x16b   : > { %v341_v53 = vpop.f32.mrb[1].mxu0  ;;  %v8263_v47 = vpop.f32.mrb[3].mxu1 }
 0x16c   : > { %v343_v40 = vpop.f32.mrb[2].mxu0  ;;  %v9744_v54 = vpop.permute.xlu0 %4663  ;;  %v3434_v47 = vsel %vm594_vm6, %v9517_v41, %v9505_v19 }
 0x16d   : > { %v344_v24 = vpop.f32.mrb[3].mxu0  ;;  %6851 = vrot.lane.b32.xlu0 %v9699_v16, %s8757_s28  ;;  %8423 = vmatmul.mubr.msk.bf16.vlgmr.msra.gmra.mrb[108].mxu1 %vm288_vm5, %v9751_v57  ;;  %v3530_v46 = vpop.permute.xlu1 %3529 }
 0x16e   : > { %8427 = vmatpush3.bf16.msra.mxu1 %v3244_v62  ;;  %4999 = vrot.lane.b32.xlu1 %v9422_v34, %s8757_s28 }
 0x16f   : > { %8014 = vmatmul.mubr.msk.bf16.vlgmr.msra.gmra.mrb[108].mxu0 %vm288_vm5, %v9751_v57  ;;  %8428 = vmatprep.mubr.msk.bf16.mxu1 %vm8756_vm0, %v10948_v5 }
 0x170   : > { %3247 = vmatpush1.bf16.msra.mxu0 %v3238_v38  ;;  %v473_v8 = vpop.f32.mrb[4].mxu1  ;;  %8432 = vmatprep.subr.bf16.mxu1 %v10948_v5  ;;  %v9768_v6 = vpop.permute.xlu0 %4762 }
 0x171   : > { %v474_v49 = vadd.f32 %v473_v8, %v380_v42  ;;  %7043 = vrot.lane.b32.xlu0 %v9756_v15, %s8759_s29  ;;  %v8268_v58 = vpop.f32.mrb[5].mxu1  ;;  %3344 = vmatprep.subr.bf16.mxu0 %v3339_v1  ;;  %v9808_v24 = vpop.permute.xlu1 %3634  ;;  %v3443_v1 = vand.u32 %v9733_v43, %v8981_v29 }
 0x172   : > { %v432_v28 = vpop.f32.mrb[4].mxu0  ;;  %v476_v17 = vpop.f32.mrb[6].mxu1  ;;  %3278 = vmatprep.mubr.bf16.mxu0 %v10950_v12  ;;  %5185 = vrot.lane.b32.xlu1 %v9393_v39, %s8759_s29 }
 0x173   : > { %v433_v60 = vadd.f32 %v432_v28, %v339_v26  ;;  %v434_v14 = vpop.f32.mrb[5].mxu0  ;;  %v8269_v13 = vpop.f32.mrb[7].mxu1  ;;  %v3440_v26 = vand.u32 %v3435_v44, %v8981_v29 }
 0x174   : > { %v435_v42 = vadd.f32 %v434_v14, %v341_v53  ;;  %v436_v63 = vpop.f32.mrb[6].mxu0  ;;  %v9782_v35 = vpop.permute.xlu0 %4760  ;;  %v9826_v14 = vld [vmem:[%s10942_s1 + $0x8] sm:$0xf] }
 0x175   : > { %v437_v32 = vpop.f32.mrb[7].mxu0  ;;  %7142 = vrot.lane.b32.xlu0 %v9718_v23, %s8760_s30  ;;  %8429 = vmatmul.mubr.msk.bf16.vlgmr.msra.gmra.mrb[112].mxu1 %vm288_vm5, %v9789_v11  ;;  %v9837_v13 = vpop.permute.xlu1 %3733  ;;  %v3535_v63 = vsel %vm701_vm7, %v3530_v46, %v9765_v55  ;;  %v3637_v55 = vsel %vm808_vm8, %v9547_v59, %v9808_v24 }
 0x176   : > { %8433 = vmatpush3.bf16.msra.mxu1 %v3342_v51  ;;  %5183 = vrot.lane.b32.xlu1 %v9373_v30, %s8759_s29  ;;  %v3437_v51 = vand.u32 %v3434_v47, %v8981_v29 }
 0x177   : > { %8016 = vmatmul.mubr.msk.bf16.vlgmr.msra.gmra.mrb[112].mxu0 %vm288_vm5, %v9789_v11  ;;  %8434 = vmatprep.mubr.msk.bf16.mxu1 %vm8756_vm0, %v10948_v5 }
 0x178   : > { %3345 = vmatpush1.bf16.msra.mxu0 %v3336_v37  ;;  %v577_v62 = vpop.f32.mrb[8].mxu1  ;;  %8438 = vmatprep.subr.bf16.mxu1 %v10948_v5  ;;  %v9801_v53 = vpop.permute.xlu0 %4865 }
 0x179   : > { %v585_v40 = vadd.f32 %v577_v62, %v474_v49  ;;  %7140 = vrot.lane.b32.xlu0 %v9699_v16, %s8760_s30  ;;  %v8274_v38 = vpop.f32.mrb[9].mxu1  ;;  %3445 = vmatprep.subr.bf16.mxu0 %v3440_v26  ;;  %v3544_v62 = vand.u32 %v9531_v48, %v8981_v29 }
 0x17a   : > { %v536_v8 = vpop.f32.mrb[8].mxu0  ;;  %v580_v58 = vpop.f32.mrb[10].mxu1  ;;  %3376 = vmatprep.mubr.bf16.mxu0 %v10950_v12  ;;  %5288 = vrot.lane.b32.xlu1 %v9422_v34, %s8760_s30 }
 0x17b   : > { %v583_v19 = vadd.f32 %v536_v8, %v433_v60  ;;  %v538_v41 = vpop.f32.mrb[9].mxu0  ;;  %v8275_v49 = vpop.f32.mrb[11].mxu1  ;;  %v3541_v60 = vand.u32 %v3536_v10, %v8981_v29  ;;  %v3538_v8 = vand.u32 %v3535_v63, %v8981_v29 }
 0x17c   : > { %v584_v28 = vadd.f32 %v538_v41, %v435_v42  ;;  %v540_v17 = vpop.f32.mrb[10].mxu0  ;;  %v9819_v44 = vpop.permute.xlu0 %4997  ;;  %v9862_v49 = vld [vmem:[%s10942_s1 + $0xc] sm:$0xf] }
 0x17d   : > { %v541_v43 = vpop.f32.mrb[11].mxu0  ;;  %7245 = vrot.lane.b32.xlu0 %v9756_v15, %s8761_s7  ;;  %8435 = vmatmul.mubr.msk.bf16.vlgmr.msra.gmra.mrb[116].mxu1 %vm288_vm5, %v9826_v14 }
 0x17e   : > { %8439 = vmatpush3.bf16.msra.mxu1 %v3443_v1  ;;  %5387 = vrot.lane.b32.xlu1 %v9393_v39, %s8761_s7  ;;  %v3636_v43 = vsel %vm808_vm8, %v9564_v2, %v9547_v59 }
 0x17f   : > { %8018 = vmatmul.mubr.msk.bf16.vlgmr.msra.gmra.mrb[116].mxu0 %vm288_vm5, %v9826_v14  ;;  %8440 = vmatprep.mubr.msk.bf16.mxu1 %vm8756_vm0, %v10948_v5 }
 0x180   : > { %3446 = vmatpush1.bf16.msra.mxu0 %v3437_v51  ;;  %v684_v37 = vpop.f32.mrb[12].mxu1  ;;  %8444 = vmatprep.subr.bf16.mxu1 %v10948_v5  ;;  %v9840_v42 = vpop.permute.xlu0 %4995 }
 0x181   : > { %v692_v32 = vadd.f32 %v684_v37, %v585_v40  ;;  %7344 = vrot.lane.b32.xlu0 %v9718_v23, %s8762_s8  ;;  %v8280_v26 = vpop.f32.mrb[13].mxu1  ;;  %3546 = vmatprep.subr.bf16.mxu0 %v3541_v60  ;;  %v3732_v51 = vpop.permute.xlu1 %3731 }
 0x182   : > { %v643_v47 = vpop.f32.mrb[12].mxu0  ;;  %v687_v38 = vpop.f32.mrb[14].mxu1  ;;  %3477 = vmatprep.mubr.bf16.mxu0 %v10950_v12  ;;  %5385 = vrot.lane.b32.xlu1 %v9373_v30, %s8761_s7  ;;  %v3645_v26 = vand.u32 %v9808_v24, %v8981_v29 }
 0x183   : > { %v690_v46 = vadd.f32 %v643_v47, %v583_v19  ;;  %v645_v40 = vpop.f32.mrb[13].mxu0  ;;  %v8281_v1 = vpop.f32.mrb[15].mxu1  ;;  %v3642_v19 = vand.u32 %v3637_v55, %v8981_v29  ;;  %v3738_v47 = vsel %vm915_vm9, %v9837_v13, %v9576_v27  ;;  %v3639_v55 = vand.u32 %v3636_v43, %v8981_v29 }
 0x184   : > { %v691_v10 = vadd.f32 %v645_v40, %v584_v28  ;;  %v647_v58 = vpop.f32.mrb[14].mxu0  ;;  %v9855_v41 = vpop.permute.xlu0 %5187 }
 0x185   : > { %v648_v48 = vpop.f32.mrb[15].mxu0  ;;  %7342 = vrot.lane.b32.xlu0 %v9699_v16, %s8762_s8  ;;  %8441 = vmatmul.mubr.msk.bf16.vlgmr.msra.gmra.mrb[120].mxu1 %vm288_vm5, %v9862_v49  ;;  %v9881_v63 = vpop.permute.xlu1 %3836  ;;  %v9899_v58 = vld [vmem:[%s10942_s1 + $0x10] sm:$0xf] }
 0x186   : > { %8445 = vmatpush3.bf16.msra.mxu1 %v3544_v62  ;;  %5490 = vrot.lane.b32.xlu1 %v9422_v34, %s8762_s8 }
 0x187   : > { %8020 = vmatmul.mubr.msk.bf16.vlgmr.msra.gmra.mrb[120].mxu0 %vm288_vm5, %v9862_v49  ;;  %8446 = vmatprep.mubr.msk.bf16.mxu1 %vm8756_vm0, %v10948_v5 }
 0x188   : > { %3547 = vmatpush1.bf16.msra.mxu0 %v3538_v8  ;;  %v791_v28 = vpop.f32.mrb[16].mxu1  ;;  %8450 = vmatprep.subr.bf16.mxu1 %v10948_v5  ;;  %v9874_v17 = vpop.permute.xlu0 %5286 }
 0x189   : > { %v799_v60 = vadd.f32 %v791_v28, %v692_v32  ;;  %7447 = vrot.lane.b32.xlu0 %v9756_v15, %s8763_s9  ;;  %v8286_v37 = vpop.f32.mrb[17].mxu1  ;;  %3647 = vmatprep.subr.bf16.mxu0 %v3642_v19  ;;  %v3737_v19 = vsel %vm915_vm9, %v3732_v51, %v9837_v13  ;;  %v3839_v13 = vsel %vm1022_vm10, %v9592_v25, %v9881_v63 }
 0x18a   : > { %v750_v62 = vpop.f32.mrb[16].mxu0  ;;  %v794_v38 = vpop.f32.mrb[18].mxu1  ;;  %3578 = vmatprep.mubr.bf16.mxu0 %v10950_v12  ;;  %5589 = vrot.lane.b32.xlu1 %v9393_v39, %s8763_s9 }
 0x18b   : > { %v797_v59 = vadd.f32 %v750_v62, %v690_v46  ;;  %v752_v2 = vpop.f32.mrb[17].mxu0  ;;  %v8287_v32 = vpop.f32.mrb[19].mxu1  ;;  %v3743_v46 = vand.u32 %v3738_v47, %v8981_v29 }
 0x18c   : > { %v798_v40 = vadd.f32 %v752_v2, %v691_v10  ;;  %v754_v1 = vpop.f32.mrb[18].mxu0  ;;  %v9892_v8 = vpop.permute.xlu0 %5284  ;;  %v3740_v2 = vand.u32 %v3737_v19, %v8981_v29  ;;  %v3838_v19 = vsel %vm1022_vm10, %v9605_v22, %v9592_v25 }
 0x18d   : > { %v755_v24 = vpop.f32.mrb[19].mxu0  ;;  %7546 = vrot.lane.b32.xlu0 %v9718_v23, %s8764_s10  ;;  %8447 = vmatmul.mubr.msk.bf16.vlgmr.msra.gmra.mrb[124].mxu1 %vm288_vm5, %v9899_v58  ;;  %v3936_v37 = vpop.permute.xlu1 %3935 }
 0x18e   : > { %8451 = vmatpush3.bf16.msra.mxu1 %v3645_v26  ;;  %5587 = vrot.lane.b32.xlu1 %v9373_v30, %s8763_s9  ;;  %v3746_v26 = vand.u32 %v9576_v27, %v8981_v29  ;;  %v9933_v24 = vld [vmem:[%s10942_s1 + $0x14] sm:$0xf] }
 0x18f   : > { %8022 = vmatmul.mubr.msk.bf16.vlgmr.msra.gmra.mrb[124].mxu0 %vm288_vm5, %v9899_v58  ;;  %8452 = vmatprep.mubr.msk.bf16.mxu1 %vm8756_vm0, %v10948_v5 }
 0x190   : > { %3648 = vmatpush1.bf16.msra.mxu0 %v3639_v55  ;;  %v898_v10 = vpop.f32.mrb[20].mxu1  ;;  %8456 = vmatprep.subr.bf16.mxu1 %v10948_v5  ;;  %v9911_v48 = vpop.permute.xlu0 %5389 }
 0x191   : > { %v906_v28 = vadd.f32 %v898_v10, %v799_v60  ;;  %7544 = vrot.lane.b32.xlu0 %v9699_v16, %s8764_s10  ;;  %v8292_v43 = vpop.f32.mrb[21].mxu1  ;;  %3748 = vmatprep.subr.bf16.mxu0 %v3743_v46 }
 0x192   : > { %v857_v62 = vpop.f32.mrb[20].mxu0  ;;  %v901_v47 = vpop.f32.mrb[22].mxu1  ;;  %3679 = vmatprep.mubr.bf16.mxu0 %v10950_v12  ;;  %5692 = vrot.lane.b32.xlu1 %v9422_v34, %s8764_s10 }
 0x193   : > { %v904_v51 = vadd.f32 %v857_v62, %v797_v59  ;;  %v859_v60 = vpop.f32.mrb[21].mxu0  ;;  %v8293_v38 = vpop.f32.mrb[23].mxu1  ;;  %v3844_v59 = vand.u32 %v3839_v13, %v8981_v29  ;;  %v3847_v47 = vand.u32 %v9881_v63, %v8981_v29 }
 0x194   : > { %v905_v32 = vadd.f32 %v859_v60, %v798_v40  ;;  %v861_v55 = vpop.f32.mrb[22].mxu0  ;;  %v9926_v1 = vpop.permute.xlu0 %5488  ;;  %v257_v40 = vld [vmem:[%s10943_s2] sm:$0xff]  ;;  %v3940_v60 = vsel %vm1129_vm11, %v3936_v37, %v9618_v31 }
 0x195   : > { %v862_v27 = vpop.f32.mrb[23].mxu0  ;;  %7649 = vrot.lane.b32.xlu0 %v9756_v15, %s8765_s11  ;;  %8453 = vmatmul.mubr.msk.bf16.vlgmr.msra.gmra.mrb[128].mxu1 %vm288_vm5, %v9933_v24  ;;  %v3934_v62 = vpop.permute.xlu1 %3933 }
 0x196   : > { %8457 = vmatpush3.bf16.msra.mxu1 %v3746_v26  ;;  %5791 = vrot.lane.b32.xlu1 %v9393_v39, %s8765_s11 }
 0x197   : > { %8024 = vmatmul.mubr.msk.bf16.vlgmr.msra.gmra.mrb[128].mxu0 %vm288_vm5, %v9933_v24  ;;  %8458 = vmatprep.mubr.msk.bf16.mxu1 %vm8756_vm0, %v10948_v5 }
 0x198   : > { %3749 = vmatpush1.bf16.msra.mxu0 %v3740_v2  ;;  %v1005_v46 = vpop.f32.mrb[24].mxu1  ;;  %8462 = vmatprep.subr.bf16.mxu1 %v10948_v5  ;;  %v9948_v10 = vpop.permute.xlu0 %5486 }
 0x199   : > { %v1013_v43 = vadd.f32 %v1005_v46, %v906_v28  ;;  %1230 = vperm.xlu0 %8717, %v257_v40   ;;  %v8298_v26 = vpop.f32.mrb[25].mxu1  ;;  %3849 = vmatprep.subr.bf16.mxu0 %v3844_v59  ;;  %v3841_v28 = vand.u32 %v3838_v19, %v8981_v29  ;;  %v9966_v40 = vld [vmem:[%s10942_s1 + $0x18] sm:$0xf]  ;;  %v3945_v46 = vand.u32 %v3940_v60, %v8981_v29 }
 0x19a   : > { %v964_v13 = vpop.f32.mrb[24].mxu0  ;;  %v1008_v38 = vpop.f32.mrb[26].mxu1  ;;  %3780 = vmatprep.mubr.bf16.mxu0 %v10950_v12  ;;  %5789 = vrot.lane.b32.xlu1 %v9373_v30, %s8765_s11  ;;  %v3939_v26 = vsel %vm1129_vm11, %v3934_v62, %v3936_v37  ;;  %v3948_v60 = vand.u32 %v9618_v31, %v8981_v29  ;;  %v9994_v31 = vld [vmem:[%s10942_s1 + $0x1c] sm:$0xf] }
 0x19b   : > { %v1011_v2 = vadd.f32 %v964_v13, %v904_v51  ;;  %v966_v25 = vpop.f32.mrb[25].mxu0  ;;  %v8299_v22 = vpop.f32.mrb[27].mxu1  ;;  %v3942_v37 = vand.u32 %v3939_v26, %v8981_v29 }
 0x19c   : > { %v1012_v55 = vadd.f32 %v966_v25, %v905_v32  ;;  %v968_v27 = vpop.f32.mrb[26].mxu0  ;;  %v9961_v59 = vpop.permute.xlu0 %5591 }
 0x19d   : > { %v969_v63 = vpop.f32.mrb[27].mxu0  ;;  %8459 = vmatmul.mubr.msk.bf16.vlgmr.msra.gmra.mrb[132].mxu1 %vm288_vm5, %v9966_v40  ;;  %v4072_v51 = vpop.permute.xlu1 %4071 }
 0x19e   : > { %8463 = vmatpush3.bf16.msra.mxu1 %v3847_v47  ;;  %5927 = vrot.lane.b32.xlu1 %v9584_v56, %s8757_s28  ;;  %v4074_v22 = vsel %vm285_vm3, %v9630_v45, %v4072_v51 }
 0x19f   : > { %8026 = vmatmul.mubr.msk.bf16.vlgmr.msra.gmra.mrb[132].mxu0 %vm288_vm5, %v9966_v40  ;;  %8464 = vmatprep.mubr.msk.bf16.mxu1 %vm8756_vm0, %v10948_v5 }
 0x1a0   : > { %3850 = vmatpush1.bf16.msra.mxu0 %v3841_v28  ;;  %v1112_v32 = vpop.f32.mrb[28].mxu1  ;;  %8468 = vmatprep.subr.bf16.mxu1 %v10948_v5  ;;  %v9978_v19 = vpop.permute.xlu0 %5690 }
 0x1a1   : > { %v8304_v13 = vpop.f32.mrb[29].mxu1  ;;  %3950 = vmatprep.subr.bf16.mxu0 %v3945_v46  ;;  %3881 = vmatprep.mubr.bf16.mxu0 %v10950_v12  ;;  %v1120_v47 = vadd.f32 %v1112_v32, %v1013_v43  ;;  %v4079_v32 = vand.u32 %v4074_v22, %v8981_v29  ;;  %v4082_v22 = vand.u32 %v4072_v51, %v8981_v29  ;;  %v10027_v51 = vld [vmem:[%s10942_s1 + $0x20] sm:$0xf] }
 0x1a2   : > { %v1071_v38 = vpop.f32.mrb[28].mxu0  ;;  %v1115_v25 = vpop.f32.mrb[30].mxu1  ;;  %6113 = vrot.lane.b32.xlu1 %v9556_v4, %s8759_s29 }
 0x1a3   : > { %v1118_v28 = vadd.f32 %v1071_v38, %v1011_v2  ;;  %v1073_v27 = vpop.f32.mrb[29].mxu0  ;;  %v8305_v63 = vpop.f32.mrb[31].mxu1 }
 0x1a4   : > { %v1119_v62 = vadd.f32 %v1073_v27, %v1012_v55  ;;  %v1075_v46 = vpop.f32.mrb[30].mxu0  ;;  %v9989_v13 = vpop.permute.xlu0 %5688 }
 0x1a5   : > { %v1076_v43 = vpop.f32.mrb[31].mxu0  ;;  %8465 = vmatmul.mubr.msk.bf16.vlgmr.msra.gmra.mrb[136].mxu1 %vm288_vm5, %v9994_v31  ;;  %v4258_v2 = vpop.permute.xlu1 %4257 }
 0x1a6   : > { %8469 = vmatpush3.bf16.msra.mxu1 %v3948_v60  ;;  %6111 = vrot.lane.b32.xlu1 %v9535_v50, %s8759_s29  ;;  %v4073_v60 = vsel %vm285_vm3, %v9643_v52, %v9630_v45 }
 0x1a7   : > { %8028 = vmatmul.mubr.msk.bf16.vlgmr.msra.gmra.mrb[136].mxu0 %vm288_vm5, %v9994_v31  ;;  %8470 = vmatprep.mubr.msk.bf16.mxu1 %vm8756_vm0, %v10948_v5 }
 0x1a8   : > { %3951 = vmatpush1.bf16.msra.mxu0 %v3942_v37  ;;  %v1219_v55 = vpop.f32.mrb[32].mxu1  ;;  %8474 = vmatprep.subr.bf16.mxu1 %v10948_v5  ;;  %v10006_v26 = vpop.permute.xlu0 %5793  ;;  %v4076_v5 = vand.u32 %v4073_v60, %v8981_v29 }
 0x1a9   : > { %v10011_v38 = vadd.f32 %v1219_v55, %v1120_v47  ;;  %v8310_v25 = vpop.f32.mrb[33].mxu1  ;;  %4084 = vmatprep.subr.bf16.mxu0 %v4079_v32  ;;  %3982 = vmatprep.mubr.bf16.mxu0 %v10950_v12  ;;  %v4256_v55 = vpop.permute.xlu1 %4255 }
 0x1aa   : > { %v1178_v27 = vpop.f32.mrb[32].mxu0  ;;  %v1222_v63 = vpop.f32.mrb[34].mxu1  ;;  %6216 = vrot.lane.b32.xlu1 %v9584_v56, %s8760_s30 }
 0x1ab   : > { %v10017_v37 = vadd.f32 %v1178_v27, %v1118_v28  ;;  %v1180_v46 = vpop.f32.mrb[33].mxu0  ;;  %v8311_v43 = vpop.f32.mrb[35].mxu1  ;;  %v4169_v28 = vand.u32 %v9229_v20, %v8981_v29  ;;  %v4262_v63 = vsel %vm487_vm4, %v4258_v2, %v9656_v61 }
 0x1ac   : > { %v10020_v45 = vadd.f32 %v1180_v46, %v1119_v62  ;;  %v1182_v52 = vpop.f32.mrb[34].mxu0  ;;  %v10022_v47 = vpop.permute.xlu0 %5925  ;;  %v10962_v62 = vmov 0.0  }
 0x1ad   : > { %10961 = vst [vmem:[#allocation2_spill] sm:$0xff] %v10022_v47  ;;  %v1183_v32 = vpop.f32.mrb[35].mxu0  ;;  %8471 = vmatmul.mubr.msk.bf16.vlgmr.msra.gmra.mrb[140].mxu1 %vm288_vm5, %v10027_v51  ;;  %v10043_v20 = vpop.permute.xlu1 %4360 }
 0x1ae   : > { %8475 = vmatpush3.bf16.msra.mxu1 %v4082_v22  ;;  %6315 = vrot.lane.b32.xlu1 %v9556_v4, %s8761_s7 }
 0x1af   : > { %8030 = vmatmul.mubr.msk.bf16.vlgmr.msra.gmra.mrb[140].mxu0 %vm288_vm5, %v10027_v51  ;;  %8476 = vmatprep.mubr.msk.bf16.mxu1 %vm8756_vm0, %v10962_v62 }
 0x1b0   : > { %4085 = vmatpush1.bf16.msra.mxu0 %v4076_v5  ;;  %v1375_v60 = vpop.f32.mrb[36].mxu1  ;;  %4116 = vmatprep.mubr.bf16.mxu0 %v10950_v12  ;;  %v10040_v25 = vpop.permute.xlu0 %5923  ;;  %v4172_v5 = vand.u32 %v9258_v33, %v8981_v29 }
 0x1b1   : > { %10963 = vst [vmem:[#allocation3_spill] sm:$0xff] %v10040_v25  ;;  %v8316_v27 = vpop.f32.mrb[37].mxu1  ;;  %4174 = vmatprep.subr.bf16.mxu0 %v4169_v28  ;;  %8480 = vmatprep.subr.bf16.mxu1 %v10962_v62  ;;  %v4166_v28 = vand.u32 %v9207_v7, %v8981_v29  ;;  %v10064_v33 = vpop.permute.xlu1 %4459 }
 0x1b2   : > { %v1334_v22 = vpop.f32.mrb[36].mxu0  ;;  %v1378_v46 = vpop.f32.mrb[38].mxu1  ;;  %6313 = vrot.lane.b32.xlu1 %v9535_v50, %s8761_s7 }
 0x1b3   : > { %v1336_v43 = vpop.f32.mrb[37].mxu0  ;;  %v8317_v52 = vpop.f32.mrb[39].mxu1  ;;  %v4267_v46 = vand.u32 %v4262_v63, %v8981_v29  ;;  %v4261_v63 = vsel %vm487_vm4, %v4256_v55, %v4258_v2 }
 0x1b4   : > { %v1338_v32 = vpop.f32.mrb[38].mxu0  ;;  %v10053_v27 = vpop.permute.xlu0 %6115  ;;  %v4264_v55 = vand.u32 %v4261_v63, %v8981_v29 }
 0x1b5   : > { %10964 = vst [vmem:[#allocation4_spill] sm:$0xff] %v10053_v27  ;;  %v1339_v12 = vpop.f32.mrb[39].mxu0  ;;  %8477 = vmatmul.mubr.msk.bf16.vlgmr.msra.gmra.mrb[144].mxu1 %vm288_vm5, %v9751_v57  ;;  %v10966_v32 = vmov 0  }
 0x1b6   : > { %8481 = vmatpush3.bf16.msra.mxu1 %v4172_v5  ;;  %6418 = vrot.lane.b32.xlu1 %v9584_v56, %s8762_s8 }
 0x1b7   : > { %8033 = vmatmul.mubr.msk.bf16.vlgmr.msra.gmra.mrb[144].mxu0 %vm288_vm5, %v9751_v57  ;;  %8482 = vmatprep.mubr.msk.bf16.mxu1 %vm8756_vm0, %v10962_v62  ;;  %v4270_v57 = vand.u32 %v9656_v61, %v8981_v29 }
 0x1b8   : > { %4175 = vmatpush1.bf16.msra.mxu0 %v4166_v28  ;;  %v1465_v7 = vpop.f32.mrb[40].mxu1  ;;  %8486 = vmatprep.subr.bf16.mxu1 %v10962_v62  ;;  %v10067_v12 = vpop.permute.xlu0 %6214  ;;  %v4363_v28 = vsel %vm594_vm6, %v9669_v0, %v10043_v20 }
 0x1b9   : > { %10965 = vst [vmem:[#allocation5_spill] sm:$0xff] %v10067_v12  ;;  %v1466_v5 = vadd.f32 %v1465_v7, %v1375_v60  ;;  %v8322_v52 = vpop.f32.mrb[41].mxu1  ;;  %4272 = vmatprep.subr.bf16.mxu0 %v4267_v46  ;;  %4206 = vmatprep.mubr.bf16.mxu0 %v10966_v32  ;;  %v4368_v61 = vand.u32 %v4363_v28, %v8981_v29 }
 0x1ba   : > { %v1424_v27 = vpop.f32.mrb[40].mxu0  ;;  %v1468_v25 = vpop.f32.mrb[42].mxu1  ;;  %6517 = vrot.lane.b32.xlu1 %v9556_v4, %s8763_s9 }
 0x1bb   : > { %v1425_v12 = vadd.f32 %v1424_v27, %v1334_v22  ;;  %v1426_v47 = vpop.f32.mrb[41].mxu0  ;;  %v8323_v2 = vpop.f32.mrb[43].mxu1 }
 0x1bc   : > { %v1427_v60 = vadd.f32 %v1426_v47, %v1336_v43  ;;  %v1428_v46 = vpop.f32.mrb[42].mxu0  ;;  %v10079_v7 = vpop.permute.xlu0 %6212  ;;  %v4362_v43 = vsel %vm594_vm6, %v9681_v18, %v9669_v0  ;;  %v4464_v2 = vsel %vm701_vm7, %v10064_v33, %v9695_v21 }
 0x1bd   : > { %v1429_v52 = vpop.f32.mrb[43].mxu0  ;;  %8483 = vmatmul.mubr.msk.bf16.vlgmr.msra.gmra.mrb[148].mxu1 %vm288_vm5, %v9789_v11  ;;  %v4458_v25 = vpop.permute.xlu1 %4457  ;;  %v4365_v46 = vand.u32 %v4362_v43, %v8981_v29 }
 0x1be   : > { %8487 = vmatpush3.bf16.msra.mxu1 %v4270_v57  ;;  %6515 = vrot.lane.b32.xlu1 %v9535_v50, %s8763_s9  ;;  %v4463_v43 = vsel %vm701_vm7, %v4458_v25, %v10064_v33 }
 0x1bf   : > { %8035 = vmatmul.mubr.msk.bf16.vlgmr.msra.gmra.mrb[148].mxu0 %vm288_vm5, %v9789_v11  ;;  %8488 = vmatprep.mubr.msk.bf16.mxu1 %vm8756_vm0, %v10962_v62  ;;  %v4371_v11 = vand.u32 %v10043_v20, %v8981_v29  ;;  %v4469_v20 = vand.u32 %v4464_v2, %v8981_v29 }
 0x1c0   : > { %4273 = vmatpush1.bf16.msra.mxu0 %v4264_v55  ;;  %v1563_v47 = vpop.f32.mrb[44].mxu1  ;;  %8492 = vmatprep.subr.bf16.mxu1 %v10962_v62  ;;  %v10091_v22 = vpop.permute.xlu0 %6317 }
 0x1c1   : > { %v1571_v27 = vadd.f32 %v1563_v47, %v1466_v5  ;;  %v8328_v63 = vpop.f32.mrb[45].mxu1  ;;  %4373 = vmatprep.subr.bf16.mxu0 %v4368_v61  ;;  %4304 = vmatprep.mubr.bf16.mxu0 %v10966_v32  ;;  %v10097_v57 = vpop.permute.xlu1 %4562 }
 0x1c2   : > { %v1522_v28 = vpop.f32.mrb[44].mxu0  ;;  %v1566_v55 = vpop.f32.mrb[46].mxu1  ;;  %6620 = vrot.lane.b32.xlu1 %v9584_v56, %s8764_s10 }
 0x1c3   : > { %v1569_v0 = vadd.f32 %v1522_v28, %v1425_v12  ;;  %v1524_v18 = vpop.f32.mrb[45].mxu0  ;;  %v8329_v5 = vpop.f32.mrb[47].mxu1 }
 0x1c4   : > { %v1570_v52 = vadd.f32 %v1524_v18, %v1427_v60  ;;  %v1526_v61 = vpop.f32.mrb[46].mxu0  ;;  %v10107_v47 = vpop.permute.xlu0 %6416  ;;  %v4565_v5 = vsel %vm808_vm8, %v9709_v9, %v10097_v57 }
 0x1c5   : > { %v1527_v63 = vpop.f32.mrb[47].mxu0  ;;  %8489 = vmatmul.mubr.msk.bf16.vlgmr.msra.gmra.mrb[152].mxu1 %vm288_vm5, %v9826_v14  ;;  %v4662_v2 = vpop.permute.xlu1 %4661 }
 0x1c6   : > { %8493 = vmatpush3.bf16.msra.mxu1 %v4371_v11  ;;  %6719 = vrot.lane.b32.xlu1 %v9556_v4, %s8765_s11 }
 0x1c7   : > { %8037 = vmatmul.mubr.msk.bf16.vlgmr.msra.gmra.mrb[152].mxu0 %vm288_vm5, %v9826_v14  ;;  %8494 = vmatprep.mubr.msk.bf16.mxu1 %vm8756_vm0, %v10962_v62  ;;  %v4472_v14 = vand.u32 %v9695_v21, %v8981_v29  ;;  %v4570_v21 = vand.u32 %v4565_v5, %v8981_v29  ;;  %v4666_v5 = vsel %vm915_vm9, %v4662_v2, %v9744_v54 }
 0x1c8   : > { %4374 = vmatpush1.bf16.msra.mxu0 %v4365_v46  ;;  %v1664_v12 = vpop.f32.mrb[48].mxu1  ;;  %8498 = vmatprep.subr.bf16.mxu1 %v10962_v62  ;;  %v10119_v60 = vpop.permute.xlu0 %6414 }
 0x1c9   : > { %v1672_v28 = vadd.f32 %v1664_v12, %v1571_v27  ;;  %v8334_v11 = vpop.f32.mrb[49].mxu1  ;;  %4474 = vmatprep.subr.bf16.mxu0 %v4469_v20  ;;  %4405 = vmatprep.mubr.bf16.mxu0 %v10966_v32  ;;  %v4466_v27 = vand.u32 %v4463_v43, %v8981_v29  ;;  %v4564_v43 = vsel %vm808_vm8, %v9728_v36, %v9709_v9 }
 0x1ca   : > { %v1623_v55 = vpop.f32.mrb[48].mxu0  ;;  %v1667_v18 = vpop.f32.mrb[50].mxu1  ;;  %6717 = vrot.lane.b32.xlu1 %v9535_v50, %s8765_s11 }
 0x1cb   : > { %v1670_v46 = vadd.f32 %v1623_v55, %v1569_v0  ;;  %v1625_v33 = vpop.f32.mrb[49].mxu0  ;;  %v8335_v25 = vpop.f32.mrb[51].mxu1 }
 0x1cc   : > { %v1671_v61 = vadd.f32 %v1625_v33, %v1570_v52  ;;  %v1627_v20 = vpop.f32.mrb[50].mxu0  ;;  %v10135_v12 = vpop.permute.xlu0 %6519 }
 0x1cd   : > { %v1628_v63 = vpop.f32.mrb[51].mxu0  ;;  %8495 = vmatmul.mubr.msk.bf16.vlgmr.msra.gmra.mrb[156].mxu1 %vm288_vm5, %v9862_v49  ;;  %v4660_v52 = vpop.permute.xlu1 %4659 }
 0x1ce   : > { %8499 = vmatpush3.bf16.msra.mxu1 %v4472_v14  ;;  %6855 = vrot.lane.b32.xlu1 %v9756_v15, %s8757_s28 }
 0x1cf   : > { %8039 = vmatmul.mubr.msk.bf16.vlgmr.msra.gmra.mrb[156].mxu0 %vm288_vm5, %v9862_v49  ;;  %8500 = vmatprep.mubr.msk.bf16.mxu1 %vm8756_vm0, %v10962_v62  ;;  %v4573_v49 = vand.u32 %v10097_v57, %v8981_v29 }
 0x1d0   : > { %4475 = vmatpush1.bf16.msra.mxu0 %v4466_v27  ;;  %v1765_v0 = vpop.f32.mrb[52].mxu1  ;;  %8504 = vmatprep.subr.bf16.mxu1 %v10962_v62  ;;  %v10148_v55 = vpop.permute.xlu0 %6618 }
 0x1d1   : > { %v1773_v11 = vadd.f32 %v1765_v0, %v1672_v28  ;;  %v8340_v14 = vpop.f32.mrb[53].mxu1  ;;  %4575 = vmatprep.subr.bf16.mxu0 %v4570_v21  ;;  %4506 = vmatprep.mubr.bf16.mxu0 %v10966_v32  ;;  %v4567_v28 = vand.u32 %v4564_v43, %v8981_v29  ;;  %v4671_v21 = vand.u32 %v4666_v5, %v8981_v29 }
 0x1d2   : > { %v1724_v18 = vpop.f32.mrb[52].mxu0  ;;  %v1768_v33 = vpop.f32.mrb[54].mxu1  ;;  %7041 = vrot.lane.b32.xlu1 %v9718_v23, %s8759_s29  ;;  %v4665_v43 = vsel %vm915_vm9, %v4660_v52, %v4662_v2 }
 0x1d3   : > { %v1771_v25 = vadd.f32 %v1724_v18, %v1670_v46  ;;  %v1726_v9 = vpop.f32.mrb[53].mxu0  ;;  %v8341_v36 = vpop.f32.mrb[55].mxu1 }
 0x1d4   : > { %v1772_v27 = vadd.f32 %v1726_v9, %v1671_v61  ;;  %v1728_v20 = vpop.f32.mrb[54].mxu0  ;;  %v10157_v63 = vpop.permute.xlu1 %4764  ;;  %v4668_v36 = vand.u32 %v4665_v43, %v8981_v29  ;;  %v4766_v43 = vsel %vm1022_vm10, %v9782_v35, %v9768_v6 }
 0x1d5   : > { %v1729_v57 = vpop.f32.mrb[55].mxu0  ;;  %8501 = vmatmul.mubr.msk.bf16.vlgmr.msra.gmra.mrb[160].mxu1 %vm288_vm5, %v9899_v58  ;;  %v10162_v0 = vpop.permute.xlu0 %6616  ;;  %v4767_v9 = vsel %vm1022_vm10, %v9768_v6, %v10157_v63 }
 0x1d6   : > { %8505 = vmatpush3.bf16.msra.mxu1 %v4573_v49  ;;  %7039 = vrot.lane.b32.xlu1 %v9699_v16, %s8759_s29 }
 0x1d7   : > { %8041 = vmatmul.mubr.msk.bf16.vlgmr.msra.gmra.mrb[160].mxu0 %vm288_vm5, %v9899_v58  ;;  %8506 = vmatprep.mubr.msk.bf16.mxu1 %vm8756_vm0, %v10962_v62  ;;  %v4674_v58 = vand.u32 %v9744_v54, %v8981_v29  ;;  %v4772_v54 = vand.u32 %v4767_v9, %v8981_v29 }
 0x1d8   : > { %4576 = vmatpush1.bf16.msra.mxu0 %v4567_v28  ;;  %v1866_v46 = vpop.f32.mrb[56].mxu1  ;;  %8510 = vmatprep.subr.bf16.mxu1 %v10962_v62  ;;  %v4864_v61 = vpop.permute.xlu1 %4863 }
 0x1d9   : > { %v1874_v14 = vadd.f32 %v1866_v46, %v1773_v11  ;;  %v8346_v18 = vpop.f32.mrb[57].mxu1  ;;  %4676 = vmatprep.subr.bf16.mxu0 %v4671_v21  ;;  %4607 = vmatprep.mubr.bf16.mxu0 %v10966_v32  ;;  %v10173_v49 = vpop.permute.xlu0 %6721  ;;  %v4868_v9 = vsel %vm1129_vm11, %v4864_v61, %v9801_v53 }
 0x1da   : > { %v1825_v5 = vpop.f32.mrb[56].mxu0  ;;  %v1869_v33 = vpop.f32.mrb[58].mxu1  ;;  %7144 = vrot.lane.b32.xlu1 %v9756_v15, %s8760_s30 }
 0x1db   : > { %v1872_v2 = vadd.f32 %v1825_v5, %v1771_v25  ;;  %v1827_v52 = vpop.f32.mrb[57].mxu0  ;;  %v8347_v11 = vpop.f32.mrb[59].mxu1 }
 0x1dc   : > { %v1873_v28 = vadd.f32 %v1827_v52, %v1772_v27  ;;  %v1829_v20 = vpop.f32.mrb[58].mxu0  ;;  %v4862_v21 = vpop.permute.xlu1 %4861 }
 0x1dd   : > { %v1830_v57 = vpop.f32.mrb[59].mxu0  ;;  %8507 = vmatmul.mubr.msk.bf16.vlgmr.msra.gmra.mrb[164].mxu1 %vm288_vm5, %v9933_v24  ;;  %v10186_v46 = vpop.permute.xlu0 %6853 }
 0x1de   : > { %8511 = vmatpush3.bf16.msra.mxu1 %v4674_v58  ;;  %7243 = vrot.lane.b32.xlu1 %v9718_v23, %s8761_s7  ;;  %v4873_v57 = vand.u32 %v4868_v9, %v8981_v29 }
 0x1df   : > { %8043 = vmatmul.mubr.msk.bf16.vlgmr.msra.gmra.mrb[164].mxu0 %vm288_vm5, %v9933_v24  ;;  %8512 = vmatprep.mubr.msk.bf16.mxu1 %vm8756_vm0, %v10962_v62  ;;  %v4775_v24 = vand.u32 %v10157_v63, %v8981_v29 }
 0x1e0   : > { %4677 = vmatpush1.bf16.msra.mxu0 %v4668_v36  ;;  %v1967_v25 = vpop.f32.mrb[60].mxu1  ;;  %8516 = vmatprep.subr.bf16.mxu1 %v10962_v62  ;;  %v10195_v27 = vpop.permute.xlu1 %4999 }
 0x1e1   : > { %v1975_v18 = vadd.f32 %v1967_v25, %v1874_v14  ;;  %v8352_v58 = vpop.f32.mrb[61].mxu1  ;;  %4777 = vmatprep.subr.bf16.mxu0 %v4772_v54  ;;  %4708 = vmatprep.mubr.bf16.mxu0 %v10966_v32  ;;  %v10201_v5 = vpop.permute.xlu0 %6851  ;;  %v4769_v14 = vand.u32 %v4766_v43, %v8981_v29 }
 0x1e2   : > { %v1926_v33 = vpop.f32.mrb[60].mxu0  ;;  %v1970_v52 = vpop.f32.mrb[62].mxu1  ;;  %7241 = vrot.lane.b32.xlu1 %v9699_v16, %s8761_s7 }
 0x1e3   : > { %v1973_v11 = vadd.f32 %v1926_v33, %v1872_v2  ;;  %v1928_v6 = vpop.f32.mrb[61].mxu0  ;;  %v8353_v35 = vpop.f32.mrb[63].mxu1  ;;  %v4876_v33 = vand.u32 %v9801_v53, %v8981_v29  ;;  %v5002_v52 = vsel %vm285_vm3, %v9819_v44, %v10195_v27 }
 0x1e4   : > { %v1974_v36 = vadd.f32 %v1928_v6, %v1873_v28  ;;  %v1930_v20 = vpop.f32.mrb[62].mxu0  ;;  %v10217_v25 = vpop.permute.xlu1 %5185  ;;  %v4867_v28 = vsel %vm1129_vm11, %v4862_v21, %v4864_v61  ;;  %v5007_v53 = vand.u32 %v5002_v52, %v8981_v29 }
 0x1e5   : > { %v1931_v54 = vpop.f32.mrb[63].mxu0  ;;  %8513 = vmatmul.mubr.msk.bf16.vlgmr.msra.gmra.mrb[168].mxu1 %vm288_vm5, %v9966_v40  ;;  %v10213_v63 = vpop.permute.xlu0 %7043  ;;  %v4870_v6 = vand.u32 %v4867_v28, %v8981_v29 }
 0x1e6   : > { %8517 = vmatpush3.bf16.msra.mxu1 %v4775_v24  ;;  %7346 = vrot.lane.b32.xlu1 %v9756_v15, %s8762_s8  ;;  %s7948_s8 = sshll.u32 %s10992_s22, 3 }
 0x1e7   : > { %8045 = vmatmul.mubr.msk.bf16.vlgmr.msra.gmra.mrb[168].mxu0 %vm288_vm5, %v9966_v40  ;;  %8518 = vmatprep.mubr.msk.bf16.mxu1 %vm8756_vm0, %v10962_v62  ;;  %s254_s25 = scalar_lea.vmem %s10947_s6, %s7948_s8 }
 0x1e8   : > { %4778 = vmatpush1.bf16.msra.mxu0 %v4769_v14  ;;  %v2068_v2 = vpop.f32.mrb[64].mxu1  ;;  %8522 = vmatprep.subr.bf16.mxu1 %v10962_v62  ;;  %v10236_v20 = vpop.permute.xlu1 %5183 }
 0x1e9   : > { %v2076_v43 = vadd.f32 %v2068_v2, %v1975_v18  ;;  %v8358_v58 = vpop.f32.mrb[65].mxu1  ;;  %4878 = vmatprep.subr.bf16.mxu0 %v4873_v57  ;;  %4809 = vmatprep.mubr.bf16.mxu0 %v10966_v32  ;;  %v10226_v24 = vpop.permute.xlu0 %7142  ;;  %v5001_v2 = vsel %vm285_vm3, %v9840_v42, %v9819_v44 }
 0x1ea   : > { %10967 = vst [vmem:[#allocation6_spill] sm:$0xff] %v10226_v24  ;;  %v2027_v40 = vpop.f32.mrb[64].mxu0  ;;  %v2071_v9 = vpop.f32.mrb[66].mxu1  ;;  %7445 = vrot.lane.b32.xlu1 %v9718_v23, %s8763_s9  ;;  %v5004_v42 = vand.u32 %v5001_v2, %v8981_v29 }
 0x1eb   : > { %v2074_v61 = vadd.f32 %v2027_v40, %v1973_v11  ;;  %v2029_v21 = vpop.f32.mrb[65].mxu0  ;;  %v8359_v18 = vpop.f32.mrb[67].mxu1 }
 0x1ec   : > { %v2075_v35 = vadd.f32 %v2029_v21, %v1974_v36  ;;  %v2031_v14 = vpop.f32.mrb[66].mxu0  ;;  %v10250_v36 = vpop.permute.xlu1 %5288 }
 0x1ed   : > { %v2032_v57 = vpop.f32.mrb[67].mxu0  ;;  %8519 = vmatmul.mubr.msk.bf16.vlgmr.msra.gmra.mrb[172].mxu1 %vm288_vm5, %v9994_v31  ;;  %v10241_v54 = vpop.permute.xlu0 %7140 }
 0x1ee   : > { %10968 = vst [vmem:[#allocation7_spill] sm:$0xff] %v10241_v54  ;;  %8523 = vmatpush3.bf16.msra.mxu1 %v4876_v33  ;;  %7443 = vrot.lane.b32.xlu1 %v9699_v16, %s8763_s9  ;;  %v5010_v33 = vand.u32 %v10195_v27, %v8981_v29  ;;  %v5097_v27 = vand.u32 %v9393_v39, %v8981_v29 }
 0x1ef   : > { %8047 = vmatmul.mubr.msk.bf16.vlgmr.msra.gmra.mrb[172].mxu0 %vm288_vm5, %v9994_v31  ;;  %8524 = vmatprep.mubr.msk.bf16.mxu1 %vm8756_vm0, %v10962_v62 }
 0x1f0   : > { %4879 = vmatpush1.bf16.msra.mxu0 %v4870_v6  ;;  %v2169_v11 = vpop.f32.mrb[68].mxu1  ;;  %8528 = vmatprep.subr.bf16.mxu1 %v10962_v62 }
 0x1f1   : > { %v10255_v28 = vadd.f32 %v2169_v11, %v2076_v43  ;;  %v8364_v58 = vpop.f32.mrb[69].mxu1  ;;  %5012 = vmatprep.subr.bf16.mxu0 %v5007_v53  ;;  %4910 = vmatprep.mubr.bf16.mxu0 %v10966_v32  ;;  %v10258_v31 = vpop.permute.xlu0 %7245  ;;  %v5190_v11 = vsel %vm487_vm4, %v10217_v25, %v9855_v41 }
 0x1f2   : > { %10969 = vst [vmem:[#allocation8_spill] sm:$0xff] %v10258_v31  ;;  %v2128_v40 = vpop.f32.mrb[68].mxu0  ;;  %v2172_v9 = vpop.f32.mrb[70].mxu1  ;;  %7548 = vrot.lane.b32.xlu1 %v9756_v15, %s8764_s10 }
 0x1f3   : > { %v10264_v52 = vadd.f32 %v2128_v40, %v2074_v61  ;;  %v2130_v21 = vpop.f32.mrb[69].mxu0  ;;  %v8365_v44 = vpop.f32.mrb[71].mxu1  ;;  %v5094_v9 = vand.u32 %v9373_v30, %v8981_v29 }
 0x1f4   : > { %v10267_v43 = vadd.f32 %v2130_v21, %v2075_v35  ;;  %v2132_v18 = vpop.f32.mrb[70].mxu0  ;;  %v10277_v61 = vpop.permute.xlu1 %5387  ;;  %v5195_v44 = vand.u32 %v5190_v11, %v8981_v29 }
 0x1f5   : > { %v2133_v6 = vpop.f32.mrb[71].mxu0  ;;  %8525 = vmatmul.mubr.msk.bf16.vlgmr.msra.gmra.mrb[176].mxu1 %vm288_vm5, %v10027_v51  ;;  %v10273_v14 = vpop.permute.xlu0 %7344  ;;  %v10302_v18 = vld [vmem:[%s10942_s1 + $0x4] sm:$0xf] }
 0x1f6   : > { %10970 = vst [vmem:[#allocation9_spill] sm:$0xff] %v10273_v14  ;;  %8529 = vmatpush3.bf16.msra.mxu1 %v5010_v33  ;;  %7647 = vrot.lane.b32.xlu1 %v9718_v23, %s8765_s11 }
 0x1f7   : > { %8049 = vmatmul.mubr.msk.bf16.vlgmr.msra.gmra.mrb[176].mxu0 %vm288_vm5, %v10027_v51  ;;  %8530 = vmatprep.mubr.msk.bf16.mxu1 %vm8756_vm0, %v10962_v62  ;;  %v5100_v51 = vand.u32 %v9422_v34, %v8981_v29 }
 0x1f8   : > { %5013 = vmatpush1.bf16.msra.mxu0 %v5004_v42  ;;  %v2303_v35 = vpop.f32.mrb[72].mxu1  ;;  %5044 = vmatprep.mubr.bf16.mxu0 %v10966_v32  ;;  %v10296_v21 = vpop.permute.xlu1 %5385 }
 0x1f9   : > { %v8370_v57 = vpop.f32.mrb[73].mxu1  ;;  %5102 = vmatprep.subr.bf16.mxu0 %v5097_v27  ;;  %8534 = vmatprep.subr.bf16.mxu1 %v10962_v62  ;;  %v10285_v39 = vpop.permute.xlu0 %7342  ;;  %v5189_v27 = vsel %vm487_vm4, %v10236_v20, %v10217_v25 }
 0x1fa   : > { %10971 = vst [vmem:[#allocation10_spill] sm:$0xff] %v10285_v39  ;;  %v2262_v53 = vpop.f32.mrb[72].mxu0  ;;  %v2306_v2 = vpop.f32.mrb[74].mxu1  ;;  %7645 = vrot.lane.b32.xlu1 %v9699_v16, %s8765_s11  ;;  %v5192_v14 = vand.u32 %v5189_v27, %v8981_v29 }
 0x1fb   : > { %v2264_v58 = vpop.f32.mrb[73].mxu0  ;;  %v8371_v33 = vpop.f32.mrb[75].mxu1 }
 0x1fc   : > { %v2266_v40 = vpop.f32.mrb[74].mxu0  ;;  %v10314_v6 = vpop.permute.xlu1 %5490 }
 0x1fd   : > { %v2267_v42 = vpop.f32.mrb[75].mxu0  ;;  %8531 = vmatmul.mubr.msk.bf16.vlgmr.msra.gmra.mrb[180].mxu1 %vm288_vm5, %v10302_v18  ;;  %v10306_v34 = vpop.permute.xlu0 %7447 }
 0x1fe   : > { %10972 = vst [vmem:[#allocation11_spill] sm:$0xff] %v10306_v34  ;;  %8535 = vmatpush3.bf16.msra.mxu1 %v5100_v51  ;;  %8536 = vmatprep.mubr.msk.bf16.mxu1 %vm8756_vm0, %v10962_v62  ;;  %v5198_v51 = vand.u32 %v9855_v41, %v8981_v29 }
 0x1ff   : > { %8052 = vmatmul.mubr.msk.bf16.vlgmr.msra.gmra.mrb[180].mxu0 %vm288_vm5, %v10302_v18  ;;  %8540 = vmatprep.subr.bf16.mxu1 %v10962_v62 }
 0x200   : > { %5103 = vmatpush1.bf16.msra.mxu0 %v5094_v9  ;;  %v2393_v30 = vpop.f32.mrb[76].mxu1  ;;  %5134 = vmatprep.mubr.bf16.mxu0 %v10966_v32  ;;  %v5291_v9 = vsel %vm594_vm6, %v9874_v17, %v10250_v36 }
 0x201   : > { %v2394_v57 = vadd.f32 %v2393_v30, %v2303_v35  ;;  %v8376_v11 = vpop.f32.mrb[77].mxu1  ;;  %5200 = vmatprep.subr.bf16.mxu0 %v5195_v44  ;;  %v10319_v2 = vpop.permute.xlu0 %7546  ;;  %v10330_v44 = vld [vmem:[%s10942_s1] sm:$0xf]  ;;  %v5296_v41 = vand.u32 %v5291_v9, %v8981_v29 }
 0x202   : > { %10973 = vst [vmem:[#allocation12_spill] sm:$0xff] %v10319_v2  ;;  %v2352_v33 = vpop.f32.mrb[76].mxu0  ;;  %v2396_v40 = vpop.f32.mrb[78].mxu1  ;;  %v5299_v11 = vand.u32 %v10250_v36, %v8981_v29  ;;  %v10360_v36 = vld [vmem:[%s10942_s1 + $0x8] sm:$0xf] }
 0x203   : > { %v2353_v42 = vadd.f32 %v2352_v33, %v2262_v53  ;;  %v2354_v34 = vpop.f32.mrb[77].mxu0  ;;  %v8377_v39 = vpop.f32.mrb[79].mxu1 }
 0x204   : > { %v2355_v25 = vadd.f32 %v2354_v34, %v2264_v58  ;;  %v2356_v20 = vpop.f32.mrb[78].mxu0  ;;  %v10337_v39 = vpop.permute.xlu1 %5589  ;;  %v5290_v58 = vsel %vm594_vm6, %v9892_v8, %v9874_v17 }
 0x205   : > { %v2357_v35 = vpop.f32.mrb[79].mxu0  ;;  %8537 = vmatmul.mubr.msk.bf16.vlgmr.msra.gmra.mrb[184].mxu1 %vm288_vm5, %v10330_v44  ;;  %v10346_v27 = vpop.permute.xlu0 %7544 }
 0x206   : > { %8541 = vmatpush3.bf16.msra.mxu1 %v5198_v51  ;;  %8542 = vmatprep.mubr.msk.bf16.mxu1 %vm8756_vm0, %v10962_v62  ;;  %10974 = vst [vmem:[#allocation13_spill] sm:$0xff] %v10346_v27  ;;  %v5293_v35 = vand.u32 %v5290_v58, %v8981_v29  ;;  %v5391_v58 = vsel %vm701_vm7, %v10296_v21, %v10277_v61 }
 0x207   : > { %8054 = vmatmul.mubr.msk.bf16.vlgmr.msra.gmra.mrb[184].mxu0 %vm288_vm5, %v10330_v44  ;;  %8546 = vmatprep.subr.bf16.mxu1 %v10962_v62 }
 0x208   : > { %5201 = vmatpush1.bf16.msra.mxu0 %v5192_v14  ;;  %v2491_v53 = vpop.f32.mrb[80].mxu1  ;;  %5232 = vmatprep.mubr.bf16.mxu0 %v10966_v32  ;;  %v5392_v14 = vsel %vm701_vm7, %v10277_v61, %v9911_v48 }
 0x209   : > { %v2499_v34 = vadd.f32 %v2491_v53, %v2394_v57  ;;  %v8382_v30 = vpop.f32.mrb[81].mxu1  ;;  %5301 = vmatprep.subr.bf16.mxu0 %v5296_v41  ;;  %v10354_v57 = vpop.permute.xlu1 %5587  ;;  %v5397_v41 = vand.u32 %v5392_v14, %v8981_v29  ;;  %v5400_v14 = vand.u32 %v9911_v48, %v8981_v29 }
 0x20a   : > { %v2450_v51 = vpop.f32.mrb[80].mxu0  ;;  %v2494_v33 = vpop.f32.mrb[82].mxu1 }
 0x20b   : > { %v2497_v40 = vadd.f32 %v2450_v51, %v2353_v42  ;;  %v2452_v9 = vpop.f32.mrb[81].mxu0  ;;  %v8383_v20 = vpop.f32.mrb[83].mxu1 }
 0x20c   : > { %v2498_v17 = vadd.f32 %v2452_v9, %v2355_v25  ;;  %v2454_v8 = vpop.f32.mrb[82].mxu0  ;;  %v10375_v51 = vpop.permute.xlu0 %7649  ;;  %v5493_v20 = vsel %vm808_vm8, %v9926_v1, %v10314_v6 }
 0x20d   : > { %v2455_v53 = vpop.f32.mrb[83].mxu0  ;;  %8543 = vmatmul.mubr.msk.bf16.vlgmr.msra.gmra.mrb[188].mxu1 %vm288_vm5, %v10360_v36  ;;  %v10370_v25 = vpop.permute.xlu1 %5692  ;;  %10975 = vst [vmem:[#allocation14_spill] sm:$0xff] %v10375_v51  ;;  %v1242_v8 = vsub.s32 0, %v8813_v3 }
 0x20e   : > { %8547 = vmatpush3.bf16.msra.mxu1 %v5299_v11  ;;  %8548 = vmatprep.mubr.msk.bf16.mxu1 %vm8756_vm0, %v10962_v62 }
 0x20f   : > { %8056 = vmatmul.mubr.msk.bf16.vlgmr.msra.gmra.mrb[188].mxu0 %vm288_vm5, %v10360_v36  ;;  %8552 = vmatprep.subr.bf16.mxu1 %v10962_v62 }
 0x210   : > { %5302 = vmatpush1.bf16.msra.mxu0 %v5293_v35  ;;  %v2592_v42 = vpop.f32.mrb[84].mxu1  ;;  %5333 = vmatprep.mubr.bf16.mxu0 %v10966_v32  ;;  %v10385_v35 = vsel %vm808_vm8, %v9948_v10, %v9926_v1  ;;  %v10397_v1 = vld [vmem:[%s10942_s1 + $0xc] sm:$0xf]  ;;  %v5498_v10 = vand.u32 %v5493_v20, %v8981_v29 }
 0x211   : > { %v2600_v30 = vadd.f32 %v2592_v42, %v2499_v34  ;;  %v8388_v11 = vpop.f32.mrb[85].mxu1  ;;  %5402 = vmatprep.subr.bf16.mxu0 %v5397_v41  ;;  %v5394_v41 = vand.u32 %v5391_v58, %v8981_v29  ;;  %v256_v42 = vld [vmem:[%s10944_s3] sm:$0x7]  ;;  %v5501_v58 = vand.u32 %v10314_v6, %v8981_v29 }
 0x212   : > { %v2551_v33 = vpop.f32.mrb[84].mxu0  ;;  %v2595_v9 = vpop.f32.mrb[86].mxu1  ;;  %v1246_v11 = vsub.s32 1, %v8813_v3 }
 0x213   : > { %v2598_v61 = vadd.f32 %v2551_v33, %v2497_v40  ;;  %v2553_v21 = vpop.f32.mrb[85].mxu0  ;;  %v8389_v34 = vpop.f32.mrb[87].mxu1  ;;  %v1250_v9 = vsub.s32 2, %v8813_v3  ;;  %v5495_v40 = vand.u32 %v10385_v35, %v8981_v29  ;;  %v10409_v3 = vrot.slane %v256_v42, %v1242_v8 }
 0x214   : > { %v2599_v53 = vadd.f32 %v2553_v21, %v2498_v17  ;;  %v2555_v48 = vpop.f32.mrb[86].mxu0  ;;  %v10411_v17 = vpop.permute.xlu1 %5791  ;;  %v10418_v33 = vrot.slane %v256_v42, %v1246_v11 }
 0x215   : > { %v2556_v51 = vpop.f32.mrb[87].mxu0  ;;  %8549 = vmatmul.mubr.msk.bf16.vlgmr.msra.gmra.mrb[192].mxu1 %vm288_vm5, %v10397_v1  ;;  %v10420_v20 = vrot.slane %v256_v42, %v1250_v9  ;;  %v5594_v48 = vsel %vm915_vm9, %v10337_v39, %v9961_v59 }
 0x216   : > { %8553 = vmatpush3.bf16.msra.mxu1 %v5400_v14  ;;  %8554 = vmatprep.mubr.msk.bf16.mxu1 %vm8756_vm0, %v10962_v62  ;;  %v5599_v24 = vand.u32 %v5594_v48, %v8981_v29 }
 0x217   : > { %8058 = vmatmul.mubr.msk.bf16.vlgmr.msra.gmra.mrb[192].mxu0 %vm288_vm5, %v10397_v1  ;;  %8558 = vmatprep.subr.bf16.mxu1 %v10962_v62 }
 0x218   : > { %5403 = vmatpush1.bf16.msra.mxu0 %v5394_v41  ;;  %v10415_v51 = vpop.permute.xlu0 %1230  ;;  %v2693_v14 = vpop.f32.mrb[88].mxu1  ;;  %5434 = vmatprep.mubr.bf16.mxu0 %v10966_v32 }
 0x219   : > { %v2701_v35 = vadd.f32 %v2693_v14, %v2600_v30  ;;  %v8394_v21 = vpop.f32.mrb[89].mxu1  ;;  %5503 = vmatprep.subr.bf16.mxu0 %v5498_v10  ;;  %v1233_v34 = vadd.f32 %v10415_v51, %v10017_v37  ;;  %v1234_v8 = vadd.f32 %v10415_v51, %v10020_v45  ;;  %v1235_v6 = vadd.f32 %v10415_v51, %v10011_v38 }
 0x21a   : > { %v2652_v41 = vpop.f32.mrb[88].mxu0  ;;  %v2696_v42 = vpop.f32.mrb[90].mxu1  ;;  %v2178_v30 = vadd.f32 %v10264_v52, %v10415_v51  ;;  %v2179_v11 = vadd.f32 %v10267_v43, %v10415_v51  ;;  %v2180_v37 = vadd.f32 %v10255_v28, %v10415_v51  ;;  %v10441_v43 = vld [vmem:[%s10942_s1 + $0x10] sm:$0xf] }
 0x21b   : > { %v2699_v9 = vadd.f32 %v2652_v41, %v2598_v61  ;;  %v2654_v45 = vpop.f32.mrb[89].mxu0  ;;  %v8395_v10 = vpop.f32.mrb[91].mxu1  ;;  %v1236_v14 = vmax.f32 %v1233_v34, 0.0  ;;  %v1237_v38 = vmax.f32 %v1234_v8, 0.0  ;;  %v1238_v21 = vmax.f32 %v1235_v6, 0.0 }
 0x21c   : > { %v2700_v27 = vadd.f32 %v2654_v45, %v2599_v53  ;;  %v2656_v2 = vpop.f32.mrb[90].mxu0  ;;  %v2181_v31 = vmax.f32 %v2178_v30, 0.0  ;;  %v2182_v54 = vmax.f32 %v2179_v11, 0.0  ;;  %v2183_v42 = vmax.f32 %v2180_v37, 0.0  ;;  %v10448_v53 = vpop.permute.xlu1 %5789 }
 0x21d   : > { %v2657_v52 = vpop.f32.mrb[91].mxu0  ;;  %8555 = vmatmul.mubr.msk.bf16.vlgmr.msra.gmra.mrb[196].mxu1 %vm288_vm5, %v10441_v43  ;;  %v1255_v28 = vmul.f32 %v10409_v3, %v1236_v14  ;;  %v1256_v61 = vmul.f32 %v10418_v33, %v1237_v38  ;;  %v1257_v2 = vmul.f32 %v10420_v20, %v1238_v21  ;;  %v5602_v14 = vand.u32 %v9961_v59, %v8981_v29  ;;  %v10475_v59 = vld [vmem:[%s10942_s1 + $0x14] sm:$0xf] }
 0x21e   : > { %8559 = vmatpush3.bf16.msra.mxu1 %v5501_v58  ;;  %v2184_v34 = vmul.f32 %v2181_v31, %v10409_v3  ;;  %v2185_v8 = vmul.f32 %v2182_v54, %v10418_v33  ;;  %v2186_v6 = vmul.f32 %v2183_v42, %v10420_v20  ;;  %8560 = vmatprep.mubr.msk.bf16.mxu1 %vm8756_vm0, %v10962_v62 }
 0x21f   : > { %8060 = vmatmul.mubr.msk.bf16.vlgmr.msra.gmra.mrb[196].mxu0 %vm288_vm5, %v10441_v43  ;;  %v1258_v41 = vadd.f32 %v1256_v61, %v1255_v28  ;;  %v1260_v48 = vsel %vm1259_vm12, %v1257_v2, 0.0  ;;  %8564 = vmatprep.subr.bf16.mxu1 %v10962_v62  ;;  %v5593_v54 = vsel %vm915_vm9, %v10354_v57, %v10337_v39  ;;  %v5695_v42 = vsel %vm1022_vm10, %v9978_v19, %v10370_v25 }
 0x220   : > { %5504 = vmatpush1.bf16.msra.mxu0 %v5495_v40  ;;  %v2794_v30 = vpop.f32.mrb[92].mxu1  ;;  %v2187_v58 = vadd.f32 %v2185_v8, %v2184_v34  ;;  %v2188_v31 = vsel %vm1259_vm12, %v2186_v6, 0.0  ;;  %5535 = vmatprep.mubr.bf16.mxu0 %v10966_v32  ;;  %v10464_v10 = vpop.permute.xlu1 %5927  ;;  %v5596_v57 = vand.u32 %v5593_v54, %v8981_v29  ;;  %v5700_v2 = vand.u32 %v5695_v42, %v8981_v29 }
 0x221   : > { %v2802_v11 = vadd.f32 %v2794_v30, %v2701_v35  ;;  %v1261_v37 = vadd.f32 %v1260_v48, %v1258_v41  ;;  %v8400_v45 = vpop.f32.mrb[93].mxu1  ;;  %5604 = vmatprep.subr.bf16.mxu0 %v5599_v24  ;;  %v5694_v34 = vsel %vm1022_vm10, %v9989_v13, %v9978_v19  ;;  %v5703_v41 = vand.u32 %v10370_v25, %v8981_v29  ;;  %v10501_v25 = vld [vmem:[%s10942_s1 + $0x18] sm:$0xf] }
 0x222   : > { %v2753_v40 = vpop.f32.mrb[92].mxu0  ;;  %v2189_v38 = vadd.f32 %v2188_v31, %v2187_v58  ;;  %v2797_v21 = vpop.f32.mrb[94].mxu1  ;;  %v5796_v30 = vsel %vm1129_vm11, %v10411_v17, %v10006_v26  ;;  %v5697_v45 = vand.u32 %v5694_v34, %v8981_v29 }
 0x223   : > { %v2800_v52 = vadd.f32 %v2753_v40, %v2699_v9  ;;  %v2755_v28 = vpop.f32.mrb[93].mxu0  ;;  %1262 = vadd.xlane.f32.xlu1 %v1261_v37  ;;  %v8401_v39 = vpop.f32.mrb[95].mxu1  ;;  %v5801_v19 = vand.u32 %v5796_v30, %v8981_v29  ;;  %v5795_v21 = vsel %vm1129_vm11, %v10448_v53, %v10411_v17 }
 0x224   : > { %v2801_v35 = vadd.f32 %v2755_v28, %v2700_v27  ;;  %2190 = vadd.xlane.f32.xlu0 %v2189_v38  ;;  %v2757_v24 = vpop.f32.mrb[94].mxu0  ;;  %v10485_v27 = vpop.permute.xlu1 %6113  ;;  %v5804_v39 = vand.u32 %v10006_v26, %v8981_v29 }
 0x225   : > { %v2758_v61 = vpop.f32.mrb[95].mxu0  ;;  %8561 = vmatmul.mubr.msk.bf16.vlgmr.msra.gmra.mrb[200].mxu1 %vm288_vm5, %v10475_v59  ;;  %v10976_v24 = vld [vmem:[#allocation2_spill] sm:$0xff] }
 0x226   : > { %8565 = vmatpush3.bf16.msra.mxu1 %v5602_v14  ;;  %8566 = vmatprep.mubr.msk.bf16.mxu1 %vm8756_vm0, %v10962_v62  ;;  %v5930_v61 = vsel %vm285_vm3, %v10976_v24, %v10464_v10 }
 0x227   : > { %8062 = vmatmul.mubr.msk.bf16.vlgmr.msra.gmra.mrb[200].mxu0 %vm288_vm5, %v10475_v59  ;;  %8570 = vmatprep.subr.bf16.mxu1 %v10962_v62  ;;  %v5935_v26 = vand.u32 %v5930_v61, %v8981_v29  ;;  %v10551_v61 = vld [vmem:[%s10942_s1 + $0x20] sm:$0xf] }
 0x228   : > { %5605 = vmatpush1.bf16.msra.mxu0 %v5596_v57  ;;  %v2895_v9 = vpop.f32.mrb[96].mxu1  ;;  %5636 = vmatprep.mubr.bf16.mxu0 %v10966_v32 }
 0x229   : > { %v2903_v8 = vadd.f32 %v2895_v9, %v2802_v11  ;;  %v8406_v6 = vpop.f32.mrb[97].mxu1  ;;  %5705 = vmatprep.subr.bf16.mxu0 %v5700_v2  ;;  %v10505_v11 = vpop.permute.xlu1 %6111 }
 0x22a   : > { %v2854_v48 = vpop.f32.mrb[96].mxu0  ;;  %v2898_v58 = vpop.f32.mrb[98].mxu1  ;;  %v5798_v6 = vand.u32 %v5795_v21, %v8981_v29 }
 0x22b   : > { %v2901_v31 = vadd.f32 %v2854_v48, %v2800_v52  ;;  %v2856_v54 = vpop.f32.mrb[97].mxu0  ;;  %v8407_v37 = vpop.f32.mrb[99].mxu1  ;;  %v10977_v58 = vld [vmem:[#allocation3_spill] sm:$0xff] }
 0x22c   : > { %v2902_v14 = vadd.f32 %v2856_v54, %v2801_v35  ;;  %v2858_v40 = vpop.f32.mrb[98].mxu0 }
 0x22d   : > { %v2859_v13 = vpop.f32.mrb[99].mxu0  ;;  %8567 = vmatmul.mubr.msk.bf16.vlgmr.msra.gmra.mrb[204].mxu1 %vm288_vm5, %v10501_v25  ;;  %v10516_v28 = vpop.permute.xlu1 %6216 }
 0x22e   : > { %8571 = vmatpush3.bf16.msra.mxu1 %v5703_v41  ;;  %8572 = vmatprep.mubr.msk.bf16.mxu1 %vm8756_vm0, %v10962_v62  ;;  %v10527_v41 = vld [vmem:[%s10942_s1 + $0x1c] sm:$0xf] }
 0x22f   : > { %8064 = vmatmul.mubr.msk.bf16.vlgmr.msra.gmra.mrb[204].mxu0 %vm288_vm5, %v10501_v25  ;;  %8576 = vmatprep.subr.bf16.mxu1 %v10962_v62 }
 0x230   : > { %5706 = vmatpush1.bf16.msra.mxu0 %v5697_v45  ;;  %v2996_v38 = vpop.f32.mrb[100].mxu1  ;;  %5737 = vmatprep.mubr.bf16.mxu0 %v10966_v32  ;;  %v5938_v45 = vand.u32 %v10464_v10, %v8981_v29  ;;  %v6025_v10 = vand.u32 %v9556_v4, %v8981_v29 }
 0x231   : > { %v3004_v42 = vadd.f32 %v2996_v38, %v2903_v8  ;;  %v8412_v52 = vpop.f32.mrb[101].mxu1  ;;  %5806 = vmatprep.subr.bf16.mxu0 %v5801_v19  ;;  %v10537_v48 = vpop.permute.xlu1 %6315 }
 0x232   : > { %v2955_v57 = vpop.f32.mrb[100].mxu0  ;;  %v2999_v35 = vpop.f32.mrb[102].mxu1 }
 0x233   : > { %v3002_v2 = vadd.f32 %v2955_v57, %v2901_v31  ;;  %v2957_v9 = vpop.f32.mrb[101].mxu0  ;;  %v8413_v34 = vpop.f32.mrb[103].mxu1  ;;  %v5929_v31 = vsel %vm285_vm3, %v10977_v58, %v10976_v24 }
 0x234   : > { %v3003_v17 = vadd.f32 %v2957_v9, %v2902_v14  ;;  %v2959_v53 = vpop.f32.mrb[102].mxu0  ;;  %v5932_v52 = vand.u32 %v5929_v31, %v8981_v29  ;;  %v10978_v31 = vld [vmem:[#allocation4_spill] sm:$0xff] }
 0x235   : > { %v2960_v8 = vpop.f32.mrb[103].mxu0  ;;  %8573 = vmatmul.mubr.msk.bf16.vlgmr.msra.gmra.mrb[208].mxu1 %vm288_vm5, %v10527_v41 }
 0x236   : > { %8577 = vmatpush3.bf16.msra.mxu1 %v5804_v39  ;;  %8578 = vmatprep.mubr.msk.bf16.mxu1 %vm8756_vm0, %v10962_v62 }
 0x237   : > { %8066 = vmatmul.mubr.msk.bf16.vlgmr.msra.gmra.mrb[208].mxu0 %vm288_vm5, %v10527_v41  ;;  %8582 = vmatprep.subr.bf16.mxu1 %v10962_v62 }
 0x238   : > { %5807 = vmatpush1.bf16.msra.mxu0 %v5798_v6  ;;  %v3097_v30 = vpop.f32.mrb[104].mxu1  ;;  %5838 = vmatprep.mubr.bf16.mxu0 %v10966_v32 }
 0x239   : > { %v3105_v54 = vadd.f32 %v3097_v30, %v3004_v42  ;;  %v8418_v37 = vpop.f32.mrb[105].mxu1  ;;  %5940 = vmatprep.subr.bf16.mxu0 %v5935_v26 }
 0x23a   : > { %v3056_v14 = vpop.f32.mrb[104].mxu0  ;;  %v3100_v40 = vpop.f32.mrb[106].mxu1 }
 0x23b   : > { %v3108_v19 = vadd.f32 %v3105_v54, %v10415_v51  ;;  %v3103_v13 = vadd.f32 %v3056_v14, %v3002_v2  ;;  %v3058_v38 = vpop.f32.mrb[105].mxu0  ;;  %v8419_v21 = vpop.f32.mrb[107].mxu1  ;;  %v6118_v54 = vsel %vm487_vm4, %v10485_v27, %v10978_v31 }
 0x23c   : > { %v3104_v39 = vadd.f32 %v3058_v38, %v3003_v17  ;;  %v3060_v57 = vpop.f32.mrb[106].mxu0  ;;  %v10557_v2 = vpop.permute.xlu1 %6313  ;;  %v6123_v21 = vand.u32 %v6118_v54, %v8981_v29 }
 0x23d   : > { %v3111_v35 = vmax.f32 %v3108_v19, 0.0  ;;  %v3106_v24 = vadd.f32 %v3103_v13, %v10415_v51  ;;  %v3061_v42 = vpop.f32.mrb[107].mxu0  ;;  %8579 = vmatmul.mubr.msk.bf16.vlgmr.msra.gmra.mrb[212].mxu1 %vm288_vm5, %v10551_v61  ;;  %v6022_v13 = vand.u32 %v9535_v50, %v8981_v29 }
 0x23e   : > { %v3107_v9 = vadd.f32 %v3104_v39, %v10415_v51  ;;  %8583 = vmatpush3.bf16.msra.mxu1 %v5938_v45  ;;  %8584 = vmatprep.mubr.msk.bf16.mxu1 %vm8756_vm0, %v10962_v62  ;;  %v6028_v45 = vand.u32 %v9584_v56, %v8981_v29 }
 0x23f   : > { %v3109_v34 = vmax.f32 %v3106_v24, 0.0  ;;  %8068 = vmatmul.mubr.msk.bf16.vlgmr.msra.gmra.mrb[212].mxu0 %vm288_vm5, %v10551_v61  ;;  %8588 = vmatprep.subr.bf16.mxu1 %v10962_v62  ;;  %v3114_v4 = vmul.f32 %v3111_v35, %v10420_v20  ;;  %v6117_v35 = vsel %vm487_vm4, %v10505_v11, %v10485_v27 }
 0x240   : > { %v3110_v6 = vmax.f32 %v3107_v9, 0.0  ;;  %5941 = vmatpush1.bf16.msra.mxu0 %v5932_v52  ;;  %v3231_v17 = vpop.f32.mrb[108].mxu1  ;;  %5972 = vmatprep.mubr.bf16.mxu0 %v10966_v32  ;;  %v10568_v26 = vpop.permute.xlu1 %6418  ;;  %v6120_v54 = vand.u32 %v6117_v35, %v8981_v29 }
 0x241   : > { %v3112_v53 = vmul.f32 %v3109_v34, %v10409_v3  ;;  %v8424_v8 = vpop.f32.mrb[109].mxu1  ;;  %6030 = vmatprep.subr.bf16.mxu0 %v6025_v10  ;;  %v3116_v39 = vsel %vm1259_vm12, %v3114_v4, 0.0  ;;  %v6126_v10 = vand.u32 %v10978_v31, %v8981_v29 }
 0x242   : > { %v3113_v30 = vmul.f32 %v3110_v6, %v10418_v33  ;;  %v3190_v58 = vpop.f32.mrb[108].mxu0  ;;  %v3234_v37 = vpop.f32.mrb[110].mxu1  ;;  %v10979_v6 = vld [vmem:[#allocation5_spill] sm:$0xff] }
 0x243   : > { %v3192_v14 = vpop.f32.mrb[109].mxu0  ;;  %v8425_v40 = vpop.f32.mrb[111].mxu1  ;;  %v6219_v4 = vsel %vm594_vm6, %v10979_v6, %v10516_v28 }
 0x244   : > { %v3194_v19 = vpop.f32.mrb[110].mxu0  ;;  %v3115_v38 = vadd.f32 %v3113_v30, %v3112_v53  ;;  %v10587_v50 = vpop.permute.xlu1 %6517  ;;  %v6224_v37 = vand.u32 %v6219_v4, %v8981_v29 }
 0x245   : > { %v3195_v52 = vpop.f32.mrb[111].mxu0  ;;  %8585 = vmatmul.mubr.msk.bf16.vlgmr.msra.gmra.mrb[216].mxu1 %vm288_vm5, %v10302_v18 }
 0x246   : > { %v3117_v57 = vadd.f32 %v3116_v39, %v3115_v38  ;;  %8589 = vmatpush3.bf16.msra.mxu1 %v6028_v45  ;;  %8590 = vmatprep.mubr.msk.bf16.mxu1 %vm8756_vm0, %v10962_v62  ;;  %v6218_v45 = vsel %vm594_vm6, %v10079_v7, %v10979_v6 }
 0x247   : > { %8071 = vmatmul.mubr.msk.bf16.vlgmr.msra.gmra.mrb[216].mxu0 %vm288_vm5, %v10302_v18  ;;  %8594 = vmatprep.subr.bf16.mxu1 %v10962_v62  ;;  %v6221_v35 = vand.u32 %v6218_v45, %v8981_v29 }
 0x248   : > { %6031 = vmatpush1.bf16.msra.mxu0 %v6022_v13  ;;  %3118 = vadd.xlane.f32.xlu1 %v3117_v57  ;;  %v3321_v56 = vpop.f32.mrb[112].mxu1  ;;  %v10602_v31 = vpop.permute.xlu1 %6515  ;;  %v6227_v13 = vand.u32 %v10516_v28, %v8981_v29 }
 0x249   : > { %v3322_v24 = vadd.f32 %v3321_v56, %v3231_v17  ;;  %v8430_v42 = vpop.f32.mrb[113].mxu1  ;;  %6128 = vmatprep.subr.bf16.mxu0 %v6123_v21  ;;  %6062 = vmatprep.mubr.bf16.mxu0 %v10966_v32  ;;  %v6320_v21 = vsel %vm701_vm7, %v10537_v48, %v10091_v22 }
 0x24a   : > { %v3280_v9 = vpop.f32.mrb[112].mxu0  ;;  %v3324_v34 = vpop.f32.mrb[114].mxu1  ;;  %v6325_v42 = vand.u32 %v6320_v21, %v8981_v29  ;;  %v6429_v21 = vand.u32 %v10568_v26, %v8981_v29 }
 0x24b   : > { %v3281_v53 = vadd.f32 %v3280_v9, %v3190_v58  ;;  %v3282_v8 = vpop.f32.mrb[113].mxu0  ;;  %v8431_v30 = vpop.f32.mrb[115].mxu1  ;;  %v6319_v9 = vsel %vm701_vm7, %v10557_v2, %v10537_v48 }
 0x24c   : > { %v3283_v27 = vadd.f32 %v3282_v8, %v3192_v14  ;;  %v3284_v11 = vpop.f32.mrb[114].mxu0  ;;  %v10613_v19 = vpop.permute.xlu1 %6620 }
 0x24d   : > { %v3285_v17 = vpop.f32.mrb[115].mxu0  ;;  %8591 = vmatmul.mubr.msk.bf16.vlgmr.msra.gmra.mrb[220].mxu1 %vm288_vm5, %v10330_v44 }
 0x24e   : > { %8595 = vmatpush3.bf16.msra.mxu1 %v6126_v10  ;;  %8596 = vmatprep.mubr.msk.bf16.mxu1 %vm8756_vm0, %v10962_v62 }
 0x24f   : > { %8073 = vmatmul.mubr.msk.bf16.vlgmr.msra.gmra.mrb[220].mxu0 %vm288_vm5, %v10330_v44  ;;  %8600 = vmatprep.subr.bf16.mxu1 %v10962_v62 }
 0x250   : > { %6129 = vmatpush1.bf16.msra.mxu0 %v6120_v54  ;;  %v3419_v58 = vpop.f32.mrb[116].mxu1  ;;  %6160 = vmatprep.mubr.bf16.mxu0 %v10966_v32  ;;  %v10633_v4 = vpop.permute.xlu1 %6719  ;;  %v6421_v54 = vsel %vm808_vm8, %v10107_v47, %v10568_v26 }
 0x251   : > { %v3427_v14 = vadd.f32 %v3419_v58, %v3322_v24  ;;  %v8436_v40 = vpop.f32.mrb[117].mxu1  ;;  %6229 = vmatprep.subr.bf16.mxu0 %v6224_v37  ;;  %v6322_v37 = vand.u32 %v6319_v9, %v8981_v29  ;;  %v6426_v45 = vand.u32 %v6421_v54, %v8981_v29  ;;  %v6623_v54 = vsel %vm1022_vm10, %v10148_v55, %v10613_v19 }
 0x252   : > { %v3378_v38 = vpop.f32.mrb[116].mxu0  ;;  %v3422_v52 = vpop.f32.mrb[118].mxu1 }
 0x253   : > { %v3425_v39 = vadd.f32 %v3378_v38, %v3281_v53  ;;  %v3380_v57 = vpop.f32.mrb[117].mxu0  ;;  %v8437_v56 = vpop.f32.mrb[119].mxu1  ;;  %v6328_v53 = vand.u32 %v10091_v22, %v8981_v29 }
 0x254   : > { %v3426_v7 = vadd.f32 %v3380_v57, %v3283_v27  ;;  %v3382_v24 = vpop.f32.mrb[118].mxu0  ;;  %v10653_v38 = vpop.permute.xlu1 %6717 }
 0x255   : > { %v3383_v10 = vpop.f32.mrb[119].mxu0  ;;  %8597 = vmatmul.mubr.msk.bf16.vlgmr.msra.gmra.mrb[224].mxu1 %vm288_vm5, %v10360_v36 }
 0x256   : > { %8601 = vmatpush3.bf16.msra.mxu1 %v6227_v13  ;;  %8602 = vmatprep.mubr.msk.bf16.mxu1 %vm8756_vm0, %v10962_v62 }
 0x257   : > { %8075 = vmatmul.mubr.msk.bf16.vlgmr.msra.gmra.mrb[224].mxu0 %vm288_vm5, %v10360_v36  ;;  %8606 = vmatprep.subr.bf16.mxu1 %v10962_v62 }
 0x258   : > { %6230 = vmatpush1.bf16.msra.mxu0 %v6221_v35  ;;  %v3520_v28 = vpop.f32.mrb[120].mxu1  ;;  %6261 = vmatprep.mubr.bf16.mxu0 %v10966_v32 }
 0x259   : > { %v3528_v34 = vadd.f32 %v3520_v28, %v3427_v14  ;;  %v8442_v6 = vpop.f32.mrb[121].mxu1  ;;  %6330 = vmatprep.subr.bf16.mxu0 %v6325_v42  ;;  %v6420_v14 = vsel %vm808_vm8, %v10119_v60, %v10107_v47  ;;  %v6521_v28 = vsel %vm915_vm9, %v10602_v31, %v10587_v50 }
 0x25a   : > { %v3479_v8 = vpop.f32.mrb[120].mxu0  ;;  %v3523_v30 = vpop.f32.mrb[122].mxu1  ;;  %v6423_v24 = vand.u32 %v6420_v14, %v8981_v29 }
 0x25b   : > { %v3526_v27 = vadd.f32 %v3479_v8, %v3425_v39  ;;  %v3481_v11 = vpop.f32.mrb[121].mxu0  ;;  %v8443_v17 = vpop.f32.mrb[123].mxu1  ;;  %v6522_v39 = vsel %vm915_vm9, %v10587_v50, %v10135_v12 }
 0x25c   : > { %v3527_v48 = vadd.f32 %v3481_v11, %v3426_v7  ;;  %v3483_v2 = vpop.f32.mrb[122].mxu0  ;;  %v6527_v42 = vand.u32 %v6522_v39, %v8981_v29  ;;  %v10673_v6 = vpop.permute.xlu1 %6855 }
 0x25d   : > { %v3484_v58 = vpop.f32.mrb[123].mxu0  ;;  %8603 = vmatmul.mubr.msk.bf16.vlgmr.msra.gmra.mrb[228].mxu1 %vm288_vm5, %v10397_v1  ;;  %v6628_v2 = vand.u32 %v6623_v54, %v8981_v29 }
 0x25e   : > { %8607 = vmatpush3.bf16.msra.mxu1 %v6328_v53  ;;  %8608 = vmatprep.mubr.msk.bf16.mxu1 %vm8756_vm0, %v10962_v62  ;;  %v6530_v53 = vand.u32 %v10135_v12, %v8981_v29  ;;  %v6622_v58 = vsel %vm1022_vm10, %v10162_v0, %v10148_v55 }
 0x25f   : > { %8077 = vmatmul.mubr.msk.bf16.vlgmr.msra.gmra.mrb[228].mxu0 %vm288_vm5, %v10397_v1  ;;  %8612 = vmatprep.subr.bf16.mxu1 %v10962_v62 }
 0x260   : > { %6331 = vmatpush1.bf16.msra.mxu0 %v6322_v37  ;;  %v3621_v22 = vpop.f32.mrb[124].mxu1  ;;  %6362 = vmatprep.mubr.bf16.mxu0 %v10966_v32  ;;  %v6524_v37 = vand.u32 %v6521_v28, %v8981_v29  ;;  %v10693_v14 = vpop.permute.xlu1 %7041 }
 0x261   : > { %v3629_v40 = vadd.f32 %v3621_v22, %v3528_v34  ;;  %v8448_v13 = vpop.f32.mrb[125].mxu1  ;;  %6431 = vmatprep.subr.bf16.mxu0 %v6426_v45 }
 0x262   : > { %v3580_v52 = vpop.f32.mrb[124].mxu0  ;;  %v3624_v57 = vpop.f32.mrb[126].mxu1 }
 0x263   : > { %v3627_v56 = vadd.f32 %v3580_v52, %v3526_v27  ;;  %v3582_v35 = vpop.f32.mrb[125].mxu0  ;;  %v8449_v7 = vpop.f32.mrb[127].mxu1 }
 0x264   : > { %v3628_v47 = vadd.f32 %v3582_v35, %v3527_v48  ;;  %v3584_v60 = vpop.f32.mrb[126].mxu0  ;;  %v6625_v35 = vand.u32 %v6622_v58, %v8981_v29 }
 0x265   : > { %v3585_v10 = vpop.f32.mrb[127].mxu0  ;;  %8609 = vmatmul.mubr.msk.bf16.vlgmr.msra.gmra.mrb[232].mxu1 %vm288_vm5, %v10441_v43 }
 0x266   : > { %8613 = vmatpush3.bf16.msra.mxu1 %v6429_v21  ;;  %8614 = vmatprep.mubr.msk.bf16.mxu1 %vm8756_vm0, %v10962_v62  ;;  %v6724_v21 = vsel %vm1129_vm11, %v10633_v4, %v10173_v49  ;;  %v10713_v10 = vpop.permute.xlu1 %7039 }
 0x267   : > { %8079 = vmatmul.mubr.msk.bf16.vlgmr.msra.gmra.mrb[232].mxu0 %vm288_vm5, %v10441_v43  ;;  %8618 = vmatprep.subr.bf16.mxu1 %v10962_v62  ;;  %v6729_v7 = vand.u32 %v6724_v21, %v8981_v29 }
 0x268   : > { %6432 = vmatpush1.bf16.msra.mxu0 %v6423_v24  ;;  %v3722_v26 = vpop.f32.mrb[128].mxu1  ;;  %6463 = vmatprep.mubr.bf16.mxu0 %v10966_v32 }
 0x269   : > { %v3730_v9 = vadd.f32 %v3722_v26, %v3629_v40  ;;  %v8454_v34 = vpop.f32.mrb[129].mxu1  ;;  %6532 = vmatprep.subr.bf16.mxu0 %v6527_v42  ;;  %v6631_v40 = vand.u32 %v10613_v19, %v8981_v29  ;;  %v6732_v26 = vand.u32 %v10173_v49, %v8981_v29 }
 0x26a   : > { %v3681_v8 = vpop.f32.mrb[128].mxu0  ;;  %v3725_v30 = vpop.f32.mrb[130].mxu1  ;;  %v6858_v34 = vsel %vm285_vm3, %v10186_v46, %v10673_v6 }
 0x26b   : > { %v3728_v27 = vadd.f32 %v3681_v8, %v3627_v56  ;;  %v3683_v11 = vpop.f32.mrb[129].mxu0  ;;  %v8455_v17 = vpop.f32.mrb[131].mxu1 }
 0x26c   : > { %v3729_v50 = vadd.f32 %v3683_v11, %v3628_v47  ;;  %v3685_v31 = vpop.f32.mrb[130].mxu0  ;;  %v6723_v47 = vsel %vm1129_vm11, %v10653_v38, %v10633_v4  ;;  %v6863_v11 = vand.u32 %v6858_v34, %v8981_v29  ;;  %v6857_v17 = vsel %vm285_vm3, %v10201_v5, %v10186_v46 }
 0x26d   : > { %v3686_v48 = vpop.f32.mrb[131].mxu0  ;;  %8615 = vmatmul.mubr.msk.bf16.vlgmr.msra.gmra.mrb[236].mxu1 %vm288_vm5, %v10475_v59  ;;  %v6726_v54 = vand.u32 %v6723_v47, %v8981_v29  ;;  %v10733_v31 = vpop.permute.xlu1 %7144  ;;  %v7046_v47 = vsel %vm487_vm4, %v10693_v14, %v10213_v63  ;;  %vm7813_vm3 = vcmask 64512  }
 0x26e   : > { %8619 = vmatpush3.bf16.msra.mxu1 %v6530_v53  ;;  %8620 = vmatprep.mubr.msk.bf16.mxu1 %vm8756_vm0, %v10962_v62  ;;  %v6866_v48 = vand.u32 %v10673_v6, %v8981_v29  ;;  %v6953_v6 = vand.u32 %v9718_v23, %v8981_v29 }
 0x26f   : > { %8081 = vmatmul.mubr.msk.bf16.vlgmr.msra.gmra.mrb[236].mxu0 %vm288_vm5, %v10475_v59  ;;  %8624 = vmatprep.subr.bf16.mxu1 %v10962_v62 }
 0x270   : > { %6533 = vmatpush1.bf16.msra.mxu0 %v6524_v37  ;;  %v3823_v12 = vpop.f32.mrb[132].mxu1  ;;  %6564 = vmatprep.mubr.bf16.mxu0 %v10966_v32 }
 0x271   : > { %v3831_v45 = vadd.f32 %v3823_v12, %v3730_v9  ;;  %v8460_v22 = vpop.f32.mrb[133].mxu1  ;;  %6633 = vmatprep.subr.bf16.mxu0 %v6628_v2 }
 0x272   : > { %v3782_v13 = vpop.f32.mrb[132].mxu0  ;;  %v3826_v52 = vpop.f32.mrb[134].mxu1 }
 0x273   : > { %v3829_v39 = vadd.f32 %v3782_v13, %v3728_v27  ;;  %v3784_v57 = vpop.f32.mrb[133].mxu0  ;;  %v8461_v56 = vpop.f32.mrb[135].mxu1  ;;  %v6860_v13 = vand.u32 %v6857_v17, %v8981_v29  ;;  %v7054_v17 = vand.u32 %v10213_v63, %v8981_v29  ;;  %v8745_v63 = vld [vmem:[%s10942_s1] sm:$0xf] }
 0x274   : > { %v3830_v55 = vadd.f32 %v3784_v57, %v3729_v50  ;;  %v3786_v0 = vpop.f32.mrb[134].mxu0 }
 0x275   : > { %v3787_v24 = vpop.f32.mrb[135].mxu0  ;;  %8621 = vmatmul.mubr.msk.bf16.vlgmr.msra.gmra.mrb[240].mxu1 %vm288_vm5, %v10501_v25 }
 0x276   : > { %8625 = vmatpush3.bf16.msra.mxu1 %v6631_v40  ;;  %8626 = vmatprep.mubr.msk.bf16.mxu1 %vm8756_vm0, %v10962_v62  ;;  %v10753_v24 = vpop.permute.xlu1 %7243 }
 0x277   : > { %8083 = vmatmul.mubr.msk.bf16.vlgmr.msra.gmra.mrb[240].mxu0 %vm288_vm5, %v10501_v25  ;;  %8630 = vmatprep.subr.bf16.mxu1 %v10962_v62 }
 0x278   : > { %6634 = vmatpush1.bf16.msra.mxu0 %v6625_v35  ;;  %v3924_v19 = vpop.f32.mrb[136].mxu1  ;;  %6665 = vmatprep.mubr.bf16.mxu0 %v10966_v32 }
 0x279   : > { %v3932_v60 = vadd.f32 %v3924_v19, %v3831_v45  ;;  %v8466_v42 = vpop.f32.mrb[137].mxu1  ;;  %6734 = vmatprep.subr.bf16.mxu0 %v6729_v7 }
 0x27a   : > { %v3883_v28 = vpop.f32.mrb[136].mxu0  ;;  %v3927_v9 = vpop.f32.mrb[138].mxu1 }
 0x27b   : > { %v3930_v53 = vadd.f32 %v3883_v28, %v3829_v39  ;;  %v3885_v8 = vpop.f32.mrb[137].mxu0  ;;  %v8467_v30 = vpop.f32.mrb[139].mxu1 }
 0x27c   : > { %v3931_v4 = vadd.f32 %v3885_v8, %v3830_v55  ;;  %v3887_v38 = vpop.f32.mrb[138].mxu0  ;;  %v7051_v30 = vand.u32 %v7046_v47, %v8981_v29 }
 0x27d   : > { %v3888_v27 = vpop.f32.mrb[139].mxu0  ;;  %8627 = vmatmul.mubr.msk.bf16.vlgmr.msra.gmra.mrb[244].mxu1 %vm288_vm5, %v10527_v41 }
 0x27e   : > { %8631 = vmatpush3.bf16.msra.mxu1 %v6732_v26  ;;  %8632 = vmatprep.mubr.msk.bf16.mxu1 %vm8756_vm0, %v10962_v62  ;;  %v6956_v26 = vand.u32 %v9756_v15, %v8981_v29  ;;  %v8744_v15 = vld [vmem:[%s10942_s1 + $0x4] sm:$0xf] }
 0x27f   : > { %8085 = vmatmul.mubr.msk.bf16.vlgmr.msra.gmra.mrb[244].mxu0 %vm288_vm5, %v10527_v41  ;;  %8636 = vmatprep.subr.bf16.mxu1 %v10962_v62 }
 0x280   : > { %6735 = vmatpush1.bf16.msra.mxu0 %v6726_v54  ;;  %v4025_v49 = vpop.f32.mrb[140].mxu1  ;;  %6766 = vmatprep.mubr.bf16.mxu0 %v10966_v32 }
 0x281   : > { %v4033_v37 = vadd.f32 %v4025_v49, %v3932_v60  ;;  %v8472_v50 = vpop.f32.mrb[141].mxu1  ;;  %6868 = vmatprep.subr.bf16.mxu0 %v6863_v11  ;;  %v7242_v49 = vpop.permute.xlu1 %7241 }
 0x282   : > { %v3984_v2 = vpop.f32.mrb[140].mxu0  ;;  %v4028_v12 = vpop.f32.mrb[142].mxu1 }
 0x283   : > { %v4036_v58 = vadd.f32 %v4033_v37, %v10415_v51  ;;  %v4031_v45 = vadd.f32 %v3984_v2, %v3930_v53  ;;  %v3986_v22 = vpop.f32.mrb[141].mxu0  ;;  %v8473_v40 = vpop.f32.mrb[143].mxu1  ;;  %v6950_v53 = vand.u32 %v9699_v16, %v8981_v29  ;;  %v10980_v37 = vld [vmem:[#allocation6_spill] sm:$0xff] }
 0x284   : > { %v4032_v21 = vadd.f32 %v3986_v22, %v3931_v4  ;;  %v3988_v52 = vpop.f32.mrb[142].mxu0  ;;  %v7147_v50 = vsel %vm594_vm6, %v10980_v37, %v10733_v31 }
 0x285   : > { %v4039_v46 = vmax.f32 %v4036_v58, 0.0  ;;  %v4034_v5 = vadd.f32 %v4031_v45, %v10415_v51  ;;  %v3989_v39 = vpop.f32.mrb[143].mxu0  ;;  %8633 = vmatmul.mubr.msk.bf16.vlgmr.msra.gmra.mrb[248].mxu1 %vm288_vm5, %v10551_v61  ;;  %v7152_v40 = vand.u32 %v7147_v50, %v8981_v29  ;;  %v10981_v52 = vld [vmem:[#allocation7_spill] sm:$0xff] }
 0x286   : > { %v4035_v57 = vadd.f32 %v4032_v21, %v10415_v51  ;;  %8637 = vmatpush3.bf16.msra.mxu1 %v6866_v48  ;;  %8638 = vmatprep.mubr.msk.bf16.mxu1 %vm8756_vm0, %v10962_v62 }
 0x287   : > { %v4037_v56 = vmax.f32 %v4034_v5, 0.0  ;;  %8087 = vmatmul.mubr.msk.bf16.vlgmr.msra.gmra.mrb[248].mxu0 %vm288_vm5, %v10551_v61  ;;  %8642 = vmatprep.subr.bf16.mxu1 %v10962_v62  ;;  %v4042_v0 = vmul.f32 %v4039_v46, %v10420_v20  ;;  %v10798_v46 = vpop.permute.xlu1 %7346 }
 0x288   : > { %v4038_v35 = vmax.f32 %v4035_v57, 0.0  ;;  %6869 = vmatpush1.bf16.msra.mxu0 %v6860_v13  ;;  %v4159_v55 = vpop.f32.mrb[144].mxu1  ;;  %6900 = vmatprep.mubr.bf16.mxu0 %v10966_v32  ;;  %v10982_v57 = vld [vmem:[#allocation8_spill] sm:$0xff] }
 0x289   : > { %v4040_v23 = vmul.f32 %v4037_v56, %v10409_v3  ;;  %v8478_v7 = vpop.f32.mrb[145].mxu1  ;;  %6958 = vmatprep.subr.bf16.mxu0 %v6953_v6  ;;  %v4044_v4 = vsel %vm1259_vm12, %v4042_v0, 0.0  ;;  %v7155_v6 = vand.u32 %v10733_v31, %v8981_v29  ;;  %v7248_v56 = vsel %vm701_vm7, %v10753_v24, %v10982_v57 }
 0x28a   : > { %v4041_v19 = vmul.f32 %v4038_v35, %v10418_v33  ;;  %v4118_v60 = vpop.f32.mrb[144].mxu0  ;;  %v4162_v42 = vpop.f32.mrb[146].mxu1 }
 0x28b   : > { %v4120_v28 = vpop.f32.mrb[145].mxu0  ;;  %v8479_v9 = vpop.f32.mrb[147].mxu1  ;;  %v7253_v42 = vand.u32 %v7248_v56, %v8981_v29 }
 0x28c   : > { %v4122_v34 = vpop.f32.mrb[146].mxu0  ;;  %v4043_v8 = vadd.f32 %v4041_v19, %v4040_v23  ;;  %v7446_v9 = vpop.permute.xlu1 %7445 }
 0x28d   : > { %v4123_v54 = vpop.f32.mrb[147].mxu0  ;;  %8639 = vmatmul.mubr.msk.bf16.vlgmr.msra.gmra.mrb[252].mxu1 %vm288_vm5, %v10302_v18  ;;  %v7045_v18 = vsel %vm487_vm4, %v10713_v10, %v10693_v14 }
 0x28e   : > { %v4045_v38 = vadd.f32 %v4044_v4, %v4043_v8  ;;  %8643 = vmatpush3.bf16.msra.mxu1 %v6956_v26  ;;  %8644 = vmatprep.mubr.msk.bf16.mxu1 %vm8756_vm0, %v10962_v62  ;;  %v7048_v14 = vand.u32 %v7045_v18, %v8981_v29  ;;  %v7256_v8 = vand.u32 %v10982_v57, %v8981_v29 }
 0x28f   : > { %8090 = vmatmul.mubr.msk.bf16.vlgmr.msra.gmra.mrb[252].mxu0 %vm288_vm5, %v8744_v15  ;;  %8648 = vmatprep.subr.bf16.mxu1 %v10962_v62 }
 0x290   : > { %6959 = vmatpush1.bf16.msra.mxu0 %v6950_v53  ;;  %4046 = vadd.xlane.f32.xlu0 %v4045_v38  ;;  %v4249_v16 = vpop.f32.mrb[148].mxu1 }
 0x291   : > { %v4250_v27 = vadd.f32 %v4249_v16, %v4159_v55  ;;  %v8484_v11 = vpop.f32.mrb[149].mxu1  ;;  %7056 = vmatprep.subr.bf16.mxu0 %v7051_v30  ;;  %6990 = vmatprep.mubr.bf16.mxu0 %v10966_v32  ;;  %v10983_v30 = vld [vmem:[#allocation9_spill] sm:$0xff] }
 0x292   : > { %v4208_v48 = vpop.f32.mrb[148].mxu0  ;;  %v4252_v2 = vpop.f32.mrb[150].mxu1 }
 0x293   : > { %v4209_v12 = vadd.f32 %v4208_v48, %v4118_v60  ;;  %v4210_v58 = vpop.f32.mrb[149].mxu0  ;;  %v8485_v45 = vpop.f32.mrb[151].mxu1 }
 0x294   : > { %v4211_v10 = vadd.f32 %v4210_v58, %v4120_v28  ;;  %v4212_v22 = vpop.f32.mrb[150].mxu0  ;;  %v7247_v28 = vsel %vm701_vm7, %v7242_v49, %v10753_v24  ;;  %v7444_v48 = vpop.permute.xlu1 %7443  ;;  %v7357_v58 = vand.u32 %v10798_v46, %v8981_v29  ;;  %v10985_v45 = vld [vmem:[#allocation11_spill] sm:$0xff] }
 0x295   : > { %v4213_v13 = vpop.f32.mrb[151].mxu0  ;;  %8645 = vmatmul.mubr.msk.bf16.vlgmr.msra.gmra.mrb[0].mxu1 %vm288_vm5, %v10330_v44  ;;  %v7146_v44 = vsel %vm594_vm6, %v10981_v52, %v10980_v37  ;;  %v7250_v18 = vand.u32 %v7247_v28, %v8981_v29  ;;  %v10984_v37 = vld [vmem:[#allocation10_spill] sm:$0xff] }
 0x296   : > { %8649 = vmatpush3.bf16.msra.mxu1 %v7054_v17  ;;  %8650 = vmatprep.mubr.msk.bf16.mxu1 %vm8756_vm0, %v10962_v62  ;;  %v7149_v19 = vand.u32 %v7146_v44, %v8981_v29  ;;  %v7348_v50 = vsel %vm808_vm8, %v10984_v37, %v10983_v30 }
 0x297   : > { %8092 = vmatmul.mubr.msk.bf16.vlgmr.msra.gmra.mrb[0].mxu0 %vm288_vm5, %v8745_v63  ;;  %8654 = vmatprep.subr.bf16.mxu1 %v10962_v62  ;;  %v7351_v63 = vand.u32 %v7348_v50, %v8981_v29 }
 0x298   : > { %7057 = vmatpush1.bf16.msra.mxu0 %v7048_v14  ;;  %v4347_v21 = vpop.f32.mrb[152].mxu1  ;;  %7088 = vmatprep.mubr.bf16.mxu0 %v10966_v32 }
 0x299   : > { %v4355_v5 = vadd.f32 %v4347_v21, %v4250_v27  ;;  %v8490_v39 = vpop.f32.mrb[153].mxu1  ;;  %7157 = vmatprep.subr.bf16.mxu0 %v7152_v40 }
 0x29a   : > { %v4306_v35 = vpop.f32.mrb[152].mxu0  ;;  %v4350_v55 = vpop.f32.mrb[154].mxu1  ;;  %v7449_v39 = vsel %vm915_vm9, %v7444_v48, %v7446_v9 }
 0x29b   : > { %v4353_v0 = vadd.f32 %v4306_v35, %v4209_v12  ;;  %v4308_v23 = vpop.f32.mrb[153].mxu0  ;;  %v8491_v7 = vpop.f32.mrb[155].mxu1  ;;  %v7458_v35 = vand.u32 %v10985_v45, %v8981_v29  ;;  %v10986_v55 = vld [vmem:[#allocation12_spill] sm:$0xff] }
 0x29c   : > { %v4354_v47 = vadd.f32 %v4308_v23, %v4211_v10  ;;  %v4310_v60 = vpop.f32.mrb[154].mxu0 }
 0x29d   : > { %v4311_v26 = vpop.f32.mrb[155].mxu0  ;;  %8651 = vmatmul.mubr.msk.bf16.vlgmr.msra.gmra.mrb[4].mxu1 %vm288_vm5, %v10360_v36  ;;  %v7452_v60 = vand.u32 %v7449_v39, %v8981_v29 }
 0x29e   : > { %8655 = vmatpush3.bf16.msra.mxu1 %v7155_v6  ;;  %8656 = vmatprep.mubr.msk.bf16.mxu1 %vm8756_vm0, %v10962_v62  ;;  %v7549_v6 = vpop.permute.xlu1 %7548 }
 0x29f   : > { %8094 = vmatmul.mubr.msk.bf16.vlgmr.msra.gmra.mrb[4].mxu0 %vm288_vm5, %v10360_v36  ;;  %8660 = vmatprep.subr.bf16.mxu1 %v10962_v62  ;;  %v7349_v36 = vsel %vm808_vm8, %v10983_v30, %v10798_v46 }
 0x2a0   : > { %7158 = vmatpush1.bf16.msra.mxu0 %v7149_v19  ;;  %v4448_v31 = vpop.f32.mrb[156].mxu1  ;;  %7189 = vmatprep.mubr.bf16.mxu0 %v10966_v32  ;;  %v7354_v11 = vand.u32 %v7349_v36, %v8981_v29 }
 0x2a1   : > { %v4456_v34 = vadd.f32 %v4448_v31, %v4355_v5  ;;  %v8496_v53 = vpop.f32.mrb[157].mxu1  ;;  %7258 = vmatprep.subr.bf16.mxu0 %v7253_v42 }
 0x2a2   : > { %v4407_v54 = vpop.f32.mrb[156].mxu0  ;;  %v4451_v4 = vpop.f32.mrb[158].mxu1 }
 0x2a3   : > { %v4454_v38 = vadd.f32 %v4407_v54, %v4353_v0  ;;  %v4409_v15 = vpop.f32.mrb[157].mxu0  ;;  %v8497_v16 = vpop.f32.mrb[159].mxu1  ;;  %v7551_v0 = vsel %vm1022_vm10, %v10986_v55, %v7549_v6  ;;  %v7559_v54 = vand.u32 %v7549_v6, %v8981_v29  ;;  %v10988_v4 = vld [vmem:[#allocation14_spill] sm:$0xff] }
 0x2a4   : > { %v4455_v27 = vadd.f32 %v4409_v15, %v4354_v47  ;;  %v4411_v24 = vpop.f32.mrb[158].mxu0  ;;  %v7556_v31 = vand.u32 %v7551_v0, %v8981_v29 }
 0x2a5   : > { %v4412_v49 = vpop.f32.mrb[159].mxu0  ;;  %8657 = vmatmul.mubr.msk.bf16.vlgmr.msra.gmra.mrb[8].mxu1 %vm288_vm5, %v10397_v1 }
 0x2a6   : > { %8661 = vmatpush3.bf16.msra.mxu1 %v7256_v8  ;;  %8662 = vmatprep.mubr.msk.bf16.mxu1 %vm8756_vm0, %v10962_v62  ;;  %v7648_v8 = vpop.permute.xlu1 %7647 }
 0x2a7   : > { %8096 = vmatmul.mubr.msk.bf16.vlgmr.msra.gmra.mrb[8].mxu0 %vm288_vm5, %v10397_v1  ;;  %8666 = vmatprep.subr.bf16.mxu1 %v10962_v62  ;;  %v7450_v1 = vsel %vm915_vm9, %v7446_v9, %v10985_v45  ;;  %v7660_v45 = vand.u32 %v10988_v4, %v8981_v29 }
 0x2a8   : > { %7259 = vmatpush1.bf16.msra.mxu0 %v7250_v18  ;;  %v4549_v17 = vpop.f32.mrb[160].mxu1  ;;  %7290 = vmatprep.mubr.bf16.mxu0 %v10966_v32  ;;  %v7455_v44 = vand.u32 %v7450_v1, %v8981_v29 }
 0x2a9   : > { %v4557_v2 = vadd.f32 %v4549_v17, %v4456_v34  ;;  %v8502_v12 = vpop.f32.mrb[161].mxu1  ;;  %7359 = vmatprep.subr.bf16.mxu0 %v7354_v11  ;;  %v10987_v34 = vld [vmem:[#allocation13_spill] sm:$0xff] }
 0x2aa   : > { %v4508_v14 = vpop.f32.mrb[160].mxu0  ;;  %v4552_v10 = vpop.f32.mrb[162].mxu1  ;;  %v7550_v53 = vsel %vm1022_vm10, %v10987_v34, %v10986_v55 }
 0x2ab   : > { %v4555_v22 = vadd.f32 %v4508_v14, %v4454_v38  ;;  %v4510_v40 = vpop.f32.mrb[161].mxu0  ;;  %v8503_v13 = vpop.f32.mrb[163].mxu1  ;;  %v7652_v38 = vsel %vm1129_vm11, %v7648_v8, %v10988_v4  ;;  %v7553_v24 = vand.u32 %v7550_v53, %v8981_v29 }
 0x2ac   : > { %v4556_v21 = vadd.f32 %v4510_v40, %v4455_v27  ;;  %v4512_v52 = vpop.f32.mrb[162].mxu0  ;;  %v7657_v17 = vand.u32 %v7652_v38, %v8981_v29  ;;  %v7646_v50 = vpop.permute.xlu1 %7645 }
 0x2ad   : > { %v4513_v5 = vpop.f32.mrb[163].mxu0  ;;  %8663 = vmatmul.mubr.msk.bf16.vlgmr.msra.gmra.mrb[12].mxu1 %vm288_vm5, %v10441_v43 }
 0x2ae   : > { %8667 = vmatpush3.bf16.msra.mxu1 %v7357_v58  ;;  %8668 = vmatprep.mubr.msk.bf16.mxu1 %vm8756_vm0, %v10962_v62 }
 0x2af   : > { %8098 = vmatmul.mubr.msk.bf16.vlgmr.msra.gmra.mrb[12].mxu0 %vm288_vm5, %v10441_v43  ;;  %8672 = vmatprep.subr.bf16.mxu1 %v10962_v62 }
 0x2b0   : > { %7360 = vmatpush1.bf16.msra.mxu0 %v7351_v63  ;;  %v4650_v46 = vpop.f32.mrb[164].mxu1  ;;  %7391 = vmatprep.mubr.bf16.mxu0 %v10966_v32 }
 0x2b1   : > { %v4658_v57 = vadd.f32 %v4650_v46, %v4557_v2  ;;  %v8508_v56 = vpop.f32.mrb[165].mxu1  ;;  %7460 = vmatprep.subr.bf16.mxu0 %v7455_v44  ;;  %v7651_v2 = vsel %vm1129_vm11, %v7646_v50, %v7648_v8 }
 0x2b2   : > { %v4609_v23 = vpop.f32.mrb[164].mxu0  ;;  %v4653_v43 = vpop.f32.mrb[166].mxu1  ;;  %v7654_v40 = vand.u32 %v7651_v2, %v8981_v29 }
 0x2b3   : > { %v4656_v7 = vadd.f32 %v4609_v23, %v4555_v22  ;;  %v4611_v19 = vpop.f32.mrb[165].mxu0  ;;  %v8509_v47 = vpop.f32.mrb[167].mxu1 }
 0x2b4   : > { %v4657_v42 = vadd.f32 %v4611_v19, %v4556_v21  ;;  %v4613_v26 = vpop.f32.mrb[166].mxu0 }
 0x2b5   : > { %v4614_v28 = vpop.f32.mrb[167].mxu0  ;;  %8669 = vmatmul.mubr.msk.bf16.vlgmr.msra.gmra.mrb[16].mxu1 %vm288_vm5, %v10475_v59 }
 0x2b6   : > { %8673 = vmatpush3.bf16.msra.mxu1 %v7458_v35  ;;  %8674 = vmatprep.mubr.msk.bf16.mxu1 %vm8756_vm0, %v10962_v62 }
 0x2b7   : > { %8100 = vmatmul.mubr.msk.bf16.vlgmr.msra.gmra.mrb[16].mxu0 %vm288_vm5, %v10475_v59  ;;  %8678 = vmatprep.subr.bf16.mxu1 %v10962_v62 }
 0x2b8   : > { %7461 = vmatpush1.bf16.msra.mxu0 %v7452_v60  ;;  %v4751_v9 = vpop.f32.mrb[168].mxu1  ;;  %7492 = vmatprep.mubr.bf16.mxu0 %v10966_v32 }
 0x2b9   : > { %v4759_v30 = vadd.f32 %v4751_v9, %v4658_v57  ;;  %v8514_v36 = vpop.f32.mrb[169].mxu1  ;;  %7561 = vmatprep.subr.bf16.mxu0 %v7556_v31 }
 0x2ba   : > { %v4710_v59 = vpop.f32.mrb[168].mxu0  ;;  %v4754_v15 = vpop.f32.mrb[170].mxu1 }
 0x2bb   : > { %v4757_v16 = vadd.f32 %v4710_v59, %v4656_v7  ;;  %v4712_v18 = vpop.f32.mrb[169].mxu0  ;;  %v8515_v27 = vpop.f32.mrb[171].mxu1 }
 0x2bc   : > { %v4758_v11 = vadd.f32 %v4712_v18, %v4657_v42  ;;  %v4714_v49 = vpop.f32.mrb[170].mxu0 }
 0x2bd   : > { %v4715_v37 = vpop.f32.mrb[171].mxu0  ;;  %8675 = vmatmul.mubr.msk.bf16.vlgmr.msra.gmra.mrb[20].mxu1 %vm288_vm5, %v10501_v25 }
 0x2be   : > { %8679 = vmatpush3.bf16.msra.mxu1 %v7559_v54  ;;  %8680 = vmatprep.mubr.msk.bf16.mxu1 %vm8756_vm0, %v10962_v62 }
 0x2bf   : > { %8102 = vmatmul.mubr.msk.bf16.vlgmr.msra.gmra.mrb[20].mxu0 %vm288_vm5, %v10501_v25  ;;  %8684 = vmatprep.subr.bf16.mxu1 %v10962_v62 }
 0x2c0   : > { %7562 = vmatpush1.bf16.msra.mxu0 %v7553_v24  ;;  %v4852_v48 = vpop.f32.mrb[172].mxu1  ;;  %7593 = vmatprep.mubr.bf16.mxu0 %v10966_v32 }
 0x2c1   : > { %v4860_v12 = vadd.f32 %v4852_v48, %v4759_v30  ;;  %v8520_v58 = vpop.f32.mrb[173].mxu1  ;;  %7662 = vmatprep.subr.bf16.mxu0 %v7657_v17 }
 0x2c2   : > { %v4811_v1 = vpop.f32.mrb[172].mxu0  ;;  %v4855_v14 = vpop.f32.mrb[174].mxu1 }
 0x2c3   : > { %v4858_v10 = vadd.f32 %v4811_v1, %v4757_v16  ;;  %v4813_v22 = vpop.f32.mrb[173].mxu0  ;;  %v8521_v25 = vpop.f32.mrb[175].mxu1 }
 0x2c4   : > { %v4859_v13 = vadd.f32 %v4813_v22, %v4758_v11  ;;  %v4815_v63 = vpop.f32.mrb[174].mxu0 }
 0x2c5   : > { %v4816_v21 = vpop.f32.mrb[175].mxu0  ;;  %8681 = vmatmul.mubr.msk.bf16.vlgmr.msra.gmra.mrb[24].mxu1 %vm288_vm5, %v10527_v41 }
 0x2c6   : > { %8685 = vmatpush3.bf16.msra.mxu1 %v7660_v45  ;;  %8686 = vmatprep.mubr.msk.bf16.mxu1 %vm8756_vm0, %v10962_v62 }
 0x2c7   : > { %8104 = vmatmul.mubr.msk.bf16.vlgmr.msra.gmra.mrb[24].mxu0 %vm288_vm5, %v10527_v41 }
 0x2c8   : > { %7663 = vmatpush1.bf16.msra.mxu0 %v7654_v40  ;;  %v4953_v52 = vpop.f32.mrb[176].mxu1  ;;  %7694 = vmatprep.mubr.bf16.mxu0 %v10966_v32 }
 0x2c9   : > { %v4961_v44 = vadd.f32 %v4953_v52, %v4860_v12  ;;  %v8526_v5 = vpop.f32.mrb[177].mxu1  ;;  %8690 = vmatprep.subr.mxu0 %v10962_v62 }
 0x2ca   : > { %v4912_v29 = vpop.f32.mrb[176].mxu0  ;;  %v4956_v46 = vpop.f32.mrb[178].mxu1 }
 0x2cb   : > { %v4964_v39 = vadd.f32 %v4961_v44, %v10415_v51  ;;  %v4959_v6 = vadd.f32 %v4912_v29, %v4858_v10  ;;  %v4914_v57 = vpop.f32.mrb[177].mxu0  ;;  %v8527_v56 = vpop.f32.mrb[179].mxu1 }
 0x2cc   : > { %v4960_v35 = vadd.f32 %v4914_v57, %v4859_v13  ;;  %v4916_v55 = vpop.f32.mrb[178].mxu0 }
 0x2cd   : > { %v4967_v0 = vmax.f32 %v4964_v39, 0.0  ;;  %v4962_v41 = vadd.f32 %v4959_v6, %v10415_v51  ;;  %v4917_v23 = vpop.f32.mrb[179].mxu0  ;;  %8687 = vmatmul.mubr.msk.bf16.vlgmr.msra.gmra.mrb[28].mxu1 %vm288_vm5, %v10551_v61 }
 0x2ce   : > { %v4963_v32 = vadd.f32 %v4960_v35, %v10415_v51 }
 0x2cf   : > { %v4965_v43 = vmax.f32 %v4962_v41, 0.0  ;;  %8106 = vmatmul.mubr.msk.bf16.vlgmr.msra.gmra.mrb[28].mxu0 %vm288_vm5, %v10551_v61  ;;  %v4970_v47 = vmul.f32 %v4967_v0, %v10420_v20 }
 0x2d0   : > { %v4966_v7 = vmax.f32 %v4963_v32, 0.0  ;;  %v5087_v19 = vpop.f32.mrb[180].mxu1  ;;  %8692 = vmatprep.mubr.msk.f32.mxu0 %vm8756_vm0, %v10962_v62  ;;  %vm7767_vm0 = vcmask 39936  }
 0x2d1   : > { %v4968_v60 = vmul.f32 %v4965_v43, %v10409_v3  ;;  %v8532_v42 = vpop.f32.mrb[181].mxu1  ;;  %v4972_v61 = vsel %vm1259_vm12, %v4970_v47, 0.0 }
 0x2d2   : > { %v4969_v26 = vmul.f32 %v4966_v7, %v10418_v33  ;;  %v5046_v31 = vpop.f32.mrb[180].mxu0  ;;  %v5090_v28 = vpop.f32.mrb[182].mxu1 }
 0x2d3   : > { %v5048_v9 = vpop.f32.mrb[181].mxu0  ;;  %v8533_v34 = vpop.f32.mrb[183].mxu1 }
 0x2d4   : > { %v5050_v53 = vpop.f32.mrb[182].mxu0  ;;  %v4971_v8 = vadd.f32 %v4969_v26, %v4968_v60 }
 0x2d5   : > { %v5051_v30 = vpop.f32.mrb[183].mxu0 }
 0x2d6   : > { %v4973_v36 = vadd.f32 %v4972_v61, %v4971_v8 }
 0x2d8   : > { %4974 = vadd.xlane.f32.xlu1 %v4973_v36  ;;  %v5177_v54 = vpop.f32.mrb[184].mxu1 }
 0x2d9   : > { %v5178_v62 = vadd.f32 %v5177_v54, %v5087_v19  ;;  %v8538_v4 = vpop.f32.mrb[185].mxu1 }
 0x2da   : > { %v5136_v38 = vpop.f32.mrb[184].mxu0  ;;  %v5180_v59 = vpop.f32.mrb[186].mxu1 }
 0x2db   : > { %v5137_v15 = vadd.f32 %v5136_v38, %v5046_v31  ;;  %v5138_v16 = vpop.f32.mrb[185].mxu0  ;;  %v8539_v18 = vpop.f32.mrb[187].mxu1 }
 0x2dc   : > { %v5139_v27 = vadd.f32 %v5138_v16, %v5048_v9  ;;  %v5140_v24 = vpop.f32.mrb[186].mxu0 }
 0x2dd   : > { %v5141_v11 = vpop.f32.mrb[187].mxu0 }
 0x2e0   : > { %v5275_v49 = vpop.f32.mrb[188].mxu1 }
 0x2e1   : > { %v5283_v17 = vadd.f32 %v5275_v49, %v5178_v62  ;;  %v8544_v37 = vpop.f32.mrb[189].mxu1 }
 0x2e2   : > { %v5234_v50 = vpop.f32.mrb[188].mxu0  ;;  %v5278_v48 = vpop.f32.mrb[190].mxu1 }
 0x2e3   : > { %v5281_v2 = vadd.f32 %v5234_v50, %v5137_v15  ;;  %v5236_v12 = vpop.f32.mrb[189].mxu0  ;;  %v8545_v58 = vpop.f32.mrb[191].mxu1 }
 0x2e4   : > { %v5282_v45 = vadd.f32 %v5236_v12, %v5139_v27  ;;  %v5238_v1 = vpop.f32.mrb[190].mxu0 }
 0x2e5   : > { %v5239_v14 = vpop.f32.mrb[191].mxu0 }
 0x2e8   : > { %v5376_v10 = vpop.f32.mrb[192].mxu1 }
 0x2e9   : > { %v5384_v22 = vadd.f32 %v5376_v10, %v5283_v17  ;;  %v8550_v25 = vpop.f32.mrb[193].mxu1 }
 0x2ea   : > { %v5335_v40 = vpop.f32.mrb[192].mxu0  ;;  %v5379_v13 = vpop.f32.mrb[194].mxu1 }
 0x2eb   : > { %v5382_v63 = vadd.f32 %v5335_v40, %v5281_v2  ;;  %v5337_v21 = vpop.f32.mrb[193].mxu0  ;;  %v8551_v52 = vpop.f32.mrb[195].mxu1 }
 0x2ec   : > { %v5383_v44 = vadd.f32 %v5337_v21, %v5282_v45  ;;  %v5339_v5 = vpop.f32.mrb[194].mxu0 }
 0x2ed   : > { %v5340_v29 = vpop.f32.mrb[195].mxu0 }
 0x2f0   : > { %v5477_v46 = vpop.f32.mrb[196].mxu1 }
 0x2f1   : > { %v5485_v39 = vadd.f32 %v5477_v46, %v5384_v22  ;;  %v8556_v6 = vpop.f32.mrb[197].mxu1 }
 0x2f2   : > { %v5436_v57 = vpop.f32.mrb[196].mxu0  ;;  %v5480_v56 = vpop.f32.mrb[198].mxu1 }
 0x2f3   : > { %v5483_v35 = vadd.f32 %v5436_v57, %v5382_v63  ;;  %v5438_v55 = vpop.f32.mrb[197].mxu0  ;;  %v8557_v0 = vpop.f32.mrb[199].mxu1 }
 0x2f4   : > { %v5484_v41 = vadd.f32 %v5438_v55, %v5383_v44  ;;  %v5440_v23 = vpop.f32.mrb[198].mxu0 }
 0x2f5   : > { %v5441_v32 = vpop.f32.mrb[199].mxu0 }
 0x2f8   : > { %v5578_v43 = vpop.f32.mrb[200].mxu1 }
 0x2f9   : > { %v5586_v7 = vadd.f32 %v5578_v43, %v5485_v39  ;;  %v8562_v19 = vpop.f32.mrb[201].mxu1 }
 0x2fa   : > { %v5537_v47 = vpop.f32.mrb[200].mxu0  ;;  %v5581_v60 = vpop.f32.mrb[202].mxu1 }
 0x2fb   : > { %v5584_v42 = vadd.f32 %v5537_v47, %v5483_v35  ;;  %v5539_v26 = vpop.f32.mrb[201].mxu0  ;;  %v8563_v31 = vpop.f32.mrb[203].mxu1 }
 0x2fc   : > { %v5585_v28 = vadd.f32 %v5539_v26, %v5484_v41  ;;  %v5541_v9 = vpop.f32.mrb[202].mxu0 }
 0x2fd   : > { %v5542_v34 = vpop.f32.mrb[203].mxu0 }
 0x300   : > { %v5679_v53 = vpop.f32.mrb[204].mxu1 }
 0x301   : > { %v5687_v8 = vadd.f32 %v5679_v53, %v5586_v7  ;;  %v8568_v30 = vpop.f32.mrb[205].mxu1 }
 0x302   : > { %v5638_v61 = vpop.f32.mrb[204].mxu0  ;;  %v5682_v36 = vpop.f32.mrb[206].mxu1 }
 0x303   : > { %v5685_v54 = vadd.f32 %v5638_v61, %v5584_v42  ;;  %v5640_v62 = vpop.f32.mrb[205].mxu0  ;;  %v8569_v4 = vpop.f32.mrb[207].mxu1 }
 0x304   : > { %v5686_v38 = vadd.f32 %v5640_v62, %v5585_v28  ;;  %v5642_v59 = vpop.f32.mrb[206].mxu0 }
 0x305   : > { %v5643_v15 = vpop.f32.mrb[207].mxu0 }
 0x308   : > { %v5780_v16 = vpop.f32.mrb[208].mxu1 }
 0x309   : > { %v5788_v18 = vadd.f32 %v5780_v16, %v5687_v8  ;;  %v8574_v27 = vpop.f32.mrb[209].mxu1 }
 0x30a   : > { %v5739_v24 = vpop.f32.mrb[208].mxu0  ;;  %v5783_v11 = vpop.f32.mrb[210].mxu1 }
 0x30b   : > { %v5786_v49 = vadd.f32 %v5739_v24, %v5685_v54  ;;  %v5741_v17 = vpop.f32.mrb[209].mxu0  ;;  %v8575_v37 = vpop.f32.mrb[211].mxu1 }
 0x30c   : > { %v5787_v50 = vadd.f32 %v5741_v17, %v5686_v38  ;;  %v5743_v48 = vpop.f32.mrb[210].mxu0 }
 0x30d   : > { %v5744_v2 = vpop.f32.mrb[211].mxu0 }
 0x310   : > { %v5881_v12 = vpop.f32.mrb[212].mxu1 }
 0x311   : > { %v5889_v58 = vadd.f32 %v5881_v12, %v5788_v18  ;;  %v8580_v45 = vpop.f32.mrb[213].mxu1 }
 0x312   : > { %v5840_v1 = vpop.f32.mrb[212].mxu0  ;;  %v5884_v14 = vpop.f32.mrb[214].mxu1 }
 0x313   : > { %v5892_v10 = vadd.f32 %v5889_v58, %v10415_v51  ;;  %v5887_v22 = vadd.f32 %v5840_v1, %v5786_v49  ;;  %v5842_v25 = vpop.f32.mrb[213].mxu0  ;;  %v8581_v40 = vpop.f32.mrb[215].mxu1 }
 0x314   : > { %v5888_v13 = vadd.f32 %v5842_v25, %v5787_v50  ;;  %v5844_v63 = vpop.f32.mrb[214].mxu0 }
 0x315   : > { %v5895_v21 = vmax.f32 %v5892_v10, 0.0  ;;  %v5890_v52 = vadd.f32 %v5887_v22, %v10415_v51  ;;  %v5845_v44 = vpop.f32.mrb[215].mxu0 }
 0x316   : > { %v5891_v5 = vadd.f32 %v5888_v13, %v10415_v51 }
 0x317   : > { %v5893_v29 = vmax.f32 %v5890_v52, 0.0  ;;  %v5898_v6 = vmul.f32 %v5895_v21, %v10420_v20 }
 0x318   : > { %v5894_v46 = vmax.f32 %v5891_v5, 0.0  ;;  %v6015_v39 = vpop.f32.mrb[216].mxu1 }
 0x319   : > { %v5896_v57 = vmul.f32 %v5893_v29, %v10409_v3  ;;  %v8586_v56 = vpop.f32.mrb[217].mxu1  ;;  %v5900_v19 = vsel %vm1259_vm12, %v5898_v6, 0.0 }
 0x31a   : > { %v5897_v35 = vmul.f32 %v5894_v46, %v10418_v33  ;;  %v5974_v55 = vpop.f32.mrb[216].mxu0  ;;  %v6018_v0 = vpop.f32.mrb[218].mxu1 }
 0x31b   : > { %v5976_v41 = vpop.f32.mrb[217].mxu0  ;;  %v8587_v23 = vpop.f32.mrb[219].mxu1 }
 0x31c   : > { %v5978_v32 = vpop.f32.mrb[218].mxu0  ;;  %v5899_v43 = vadd.f32 %v5897_v35, %v5896_v57 }
 0x31d   : > { %v5979_v7 = vpop.f32.mrb[219].mxu0 }
 0x31e   : > { %v5901_v47 = vadd.f32 %v5900_v19, %v5899_v43 }
 0x320   : > { %5902 = vadd.xlane.f32.xlu0 %v5901_v47  ;;  %v6105_v60 = vpop.f32.mrb[220].mxu1 }
 0x321   : > { %v6106_v42 = vadd.f32 %v6105_v60, %v6015_v39  ;;  %v8592_v26 = vpop.f32.mrb[221].mxu1 }
 0x322   : > { %v6064_v31 = vpop.f32.mrb[220].mxu0  ;;  %v6108_v28 = vpop.f32.mrb[222].mxu1 }
 0x323   : > { %v6065_v9 = vadd.f32 %v6064_v31, %v5974_v55  ;;  %v6066_v34 = vpop.f32.mrb[221].mxu0  ;;  %v8593_v53 = vpop.f32.mrb[223].mxu1 }
 0x324   : > { %v6067_v8 = vadd.f32 %v6066_v34, %v5976_v41  ;;  %v6068_v30 = vpop.f32.mrb[222].mxu0 }
 0x325   : > { %v6069_v61 = vpop.f32.mrb[223].mxu0 }
 0x328   : > { %v6203_v36 = vpop.f32.mrb[224].mxu1 }
 0x329   : > { %v6211_v54 = vadd.f32 %v6203_v36, %v6106_v42  ;;  %v8598_v62 = vpop.f32.mrb[225].mxu1 }
 0x32a   : > { %v6162_v4 = vpop.f32.mrb[224].mxu0  ;;  %v6206_v38 = vpop.f32.mrb[226].mxu1 }
 0x32b   : > { %v6209_v59 = vadd.f32 %v6162_v4, %v6065_v9  ;;  %v6164_v15 = vpop.f32.mrb[225].mxu0  ;;  %v8599_v16 = vpop.f32.mrb[227].mxu1 }
 0x32c   : > { %v6210_v18 = vadd.f32 %v6164_v15, %v6067_v8  ;;  %v6166_v27 = vpop.f32.mrb[226].mxu0 }
 0x32d   : > { %v6167_v24 = vpop.f32.mrb[227].mxu0 }
 0x330   : > { %v6304_v11 = vpop.f32.mrb[228].mxu1 }
 0x331   : > { %v6312_v49 = vadd.f32 %v6304_v11, %v6211_v54  ;;  %v8604_v17 = vpop.f32.mrb[229].mxu1 }
 0x332   : > { %v6263_v37 = vpop.f32.mrb[228].mxu0  ;;  %v6307_v50 = vpop.f32.mrb[230].mxu1 }
 0x333   : > { %v6310_v48 = vadd.f32 %v6263_v37, %v6209_v59  ;;  %v6265_v2 = vpop.f32.mrb[229].mxu0  ;;  %v8605_v12 = vpop.f32.mrb[231].mxu1 }
 0x334   : > { %v6311_v58 = vadd.f32 %v6265_v2, %v6210_v18  ;;  %v6267_v45 = vpop.f32.mrb[230].mxu0 }
 0x335   : > { %v6268_v1 = vpop.f32.mrb[231].mxu0 }
 0x338   : > { %v6405_v14 = vpop.f32.mrb[232].mxu1 }
 0x339   : > { %v6413_v10 = vadd.f32 %v6405_v14, %v6312_v49  ;;  %v8610_v22 = vpop.f32.mrb[233].mxu1 }
 0x33a   : > { %v6364_v25 = vpop.f32.mrb[232].mxu0  ;;  %v6408_v40 = vpop.f32.mrb[234].mxu1 }
 0x33b   : > { %v6411_v13 = vadd.f32 %v6364_v25, %v6310_v48  ;;  %v6366_v63 = vpop.f32.mrb[233].mxu0  ;;  %v8611_v21 = vpop.f32.mrb[235].mxu1 }
 0x33c   : > { %v6412_v52 = vadd.f32 %v6366_v63, %v6311_v58  ;;  %v6368_v44 = vpop.f32.mrb[234].mxu0 }
 0x33d   : > { %v6369_v5 = vpop.f32.mrb[235].mxu0 }
 0x340   : > { %v6506_v29 = vpop.f32.mrb[236].mxu1 }
 0x341   : > { %v6514_v46 = vadd.f32 %v6506_v29, %v6413_v10  ;;  %v8616_v39 = vpop.f32.mrb[237].mxu1 }
 0x342   : > { %v6465_v6 = vpop.f32.mrb[236].mxu0  ;;  %v6509_v57 = vpop.f32.mrb[238].mxu1 }
 0x343   : > { %v6512_v56 = vadd.f32 %v6465_v6, %v6411_v13  ;;  %v6467_v35 = vpop.f32.mrb[237].mxu0  ;;  %v8617_v55 = vpop.f32.mrb[239].mxu1 }
 0x344   : > { %v6513_v0 = vadd.f32 %v6467_v35, %v6412_v52  ;;  %v6469_v41 = vpop.f32.mrb[238].mxu0 }
 0x345   : > { %v6470_v23 = vpop.f32.mrb[239].mxu0 }
 0x348   : > { %v6607_v32 = vpop.f32.mrb[240].mxu1 }
 0x349   : > { %v6615_v43 = vadd.f32 %v6607_v32, %v6514_v46  ;;  %v8622_v7 = vpop.f32.mrb[241].mxu1 }
 0x34a   : > { %v6566_v19 = vpop.f32.mrb[240].mxu0  ;;  %v6610_v47 = vpop.f32.mrb[242].mxu1 }
 0x34b   : > { %v6613_v60 = vadd.f32 %v6566_v19, %v6512_v56  ;;  %v6568_v42 = vpop.f32.mrb[241].mxu0  ;;  %v8623_v26 = vpop.f32.mrb[243].mxu1 }
 0x34c   : > { %v6614_v31 = vadd.f32 %v6568_v42, %v6513_v0  ;;  %v6570_v28 = vpop.f32.mrb[242].mxu0 }
 0x34d   : > { %v6571_v9 = vpop.f32.mrb[243].mxu0 }
 0x350   : > { %v6708_v34 = vpop.f32.mrb[244].mxu1 }
 0x351   : > { %v6716_v53 = vadd.f32 %v6708_v34, %v6615_v43  ;;  %v8628_v8 = vpop.f32.mrb[245].mxu1 }
 0x352   : > { %v6667_v30 = vpop.f32.mrb[244].mxu0  ;;  %v6711_v61 = vpop.f32.mrb[246].mxu1 }
 0x353   : > { %v6714_v36 = vadd.f32 %v6667_v30, %v6613_v60  ;;  %v6669_v54 = vpop.f32.mrb[245].mxu0  ;;  %v8629_v62 = vpop.f32.mrb[247].mxu1 }
 0x354   : > { %v6715_v4 = vadd.f32 %v6669_v54, %v6614_v31  ;;  %v6671_v38 = vpop.f32.mrb[246].mxu0 }
 0x355   : > { %v6672_v59 = vpop.f32.mrb[247].mxu0 }
 0x358   : > { %v6809_v15 = vpop.f32.mrb[248].mxu1 }
 0x359   : > { %v6817_v16 = vadd.f32 %v6809_v15, %v6716_v53  ;;  %v8634_v18 = vpop.f32.mrb[249].mxu1 }
 0x35a   : > { %v6768_v27 = vpop.f32.mrb[248].mxu0  ;;  %v6812_v24 = vpop.f32.mrb[250].mxu1 }
 0x35b   : > { %v6820_v11 = vadd.f32 %v6817_v16, %v10415_v51  ;;  %v6815_v49 = vadd.f32 %v6768_v27, %v6714_v36  ;;  %v6770_v17 = vpop.f32.mrb[249].mxu0  ;;  %v8635_v37 = vpop.f32.mrb[251].mxu1 }
 0x35c   : > { %v6816_v50 = vadd.f32 %v6770_v17, %v6715_v4  ;;  %v6772_v48 = vpop.f32.mrb[250].mxu0 }
 0x35d   : > { %v6823_v2 = vmax.f32 %v6820_v11, 0.0  ;;  %v6818_v12 = vadd.f32 %v6815_v49, %v10415_v51  ;;  %v6773_v58 = vpop.f32.mrb[251].mxu0 }
 0x35e   : > { %v6819_v45 = vadd.f32 %v6816_v50, %v10415_v51 }
 0x35f   : > { %v6821_v1 = vmax.f32 %v6818_v12, 0.0  ;;  %v6826_v22 = vmul.f32 %v6823_v2, %v10420_v20 }
 0x360   : > { %v6822_v14 = vmax.f32 %v6819_v45, 0.0  ;;  %v6943_v10 = vpop.f32.mrb[252].mxu1 }
 0x361   : > { %v6824_v25 = vmul.f32 %v6821_v1, %v10409_v3  ;;  %v8640_v40 = vpop.f32.mrb[253].mxu1  ;;  %v6828_v39 = vsel %vm1259_vm12, %v6826_v22, 0.0 }
 0x362   : > { %v6825_v13 = vmul.f32 %v6822_v14, %v10418_v33  ;;  %v6902_v63 = vpop.f32.mrb[252].mxu0  ;;  %v6946_v21 = vpop.f32.mrb[254].mxu1 }
 0x363   : > { %v6904_v52 = vpop.f32.mrb[253].mxu0  ;;  %v8641_v44 = vpop.f32.mrb[255].mxu1 }
 0x364   : > { %v6906_v5 = vpop.f32.mrb[254].mxu0  ;;  %v6827_v29 = vadd.f32 %v6825_v13, %v6824_v25 }
 0x365   : > { %v6907_v46 = vpop.f32.mrb[255].mxu0 }
 0x366   : > { %v6829_v6 = vadd.f32 %v6828_v39, %v6827_v29 }
 0x368   : > { %6830 = vadd.xlane.f32.xlu1 %v6829_v6  ;;  %v7033_v57 = vpop.f32.mrb[0].mxu1 }
 0x369   : > { %v7034_v56 = vadd.f32 %v7033_v57, %v6943_v10  ;;  %v8646_v35 = vpop.f32.mrb[1].mxu1 }
 0x36a   : > { %v6992_v55 = vpop.f32.mrb[0].mxu0  ;;  %v7036_v0 = vpop.f32.mrb[2].mxu1 }
 0x36b   : > { %v6993_v41 = vadd.f32 %v6992_v55, %v6902_v63  ;;  %v6994_v23 = vpop.f32.mrb[1].mxu0  ;;  %v8647_v32 = vpop.f32.mrb[3].mxu1 }
 0x36c   : > { %v6995_v43 = vadd.f32 %v6994_v23, %v6904_v52  ;;  %v6996_v7 = vpop.f32.mrb[2].mxu0 }
 0x36d   : > { %v6997_v19 = vpop.f32.mrb[3].mxu0 }
 0x370   : > { %v7131_v47 = vpop.f32.mrb[4].mxu1 }
 0x371   : > { %v7139_v60 = vadd.f32 %v7131_v47, %v7034_v56  ;;  %v8652_v42 = vpop.f32.mrb[5].mxu1 }
 0x372   : > { %v7090_v26 = vpop.f32.mrb[4].mxu0  ;;  %v7134_v31 = vpop.f32.mrb[6].mxu1 }
 0x373   : > { %v7137_v28 = vadd.f32 %v7090_v26, %v6993_v41  ;;  %v7092_v9 = vpop.f32.mrb[5].mxu0  ;;  %v8653_v34 = vpop.f32.mrb[7].mxu1 }
 0x374   : > { %v7138_v53 = vadd.f32 %v7092_v9, %v6995_v43  ;;  %v7094_v8 = vpop.f32.mrb[6].mxu0 }
 0x375   : > { %v7095_v30 = vpop.f32.mrb[7].mxu0 }
 0x378   : > { %v7232_v61 = vpop.f32.mrb[8].mxu1 }
 0x379   : > { %v7240_v36 = vadd.f32 %v7232_v61, %v7139_v60  ;;  %v8658_v54 = vpop.f32.mrb[9].mxu1 }
 0x37a   : > { %v7191_v62 = vpop.f32.mrb[8].mxu0  ;;  %v7235_v4 = vpop.f32.mrb[10].mxu1 }
 0x37b   : > { %v7238_v38 = vadd.f32 %v7191_v62, %v7137_v28  ;;  %v7193_v59 = vpop.f32.mrb[9].mxu0  ;;  %v8659_v15 = vpop.f32.mrb[11].mxu1 }
 0x37c   : > { %v7239_v16 = vadd.f32 %v7193_v59, %v7138_v53  ;;  %v7195_v18 = vpop.f32.mrb[10].mxu0 }
 0x37d   : > { %v7196_v27 = vpop.f32.mrb[11].mxu0 }
 0x380   : > { %v7333_v24 = vpop.f32.mrb[12].mxu1 }
 0x381   : > { %v7341_v11 = vadd.f32 %v7333_v24, %v7240_v36  ;;  %v8664_v49 = vpop.f32.mrb[13].mxu1 }
 0x382   : > { %v7292_v17 = vpop.f32.mrb[12].mxu0  ;;  %v7336_v37 = vpop.f32.mrb[14].mxu1 }
 0x383   : > { %v7339_v50 = vadd.f32 %v7292_v17, %v7238_v38  ;;  %v7294_v48 = vpop.f32.mrb[13].mxu0  ;;  %v8665_v2 = vpop.f32.mrb[15].mxu1 }
 0x384   : > { %v7340_v12 = vadd.f32 %v7294_v48, %v7239_v16  ;;  %v7296_v58 = vpop.f32.mrb[14].mxu0  ;;  %v7805_v2 = vld [vmem:[%s10945_s4] sm:$0xff] }
 0x385   : > { %v7297_v45 = vpop.f32.mrb[15].mxu0  ;;  %8691 = vmatpush3.msra.mxu0 %v7805_v2 }
 0x388   : > { %v7434_v1 = vpop.f32.mrb[16].mxu1 }
 0x389   : > { %v7442_v14 = vadd.f32 %v7434_v1, %v7341_v11  ;;  %v8670_v10 = vpop.f32.mrb[17].mxu1 }
 0x38a   : > { %v7393_v22 = vpop.f32.mrb[16].mxu0  ;;  %v7437_v25 = vpop.f32.mrb[18].mxu1 }
 0x38b   : > { %v7440_v40 = vadd.f32 %v7393_v22, %v7339_v50  ;;  %v7395_v13 = vpop.f32.mrb[17].mxu0  ;;  %v8671_v63 = vpop.f32.mrb[19].mxu1 }
 0x38c   : > { %v7441_v21 = vadd.f32 %v7395_v13, %v7340_v12  ;;  %v7397_v52 = vpop.f32.mrb[18].mxu0  ;;  %v1263_v12 = vpop.xlane.xlu1 %1262 }
 0x38d   : > { %v7398_v44 = vpop.f32.mrb[19].mxu0  ;;  %v8108_v52 = vld [vmem:[%s10946_s5] ss:$0 sm:$0xff] }
 0x390   : > { %v7535_v5 = vpop.f32.mrb[20].mxu1  ;;  %v3119_v58 = vpop.xlane.xlu1 %3118 }
 0x391   : > { %v7543_v29 = vadd.f32 %v7535_v5, %v7442_v14  ;;  %v8676_v46 = vpop.f32.mrb[21].mxu1 }
 0x392   : > { %v7494_v39 = vpop.f32.mrb[20].mxu0  ;;  %v7538_v6 = vpop.f32.mrb[22].mxu1 }
 0x393   : > { %v7541_v57 = vadd.f32 %v7494_v39, %v7440_v40  ;;  %v7496_v56 = vpop.f32.mrb[21].mxu0  ;;  %v8677_v35 = vpop.f32.mrb[23].mxu1 }
 0x394   : > { %v7542_v55 = vadd.f32 %v7496_v56, %v7441_v21  ;;  %v7498_v0 = vpop.f32.mrb[22].mxu0 }
 0x395   : > { %v7499_v41 = vpop.f32.mrb[23].mxu0 }
 0x398   : > { %v7636_v23 = vpop.f32.mrb[24].mxu1 }
 0x399   : > { %v7644_v32 = vadd.f32 %v7636_v23, %v7543_v29  ;;  %v8682_v43 = vpop.f32.mrb[25].mxu1 }
 0x39a   : > { %v7595_v7 = vpop.f32.mrb[24].mxu0  ;;  %v7639_v19 = vpop.f32.mrb[26].mxu1 }
 0x39b   : > { %v7642_v47 = vadd.f32 %v7595_v7, %v7541_v57  ;;  %v7597_v60 = vpop.f32.mrb[25].mxu0  ;;  %v8683_v42 = vpop.f32.mrb[27].mxu1 }
 0x39c   : > { %v7643_v26 = vadd.f32 %v7597_v60, %v7542_v55  ;;  %v7599_v31 = vpop.f32.mrb[26].mxu0 }
 0x39d   : > { %v7600_v28 = vpop.f32.mrb[27].mxu0 }
 0x3a0   : > { %v7737_v9 = vpop.f32.mrb[28].mxu1 }
 0x3a1   : > { %v7745_v34 = vadd.f32 %v7737_v9, %v7644_v32  ;;  %v8688_v53 = vpop.f32.mrb[29].mxu1 }
 0x3a2   : > { %v7696_v8 = vpop.f32.mrb[28].mxu0  ;;  %v7740_v30 = vpop.f32.mrb[30].mxu1 }
 0x3a3   : > { %v7748_v61 = vadd.f32 %v7745_v34, %v10415_v51  ;;  %v7743_v36 = vadd.f32 %v7696_v8, %v7642_v47  ;;  %v7698_v54 = vpop.f32.mrb[29].mxu0  ;;  %v8689_v62 = vpop.f32.mrb[31].mxu1 }
 0x3a4   : > { %v7744_v4 = vadd.f32 %v7698_v54, %v7643_v26  ;;  %v7700_v38 = vpop.f32.mrb[30].mxu0 }
 0x3a5   : > { %v7751_v59 = vmax.f32 %v7748_v61, 0.0  ;;  %v7746_v15 = vadd.f32 %v7743_v36, %v10415_v51  ;;  %v7701_v16 = vpop.f32.mrb[31].mxu0 }
 0x3a6   : > { %v7747_v18 = vadd.f32 %v7744_v4, %v10415_v51  ;;  %v2191_v51 = vpop.xlane.xlu0 %2190 }
 0x3a7   : > { %v7749_v27 = vmax.f32 %v7746_v15, 0.0  ;;  %v7754_v11 = vmul.f32 %v7751_v59, %v10420_v20  ;;  %v4975_v20 = vpop.xlane.xlu1 %4974 }
 0x3a8   : > { %v7750_v24 = vmax.f32 %v7747_v18, 0.0 }
 0x3a9   : > { %v7752_v49 = vmul.f32 %v7749_v27, %v10409_v3  ;;  %v7756_v50 = vsel %vm1259_vm12, %v7754_v11, 0.0  ;;  %v7761_v3 = vsel %vm7760_vm13, %v1263_v12, %v2191_v51 }
 0x3aa   : > { %v7753_v17 = vmul.f32 %v7750_v24, %v10418_v33  ;;  %v4047_v45 = vpop.xlane.xlu0 %4046  ;;  %v7763_v33 = vsel %vm7762_vm14, %v7761_v3, %v3119_v58 }
 0x3ab   : > { %v7764_v14 = vsel %vm288_vm5, %v7763_v33, %v4047_v45 }
 0x3ac   : > { %v7755_v37 = vadd.f32 %v7753_v17, %v7752_v49  ;;  %v7766_v22 = vsel %vm7765_vm15, %v7764_v14, %v4975_v20 }
 0x3ae   : > { %v7757_v48 = vadd.f32 %v7756_v50, %v7755_v37  ;;  %v5903_v1 = vpop.xlane.xlu0 %5902 }
 0x3af   : > { %v7768_v25 = vsel %vm7767_vm0, %v7766_v22, %v5903_v1 }
 0x3b0   : > { %7758 = vadd.xlane.f32.xlu0 %v7757_v48 }
 0x3f5   : > { %v6831_v10 = vpop.xlane.xlu1 %6830 }
 0x3f6   : > { %v7770_v40 = vsel %vm7769_vm1, %v7768_v25, %v6831_v10 }
 0x43d   : > { %v7759_v13 = vpop.xlane.xlu0 %7758 }
 0x43e   : > { %v7772_v63 = vsel %vm7771_vm2, %v7770_v40, %v7759_v13 }
 0x43f   : > { %7773 = vxpose.xlu1.b32.start.end [1/1] (short) (narrow) %v7772_v63, 8 }
 0x4bf   : > { %v7789_v21 = vpop.trf.xlu1 }
 0x4c0   : > { %8693 = vmatmul.mubr.msk.f32.vlgmr.msra.gmra.mrb[32].mxu0 %vm7813_vm3, %v7789_v21 }
 0x593   : > { %v7883_v44 = vpop.f32.mrb[32].mxu0 }
 0x594   : > { %v7884_v5 = vadd.f32 %v8108_v52, %v7883_v44  ;;  %v8694_v29 = vpop.f32.mrb[33].mxu0 }
 0x596   : > { %7887 = vst [vmem:[%s254_s25] sm:$0xff] %v7884_v5 }
 0x597 PF: > { %s16_s21 = sadd.s32 1, %s8752_s21  }
 0x598   : > { %p13_p5 = scmp.ge.s32.totalorder %s16_s21, 5  }
 0x59a   :  { %15 = sbr.rel (!%p13_p5) target bundleno = 1 (0x1), region = 89 }

</bundles_post_ra>
